<compile_context>
chip_gen: v7x
topology: tpu7x:2x2x1
jax: 0.10.0
libtpu: 0.0.40
codegen_flags: <defaults>
</compile_context>

<pallas_src>
import functools

import jax
import jax.numpy as jnp
from jax.experimental import pallas as pl
from jax.experimental.pallas import tpu as pltpu

C_IN = 512     # channels of the input feature map (hard-coded in the module)
C_MID = 256    # 1x1 conv output channels
HID = 32       # channel-attention hidden size
BN_EPS = 1e-5


# ----------------------------------------------------------------------------
# Pallas kernel: grid = (num_head, n_ct); one head per axis-0 step, the fused
# 3x3 conv's 512 output channels optionally tiled along axis 1 (accumulator).
# ----------------------------------------------------------------------------
def _head_kernel(W, HW, B, n_ct,
                 mask_ref, x_ref, w1_ref, b1_ref, w3_ref, b3_ref,
                 wl1_ref, bl1_ref, wl2_ref, bl2_ref, out_ref,
                 stack_scr, s_scr):
    c = pl.program_id(1)
    N = x_ref.shape[0]

    # ---- once per head: 1x1 conv (+BN) and the masked/rolled 9-tap stack ----
    @pl.when(c == 0)
    def _():
        x = x_ref[...]                                                      # (N, 512) bf16
        y1 = jnp.dot(x, w1_ref[0],
                     preferred_element_type=jnp.float32) + b1_ref[0]        # (N, 256) f32
        k = 0
        for dh in (-1, 0, 1):
            for dw in (-1, 0, 1):
                off = dh * W + dw
                # circular sublane roll (XLU); the border mask zeroes every wrapped /
                # out-of-image row, so this is equivalent to the zero-padded conv taps.
                tap = y1 if off == 0 else pltpu.roll(y1, shift=(-off) % N, axis=0)
                stack_scr[:, k * C_MID:(k + 1) * C_MID] = (
                    tap.astype(jnp.bfloat16) * mask_ref[:, k:k + 1])        # bf16 multiply
                k += 1
        s_scr[...] = jnp.zeros_like(s_scr)

    # ---- per output-channel tile: fused {3x3,1x3,3x1} conv -> ReLU -> lane-dense accumulate ----
    z = jnp.dot(stack_scr[...], w3_ref[0],
                preferred_element_type=jnp.float32) + b3_ref[0]             # (N, ct) f32
    z = jnp.maximum(z, 0.0)
    ct = z.shape[-1]                                                        # static, multiple of 128
    acc = s_scr[...]                                                        # (N, 128) f32
    for g in range(ct // 128):
        acc = acc + z[:, g * 128:(g + 1) * 128]
    s_scr[...] = acc

    # ---- once per head (last tile): spatial-attn output, GAP, channel attention ----
    @pl.when(c == n_ct - 1)
    def _():
        s = jnp.sum(s_scr[...], axis=-1, keepdims=True)                     # single XLU reduce (N,1)
        sa = x_ref[...].astype(jnp.float32) * s                             # (N, 512) f32
        # global average pool over H*W per batch element (no pool-selector matmul)
        if HW % 8 == 0:
            gap = jnp.sum(sa.reshape(B, HW, C_IN), axis=1) * (1.0 / HW)     # (B, 512) f32
        else:
            gap = jnp.concatenate(
                [jnp.sum(sa[b * HW:(b + 1) * HW, :], axis=0, keepdims=True)
                 for b in range(B)], axis=0) * (1.0 / HW)
        t = jnp.dot(gap.astype(jnp.bfloat16), wl1_ref[0],
                    preferred_element_type=jnp.float32) + bl1_ref[0]        # (B, 32)
        t = jnp.maximum(t, 0.0)                                             # ReLU (BN1d folded)
        u = jnp.dot(t.astype(jnp.bfloat16), wl2_ref[0],
                    preferred_element_type=jnp.float32) + bl2_ref[0]        # (B, 512)
        u = jax.nn.sigmoid(u)
        out_ref[0] = gap * u                                                # (B, 512) f32


# ----------------------------------------------------------------------------
# Wrapper
# ----------------------------------------------------------------------------
def dan_forward(x_nhwc, params, *, ct=None):
    """x_nhwc: (B, H, W, 512) float32.  Returns (x, heads) with heads (B, num_head, 512)."""
    B, H, W, C = x_nhwc.shape
    assert C == C_IN
    HW = H * W
    N = B * HW
    num_head = params["w1"].shape[0]

    if ct is None:
        ct = C_IN      # full output width by default: grid overhead dominates at realistic N
    assert C_IN % ct == 0 and ct % 128 == 0
    n_ct = C_IN // ct

    x_flat = x_nhwc.reshape(N, C).astype(jnp.bfloat16)

    # head-invariant border mask for the 9 conv taps: (N, 9) bf16 (0/1 exact in bf16)
    r = jnp.arange(N)
    ii = (r % HW) // W
    jj = r % W
    cols = []
    for dh in (-1, 0, 1):
        for dw in (-1, 0, 1):
            cols.append((ii + dh >= 0) & (ii + dh < H) & (jj + dw >= 0) & (jj + dw < W))
    mask = jnp.stack(cols, axis=1).astype(jnp.bfloat16)                     # (N, 9)

    kernel = functools.partial(_head_kernel, W, HW, B, n_ct)

    heads_hbc = pl.pallas_call(
        kernel,
        out_shape=jax.ShapeDtypeStruct((num_head, B, C_IN), jnp.float32),
        grid_spec=pltpu.PrefetchScalarGridSpec(
            num_scalar_prefetch=0,
            grid=(num_head, n_ct),
            in_specs=[
                pl.BlockSpec((N, 9), lambda h, c: (0, 0)),                   # tap mask (shared)
                pl.BlockSpec((N, C_IN), lambda h, c: (0, 0)),                # x (shared)
                pl.BlockSpec((1, C_IN, C_MID), lambda h, c: (h, 0, 0)),      # w1  (1x1 conv + BN)
                pl.BlockSpec((1, 1, C_MID), lambda h, c: (h, 0, 0)),         # b1
                pl.BlockSpec((1, 9 * C_MID, ct), lambda h, c: (h, 0, c)),    # fused 3x3 weights
                pl.BlockSpec((1, 1, ct), lambda h, c: (h, 0, c)),            # fused 3x3 bias
                pl.BlockSpec((1, C_IN, HID), lambda h, c: (h, 0, 0)),        # linear1 (+BN1d)
                pl.BlockSpec((1, 1, HID), lambda h, c: (h, 0, 0)),
                pl.BlockSpec((1, HID, C_IN), lambda h, c: (h, 0, 0)),        # linear2
                pl.BlockSpec((1, 1, C_IN), lambda h, c: (h, 0, 0)),
            ],
            out_specs=pl.BlockSpec((1, B, C_IN), lambda h, c: (h, 0, 0)),
            scratch_shapes=[
                pltpu.VMEM((N, 9 * C_MID), jnp.bfloat16),                    # fused-tap stack
                pltpu.VMEM((N, 128), jnp.float32),                           # lane-dense channel-sum acc
            ],
        ),
        compiler_params=pltpu.CompilerParams(
            dimension_semantics=("parallel", "arbitrary"),
            vmem_limit_bytes=32 * 1024 * 1024,
        ),
    )(mask, x_flat,
      params["w1"], params["b1"], params["w3"], params["b3"],
      params["wl1"], params["bl1"], params["wl2"], params["bl2"])

    # torch.stack(heads).permute([1, 0, 2])  ->  (B, num_head, 512); tiny transpose outside
    heads = jnp.transpose(heads_hbc, (1, 0, 2))
    return x_nhwc, heads


# ----------------------------------------------------------------------------
# Deterministic parameter construction (module's init scheme, BN folded, eval mode)
# ----------------------------------------------------------------------------
def _fold_bn(w, b, gamma, beta, mean, var, eps=BN_EPS):
    scale = gamma / jnp.sqrt(var + eps)          # broadcasts over the out-channel (last) dim
    return w * scale, (b - mean) * scale + beta


def _bn_default(c):
    # init_weights: BN weight = 1, bias = 0; running stats at defaults (mean 0, var 1)
    return (jnp.ones((c,), jnp.float32), jnp.zeros((c,), jnp.float32),
            jnp.zeros((c,), jnp.float32), jnp.ones((c,), jnp.float32))


def init_params(key, num_head):
    ks = jax.random.split(key, 6)

    def kaiming_out(k, shape, fan_out):
        return jax.random.normal(k, shape, jnp.float32) * jnp.sqrt(2.0 / fan_out)

    # conv weights in (head, kh, kw, c_in, c_out) / (head, c_in, c_out); biases start at 0
    w1 = kaiming_out(ks[0], (num_head, C_IN, C_MID), C_MID * 1 * 1)
    w33 = kaiming_out(ks[1], (num_head, 3, 3, C_MID, C_IN), C_IN * 9)
    w13 = kaiming_out(ks[2], (num_head, 1, 3, C_MID, C_IN), C_IN * 3)
    w31 = kaiming_out(ks[3], (num_head, 3, 1, C_MID, C_IN), C_IN * 3)

    wl1 = jax.random.normal(ks[4], (num_head, C_IN, HID), jnp.float32) * 1e-3
    wl2 = jax.random.normal(ks[5], (num_head, HID, C_IN), jnp.float32) * 1e-3
    bl2 = jnp.zeros((num_head, 1, C_IN), jnp.float32)

    zero_b = lambda c: jnp.zeros((num_head, 1, c), jnp.float32)

    # fold BatchNorm2d(256) into the 1x1 conv
    w1f, b1f = _fold_bn(w1, zero_b(C_MID), *_bn_default(C_MID))

    # fold each BatchNorm2d(512) into its conv, then merge 1x3 / 3x1 into the 3x3 kernel
    w33f, b33f = _fold_bn(w33, zero_b(C_IN), *_bn_default(C_IN))
    w13f, b13f = _fold_bn(w13, zero_b(C_IN), *_bn_default(C_IN))
    w31f, b31f = _fold_bn(w31, zero_b(C_IN), *_bn_default(C_IN))

    w3 = w33f
    w3 = w3.at[:, 1, :, :, :].add(w13f[:, 0])        # 1x3, padding (0,1) -> middle row
    w3 = w3.at[:, :, 1, :, :].add(w31f[:, :, 0])     # 3x1, padding (1,0) -> middle column
    # fused-matmul layout: rows k-major (k = (dh+1)*3 + (dw+1)), c_mid-minor -> K = 9*256 = 2304
    w3 = w3.reshape(num_head, 9 * C_MID, C_IN)
    b3 = b33f + b13f + b31f

    # fold BatchNorm1d(32) into linear1
    wl1f, bl1f = _fold_bn(wl1, zero_b(HID), *_bn_default(HID))

    # weights in bf16 (f32 MXU accumulation in-kernel); biases kept in f32
    return dict(w1=w1f.astype(jnp.bfloat16), b1=b1f,
                w3=w3.astype(jnp.bfloat16), b3=b3,
                wl1=wl1f.astype(jnp.bfloat16), bl1=bl1f,
                wl2=wl2.astype(jnp.bfloat16), bl2=bl2)


if __name__ == "__main__":
    key = jax.random.PRNGKey(0)
    kx, kp = jax.random.split(key)

    B, H, W = 2, 8, 8          # small spatial map; channels fixed at 512 by the module
    num_head = 2

    # PyTorch reference input would be NCHW (B, 512, H, W); we build it channels-last.
    x = jax.random.normal(kx, (B, H, W, C_IN), jnp.float32)
    params = init_params(kp, num_head)

    x_out, heads = dan_forward(x, params)
    jax.block_until_ready(heads)

    assert x_out.shape == (B, H, W, C_IN)
    assert heads.shape == (B, num_head, C_IN)
    print("KERNEL_OK")
</pallas_src>

<mosaic_0001>
module attributes {stable_mosaic.version = 11 : i64} {
  func.func @_head_kernel(%arg0: i32, %arg1: i32, %arg2: memref<128x9xbf16, #tpu.memory_space<vmem>>, %arg3: memref<128x512xbf16, #tpu.memory_space<vmem>>, %arg4: memref<1x512x256xbf16, #tpu.memory_space<vmem>>, %arg5: memref<1x1x256xf32, #tpu.memory_space<vmem>>, %arg6: memref<1x2304x512xbf16, #tpu.memory_space<vmem>>, %arg7: memref<1x1x512xf32, #tpu.memory_space<vmem>>, %arg8: memref<1x512x32xbf16, #tpu.memory_space<vmem>>, %arg9: memref<1x1x32xf32, #tpu.memory_space<vmem>>, %arg10: memref<1x32x512xbf16, #tpu.memory_space<vmem>>, %arg11: memref<1x1x512xf32, #tpu.memory_space<vmem>>, %arg12: memref<1x2x512xf32, #tpu.memory_space<vmem>>, %arg13: memref<128x2304xbf16, #tpu.memory_space<vmem>>, %arg14: memref<128x128xf32, #tpu.memory_space<vmem>>) attributes {dimension_semantics = [#tpu.dimension_semantics<parallel>, #tpu.dimension_semantics<arbitrary>], iteration_bounds = array<i64: 2, 1>, scalar_prefetch = 0 : i64, scratch_operands = 2 : i64, tpu.core_type = #tpu.core_type<tc>, window_params = [{pipeline_mode = #tpu.pipeline_mode<synchronous>, transform_indices = @transform_0, window_bounds = array<i64: 128, 9>}, {pipeline_mode = #tpu.pipeline_mode<synchronous>, transform_indices = @transform_1, window_bounds = array<i64: 128, 512>}, {transform_indices = @transform_2, window_bounds = array<i64: 1, 512, 256>}, {transform_indices = @transform_3, window_bounds = array<i64: 1, 1, 256>}, {transform_indices = @transform_4, window_bounds = array<i64: 1, 2304, 512>}, {transform_indices = @transform_5, window_bounds = array<i64: 1, 1, 512>}, {transform_indices = @transform_6, window_bounds = array<i64: 1, 512, 32>}, {transform_indices = @transform_7, window_bounds = array<i64: 1, 1, 32>}, {transform_indices = @transform_8, window_bounds = array<i64: 1, 32, 512>}, {transform_indices = @transform_9, window_bounds = array<i64: 1, 1, 512>}, {transform_indices = @transform_10, window_bounds = array<i64: 1, 2, 512>}]} {
    %c0_i32 = arith.constant 0 : i32
    %0 = arith.cmpi eq, %arg1, %c0_i32 : i32
    %1 = arith.extui %0 : i1 to i32
    %c0_i32_0 = arith.constant 0 : i32
    %2 = arith.cmpi ne, %1, %c0_i32_0 : i32
    scf.if %2 {
      %c0_15 = arith.constant 0 : index
      %c0_16 = arith.constant 0 : index
      %26 = vector.load %arg3[%c0_15, %c0_16] : memref<128x512xbf16, #tpu.memory_space<vmem>>, vector<128x512xbf16>
      %c0_17 = arith.constant 0 : index
      %c0_18 = arith.constant 0 : index
      %c0_19 = arith.constant 0 : index
      %27 = vector.load %arg4[%c0_17, %c0_18, %c0_19] : memref<1x512x256xbf16, #tpu.memory_space<vmem>>, vector<1x512x256xbf16>
      %28 = vector.shape_cast %27 : vector<1x512x256xbf16> to vector<512x256xbf16>
      %cst_20 = arith.constant dense<0.000000e+00> : vector<128x256xf32>
      %29 = tpu.matmul %26, %28, %cst_20 {dimension_numbers = #tpu.dot_dimension_numbers<[1], [0], [0], [1], [0, 0, 1, 1], [], []>} : vector<128x512xbf16>, vector<512x256xbf16>, vector<128x256xf32> -> vector<128x256xf32>
      %c0_21 = arith.constant 0 : index
      %c0_22 = arith.constant 0 : index
      %c0_23 = arith.constant 0 : index
      %30 = vector.load %arg5[%c0_21, %c0_22, %c0_23] : memref<1x1x256xf32, #tpu.memory_space<vmem>>, vector<1x1x256xf32>
      %31 = vector.shape_cast %30 : vector<1x1x256xf32> to vector<1x256xf32>
      %32 = vector.broadcast %31 : vector<1x256xf32> to vector<128x256xf32>
      %33 = arith.addf %29, %32 : vector<128x256xf32>
      %c9_i32 = arith.constant 9 : i32
      %34 = tpu.dynamic_rotate %33 by %c9_i32 dim 0 : vector<128x256xf32>, i32 -> vector<128x256xf32>
      %35 = arith.truncf %34 : vector<128x256xf32> to vector<128x256xbf16>
      %c0_24 = arith.constant 0 : index
      %c0_25 = arith.constant 0 : index
      %36 = vector.load %arg2[%c0_24, %c0_25] : memref<128x9xbf16, #tpu.memory_space<vmem>>, vector<128x1xbf16>
      %37 = vector.broadcast %36 : vector<128x1xbf16> to vector<128x256xbf16>
      %38 = arith.mulf %35, %37 : vector<128x256xbf16>
      %c0_26 = arith.constant 0 : index
      %c0_27 = arith.constant 0 : index
      %39 = vector.load %arg13[%c0_26, %c0_27] : memref<128x2304xbf16, #tpu.memory_space<vmem>>, vector<128x256xbf16>
      tpu.vector_store %arg13[%c0_26, %c0_27], %38 {strides = array<i32>} : memref<128x2304xbf16, #tpu.memory_space<vmem>>, vector<128x256xbf16>,
      %c8_i32 = arith.constant 8 : i32
      %40 = tpu.dynamic_rotate %33 by %c8_i32 dim 0 : vector<128x256xf32>, i32 -> vector<128x256xf32>
      %41 = arith.truncf %40 : vector<128x256xf32> to vector<128x256xbf16>
      %c0_28 = arith.constant 0 : index
      %c1 = arith.constant 1 : index
      %42 = vector.load %arg2[%c0_28, %c1] : memref<128x9xbf16, #tpu.memory_space<vmem>>, vector<128x1xbf16>
      %43 = vector.broadcast %42 : vector<128x1xbf16> to vector<128x256xbf16>
      %44 = arith.mulf %41, %43 : vector<128x256xbf16>
      %c0_29 = arith.constant 0 : index
      %c256 = arith.constant 256 : index
      %45 = vector.load %arg13[%c0_29, %c256] : memref<128x2304xbf16, #tpu.memory_space<vmem>>, vector<128x256xbf16>
      tpu.vector_store %arg13[%c0_29, %c256], %44 {strides = array<i32>} : memref<128x2304xbf16, #tpu.memory_space<vmem>>, vector<128x256xbf16>,
      %c7_i32 = arith.constant 7 : i32
      %46 = tpu.dynamic_rotate %33 by %c7_i32 dim 0 : vector<128x256xf32>, i32 -> vector<128x256xf32>
      %47 = arith.truncf %46 : vector<128x256xf32> to vector<128x256xbf16>
      %c0_30 = arith.constant 0 : index
      %c2 = arith.constant 2 : index
      %48 = vector.load %arg2[%c0_30, %c2] : memref<128x9xbf16, #tpu.memory_space<vmem>>, vector<128x1xbf16>
      %49 = vector.broadcast %48 : vector<128x1xbf16> to vector<128x256xbf16>
      %50 = arith.mulf %47, %49 : vector<128x256xbf16>
      %c0_31 = arith.constant 0 : index
      %c512 = arith.constant 512 : index
      %51 = vector.load %arg13[%c0_31, %c512] : memref<128x2304xbf16, #tpu.memory_space<vmem>>, vector<128x256xbf16>
      tpu.vector_store %arg13[%c0_31, %c512], %50 {strides = array<i32>} : memref<128x2304xbf16, #tpu.memory_space<vmem>>, vector<128x256xbf16>,
      %c1_i32 = arith.constant 1 : i32
      %52 = tpu.dynamic_rotate %33 by %c1_i32 dim 0 : vector<128x256xf32>, i32 -> vector<128x256xf32>
      %53 = arith.truncf %52 : vector<128x256xf32> to vector<128x256xbf16>
      %c0_32 = arith.constant 0 : index
      %c3 = arith.constant 3 : index
      %54 = vector.load %arg2[%c0_32, %c3] : memref<128x9xbf16, #tpu.memory_space<vmem>>, vector<128x1xbf16>
      %55 = vector.broadcast %54 : vector<128x1xbf16> to vector<128x256xbf16>
      %56 = arith.mulf %53, %55 : vector<128x256xbf16>
      %c0_33 = arith.constant 0 : index
      %c768 = arith.constant 768 : index
      %57 = vector.load %arg13[%c0_33, %c768] : memref<128x2304xbf16, #tpu.memory_space<vmem>>, vector<128x256xbf16>
      tpu.vector_store %arg13[%c0_33, %c768], %56 {strides = array<i32>} : memref<128x2304xbf16, #tpu.memory_space<vmem>>, vector<128x256xbf16>,
      %58 = arith.truncf %33 : vector<128x256xf32> to vector<128x256xbf16>
      %c0_34 = arith.constant 0 : index
      %c4 = arith.constant 4 : index
      %59 = vector.load %arg2[%c0_34, %c4] : memref<128x9xbf16, #tpu.memory_space<vmem>>, vector<128x1xbf16>
      %60 = vector.broadcast %59 : vector<128x1xbf16> to vector<128x256xbf16>
      %61 = arith.mulf %58, %60 : vector<128x256xbf16>
      %c0_35 = arith.constant 0 : index
      %c1024 = arith.constant 1024 : index
      %62 = vector.load %arg13[%c0_35, %c1024] : memref<128x2304xbf16, #tpu.memory_space<vmem>>, vector<128x256xbf16>
      tpu.vector_store %arg13[%c0_35, %c1024], %61 {strides = array<i32>} : memref<128x2304xbf16, #tpu.memory_space<vmem>>, vector<128x256xbf16>,
      %c127_i32 = arith.constant 127 : i32
      %63 = tpu.dynamic_rotate %33 by %c127_i32 dim 0 : vector<128x256xf32>, i32 -> vector<128x256xf32>
      %64 = arith.truncf %63 : vector<128x256xf32> to vector<128x256xbf16>
      %c0_36 = arith.constant 0 : index
      %c5 = arith.constant 5 : index
      %65 = vector.load %arg2[%c0_36, %c5] : memref<128x9xbf16, #tpu.memory_space<vmem>>, vector<128x1xbf16>
      %66 = vector.broadcast %65 : vector<128x1xbf16> to vector<128x256xbf16>
      %67 = arith.mulf %64, %66 : vector<128x256xbf16>
      %c0_37 = arith.constant 0 : index
      %c1280 = arith.constant 1280 : index
      %68 = vector.load %arg13[%c0_37, %c1280] : memref<128x2304xbf16, #tpu.memory_space<vmem>>, vector<128x256xbf16>
      tpu.vector_store %arg13[%c0_37, %c1280], %67 {strides = array<i32>} : memref<128x2304xbf16, #tpu.memory_space<vmem>>, vector<128x256xbf16>,
      %c121_i32 = arith.constant 121 : i32
      %69 = tpu.dynamic_rotate %33 by %c121_i32 dim 0 : vector<128x256xf32>, i32 -> vector<128x256xf32>
      %70 = arith.truncf %69 : vector<128x256xf32> to vector<128x256xbf16>
      %c0_38 = arith.constant 0 : index
      %c6 = arith.constant 6 : index
      %71 = vector.load %arg2[%c0_38, %c6] : memref<128x9xbf16, #tpu.memory_space<vmem>>, vector<128x1xbf16>
      %72 = vector.broadcast %71 : vector<128x1xbf16> to vector<128x256xbf16>
      %73 = arith.mulf %70, %72 : vector<128x256xbf16>
      %c0_39 = arith.constant 0 : index
      %c1536 = arith.constant 1536 : index
      %74 = vector.load %arg13[%c0_39, %c1536] : memref<128x2304xbf16, #tpu.memory_space<vmem>>, vector<128x256xbf16>
      tpu.vector_store %arg13[%c0_39, %c1536], %73 {strides = array<i32>} : memref<128x2304xbf16, #tpu.memory_space<vmem>>, vector<128x256xbf16>,
      %c120_i32 = arith.constant 120 : i32
      %75 = tpu.dynamic_rotate %33 by %c120_i32 dim 0 : vector<128x256xf32>, i32 -> vector<128x256xf32>
      %76 = arith.truncf %75 : vector<128x256xf32> to vector<128x256xbf16>
      %c0_40 = arith.constant 0 : index
      %c7 = arith.constant 7 : index
      %77 = vector.load %arg2[%c0_40, %c7] : memref<128x9xbf16, #tpu.memory_space<vmem>>, vector<128x1xbf16>
      %78 = vector.broadcast %77 : vector<128x1xbf16> to vector<128x256xbf16>
      %79 = arith.mulf %76, %78 : vector<128x256xbf16>
      %c0_41 = arith.constant 0 : index
      %c1792 = arith.constant 1792 : index
      %80 = vector.load %arg13[%c0_41, %c1792] : memref<128x2304xbf16, #tpu.memory_space<vmem>>, vector<128x256xbf16>
      tpu.vector_store %arg13[%c0_41, %c1792], %79 {strides = array<i32>} : memref<128x2304xbf16, #tpu.memory_space<vmem>>, vector<128x256xbf16>,
      %c119_i32 = arith.constant 119 : i32
      %81 = tpu.dynamic_rotate %33 by %c119_i32 dim 0 : vector<128x256xf32>, i32 -> vector<128x256xf32>
      %82 = arith.truncf %81 : vector<128x256xf32> to vector<128x256xbf16>
      %c0_42 = arith.constant 0 : index
      %c8 = arith.constant 8 : index
      %83 = vector.load %arg2[%c0_42, %c8] : memref<128x9xbf16, #tpu.memory_space<vmem>>, vector<128x1xbf16>
      %84 = vector.broadcast %83 : vector<128x1xbf16> to vector<128x256xbf16>
      %85 = arith.mulf %82, %84 : vector<128x256xbf16>
      %c0_43 = arith.constant 0 : index
      %c2048 = arith.constant 2048 : index
      %86 = vector.load %arg13[%c0_43, %c2048] : memref<128x2304xbf16, #tpu.memory_space<vmem>>, vector<128x256xbf16>
      tpu.vector_store %arg13[%c0_43, %c2048], %85 {strides = array<i32>} : memref<128x2304xbf16, #tpu.memory_space<vmem>>, vector<128x256xbf16>,
      %cst_44 = arith.constant 0.000000e+00 : f32
      %87 = vector.broadcast %cst_44 : f32 to vector<128x128xf32>
      %c0_45 = arith.constant 0 : index
      %c0_46 = arith.constant 0 : index
      %88 = vector.load %arg14[%c0_45, %c0_46] : memref<128x128xf32, #tpu.memory_space<vmem>>, vector<128x128xf32>
      tpu.vector_store %arg14[%c0_45, %c0_46], %87 {strides = array<i32>} : memref<128x128xf32, #tpu.memory_space<vmem>>, vector<128x128xf32>,
    } else {
    }
    %c0 = arith.constant 0 : index
    %c0_1 = arith.constant 0 : index
    %3 = vector.load %arg13[%c0, %c0_1] : memref<128x2304xbf16, #tpu.memory_space<vmem>>, vector<128x2304xbf16>
    %c0_2 = arith.constant 0 : index
    %c0_3 = arith.constant 0 : index
    %c0_4 = arith.constant 0 : index
    %4 = vector.load %arg6[%c0_2, %c0_3, %c0_4] : memref<1x2304x512xbf16, #tpu.memory_space<vmem>>, vector<1x2304x512xbf16>
    %5 = vector.shape_cast %4 : vector<1x2304x512xbf16> to vector<2304x512xbf16>
    %cst = arith.constant dense<0.000000e+00> : vector<128x512xf32>
    %6 = tpu.matmul %3, %5, %cst {dimension_numbers = #tpu.dot_dimension_numbers<[1], [0], [0], [1], [0, 0, 1, 1], [], []>} : vector<128x2304xbf16>, vector<2304x512xbf16>, vector<128x512xf32> -> vector<128x512xf32>
    %c0_5 = arith.constant 0 : index
    %c0_6 = arith.constant 0 : index
    %c0_7 = arith.constant 0 : index
    %7 = vector.load %arg7[%c0_5, %c0_6, %c0_7] : memref<1x1x512xf32, #tpu.memory_space<vmem>>, vector<1x1x512xf32>
    %8 = vector.shape_cast %7 : vector<1x1x512xf32> to vector<1x512xf32>
    %9 = vector.broadcast %8 : vector<1x512xf32> to vector<128x512xf32>
    %10 = arith.addf %6, %9 : vector<128x512xf32>
    %cst_8 = arith.constant 0.000000e+00 : f32
    %11 = vector.broadcast %cst_8 : f32 to vector<128x512xf32>
    %12 = arith.maximumf %10, %11 : vector<128x512xf32>
    %c0_9 = arith.constant 0 : index
    %c0_10 = arith.constant 0 : index
    %13 = vector.load %arg14[%c0_9, %c0_10] : memref<128x128xf32, #tpu.memory_space<vmem>>, vector<128x128xf32>
    %14 = vector.extract_strided_slice %12 {offsets = [0, 0], sizes = [128, 128], strides = [1, 1]} : vector<128x512xf32> to vector<128x128xf32>
    %15 = arith.addf %13, %14 : vector<128x128xf32>
    %16 = vector.extract_strided_slice %12 {offsets = [0, 128], sizes = [128, 128], strides = [1, 1]} : vector<128x512xf32> to vector<128x128xf32>
    %17 = arith.addf %15, %16 : vector<128x128xf32>
    %18 = vector.extract_strided_slice %12 {offsets = [0, 256], sizes = [128, 128], strides = [1, 1]} : vector<128x512xf32> to vector<128x128xf32>
    %19 = arith.addf %17, %18 : vector<128x128xf32>
    %20 = vector.extract_strided_slice %12 {offsets = [0, 384], sizes = [128, 128], strides = [1, 1]} : vector<128x512xf32> to vector<128x128xf32>
    %21 = arith.addf %19, %20 : vector<128x128xf32>
    %c0_11 = arith.constant 0 : index
    %c0_12 = arith.constant 0 : index
    %22 = vector.load %arg14[%c0_11, %c0_12] : memref<128x128xf32, #tpu.memory_space<vmem>>, vector<128x128xf32>
    tpu.vector_store %arg14[%c0_11, %c0_12], %21 {strides = array<i32>} : memref<128x128xf32, #tpu.memory_space<vmem>>, vector<128x128xf32>,
    %c0_i32_13 = arith.constant 0 : i32
    %23 = arith.cmpi eq, %arg1, %c0_i32_13 : i32
    %24 = arith.extui %23 : i1 to i32
    %c0_i32_14 = arith.constant 0 : i32
    %25 = arith.cmpi ne, %24, %c0_i32_14 : i32
    scf.if %25 {
      %c0_15 = arith.constant 0 : index
      %c0_16 = arith.constant 0 : index
      %26 = vector.load %arg14[%c0_15, %c0_16] : memref<128x128xf32, #tpu.memory_space<vmem>>, vector<128x128xf32>
      %cst_17 = arith.constant dense<0.000000e+00> : vector<128xf32>
      %27 = vector.multi_reduction <add>, %26, %cst_17 [1] : vector<128x128xf32> to vector<128xf32>
      %28 = vector.shape_cast %27 : vector<128xf32> to vector<128x1xf32>
      %c0_18 = arith.constant 0 : index
      %c0_19 = arith.constant 0 : index
      %29 = vector.load %arg3[%c0_18, %c0_19] : memref<128x512xbf16, #tpu.memory_space<vmem>>, vector<128x512xbf16>
      %30 = arith.extf %29 : vector<128x512xbf16> to vector<128x512xf32>
      %31 = vector.broadcast %28 : vector<128x1xf32> to vector<128x512xf32>
      %32 = arith.mulf %30, %31 : vector<128x512xf32>
      %33 = vector.shape_cast %32 : vector<128x512xf32> to vector<2x64x512xf32>
      %cst_20 = arith.constant dense<0.000000e+00> : vector<2x512xf32>
      %34 = vector.multi_reduction <add>, %33, %cst_20 [1] : vector<2x64x512xf32> to vector<2x512xf32>
      %cst_21 = arith.constant 1.562500e-02 : f32
      %35 = vector.broadcast %cst_21 : f32 to vector<2x512xf32>
      %36 = arith.mulf %34, %35 : vector<2x512xf32>
      %37 = arith.truncf %36 : vector<2x512xf32> to vector<2x512xbf16>
      %c0_22 = arith.constant 0 : index
      %c0_23 = arith.constant 0 : index
      %c0_24 = arith.constant 0 : index
      %38 = vector.load %arg8[%c0_22, %c0_23, %c0_24] : memref<1x512x32xbf16, #tpu.memory_space<vmem>>, vector<1x512x32xbf16>
      %39 = vector.shape_cast %38 : vector<1x512x32xbf16> to vector<512x32xbf16>
      %cst_25 = arith.constant dense<0.000000e+00> : vector<2x32xf32>
      %40 = tpu.matmul %37, %39, %cst_25 {dimension_numbers = #tpu.dot_dimension_numbers<[1], [0], [0], [1], [0, 0, 1, 1], [], []>} : vector<2x512xbf16>, vector<512x32xbf16>, vector<2x32xf32> -> vector<2x32xf32>
      %c0_26 = arith.constant 0 : index
      %c0_27 = arith.constant 0 : index
      %c0_28 = arith.constant 0 : index
      %41 = vector.load %arg9[%c0_26, %c0_27, %c0_28] : memref<1x1x32xf32, #tpu.memory_space<vmem>>, vector<1x1x32xf32>
      %42 = vector.shape_cast %41 : vector<1x1x32xf32> to vector<1x32xf32>
      %43 = vector.broadcast %42 : vector<1x32xf32> to vector<2x32xf32>
      %44 = arith.addf %40, %43 : vector<2x32xf32>
      %cst_29 = arith.constant 0.000000e+00 : f32
      %45 = vector.broadcast %cst_29 : f32 to vector<2x32xf32>
      %46 = arith.maximumf %44, %45 : vector<2x32xf32>
      %47 = arith.truncf %46 : vector<2x32xf32> to vector<2x32xbf16>
      %c0_30 = arith.constant 0 : index
      %c0_31 = arith.constant 0 : index
      %c0_32 = arith.constant 0 : index
      %48 = vector.load %arg10[%c0_30, %c0_31, %c0_32] : memref<1x32x512xbf16, #tpu.memory_space<vmem>>, vector<1x32x512xbf16>
      %49 = vector.shape_cast %48 : vector<1x32x512xbf16> to vector<32x512xbf16>
      %cst_33 = arith.constant dense<0.000000e+00> : vector<2x512xf32>
      %50 = tpu.matmul %47, %49, %cst_33 {dimension_numbers = #tpu.dot_dimension_numbers<[1], [0], [0], [1], [0, 0, 1, 1], [], []>} : vector<2x32xbf16>, vector<32x512xbf16>, vector<2x512xf32> -> vector<2x512xf32>
      %c0_34 = arith.constant 0 : index
      %c0_35 = arith.constant 0 : index
      %c0_36 = arith.constant 0 : index
      %51 = vector.load %arg11[%c0_34, %c0_35, %c0_36] : memref<1x1x512xf32, #tpu.memory_space<vmem>>, vector<1x1x512xf32>
      %52 = vector.shape_cast %51 : vector<1x1x512xf32> to vector<1x512xf32>
      %53 = vector.broadcast %52 : vector<1x512xf32> to vector<2x512xf32>
      %54 = arith.addf %50, %53 : vector<2x512xf32>
      %55 = arith.negf %54 : vector<2x512xf32>
      %56 = math.exp %55 : vector<2x512xf32>
      %cst_37 = arith.constant 1.000000e+00 : f32
      %57 = vector.broadcast %cst_37 : f32 to vector<2x512xf32>
      %58 = arith.addf %57, %56 : vector<2x512xf32>
      %59 = arith.divf %57, %58 : vector<2x512xf32>
      %60 = arith.mulf %36, %59 : vector<2x512xf32>
      %c0_38 = arith.constant 0 : index
      %c0_39 = arith.constant 0 : index
      %c0_40 = arith.constant 0 : index
      %61 = vector.load %arg12[%c0_38, %c0_39, %c0_40] : memref<1x2x512xf32, #tpu.memory_space<vmem>>, vector<1x2x512xf32>
      %62 = vector.shape_cast %61 : vector<1x2x512xf32> to vector<2x512xf32>
      %63 = vector.shape_cast %60 : vector<2x512xf32> to vector<1x2x512xf32>
      tpu.vector_store %arg12[%c0_38, %c0_39, %c0_40], %63 {strides = array<i32>} : memref<1x2x512xf32, #tpu.memory_space<vmem>>, vector<1x2x512xf32>,
    } else {
    }
    return
  }
  func.func @transform_0(%arg0: i32, %arg1: i32) -> (i32, i32) {
    %c0_i32 = arith.constant 0 : i32
    %c0_i32_0 = arith.constant 0 : i32
    %c0_i32_1 = arith.constant 0 : i32
    return %c0_i32, %c0_i32_0 : i32, i32
  }
  func.func @transform_1(%arg0: i32, %arg1: i32) -> (i32, i32) {
    %c0_i32 = arith.constant 0 : i32
    %c0_i32_0 = arith.constant 0 : i32
    %c0_i32_1 = arith.constant 0 : i32
    return %c0_i32, %c0_i32_0 : i32, i32
  }
  func.func @transform_2(%arg0: i32, %arg1: i32) -> (i32, i32, i32) {
    %c0_i32 = arith.constant 0 : i32
    %c0_i32_0 = arith.constant 0 : i32
    %c0_i32_1 = arith.constant 0 : i32
    return %arg0, %c0_i32, %c0_i32_0 : i32, i32, i32
  }
  func.func @transform_3(%arg0: i32, %arg1: i32) -> (i32, i32, i32) {
    %c0_i32 = arith.constant 0 : i32
    %c0_i32_0 = arith.constant 0 : i32
    %c0_i32_1 = arith.constant 0 : i32
    return %arg0, %c0_i32, %c0_i32_0 : i32, i32, i32
  }
  func.func @transform_4(%arg0: i32, %arg1: i32) -> (i32, i32, i32) {
    %c0_i32 = arith.constant 0 : i32
    %c0_i32_0 = arith.constant 0 : i32
    return %arg0, %c0_i32, %arg1 : i32, i32, i32
  }
  func.func @transform_5(%arg0: i32, %arg1: i32) -> (i32, i32, i32) {
    %c0_i32 = arith.constant 0 : i32
    %c0_i32_0 = arith.constant 0 : i32
    return %arg0, %c0_i32, %arg1 : i32, i32, i32
  }
  func.func @transform_6(%arg0: i32, %arg1: i32) -> (i32, i32, i32) {
    %c0_i32 = arith.constant 0 : i32
    %c0_i32_0 = arith.constant 0 : i32
    %c0_i32_1 = arith.constant 0 : i32
    return %arg0, %c0_i32, %c0_i32_0 : i32, i32, i32
  }
  func.func @transform_7(%arg0: i32, %arg1: i32) -> (i32, i32, i32) {
    %c0_i32 = arith.constant 0 : i32
    %c0_i32_0 = arith.constant 0 : i32
    %c0_i32_1 = arith.constant 0 : i32
    return %arg0, %c0_i32, %c0_i32_0 : i32, i32, i32
  }
  func.func @transform_8(%arg0: i32, %arg1: i32) -> (i32, i32, i32) {
    %c0_i32 = arith.constant 0 : i32
    %c0_i32_0 = arith.constant 0 : i32
    %c0_i32_1 = arith.constant 0 : i32
    return %arg0, %c0_i32, %c0_i32_0 : i32, i32, i32
  }
  func.func @transform_9(%arg0: i32, %arg1: i32) -> (i32, i32, i32) {
    %c0_i32 = arith.constant 0 : i32
    %c0_i32_0 = arith.constant 0 : i32
    %c0_i32_1 = arith.constant 0 : i32
    return %arg0, %c0_i32, %c0_i32_0 : i32, i32, i32
  }
  func.func @transform_10(%arg0: i32, %arg1: i32) -> (i32, i32, i32) {
    %c0_i32 = arith.constant 0 : i32
    %c0_i32_0 = arith.constant 0 : i32
    %c0_i32_1 = arith.constant 0 : i32
    return %arg0, %c0_i32, %c0_i32_0 : i32, i32, i32
  }
}

</mosaic_0001>

<bundles_post_ra>
// kernel: tpu_custom_call.1
= control target key start
LH: loop header
LB: loop body
LE: loop exit
PB: predicated region body
PF: predicated region fallthrough
CT: control target
= control target key end

     0   :  { %s17984_s0 = inlined_call_operand.vmem [shape: bf16[128,9], index: 0, kind: input, shape index: {}]   ;;  %s17985_s1 = inlined_call_operand.hbm [shape: bf16[128,512], index: 1, kind: input, shape index: {}]   ;;  %s17986_s2 = inlined_call_operand.hbm [shape: bf16[2,512,256], index: 2, kind: input, shape index: {}]   ;;  %s17987_s3 = inlined_call_operand.hbm [shape: f32[2,1,256], index: 3, kind: input, shape index: {}]   ;;  %s17988_s4 = inlined_call_operand.hbm [shape: bf16[2,2304,512], index: 4, kind: input, shape index: {}]   ;;  %s17989_s5 = inlined_call_operand.hbm [shape: f32[2,1,512], index: 5, kind: input, shape index: {}]   ;;  %s17990_s6 = inlined_call_operand.vmem [shape: bf16[2,512,32], index: 6, kind: input, shape index: {}]   ;;  %s17991_s7 = inlined_call_operand.hbm [shape: f32[2,1,32], index: 7, kind: input, shape index: {}]   ;;  %s17992_s8 = inlined_call_operand.hbm [shape: bf16[2,32,512], index: 8, kind: input, shape index: {}]   ;;  %s17993_s9 = inlined_call_operand.hbm [shape: f32[2,1,512], index: 9, kind: input, shape index: {}]   ;;  %s17994_s10 = inlined_call_operand.hbm [shape: f32[2,2,512], index: 10, kind: output, shape index: {}]  }
   0x1   :  { %18168 = sst [smem:[#allocation152_spill]] %s17984_s0 }
   0x2   :  { %18169 = sst [smem:[#allocation153_spill]] %s17986_s2 }
   0x3   :  { %18170 = sst [smem:[#allocation154_spill]] %s17987_s3 }
   0x4   :  { %18171 = sst [smem:[#allocation155_spill]] %s17988_s4 }
   0x5   :  { %18172 = sst [smem:[#allocation156_spill]] %s17990_s6 }
   0x6   :  { %18173 = sst [smem:[#allocation157_spill]] %s17991_s7 }
   0x7   :  { %18174 = sst [smem:[#allocation158_spill]] %s17994_s10 }
   0x8   :  { %15 = vsyncpa [#allocation5], 0 }
   0x9   :  { %16 = vsyncpa [#allocation8], 0 }
   0xa   :  { %18 = vsyncpa [#allocation8 + $0x1], 0 }
   0xb   :  { %19 = vsyncpa [#allocation11], 0 }
   0xc   :  { %21 = vsyncpa [#allocation11 + $0x1], 0 }
   0xd   :  { %22 = vsyncpa [#allocation14], 0 }
   0xe   :  { %24 = vsyncpa [#allocation14 + $0x1], 0 }
   0xf   :  { %25 = vsyncpa [#allocation17], 0 }
  0x10   :  { %27 = vsyncpa [#allocation17 + $0x1], 0 }
  0x11   :  { %28 = vsyncpa [#allocation6], 0 }
  0x12   :  { %30 = vsyncpa [#allocation6 + $0x1], 0  ;;  %s14514_s13 = smov 0   ;;  %s14516_s14 = smov 0  }
  0x13   :  { %s14518_s15 = smov 0   ;;  %s14520_s16 = smov 0  }
  0x14   :  { %s14522_s17 = smov 0   ;;  %s14524_s18 = smov 0  }
  0x15 LB: > { %18175 = sst [smem:[#allocation25_spill]] %s14421_s15  ;;  %s48_s19 = sadd.s32 1, %s14429_s17  ;;  %s14433_s18 = sphi %s14524_s18, %s36_s18   ;;  %s14429_s17 = sphi %s14522_s17, %s18654_s17   ;;  %s14425_s16 = sphi %s14520_s16, %s18653_s16   ;;  %s14421_s15 = sphi %s14518_s15, %s18649_s15   ;;  %s14417_s14 = sphi %s14516_s14, %s18652_s14   ;;  %s14413_s13 = sphi %s14514_s13, %s18651_s13  }
  0x16   : > { %18176 = sst [smem:[#allocation26_spill]] %s14425_s16  ;;  %s97_s20 = sadd.s32 1, %s14421_s15 }
  0x17   : > { %p50_p0 = scmp.ge.s32.totalorder %s48_s19, 2  ;;  %p17996_p1 = scmp.ne.s32.totalorder %s14421_s15, %s14417_s14 }
  0x18   : > { %p105_p2 = scmp.eq.s32.totalorder %s14433_s18, 0  ;;  %p12944_p5 = scmp.lt.s32.totalorder %s14433_s18, 2 }
  0x19   : > { %s18656_s19 = smov (%p50_p0, %s48_s19), 0  ;;  %s14559_s22 = sand.u32 1, %s14433_s18  }
  0x1a   : > { %18177 = sst [smem:[#allocation27_spill]] %s18656_s19  ;;  %p106_p4 = por %p105_p2, %p17996_p1 }
  0x1b   : > { %s94_s21 = ssub.s32 %s14429_s17, %s18656_s19  ;;  %s14562_s23 = sand.u32 1, %s14421_s15  }
  0x1c   : > { %p95_p6 = scmp.eq.s32.totalorder %s94_s21, 0  ;;  %s12167_s24 = sshll.u32 %s14429_s17, 13 }
  0x1d   : > { %s11344_s26 = sshll.u32 %s14562_s23, 9  ;;  %s18179_s2 = sld [smem:[#allocation153_spill]] }
  0x1e   : > { %s14566_s25 = scalar_select %p95_p6, %s14421_s15, %s97_s20  }
  0x1f   : > { %p14574_p7 = pnand %p12944_p5, %p106_p4  ;;  %s366_s11 = scalar_lea.vmem [#allocation7], %s11344_s26 }
  0x20   : > { %18178 = sst [smem:[#allocation28_spill]] %s14566_s25  ;;  %s373_s12 = sshll.u32 %s366_s11, 4  ;;  %s14578_s12 = int_to_ptr.vmem [resolvable:$true] %s373_s12 }
  0x21   : > { %s18180_s30 = scalar_select %p14574_p7, 1, 0 }
  0x22   : > { %p14585_p9 = pneg %p14574_p7 }
  0x23   : > { %s14572_s29 = scalar_lea.hbm %s18179_s2, %s12167_s24  ;;  %s14102_s19 = scalar_lea.hbm %s18179_s2, 16384 }
  0x24   : > { %s14097_s21 = scalar_lea.hbm %s14572_s29, 8192  ;;  %p14103_p12 = scmp.lt.u32.totalorder %s14572_s29, %s18179_s2 }
  0x25   : > { %p14098_p8 = scmp.ne.s32.totalorder %s14572_s29, %s14097_s21  ;;  %p14104_p13 = scmp.lt.u32.totalorder %s14102_s19, %s14097_s21 }
  0x26   : > { %s18181_s24 = scalar_select %p14585_p9, 1, 0 }
  0x27   : > { %p14100_p10 = pnand %p14585_p9, %p14098_p8  ;;  %p14105_p0 = por %p14104_p13, %p14103_p12 }
  0x28   : > { %p14106_p2 = scmp.lt.u32.totalorder %s14097_s21, %s14572_s29 }
  0x29   : > { %p14101_p11 = pneg %p14100_p10 }
  0x2a   : > { %p14107_p4 = por %p14106_p2, %p14105_p0 }
  0x2c   : > { %p14108_p5 = pnand %p14107_p4, %p14101_p11 }
  0x2e   : > { %14111 = shalt.err (!%p14108_p5)
}
  0x2f   : > { %s14112_s20 = scalar_lea.vmem %s14578_s12, 8192  ;;  %s14435_s27 = smov [#allocation7]  }
  0x30   : > { %p14113_p6 = scmp.ne.s32.totalorder %s14578_s12, %s14112_s20  ;;  %s14117_s28 = sshll.u32 %s14435_s27, 4  ;;  %s14118_s28 = int_to_ptr.vmem [resolvable:$false] %s14117_s28 }
  0x31   : > { %s14119_s26 = scalar_lea.vmem %s14118_s28, 16384  ;;  %p14120_p3 = scmp.lt.s32.totalorder %s14578_s12, %s14118_s28 }
  0x32   : > { %p14115_p8 = pnand %p14113_p6, %p14585_p9  ;;  %p14121_p1 = scmp.lt.s32.totalorder %s14119_s26, %s14112_s20 }
  0x34   : > { %p14116_p10 = pneg %p14115_p8  ;;  %p14122_p12 = por %p14121_p1, %p14120_p3 }
  0x36   : > { %p14123_p13 = pnand %p14122_p12, %p14116_p10 }
  0x38   : > { %14126 = shalt.err (!%p14123_p13)
}
  0x39   : > { %s14436_s19 = smov 128   ;;  %s14437_s21 = smov 8  }
  0x3a   : > { %s18182_s11 = scalar_lea.sflag [#allocation8], %s14559_s22  ;;  %s12890_s27 = smul.u32 4608, %s14562_s23 }
  0x3b   : > { %12920 = dma.hbm_to_vmem [thread:$0]  (!%p14574_p7), %s14572_s29, 8192, %s14578_s12, %s18182_s11, %s14436_s19, %s14436_s19, %s14437_s21  }
  0x3c   : > { %s12891_s28 = smul.u32 73728, %s14429_s17  ;;  %s11354_s20 = sshll.u32 %s14429_s17, 4 }
  0x3d   : > { %s18183_s4 = sld [smem:[#allocation155_spill]]  ;;  %s406_s10 = scalar_lea.vmem [#allocation10], %s12890_s27 }
  0x3e   : > { %s415_s6 = sshll.u32 %s406_s10, 4  ;;  %s18184_s7 = sld [smem:[#allocation157_spill]]  ;;  %s14618_s6 = int_to_ptr.vmem [resolvable:$true] %s415_s6 }
  0x3f   : > { %s18003_s12 = scalar_lea.sflag [#allocation11], %s14559_s22 }
  0x43   : > { %s14616_s25 = scalar_lea.hbm %s18183_s4, %s12891_s28  ;;  %s14132_s11 = scalar_lea.hbm %s18183_s4, 147456 }
  0x44   : > { %s14623_s29 = scalar_lea.hbm %s18184_s7, %s11354_s20  ;;  %s14127_s19 = scalar_lea.hbm %s14616_s25, 73728 }
  0x45   : > { %p14128_p1 = scmp.ne.s32.totalorder %s14616_s25, %s14127_s19  ;;  %p14133_p0 = scmp.lt.u32.totalorder %s14616_s25, %s18183_s4 }
  0x46   : > { %p14134_p2 = scmp.lt.u32.totalorder %s14132_s11, %s14127_s19  ;;  %p14136_p5 = scmp.lt.u32.totalorder %s14127_s19, %s14616_s25 }
  0x47   : > { %p14130_p3 = pnand %p14128_p1, %p14585_p9 }
  0x48   : > { %p14135_p4 = por %p14134_p2, %p14133_p0 }
  0x49   : > { %p14131_p11 = pneg %p14130_p3 }
  0x4a   : > { %p14137_p6 = por %p14136_p5, %p14135_p4 }
  0x4c   : > { %p14138_p8 = pnand %p14137_p6, %p14131_p11 }
  0x4e   : > { %14141 = shalt.err (!%p14138_p8)
}
  0x4f   : > { %s14142_s0 = scalar_lea.vmem %s14618_s6, 73728  ;;  %s14438_s10 = smov [#allocation10]  }
  0x50   : > { %p14143_p10 = scmp.ne.s32.totalorder %s14618_s6, %s14142_s0  ;;  %s14147_s16 = sshll.u32 %s14438_s10, 4  ;;  %s14148_s16 = int_to_ptr.vmem [resolvable:$false] %s14147_s16 }
  0x51   : > { %s14149_s20 = scalar_lea.vmem %s14148_s16, 147456  ;;  %p14150_p1 = scmp.lt.s32.totalorder %s14618_s6, %s14148_s16 }
  0x52   : > { %p14145_p12 = pnand %p14143_p10, %p14585_p9  ;;  %p14151_p3 = scmp.lt.s32.totalorder %s14149_s20, %s14142_s0 }
  0x54   : > { %p14146_p13 = pneg %p14145_p12  ;;  %p14152_p0 = por %p14151_p3, %p14150_p1 }
  0x56   : > { %p14153_p2 = pnand %p14152_p0, %p14146_p13 }
  0x58   : > { %14156 = shalt.err (!%p14153_p2)
}
  0x59   : > { %s18004_s26 = smov 256   ;;  %s18006_s19 = smov 16  }
  0x5a   : > { %12926 = dma.hbm_to_vmem [thread:$0]  (!%p14574_p7), %s14616_s25, 73728, %s14618_s6, %s18003_s12, %s18004_s26, %s18004_s26, %s18006_s19  }
  0x5b   : > { %s457_s2 = scalar_lea.vmem [#allocation13], %s14562_s23  ;;  %s18002_s11 = scalar_lea.sflag [#allocation14], %s14559_s22 }
  0x5c   : > { %s464_s21 = sshll.u32 %s457_s2, 4  ;;  %s14157_s28 = scalar_lea.hbm %s14623_s29, 16  ;;  %s465_s21 = int_to_ptr.vmem [resolvable:$true] %s464_s21 }
  0x5d   : > { %p14158_p11 = scmp.ne.s32.totalorder %s14623_s29, %s14157_s28  ;;  %s14162_s10 = scalar_lea.hbm %s18184_s7, 32 }
  0x5e   : > { %p14163_p6 = scmp.lt.u32.totalorder %s14623_s29, %s18184_s7  ;;  %p14164_p8 = scmp.lt.u32.totalorder %s14162_s10, %s14157_s28 }
  0x5f   : > { %p14160_p4 = pnand %p14158_p11, %p14585_p9  ;;  %p14166_p12 = scmp.lt.u32.totalorder %s14157_s28, %s14623_s29 }
  0x60   : > { %p14165_p10 = por %p14164_p8, %p14163_p6 }
  0x61   : > { %p14161_p5 = pneg %p14160_p4 }
  0x62   : > { %p14167_p13 = por %p14166_p12, %p14165_p10 }
  0x64   : > { %p14168_p1 = pnand %p14167_p13, %p14161_p5 }
  0x66   : > { %14171 = shalt.err (!%p14168_p1)
}
  0x67   : > { %s14172_s6 = scalar_lea.vmem %s465_s21, 16  ;;  %s14441_s25 = smov [#allocation13]  }
  0x68   : > { %p14173_p3 = scmp.ne.s32.totalorder %s465_s21, %s14172_s6  ;;  %s14177_s2 = sshll.u32 %s14441_s25, 4  ;;  %s14178_s2 = int_to_ptr.vmem [resolvable:$false] %s14177_s2 }
  0x69   : > { %s14179_s27 = scalar_lea.vmem %s14178_s2, 32  ;;  %p14180_p11 = scmp.lt.s32.totalorder %s465_s21, %s14178_s2 }
  0x6a   : > { %p14175_p0 = pnand %p14173_p3, %p14585_p9  ;;  %p14181_p4 = scmp.lt.s32.totalorder %s14179_s27, %s14172_s6 }
  0x6c   : > { %p14176_p2 = pneg %p14175_p0  ;;  %p14182_p7 = por %p14181_p4, %p14180_p11 }
  0x6e   : > { %p14183_p6 = pnand %p14182_p7, %p14176_p2 }
  0x70   : > { %14186 = shalt.err (!%p14183_p6)
}
  0x71   : > { %p18185_p8 = scmp.ne.s32.totalorder %s18180_s30, 0  ;;  %s14674_s28 = sadd.s32 4294967295, %s14433_s18  }
  0x72   : > { %s11340_s0 = sadd.s32 4294967294, %s14433_s18   ;;  %p110_p7 = scmp.ne.s32.totalorder %s14417_s14, %s14413_s13 }
  0x73   : > { %12932 = dma.hbm_to_vmem [thread:$0]  (!%p18185_p8), %s14623_s29, 16, %s465_s21, %s18002_s11  }
  0x74   : > { %p18008_p5 = scmp.eq.s32.totalorder %s14674_s28, 0  ;;  %p320_p10 = scmp.eq.s32.totalorder %s14674_s28, 1 }
  0x75   : > { %p326_p12 = scmp.eq.s32.totalorder %s11340_s0, 1  ;;  %p11341_p1 = scmp.ge.s32.totalorder %s14433_s18, 1 }
  0x76   : > { %p14683_p13 = por %p18008_p5, %p110_p7  ;;  %p18187_p3 = scmp.ne.s32.totalorder %s14421_s15, %s14417_s14 }
  0x77   : > { %p14695_p2 = por %p326_p12, %p110_p7  ;;  %p333_p11 = scmp.lt.s32.totalorder %s14433_s18, 3 }
  0x78   : > { %s18186_s10 = scalar_select %p14683_p13, 1, 0 }
  0x79   : > { %p14691_p0 = por %p320_p10, %p18187_p3  ;;  %s11347_s16 = sshll.u32 %s14562_s23, 1 }
  0x7a   : > { %s18189_s21 = scalar_select %p14695_p2, 1, 0 }
  0x7b   : > { %s18188_s29 = scalar_select %p14691_p0, 1, 0 }
  0x7c   : > { %p14701_p4 = pnand %p11341_p1, %p333_p11  ;;  %s14442_s6 = smov [#allocation4]  }
  0x7d   : > { %s348_s25 = sshll.u32 %s14442_s6, 4  ;;  %s12168_s2 = sshll.u32 %s14429_s17, 5  ;;  %s14705_s25 = int_to_ptr.vmem [resolvable:$true] %s348_s25 }
  0x7e   : > { %s18190_s20 = scalar_select %p14701_p4, 1, 0 }
  0x7f   : > { %p12913_p6 = pneg %p14701_p4  ;;  %s18191_s3 = sld [smem:[#allocation154_spill]] }
  0x80   : > { %s387_s12 = scalar_lea.vmem [#allocation9], %s11347_s16 }
  0x81   : > { %s395_s26 = sshll.u32 %s387_s12, 4  ;;  %p14717_p7 = pnand %p12913_p6, %p18008_p5  ;;  %s396_s26 = int_to_ptr.vmem [resolvable:$true] %s395_s26 }
  0x83   : > { %s18192_s19 = scalar_select %p14717_p7, 1, 0 }
  0x85   : > { %s14713_s11 = scalar_lea.hbm %s18191_s3, %s12168_s2  ;;  %s14192_s0 = scalar_lea.hbm %s18191_s3, 64 }
  0x86   : > { %s14187_s6 = scalar_lea.hbm %s14713_s11, 32  ;;  %p14193_p3 = scmp.lt.u32.totalorder %s14713_s11, %s18191_s3 }
  0x87   : > { %p14188_p10 = scmp.ne.s32.totalorder %s14713_s11, %s14187_s6  ;;  %p14194_p11 = scmp.lt.u32.totalorder %s14192_s0, %s14187_s6 }
  0x88   : > { %p14196_p6 = scmp.lt.u32.totalorder %s14187_s6, %s14713_s11 }
  0x89   : > { %p14190_p12 = pnand %p14188_p10, %p14585_p9  ;;  %p14195_p2 = por %p14194_p11, %p14193_p3 }
  0x8b   : > { %p14191_p1 = pneg %p14190_p12  ;;  %p14197_p5 = por %p14196_p6, %p14195_p2 }
  0x8d   : > { %p14198_p0 = pnand %p14197_p5, %p14191_p1 }
  0x8f   : > { %14201 = shalt.err (!%p14198_p0)
}
  0x90   : > { %s14202_s12 = scalar_lea.vmem %s396_s26, 32  ;;  %s14443_s16 = smov [#allocation9]  }
  0x91   : > { %p14203_p13 = scmp.ne.s32.totalorder %s396_s26, %s14202_s12  ;;  %s14207_s15 = sshll.u32 %s14443_s16, 4  ;;  %s14208_s15 = int_to_ptr.vmem [resolvable:$false] %s14207_s15 }
  0x92   : > { %s14209_s27 = scalar_lea.vmem %s14208_s15, 64  ;;  %p14210_p4 = scmp.lt.s32.totalorder %s396_s26, %s14208_s15 }
  0x93   : > { %p14205_p10 = pnand %p14203_p13, %p14585_p9  ;;  %p14211_p7 = scmp.lt.s32.totalorder %s14209_s27, %s14202_s12 }
  0x95   : > { %p14206_p12 = pneg %p14205_p10  ;;  %p14212_p8 = por %p14211_p7, %p14210_p4 }
  0x97   : > { %p14213_p3 = pnand %p14212_p8, %p14206_p12 }
  0x99   : > { %14216 = shalt.err (!%p14213_p3)
}
  0x9a   : > { %p18193_p11 = scmp.ne.s32.totalorder %s18180_s30, 0  ;;  %s18194_s4 = scalar_lea.sflag [#allocation8], %s14559_s22 }
  0x9b   : > { %s18016_s7 = sshll.u32 %s14562_s23, 2  ;;  %s14217_s0 = scalar_lea.hbm %s17985_s1, 4096 }
  0x9c   : > { %12923 = dma.hbm_to_vmem [thread:$0]  (!%p18193_p11), %s14713_s11, 32, %s396_s26, %s18194_s4  }
  0x9d   : > { %p14218_p5 = scmp.ne.s32.totalorder %s17985_s1, %s14217_s0  ;;  %p18195_p13 = scmp.ne.s32.totalorder %s18192_s19, 0 }
  0x9e   : > { %p14224_p4 = scmp.lt.u32.totalorder %s14217_s0, %s17985_s1 }
  0x9f   : > { %p14219_p8 = pneg %p18195_p13 }
  0xa1   : > { %p14220_p0 = pnand %p14219_p8, %p14218_p5 }
  0xa3   : > { %p14221_p2 = pneg %p14220_p0 }
  0xa5   : > { %p14226_p7 = pnand %p14224_p4, %p14221_p2 }
  0xa7   : > { %14229 = shalt.err (!%p14226_p7)
}
  0xa8   : > { %s14230_s26 = scalar_lea.vmem %s14705_s25, 4096  ;;  %p14238_p12 = scmp.lt.s32.totalorder %s14705_s25, %s14705_s25 }
  0xa9   : > { %p14231_p1 = scmp.ne.s32.totalorder %s14705_s25, %s14230_s26  ;;  %p14239_p3 = scmp.lt.s32.totalorder %s14230_s26, %s14230_s26 }
  0xab   : > { %p14233_p6 = pnand %p14231_p1, %p14219_p8  ;;  %p14240_p11 = por %p14239_p3, %p14238_p12 }
  0xad   : > { %p14234_p10 = pneg %p14233_p6 }
  0xaf   : > { %p14241_p9 = pnand %p14240_p11, %p14234_p10 }
  0xb1   : > { %14244 = shalt.err (!%p14241_p9)
}
  0xb2   : > { %s18196_s3 = smov 16   ;;  %s18197_s11 = smov 256  }
  0xb3   : > { %12916 = dma.hbm_to_vmem [thread:$0]  (!%p18195_p13), %s17985_s1, 4096, %s14705_s25, [#allocation5], %s18197_s11, %s18197_s11, %s18196_s3  }
  0xb4   : > { %s18017_s6 = sshll.u32 %s14429_s17, 6  ;;  %s429_s19 = scalar_lea.vmem [#allocation12], %s18016_s7 }
  0xb5   : > { %s14771_s16 = scalar_lea.hbm %s17989_s5, %s18017_s6  ;;  %s439_s15 = sshll.u32 %s429_s19, 4  ;;  %s440_s15 = int_to_ptr.vmem [resolvable:$true] %s439_s15 }
  0xb6   : > { %s11355_s12 = sshll.u32 %s14562_s23, 6  ;;  %s14245_s26 = scalar_lea.hbm %s14771_s16, 64 }
  0xb7   : > { %p14246_p9 = scmp.ne.s32.totalorder %s14771_s16, %s14245_s26  ;;  %p18198_p11 = scmp.ne.s32.totalorder %s18181_s24, 0 }
  0xb8   : > { %s14250_s4 = scalar_lea.hbm %s17989_s5, 128  ;;  %p14251_p8 = scmp.lt.u32.totalorder %s14771_s16, %s17989_s5 }
  0xb9   : > { %p14248_p5 = pnand %p14246_p9, %p18198_p11  ;;  %p14252_p0 = scmp.lt.u32.totalorder %s14250_s4, %s14245_s26 }
  0xba   : > { %p14254_p4 = scmp.lt.u32.totalorder %s14245_s26, %s14771_s16 }
  0xbb   : > { %p14249_p13 = pneg %p14248_p5  ;;  %p14253_p2 = por %p14252_p0, %p14251_p8 }
  0xbd   : > { %p14255_p7 = por %p14254_p4, %p14253_p2 }
  0xbf   : > { %p14256_p1 = pnand %p14255_p7, %p14249_p13 }
  0xc1   : > { %14259 = shalt.err (!%p14256_p1)
}
  0xc2   : > { %s14260_s19 = scalar_lea.vmem %s440_s15, 64  ;;  %s14444_s7 = smov [#allocation12]  }
  0xc3   : > { %p14261_p6 = scmp.ne.s32.totalorder %s440_s15, %s14260_s19  ;;  %s14265_s6 = sshll.u32 %s14444_s7, 4  ;;  %s14266_s6 = int_to_ptr.vmem [resolvable:$false] %s14265_s6 }
  0xc4   : > { %s14267_s25 = scalar_lea.vmem %s14266_s6, 128  ;;  %p14268_p3 = scmp.lt.s32.totalorder %s440_s15, %s14266_s6 }
  0xc5   : > { %p14263_p10 = pnand %p14261_p6, %p18198_p11  ;;  %p14269_p9 = scmp.lt.s32.totalorder %s14267_s25, %s14260_s19 }
  0xc7   : > { %p14264_p12 = pneg %p14263_p10  ;;  %p14270_p5 = por %p14269_p9, %p14268_p3 }
  0xc9   : > { %p14271_p0 = pnand %p14270_p5, %p14264_p12 }
  0xcb   : > { %14274 = shalt.err (!%p14271_p0)
}
  0xcc   : > { %p18199_p8 = scmp.ne.s32.totalorder %s18180_s30, 0  ;;  %s18200_s26 = scalar_lea.sflag [#allocation11], %s14559_s22 }
  0xcd   : > { %s12170_s27 = sshll.u32 %s14429_s17, 10  ;;  %s475_s6 = scalar_lea.vmem [#allocation15], %s11355_s12 }
  0xce   : > { %12929 = dma.hbm_to_vmem [thread:$0]  (!%p18199_p8), %s14771_s16, 64, %s440_s15, %s18200_s26  }
  0xcf   : > { %s14799_s7 = scalar_lea.hbm %s17992_s8, %s12170_s27  ;;  %s482_s0 = sshll.u32 %s475_s6, 4  ;;  %s14803_s0 = int_to_ptr.vmem [resolvable:$true] %s482_s0 }
  0xd0   : > { %s14275_s19 = scalar_lea.hbm %s14799_s7, 1024  ;;  %s14280_s25 = scalar_lea.hbm %s17992_s8, 2048 }
  0xd1   : > { %p14276_p13 = scmp.ne.s32.totalorder %s14799_s7, %s14275_s19  ;;  %p14281_p7 = scmp.lt.u32.totalorder %s14799_s7, %s17992_s8 }
  0xd2   : > { %p14282_p1 = scmp.lt.u32.totalorder %s14280_s25, %s14275_s19  ;;  %p14284_p10 = scmp.lt.u32.totalorder %s14275_s19, %s14799_s7 }
  0xd3   : > { %p14278_p2 = pnand %p14276_p13, %p18198_p11 }
  0xd4   : > { %p14283_p6 = por %p14282_p1, %p14281_p7 }
  0xd5   : > { %p14279_p4 = pneg %p14278_p2 }
  0xd6   : > { %p14285_p12 = por %p14284_p10, %p14283_p6 }
  0xd8   : > { %p14286_p3 = pnand %p14285_p12, %p14279_p4 }
  0xda   : > { %14289 = shalt.err (!%p14286_p3)
}
  0xdb   : > { %s14290_s12 = scalar_lea.vmem %s14803_s0, 1024  ;;  %s14445_s4 = smov [#allocation15]  }
  0xdc   : > { %p14291_p9 = scmp.ne.s32.totalorder %s14803_s0, %s14290_s12  ;;  %s14295_s2 = sshll.u32 %s14445_s4, 4  ;;  %s14296_s2 = int_to_ptr.vmem [resolvable:$false] %s14295_s2 }
  0xdd   : > { %s14297_s6 = scalar_lea.vmem %s14296_s2, 2048  ;;  %p14298_p13 = scmp.lt.s32.totalorder %s14803_s0, %s14296_s2 }
  0xde   : > { %p14293_p5 = pnand %p14291_p9, %p18198_p11  ;;  %p14299_p2 = scmp.lt.s32.totalorder %s14297_s6, %s14290_s12 }
  0xe0   : > { %p14294_p0 = pneg %p14293_p5  ;;  %p14300_p7 = por %p14299_p2, %p14298_p13 }
  0xe2   : > { %p14301_p1 = pnand %p14300_p7, %p14294_p0 }
  0xe4   : > { %14304 = shalt.err (!%p14301_p1)
}
  0xe5   : > { %s18201_s19 = scalar_lea.sflag [#allocation14], %s14559_s22  ;;  %s18202_s16 = sshll.u32 %s14429_s17, 6 }
  0xe6   : > { %12935 = dma.hbm_to_vmem [thread:$0]  (!%p18199_p8), %s14799_s7, 1024, %s14803_s0, %s18201_s19, %s18197_s11, %s18197_s11, %s18196_s3  }
  0xe7   : > { %s14836_s26 = scalar_lea.hbm %s17993_s9, %s18202_s16  ;;  %s18203_s27 = sshll.u32 %s14562_s23, 2 }
  0xe8   : > { %s496_s12 = scalar_lea.vmem [#allocation16], %s18203_s27  ;;  %s493_s4 = scalar_lea.sflag [#allocation17], %s14562_s23 }
  0xe9   : > { %s504_s22 = sshll.u32 %s496_s12, 4  ;;  %s14305_s2 = scalar_lea.hbm %s14836_s26, 64  ;;  %s505_s22 = int_to_ptr.vmem [resolvable:$true] %s504_s22 }
  0xea   : > { %p14306_p4 = scmp.ne.s32.totalorder %s14836_s26, %s14305_s2  ;;  %s14310_s7 = scalar_lea.hbm %s17993_s9, 128 }
  0xeb   : > { %p14311_p12 = scmp.lt.u32.totalorder %s14836_s26, %s17993_s9  ;;  %p14312_p3 = scmp.lt.u32.totalorder %s14310_s7, %s14305_s2 }
  0xec   : > { %p14308_p6 = pnand %p14306_p4, %p18198_p11  ;;  %p14314_p5 = scmp.lt.u32.totalorder %s14305_s2, %s14836_s26 }
  0xed   : > { %p14313_p9 = por %p14312_p3, %p14311_p12 }
  0xee   : > { %p14309_p10 = pneg %p14308_p6 }
  0xef   : > { %p14315_p0 = por %p14314_p5, %p14313_p9 }
  0xf1   : > { %p14316_p13 = pnand %p14315_p0, %p14309_p10 }
  0xf3   : > { %14319 = shalt.err (!%p14316_p13)
}
  0xf4   : > { %s14320_s23 = scalar_lea.vmem %s505_s22, 64  ;;  %s14446_s19 = smov [#allocation16]  }
  0xf5   : > { %p14321_p2 = scmp.ne.s32.totalorder %s505_s22, %s14320_s23  ;;  %s14325_s16 = sshll.u32 %s14446_s19, 4  ;;  %s14326_s16 = int_to_ptr.vmem [resolvable:$false] %s14325_s16 }
  0xf6   : > { %s14327_s15 = scalar_lea.vmem %s14326_s16, 128  ;;  %p14328_p4 = scmp.lt.s32.totalorder %s505_s22, %s14326_s16 }
  0xf7   : > { %p14323_p7 = pnand %p14321_p2, %p18198_p11  ;;  %p14329_p6 = scmp.lt.s32.totalorder %s14327_s15, %s14320_s23 }
  0xf9   : > { %p14324_p1 = pneg %p14323_p7  ;;  %p14330_p8 = por %p14329_p6, %p14328_p4 }
  0xfb   : > { %p14331_p3 = pnand %p14330_p8, %p14324_p1 }
  0xfd   : > { %14334 = shalt.err (!%p14331_p3)
}
  0xfe   : > { %p18204_p12 = scmp.ne.s32.totalorder %s18180_s30, 0  ;;  %p18205_p10 = scmp.ne.s32.totalorder %s18190_s20, 0 }
 0x100   : > { %12938 = dma.hbm_to_vmem [thread:$0]  (!%p18204_p12), %s14836_s26, 64, %s505_s22, %s493_s4  }
 0x101   : > { %513 = sbr.rel (%p18205_p10) target bundleno = 2230 (0x8b6), region = 60 }
 0x108   : > { %p18206_p9 = scmp.eq.s32.totalorder %s14674_s28, 0 }
 0x10a   : > { %14388 = dma.done.wait (%p18206_p9), [#allocation5], 4096   ;;  %p18207_p11 = pmov %p18206_p9 }
 0x10b   : > { %s519_s24 = sand.u32 1, %s14674_s28   ;;  %s14866_s25 = sand.u32 1, %s14417_s14  }
 0x10c   : > { %14390 = vsyncadd (%p18207_p11), [#allocation5], 4294963200  ;;  %s11363_s27 = sshll.u32 %s14866_s25, 9  ;;  %s520_s30 = scalar_lea.sflag [#allocation8], %s519_s24 }
 0x10d   : > { %s14869_s12 = scalar_lea.vmem [#allocation7], %s11363_s27  ;;  %p18208_p8 = scmp.ne.s32.totalorder %s18186_s10, 0 }
 0x10f   : > { %14392 = dma.done.wait (%p18208_p8), %s520_s30, 8224  }
 0x110   : > { %14394 = vsyncadd (%p18208_p8), %s520_s30, 4294959072  ;;  %s11364_s20 = sshll.u32 %s14866_s25, 1  ;;  %s12892_s26 = smul.u32 4608, %s14866_s25 }
 0x111   : > { %s14877_s22 = scalar_lea.vmem [#allocation9], %s11364_s20  ;;  %s538_s28 = scalar_lea.sflag [#allocation11], %s519_s24 }
 0x112   : > { %s14879_s4 = scalar_lea.vmem [#allocation10], %s12892_s26 }
 0x113   : > { %14396 = dma.done.wait (%p18208_p8), %s538_s28, 73792  }
 0x114   : > { %14398 = vsyncadd (%p18208_p8), %s538_s28, 4294893504  ;;  %s11365_s2 = sshll.u32 %s14866_s25, 2  ;;  %s556_s11 = scalar_lea.sflag [#allocation14], %s519_s24 }
 0x115   : > { %s14886_s3 = scalar_lea.vmem [#allocation12], %s11365_s2  ;;  %s558_s7 = scalar_lea.vmem [#allocation13], %s14866_s25 }
 0x116   : > { %14400 = dma.done.wait (%p18208_p8), %s556_s11, 1040  }
 0x117   : > { %14402 = vsyncadd (%p18208_p8), %s556_s11, 4294966256  ;;  %s11366_s0 = sshll.u32 %s14866_s25, 6  ;;  %s573_s23 = scalar_lea.sflag [#allocation17], %s14866_s25 }
 0x118   : > { %s14894_s6 = scalar_lea.vmem [#allocation15], %s11366_s0  ;;  %s14897_s19 = scalar_lea.vmem [#allocation16], %s11365_s2 }
 0x119   : > { %14404 = dma.done.wait (%p18208_p8), %s573_s23, 64  }
 0x11a   : > { %14406 = vsyncadd (%p18208_p8), %s573_s23, 4294967232  ;;  %v18019_v0 = vmov 0   ;;  %s18209_s24 = sld [smem:[#allocation152_spill]]  ;;  %v13029_v2 = vld [vmem:[%s14869_s12 + $0x4] ss:$8 sps:$4 sm:$0xff]   ;;  %v14448_v36 = vmov 1  }
 0x11b   : > { %13012 = vset.pattern.permute.xlu1 %v18019_v0  ;;  %13011 = vset.pattern.permute.xlu0 %v18019_v0  ;;  %v13031_v3 = vld [vmem:[%s14869_s12] ss:$8 sps:$4 sm:$0xff]   ;;  %v13032_v5 = vld [vmem:[%s14869_s12 + $0x14] ss:$8 sps:$4 sm:$0xff]   ;;  %v13034_v6 = vld [vmem:[%s14869_s12 + $0x10] ss:$8 sps:$4 sm:$0xff]  }
 0x11c   : > { %1247 = vmatprep.subr.bf16.mxu0 %v13029_v2  ;;  %v13035_v7 = vld [vmem:[%s14869_s12 + $0x24] ss:$8 sps:$4 sm:$0xff]   ;;  %v13037_v9 = vld [vmem:[%s14869_s12 + $0x20] ss:$8 sps:$4 sm:$0xff]   ;;  %v13038_v10 = vld [vmem:[%s14869_s12 + $0x34] ss:$8 sps:$4 sm:$0xff]  }
 0x11d   : > { %1248 = vmatpush1.bf16.msra.mxu0 %v13031_v3  ;;  %v13040_v13 = vld [vmem:[%s14869_s12 + $0x30] ss:$8 sps:$4 sm:$0xff]   ;;  %v13041_v15 = vld [vmem:[%s14869_s12 + $0x44] ss:$8 sps:$4 sm:$0xff]   ;;  %v13043_v17 = vld [vmem:[%s14869_s12 + $0x40] ss:$8 sps:$4 sm:$0xff]  }
 0x11e   : > { %1249 = vmatprep.subr.bf16.mxu0 %v13032_v5  ;;  %v13044_v19 = vld [vmem:[%s14869_s12 + $0x54] ss:$8 sps:$4 sm:$0xff]   ;;  %v13046_v21 = vld [vmem:[%s14869_s12 + $0x50] ss:$8 sps:$4 sm:$0xff]   ;;  %v13047_v23 = vld [vmem:[%s14869_s12 + $0x64] ss:$8 sps:$4 sm:$0xff]  }
 0x11f   : > { %v13049_v25 = vld [vmem:[%s14869_s12 + $0x60] ss:$8 sps:$4 sm:$0xff]   ;;  %v13050_v27 = vld [vmem:[%s14869_s12 + $0x74] ss:$8 sps:$4 sm:$0xff]   ;;  %v13052_v29 = vld [vmem:[%s14869_s12 + $0x70] ss:$8 sps:$4 sm:$0xff]  }
 0x120   : > { %v1558_v1 = vld [vmem:[%s18209_s24 + $0x8] sm:$0xf]  ;;  %v1559_v4 = vld [vmem:[%s18209_s24 + $0xc] sm:$0xf]  ;;  %v1561_v8 = vld [vmem:[%s18209_s24 + $0x14] sm:$0xf] }
 0x121   : > { %1598 = vperm.xlu1 %13012, %v1558_v1   ;;  %1250 = vmatpush1.bf16.msra.mxu0 %v13034_v6  ;;  %v1563_v11 = vld [vmem:[%s18209_s24 + $0x1c] sm:$0xf]  ;;  %v1556_v12 = vld [vmem:[%s18209_s24] sm:$0xf]  ;;  %v1557_v14 = vld [vmem:[%s18209_s24 + $0x4] sm:$0xf] }
 0x122   : > { %1251 = vmatprep.subr.bf16.mxu0 %v13035_v7  ;;  %1574 = vperm.xlu0 %13011, %v1556_v12   ;;  %v1565_v16 = vld [vmem:[%s18209_s24 + $0x24] sm:$0xf]  ;;  %v1560_v18 = vld [vmem:[%s18209_s24 + $0x10] sm:$0xf]  ;;  %v1567_v20 = vld [vmem:[%s18209_s24 + $0x2c] sm:$0xf] }
 0x123   : > { %v1562_v22 = vld [vmem:[%s18209_s24 + $0x18] sm:$0xf]  ;;  %v1569_v24 = vld [vmem:[%s18209_s24 + $0x34] sm:$0xf]  ;;  %v1564_v26 = vld [vmem:[%s18209_s24 + $0x20] sm:$0xf] }
 0x124   : > { %v1571_v28 = vld [vmem:[%s18209_s24 + $0x3c] sm:$0xf]  ;;  %v1566_v30 = vld [vmem:[%s18209_s24 + $0x28] sm:$0xf]  ;;  %v13053_v31 = vld [vmem:[%s14869_s12 + $0x84] ss:$8 sps:$4 sm:$0xff]  }
 0x125   : > { %1610 = vperm.xlu1 %13012, %v1559_v4   ;;  %1252 = vmatpush1.bf16.msra.mxu0 %v13037_v9  ;;  %v1861_v32 = vld [vmem:[%s18209_s24 + $0x4] sm:$0xf]  ;;  %v13055_v33 = vld [vmem:[%s14869_s12 + $0x80] ss:$8 sps:$4 sm:$0xff]   ;;  %v1568_v35 = vld [vmem:[%s18209_s24 + $0x30] sm:$0xf] }
 0x126   : > { %1253 = vmatprep.subr.bf16.mxu0 %v13038_v10  ;;  %1586 = vperm.xlu0 %13011, %v1557_v14   ;;  %v13079_v34 = vld [vmem:[#allocation4 + $0x4] ss:$16 sps:$4 sm:$0xff]   ;;  %v1862_v38 = vld [vmem:[%s18209_s24 + $0x8] sm:$0xf]  ;;  %v13058_v39 = vld [vmem:[%s14869_s12 + $0x90] ss:$8 sps:$4 sm:$0xff]  }
 0x127   : > { %v13056_v37 = vld [vmem:[%s14869_s12 + $0x94] ss:$8 sps:$4 sm:$0xff]   ;;  %1279 = vmatprep.mubr.bf16.mxu0 %v13079_v34  ;;  %v1570_v40 = vld [vmem:[%s18209_s24 + $0x38] sm:$0xf]  ;;  %v13059_v41 = vld [vmem:[%s14869_s12 + $0xa4] ss:$8 sps:$4 sm:$0xff]  }
 0x128   : > { %v1864_v42 = vld [vmem:[%s18209_s24 + $0x10] sm:$0xf]  ;;  %v13061_v43 = vld [vmem:[%s14869_s12 + $0xa0] ss:$8 sps:$4 sm:$0xff]   ;;  %v13062_v44 = vld [vmem:[%s14869_s12 + $0xb4] ss:$8 sps:$4 sm:$0xff]  }
 0x129   : > { %1634 = vperm.xlu1 %13012, %v1561_v8   ;;  %1254 = vmatpush1.bf16.msra.mxu0 %v13040_v13  ;;  %v1860_v45 = vld [vmem:[%s18209_s24] sm:$0xf]  ;;  %v1866_v46 = vld [vmem:[%s18209_s24 + $0x18] sm:$0xf]  ;;  %v13065_v48 = vld [vmem:[%s14869_s12 + $0xc4] ss:$8 sps:$4 sm:$0xff]  }
 0x12a   : > { %1255 = vmatprep.subr.bf16.mxu0 %v13041_v15  ;;  %1622 = vperm.xlu0 %13011, %v1560_v18   ;;  %v13064_v47 = vld [vmem:[%s14869_s12 + $0xb0] ss:$8 sps:$4 sm:$0xff]   ;;  %v1863_v49 = vld [vmem:[%s18209_s24 + $0xc] sm:$0xf]  ;;  %v1868_v50 = vld [vmem:[%s18209_s24 + $0x20] sm:$0xf] }
 0x12b   : > { %v13067_v51 = vld [vmem:[%s14869_s12 + $0xc0] ss:$8 sps:$4 sm:$0xff]   ;;  %v13068_v52 = vld [vmem:[%s14869_s12 + $0xd4] ss:$8 sps:$4 sm:$0xff]   ;;  %v13070_v55 = vld [vmem:[%s14869_s12 + $0xd0] ss:$8 sps:$4 sm:$0xff]  }
 0x12c   : > { %v1865_v53 = vld [vmem:[%s18209_s24 + $0x14] sm:$0xf]  ;;  %v1870_v54 = vld [vmem:[%s18209_s24 + $0x28] sm:$0xf]  ;;  %v13071_v56 = vld [vmem:[%s14869_s12 + $0xe4] ss:$8 sps:$4 sm:$0xff]  }
 0x12d   : > { %1658 = vperm.xlu1 %13012, %v1563_v11   ;;  %1256 = vmatpush1.bf16.msra.mxu0 %v13043_v17  ;;  %v1867_v57 = vld [vmem:[%s18209_s24 + $0x1c] sm:$0xf]  ;;  %v1872_v58 = vld [vmem:[%s18209_s24 + $0x30] sm:$0xf]  ;;  %v13073_v59 = vld [vmem:[%s14869_s12 + $0xe0] ss:$8 sps:$4 sm:$0xff]  }
 0x12e   : > { %1257 = vmatprep.subr.bf16.mxu0 %v13044_v19  ;;  %1646 = vperm.xlu0 %13011, %v1562_v22   ;;  %v13074_v60 = vld [vmem:[%s14869_s12 + $0xf4] ss:$8 sps:$4 sm:$0xff]   ;;  %v1869_v61 = vld [vmem:[%s18209_s24 + $0x24] sm:$0xf]  ;;  %v1874_v62 = vld [vmem:[%s18209_s24 + $0x38] sm:$0xf] }
 0x12f   : > { %v13076_v63 = vld [vmem:[%s14869_s12 + $0xf0] ss:$8 sps:$4 sm:$0xff]   ;;  %v13082_v1 = vld [vmem:[%s14869_s12 + $0x104] ss:$8 sps:$4 sm:$0xff]   ;;  %v2229_v4 = vld [vmem:[%s18209_s24] sm:$0xf] }
 0x130   : > { %v1871_v2 = vld [vmem:[%s18209_s24 + $0x2c] sm:$0xf]  ;;  %v13077_v3 = vld [vmem:[#allocation4] ss:$16 sps:$4 sm:$0xff]   ;;  %v13086_v6 = vld [vmem:[#allocation4 + $0x24] ss:$16 sps:$4 sm:$0xff]  }
 0x131   : > { %1682 = vperm.xlu1 %13012, %v1565_v16   ;;  %1258 = vmatpush1.bf16.msra.mxu0 %v13046_v21  ;;  %v13080_v5 = vld [vmem:[%s14869_s12 + $0x100] ss:$8 sps:$4 sm:$0xff]   ;;  %v13085_v7 = vld [vmem:[%s14869_s12 + $0x114] ss:$8 sps:$4 sm:$0xff]   ;;  %v14449_v8 = vmov 2   ;;  %s18614_s15 = sld [smem:[#allocation156_spill]] }
 0x132   : > { %1259 = vmatprep.subr.bf16.mxu0 %v13047_v23  ;;  %1670 = vperm.xlu0 %13011, %v1564_v26   ;;  %v1873_v9 = vld [vmem:[%s18209_s24 + $0x34] sm:$0xf]  ;;  %v2231_v10 = vld [vmem:[%s18209_s24 + $0x8] sm:$0xf]  ;;  %v13083_v11 = vld [vmem:[%s14869_s12 + $0x110] ss:$8 sps:$4 sm:$0xff]  }
 0x133   : > { %v13091_v12 = vld [vmem:[%s14869_s12 + $0x124] ss:$8 sps:$4 sm:$0xff]   ;;  %v1875_v13 = vld [vmem:[%s18209_s24 + $0x3c] sm:$0xf]  ;;  %v13088_v15 = vld [vmem:[#allocation4 + $0x20] ss:$16 sps:$4 sm:$0xff]  }
 0x134   : > { %v2232_v14 = vld [vmem:[%s18209_s24 + $0xc] sm:$0xf]  ;;  %v13089_v16 = vld [vmem:[%s14869_s12 + $0x120] ss:$8 sps:$4 sm:$0xff]   ;;  %v13095_v17 = vld [vmem:[#allocation4 + $0x44] ss:$16 sps:$4 sm:$0xff]  }
 0x135   : > { %1706 = vperm.xlu1 %13012, %v1567_v20   ;;  %1260 = vmatpush1.bf16.msra.mxu0 %v13049_v25  ;;  %v13094_v18 = vld [vmem:[%s14869_s12 + $0x134] ss:$8 sps:$4 sm:$0xff]   ;;  %v2230_v19 = vld [vmem:[%s18209_s24 + $0x4] sm:$0xf]  ;;  %v13092_v21 = vld [vmem:[%s14869_s12 + $0x130] ss:$8 sps:$4 sm:$0xff]  }
 0x136   : > { %1261 = vmatprep.subr.bf16.mxu0 %v13050_v27  ;;  %1694 = vperm.xlu0 %13011, %v1566_v30   ;;  %v2234_v20 = vld [vmem:[%s18209_s24 + $0x14] sm:$0xf]  ;;  %v13100_v22 = vld [vmem:[%s14869_s12 + $0x144] ss:$8 sps:$4 sm:$0xff]   ;;  %v2236_v23 = vld [vmem:[%s18209_s24 + $0x1c] sm:$0xf] }
 0x137   : > { %v2233_v25 = vld [vmem:[%s18209_s24 + $0x10] sm:$0xf]  ;;  %v13098_v26 = vld [vmem:[%s14869_s12 + $0x140] ss:$8 sps:$4 sm:$0xff]   ;;  %v13104_v27 = vld [vmem:[#allocation4 + $0x64] ss:$16 sps:$4 sm:$0xff]  }
 0x138   : > { %v2238_v30 = vld [vmem:[%s18209_s24 + $0x24] sm:$0xf]  ;;  %v13106_v34 = vld [vmem:[#allocation4 + $0x60] ss:$16 sps:$4 sm:$0xff]   ;;  %vm10543_vm2 = vcmask 1041409   ;;  %vm10900_vm3 = vcmask 261120  }
 0x139   : > { %1730 = vperm.xlu1 %13012, %v1569_v24   ;;  %1262 = vmatpush1.bf16.msra.mxu0 %v13052_v29  ;;  %v13097_v24 = vld [vmem:[#allocation4 + $0x40] ss:$16 sps:$4 sm:$0xff]   ;;  %v2235_v29 = vld [vmem:[%s18209_s24 + $0x18] sm:$0xf]  ;;  %vm11082_vm4 = vcmask 1043459   ;;  %vm11084_vm5 = vcmask 1045509  }
 0x13a   : > { %1263 = vmatprep.subr.bf16.mxu0 %v13053_v31  ;;  %1718 = vperm.xlu0 %13011, %v1568_v35   ;;  %v13101_v31 = vld [vmem:[%s14869_s12 + $0x150] ss:$8 sps:$4 sm:$0xff]   ;;  %v2237_v35 = vld [vmem:[%s18209_s24 + $0x20] sm:$0xf]  ;;  %vm11086_vm6 = vcmask 1047559   ;;  %s18644_s20 = sld [smem:[#allocation158_spill]] }
 0x13b   : > { %s11091_s28 = scalar_lea.sflag [#allocation6], %s14866_s25  ;;  %p18645_p13 = scmp.ne.s32.totalorder %s18188_s29, 0 }
 0x13c   : > { %s14458_s11 = smov [#allocation18]  }
 0x13d   : > { %1754 = vperm.xlu1 %13012, %v1571_v28   ;;  %1264 = vmatpush1.bf16.msra.mxu0 %v13055_v33  ;;  %v13103_v28 = vld [vmem:[%s14869_s12 + $0x154] ss:$8 sps:$4 sm:$0xff]   ;;  %v2240_v33 = vld [vmem:[%s18209_s24 + $0x2c] sm:$0xf]  ;;  %s14339_s0 = sshll.u32 %s14458_s11, 4  ;;  %s14340_s0 = int_to_ptr.vmem [resolvable:$false] %s14339_s0 }
 0x13e   : > { %1265 = vmatprep.subr.bf16.mxu0 %v13056_v37  ;;  %1742 = vperm.xlu0 %13011, %v1570_v40   ;;  %v13113_v37 = vld [vmem:[#allocation4 + $0x84] ss:$16 sps:$4 sm:$0xff]  }
 0x13f   : > { %v2242_v40 = vld [vmem:[%s18209_s24 + $0x34] sm:$0xf] }
 0x141   : > { %13014 = vset.pattern.permute.xlu1 %v14448_v36  ;;  %1266 = vmatpush1.bf16.msra.mxu0 %v13058_v39  ;;  %v2239_v39 = vld [vmem:[%s18209_s24 + $0x28] sm:$0xf] }
 0x142   : > { %1890 = vperm.xlu1 %13014, %v1861_v32   ;;  %1267 = vmatprep.subr.bf16.mxu0 %v13059_v41  ;;  %v13109_v32 = vld [vmem:[%s14869_s12 + $0x164] ss:$8 sps:$4 sm:$0xff]   ;;  %v13110_v41 = vld [vmem:[%s14869_s12 + $0x170] ss:$8 sps:$4 sm:$0xff]  }
 0x143   : > { %13013 = vset.pattern.permute.xlu0 %v14448_v36  ;;  %v13107_v36 = vld [vmem:[%s14869_s12 + $0x160] ss:$8 sps:$4 sm:$0xff]  }
 0x144   : > { %1878 = vperm.xlu0 %13013, %v1860_v45   ;;  %v2244_v45 = vld [vmem:[%s18209_s24 + $0x3c] sm:$0xf] }
 0x145   : > { %1268 = vmatpush1.bf16.msra.mxu0 %v13061_v43  ;;  %v13115_v43 = vld [vmem:[#allocation4 + $0x80] ss:$16 sps:$4 sm:$0xff]  }
 0x146   : > { %1902 = vperm.xlu1 %13014, %v1862_v38   ;;  %1269 = vmatprep.subr.bf16.mxu0 %v13062_v44  ;;  %v13112_v38 = vld [vmem:[%s14869_s12 + $0x174] ss:$8 sps:$4 sm:$0xff]   ;;  %v2241_v44 = vld [vmem:[%s18209_s24 + $0x30] sm:$0xf] }
 0x148   : > { %1914 = vperm.xlu0 %13013, %v1863_v49   ;;  %v13119_v49 = vld [vmem:[%s14869_s12 + $0x190] ss:$8 sps:$4 sm:$0xff]  }
 0x149   : > { %1270 = vmatpush1.bf16.msra.mxu0 %v13064_v47  ;;  %v13122_v47 = vld [vmem:[#allocation4 + $0xa4] ss:$16 sps:$4 sm:$0xff]  }
 0x14a   : > { %1926 = vperm.xlu1 %13014, %v1864_v42   ;;  %1271 = vmatprep.subr.bf16.mxu0 %v13065_v48  ;;  %v13118_v42 = vld [vmem:[%s14869_s12 + $0x184] ss:$8 sps:$4 sm:$0xff]   ;;  %v13121_v48 = vld [vmem:[%s14869_s12 + $0x194] ss:$8 sps:$4 sm:$0xff]  }
 0x14c   : > { %1938 = vperm.xlu0 %13013, %v1865_v53   ;;  %v13124_v53 = vld [vmem:[#allocation4 + $0xa0] ss:$16 sps:$4 sm:$0xff]  }
 0x14d   : > { %1272 = vmatpush1.bf16.msra.mxu0 %v13067_v51  ;;  %v13127_v51 = vld [vmem:[%s14869_s12 + $0x1a4] ss:$8 sps:$4 sm:$0xff]  }
 0x14e   : > { %1950 = vperm.xlu1 %13014, %v1866_v46   ;;  %1273 = vmatprep.subr.bf16.mxu0 %v13068_v52  ;;  %v13116_v46 = vld [vmem:[%s14869_s12 + $0x180] ss:$8 sps:$4 sm:$0xff]   ;;  %v2243_v52 = vld [vmem:[%s18209_s24 + $0x38] sm:$0xf] }
 0x150   : > { %1962 = vperm.xlu0 %13013, %v1867_v57   ;;  %v13130_v57 = vld [vmem:[%s14869_s12 + $0x1b4] ss:$8 sps:$4 sm:$0xff]  }
 0x151   : > { %1274 = vmatpush1.bf16.msra.mxu0 %v13070_v55  ;;  %v14450_v55 = vmov 3  }
 0x152   : > { %1974 = vperm.xlu1 %13014, %v1868_v50   ;;  %1275 = vmatprep.subr.bf16.mxu0 %v13071_v56  ;;  %v2534_v50 = vld [vmem:[%s18209_s24 + $0x4] sm:$0xf]  ;;  %v2535_v56 = vld [vmem:[%s18209_s24 + $0x8] sm:$0xf] }
 0x154   : > { %1986 = vperm.xlu0 %13013, %v1869_v61   ;;  %v2537_v61 = vld [vmem:[%s18209_s24 + $0x10] sm:$0xf] }
 0x155   : > { %1276 = vmatpush1.bf16.msra.mxu0 %v13073_v59  ;;  %v2533_v59 = vld [vmem:[%s18209_s24] sm:$0xf] }
 0x156   : > { %1998 = vperm.xlu1 %13014, %v1870_v54   ;;  %1277 = vmatprep.subr.bf16.mxu0 %v13074_v60  ;;  %v13125_v54 = vld [vmem:[%s14869_s12 + $0x1a0] ss:$8 sps:$4 sm:$0xff]   ;;  %v13128_v60 = vld [vmem:[%s14869_s12 + $0x1b0] ss:$8 sps:$4 sm:$0xff]  }
 0x158   : > { %2010 = vperm.xlu0 %13013, %v1871_v2   ;;  %v13134_v2 = vld [vmem:[%s14869_s12 + $0x1c0] ss:$8 sps:$4 sm:$0xff]  }
 0x159   : > { %1278 = vmatpush1.bf16.msra.mxu0 %v13076_v63  ;;  %v2536_v63 = vld [vmem:[%s18209_s24 + $0xc] sm:$0xf] }
 0x15a   : > { %2022 = vperm.xlu1 %13014, %v1872_v58   ;;  %1360 = vmatprep.subr.bf16.mxu0 %v13082_v1  ;;  %v13131_v58 = vld [vmem:[#allocation4 + $0xc4] ss:$16 sps:$4 sm:$0xff]   ;;  %v13133_v1 = vld [vmem:[#allocation4 + $0xc0] ss:$16 sps:$4 sm:$0xff]  }
 0x15c   : > { %1280 = vmatmul.mubr.bf16.vlgmr.msra.gmra.mrb[0].mxu0 %v13077_v3  ;;  %2034 = vperm.xlu0 %13013, %v1873_v9   ;;  %v2539_v3 = vld [vmem:[%s18209_s24 + $0x18] sm:$0xf]  ;;  %v13145_v9 = vld [vmem:[%s14869_s12 + $0x1e4] ss:$8 sps:$4 sm:$0xff]  }
 0x15d   : > { %1361 = vmatpush1.bf16.msra.mxu0 %v13080_v5  ;;  %1289 = vmatprep.mubr.bf16.mxu0 %v13086_v6  ;;  %v13140_v5 = vld [vmem:[#allocation4 + $0xe4] ss:$16 sps:$4 sm:$0xff]  }
 0x15e   : > { %2046 = vperm.xlu1 %13014, %v1874_v62   ;;  %1362 = vmatprep.subr.bf16.mxu0 %v13085_v7  ;;  %v13136_v62 = vld [vmem:[%s14869_s12 + $0x1c4] ss:$8 sps:$4 sm:$0xff]   ;;  %v2538_v6 = vld [vmem:[%s18209_s24 + $0x14] sm:$0xf]  ;;  %v13137_v7 = vld [vmem:[%s14869_s12 + $0x1d0] ss:$8 sps:$4 sm:$0xff]  }
 0x160   : > { %2058 = vperm.xlu0 %13013, %v1875_v13   ;;  %v2543_v13 = vld [vmem:[%s18209_s24 + $0x28] sm:$0xf] }
 0x161   : > { %1363 = vmatpush1.bf16.msra.mxu0 %v13083_v11  ;;  %v13142_v11 = vld [vmem:[#allocation4 + $0xe0] ss:$16 sps:$4 sm:$0xff]  }
 0x162   : > { %13015 = vset.pattern.permute.xlu1 %v14449_v8  ;;  %1364 = vmatprep.subr.bf16.mxu0 %v13091_v12  ;;  %v13143_v12 = vld [vmem:[%s14869_s12 + $0x1e0] ss:$8 sps:$4 sm:$0xff]  }
 0x163   : > { %2247 = vperm.xlu1 %13015, %v2229_v4   ;;  %v13139_v4 = vld [vmem:[%s14869_s12 + $0x1d4] ss:$8 sps:$4 sm:$0xff]  }
 0x164   : > { %1290 = vmatmul.mubr.bf16.gmra.mrb[4].mxu0 %v13088_v15  ;;  %13016 = vset.pattern.permute.xlu0 %v14449_v8  ;;  %v2541_v8 = vld [vmem:[%s18209_s24 + $0x20] sm:$0xf]  ;;  %v13151_v15 = vld [vmem:[#allocation4 + $0xc] ss:$16 sps:$4 sm:$0xff]  }
 0x165   : > { %1365 = vmatpush1.bf16.msra.mxu0 %v13089_v16  ;;  %1299 = vmatprep.mubr.bf16.mxu0 %v13095_v17  ;;  %v2542_v16 = vld [vmem:[%s18209_s24 + $0x24] sm:$0xf]  ;;  %v13146_v17 = vld [vmem:[%s14869_s12 + $0x1f0] ss:$8 sps:$4 sm:$0xff]  }
 0x166   : > { %1366 = vmatprep.subr.bf16.mxu0 %v13094_v18  ;;  %2259 = vperm.xlu0 %13016, %v2230_v19   ;;  %v2545_v18 = vld [vmem:[%s18209_s24 + $0x30] sm:$0xf]  ;;  %v2544_v19 = vld [vmem:[%s18209_s24 + $0x2c] sm:$0xf] }
 0x167   : > { %2271 = vperm.xlu1 %13015, %v2231_v10   ;;  %v2540_v10 = vld [vmem:[%s18209_s24 + $0x1c] sm:$0xf] }
 0x169   : > { %1367 = vmatpush1.bf16.msra.mxu0 %v13092_v21  ;;  %v2547_v21 = vld [vmem:[%s18209_s24 + $0x38] sm:$0xf] }
 0x16a   : > { %1368 = vmatprep.subr.bf16.mxu0 %v13100_v22  ;;  %2295 = vperm.xlu0 %13016, %v2233_v25   ;;  %v13152_v22 = vld [vmem:[#allocation4 + $0x2c] ss:$16 sps:$4 sm:$0xff]  }
 0x16b   : > { %2283 = vperm.xlu1 %13015, %v2232_v14   ;;  %v13148_v14 = vld [vmem:[%s14869_s12 + $0x1f4] ss:$8 sps:$4 sm:$0xff]  }
 0x16c   : > { %1300 = vmatmul.mubr.bf16.gmra.mrb[8].mxu0 %v13097_v24  ;;  %v2837_v24 = vld [vmem:[%s18209_s24] sm:$0xf]  ;;  %v2548_v25 = vld [vmem:[%s18209_s24 + $0x3c] sm:$0xf] }
 0x16d   : > { %1369 = vmatpush1.bf16.msra.mxu0 %v13098_v26  ;;  %1309 = vmatprep.mubr.bf16.mxu0 %v13104_v27  ;;  %v13154_v26 = vld [vmem:[#allocation4 + $0x28] ss:$16 sps:$4 sm:$0xff]   ;;  %v14451_v27 = vmov 4  }
 0x16e   : > { %1370 = vmatprep.subr.bf16.mxu0 %v13103_v28  ;;  %2319 = vperm.xlu0 %13016, %v2235_v29   ;;  %v2839_v28 = vld [vmem:[%s18209_s24 + $0x8] sm:$0xf]  ;;  %v13155_v29 = vld [vmem:[#allocation4 + $0x4c] ss:$16 sps:$4 sm:$0xff]  }
 0x16f   : > { %2307 = vperm.xlu1 %13015, %v2234_v20   ;;  %v13149_v20 = vld [vmem:[#allocation4 + $0x8] ss:$16 sps:$4 sm:$0xff]  }
 0x171   : > { %1371 = vmatpush1.bf16.msra.mxu0 %v13101_v31  ;;  %v2840_v31 = vld [vmem:[%s18209_s24 + $0xc] sm:$0xf] }
 0x172   : > { %1372 = vmatprep.subr.bf16.mxu0 %v13109_v32  ;;  %2343 = vperm.xlu0 %13016, %v2237_v35   ;;  %v13157_v32 = vld [vmem:[#allocation4 + $0x48] ss:$16 sps:$4 sm:$0xff]   ;;  %v2842_v35 = vld [vmem:[%s18209_s24 + $0x14] sm:$0xf] }
 0x173   : > { %2331 = vperm.xlu1 %13015, %v2236_v23   ;;  %v2546_v23 = vld [vmem:[%s18209_s24 + $0x34] sm:$0xf] }
 0x174   : > { %1310 = vmatmul.mubr.bf16.gmra.mrb[12].mxu0 %v13106_v34  ;;  %v13158_v34 = vld [vmem:[#allocation4 + $0x6c] ss:$16 sps:$4 sm:$0xff]  }
 0x175   : > { %1373 = vmatpush1.bf16.msra.mxu0 %v13107_v36  ;;  %1319 = vmatprep.mubr.bf16.mxu0 %v13113_v37  ;;  %v2843_v36 = vld [vmem:[%s18209_s24 + $0x18] sm:$0xf]  ;;  %v2844_v37 = vld [vmem:[%s18209_s24 + $0x1c] sm:$0xf] }
 0x176   : > { %1374 = vmatprep.subr.bf16.mxu0 %v13112_v38  ;;  %2367 = vperm.xlu0 %13016, %v2239_v39   ;;  %v13160_v38 = vld [vmem:[#allocation4 + $0x68] ss:$16 sps:$4 sm:$0xff]   ;;  %v2845_v39 = vld [vmem:[%s18209_s24 + $0x20] sm:$0xf] }
 0x177   : > { %2355 = vperm.xlu1 %13015, %v2238_v30   ;;  %v2838_v30 = vld [vmem:[%s18209_s24 + $0x4] sm:$0xf] }
 0x179   : > { %1375 = vmatpush1.bf16.msra.mxu0 %v13110_v41  ;;  %v2846_v41 = vld [vmem:[%s18209_s24 + $0x24] sm:$0xf] }
 0x17a   : > { %1376 = vmatprep.subr.bf16.mxu0 %v13118_v42  ;;  %2391 = vperm.xlu0 %13016, %v2241_v44   ;;  %v2848_v44 = vld [vmem:[%s18209_s24 + $0x2c] sm:$0xf] }
 0x17b   : > { %2379 = vperm.xlu1 %13015, %v2240_v33   ;;  %v2841_v33 = vld [vmem:[%s18209_s24 + $0x10] sm:$0xf] }
 0x17c   : > { %1320 = vmatmul.mubr.bf16.gmra.mrb[16].mxu0 %v13115_v43  ;;  %v2847_v43 = vld [vmem:[%s18209_s24 + $0x28] sm:$0xf] }
 0x17d   : > { %1377 = vmatpush1.bf16.msra.mxu0 %v13116_v46  ;;  %1329 = vmatprep.mubr.bf16.mxu0 %v13122_v47  ;;  %v2849_v46 = vld [vmem:[%s18209_s24 + $0x30] sm:$0xf]  ;;  %v13164_v47 = vld [vmem:[#allocation4 + $0xac] ss:$16 sps:$4 sm:$0xff]  }
 0x17e   : > { %1378 = vmatprep.subr.bf16.mxu0 %v13121_v48  ;;  %2415 = vperm.xlu0 %13016, %v2243_v52  }
 0x17f   : > { %2403 = vperm.xlu1 %13015, %v2242_v40   ;;  %v13161_v40 = vld [vmem:[#allocation4 + $0x8c] ss:$16 sps:$4 sm:$0xff]  }
 0x181   : > { %1379 = vmatpush1.bf16.msra.mxu0 %v13119_v49  ;;  %v2850_v49 = vld [vmem:[%s18209_s24 + $0x34] sm:$0xf] }
 0x182   : > { %1380 = vmatprep.subr.bf16.mxu0 %v13127_v51  ;;  %13017 = vset.pattern.permute.xlu0 %v14450_v55  ;;  %v2852_v51 = vld [vmem:[%s18209_s24 + $0x3c] sm:$0xf] }
 0x183   : > { %2427 = vperm.xlu1 %13015, %v2244_v45   ;;  %2551 = vperm.xlu0 %13017, %v2533_v59   ;;  %v13163_v45 = vld [vmem:[#allocation4 + $0x88] ss:$16 sps:$4 sm:$0xff]  }
 0x184   : > { %1330 = vmatmul.mubr.bf16.gmra.mrb[20].mxu0 %v13124_v53  ;;  %v13166_v53 = vld [vmem:[#allocation4 + $0xa8] ss:$16 sps:$4 sm:$0xff]  }
 0x185   : > { %1381 = vmatpush1.bf16.msra.mxu0 %v13125_v54  ;;  %1339 = vmatprep.mubr.bf16.mxu0 %v13131_v58  ;;  %v3141_v54 = vld [vmem:[%s18209_s24] sm:$0xf]  ;;  %v3144_v58 = vld [vmem:[%s18209_s24 + $0xc] sm:$0xf] }
 0x186   : > { %1382 = vmatprep.subr.bf16.mxu0 %v13130_v57  ;;  %v3142_v57 = vld [vmem:[%s18209_s24 + $0x4] sm:$0xf] }
 0x187   : > { %13018 = vset.pattern.permute.xlu1 %v14450_v55  ;;  %2587 = vperm.xlu0 %13017, %v2536_v63   ;;  %v13167_v55 = vld [vmem:[#allocation4 + $0xcc] ss:$16 sps:$4 sm:$0xff]   ;;  %v3146_v63 = vld [vmem:[%s18209_s24 + $0x14] sm:$0xf] }
 0x188   : > { %2563 = vperm.xlu1 %13018, %v2534_v50   ;;  %v2851_v50 = vld [vmem:[%s18209_s24 + $0x38] sm:$0xf] }
 0x189   : > { %1383 = vmatpush1.bf16.msra.mxu0 %v13128_v60  ;;  %v3143_v60 = vld [vmem:[%s18209_s24 + $0x8] sm:$0xf] }
 0x18a   : > { %1384 = vmatprep.subr.bf16.mxu0 %v13136_v62  ;;  %v13170_v62 = vld [vmem:[#allocation4 + $0xec] ss:$16 sps:$4 sm:$0xff]  }
 0x18b   : > { %2611 = vperm.xlu0 %13017, %v2538_v6   ;;  %v13172_v6 = vld [vmem:[#allocation4 + $0xe8] ss:$16 sps:$4 sm:$0xff]  }
 0x18c   : > { %2575 = vperm.xlu1 %13018, %v2535_v56   ;;  %1340 = vmatmul.mubr.bf16.gmra.mrb[24].mxu0 %v13133_v1  ;;  %v14452_v56 = vmov 5  }
 0x18d   : > { %1385 = vmatpush1.bf16.msra.mxu0 %v13134_v2  ;;  %1349 = vmatprep.mubr.bf16.mxu0 %v13140_v5  ;;  %v3145_v2 = vld [vmem:[%s18209_s24 + $0x10] sm:$0xf]  ;;  %v3147_v5 = vld [vmem:[%s18209_s24 + $0x18] sm:$0xf] }
 0x18e   : > { %1386 = vmatprep.subr.bf16.mxu0 %v13139_v4 }
 0x18f   : > { %2635 = vperm.xlu0 %13017, %v2540_v10   ;;  %v3149_v10 = vld [vmem:[%s18209_s24 + $0x20] sm:$0xf] }
 0x190   : > { %2599 = vperm.xlu1 %13018, %v2537_v61   ;;  %v13169_v61 = vld [vmem:[#allocation4 + $0xc8] ss:$16 sps:$4 sm:$0xff]  }
 0x191   : > { %1387 = vmatpush1.bf16.msra.mxu0 %v13137_v7  ;;  %v3150_v7 = vld [vmem:[%s18209_s24 + $0x24] sm:$0xf] }
 0x192   : > { %1388 = vmatprep.subr.bf16.mxu0 %v13145_v9  ;;  %v3152_v9 = vld [vmem:[%s18209_s24 + $0x2c] sm:$0xf] }
 0x193   : > { %2659 = vperm.xlu0 %13017, %v2542_v16   ;;  %v3156_v16 = vld [vmem:[%s18209_s24 + $0x3c] sm:$0xf] }
 0x194   : > { %2623 = vperm.xlu1 %13018, %v2539_v3   ;;  %1350 = vmatmul.mubr.bf16.gmra.mrb[28].mxu0 %v13142_v11  ;;  %v3148_v3 = vld [vmem:[%s18209_s24 + $0x1c] sm:$0xf] }
 0x195   : > { %1389 = vmatpush1.bf16.msra.mxu0 %v13143_v12  ;;  %1392 = vmatprep.mubr.bf16.mxu0 %v13151_v15  ;;  %v3154_v12 = vld [vmem:[%s18209_s24 + $0x34] sm:$0xf] }
 0x196   : > { %1390 = vmatprep.subr.bf16.mxu0 %v13148_v14  ;;  %v3151_v14 = vld [vmem:[%s18209_s24 + $0x28] sm:$0xf] }
 0x197   : > { %2683 = vperm.xlu0 %13017, %v2544_v19   ;;  %v3155_v19 = vld [vmem:[%s18209_s24 + $0x38] sm:$0xf] }
 0x198   : > { %2647 = vperm.xlu1 %13018, %v2541_v8  }
 0x199   : > { %1391 = vmatpush1.bf16.msra.mxu0 %v13146_v17  ;;  %v3153_v17 = vld [vmem:[%s18209_s24 + $0x30] sm:$0xf] }
 0x19b   : > { %2707 = vperm.xlu0 %13017, %v2546_v23   ;;  %v14453_v23 = vmov 6  }
 0x19c   : > { %2671 = vperm.xlu1 %13018, %v2543_v13   ;;  %1393 = vmatmul.mubr.bf16.vlgmr.msra.gmra.mrb[0].mxu0 %v13149_v20  ;;  %v3430_v20 = vld [vmem:[%s18209_s24 + $0x4] sm:$0xf] }
 0x19d   : > { %1402 = vmatprep.mubr.bf16.mxu0 %v13152_v22 }
 0x19f   : > { %2731 = vperm.xlu0 %13017, %v2548_v25   ;;  %v3429_v25 = vld [vmem:[%s18209_s24] sm:$0xf] }
 0x1a0   : > { %2695 = vperm.xlu1 %13018, %v2545_v18   ;;  %v15191_v42 = vpop.permute.xlu1 %1598 }
 0x1a1   : > { %v15240_v4 = vpop.permute.xlu0 %1574 }
 0x1a3   : > { %13020 = vset.pattern.permute.xlu0 %v14451_v27 }
 0x1a4   : > { %2719 = vperm.xlu1 %13018, %v2547_v21   ;;  %1403 = vmatmul.mubr.bf16.gmra.mrb[4].mxu0 %v13154_v26  ;;  %v15202_v48 = vpop.permute.xlu1 %1610 }
 0x1a5   : > { %1412 = vmatprep.mubr.bf16.mxu0 %v13155_v29  ;;  %2867 = vperm.xlu0 %13020, %v2838_v30   ;;  %v15256_v11 = vpop.permute.xlu0 %1586 }
 0x1a8   : > { %13019 = vset.pattern.permute.xlu1 %v14451_v27  ;;  %v15213_v52 = vpop.permute.xlu1 %1634  ;;  %v3435_v27 = vld [vmem:[%s18209_s24 + $0x18] sm:$0xf] }
 0x1a9   : > { %2855 = vperm.xlu1 %13019, %v2837_v24   ;;  %2903 = vperm.xlu0 %13020, %v2841_v33   ;;  %v15266_v15 = vpop.permute.xlu0 %1622  ;;  %v3433_v24 = vld [vmem:[%s18209_s24 + $0x10] sm:$0xf] }
 0x1ac   : > { %1413 = vmatmul.mubr.bf16.gmra.mrb[8].mxu0 %v13157_v32  ;;  %v15224_v59 = vpop.permute.xlu1 %1658  ;;  %v3437_v32 = vld [vmem:[%s18209_s24 + $0x20] sm:$0xf] }
 0x1ad   : > { %2879 = vperm.xlu1 %13019, %v2839_v28   ;;  %1422 = vmatprep.mubr.bf16.mxu0 %v13158_v34  ;;  %v15282_v21 = vpop.permute.xlu0 %1646  ;;  %v3431_v28 = vld [vmem:[%s18209_s24 + $0x8] sm:$0xf] }
 0x1ae   : > { %2927 = vperm.xlu0 %13020, %v2843_v36   ;;  %v3439_v34 = vld [vmem:[%s18209_s24 + $0x28] sm:$0xf] }
 0x1b0   : > { %v15232_v1 = vpop.permute.xlu1 %1682 }
 0x1b1   : > { %2891 = vperm.xlu1 %13019, %v2840_v31   ;;  %v15292_v26 = vpop.permute.xlu0 %1670  ;;  %v3432_v31 = vld [vmem:[%s18209_s24 + $0xc] sm:$0xf] }
 0x1b2   : > { %2951 = vperm.xlu0 %13020, %v2845_v39   ;;  %v13173_v39 = vld [vmem:[%s14879_s4 + $0x4] ss:$16 sps:$4 sm:$0xff]  }
 0x1b3   : > { %7931 = vmatprep.subr.bf16.mxu1 %v13173_v39  ;;  %v3719_v39 = vld [vmem:[%s18209_s24 + $0x8] sm:$0xf] }
 0x1b4   : > { %1423 = vmatmul.mubr.bf16.gmra.mrb[12].mxu0 %v13160_v38  ;;  %v15248_v8 = vpop.permute.xlu1 %1706  ;;  %v3436_v38 = vld [vmem:[%s18209_s24 + $0x1c] sm:$0xf] }
 0x1b5   : > { %2915 = vperm.xlu1 %13019, %v2842_v35   ;;  %1432 = vmatprep.mubr.bf16.mxu0 %v13161_v40  ;;  %v15302_v30 = vpop.permute.xlu0 %1694  ;;  %v3434_v35 = vld [vmem:[%s18209_s24 + $0x14] sm:$0xf]  ;;  %v13177_v40 = vld [vmem:[%s14879_s4 + $0xc] ss:$16 sps:$4 sm:$0xff]  }
 0x1b6   : > { %2975 = vperm.xlu0 %13020, %v2847_v43   ;;  %18214 = vst [vmem:[#allocation33_spill] sm:$0xff] %v15302_v30  ;;  %v13175_v43 = vld [vmem:[%s14879_s4 + $0x8] ss:$16 sps:$4 sm:$0xff]   ;;  %8948 = vmatprep.subr.bf16.mxu0 %v13177_v40  ;;  %v13209_v40 = vld [vmem:[%s14879_s4 + $0xc4] ss:$16 sps:$4 sm:$0xff]  }
 0x1b7   : > { %8949 = vmatpush1.bf16.msra.mxu0 %v13175_v43  ;;  %v13213_v43 = vld [vmem:[%s14879_s4 + $0xcc] ss:$16 sps:$4 sm:$0xff]  }
 0x1b8   : > { %v15261_v13 = vpop.permute.xlu1 %1730 }
 0x1b9   : > { %2939 = vperm.xlu1 %13019, %v2844_v37   ;;  %18210 = vst [vmem:[#allocation29_spill] sm:$0xff] %v15261_v13  ;;  %v15318_v36 = vpop.permute.xlu0 %1718  ;;  %v3441_v37 = vld [vmem:[%s18209_s24 + $0x30] sm:$0xf] }
 0x1ba   : > { %2999 = vperm.xlu0 %13020, %v2849_v46   ;;  %18216 = vst [vmem:[#allocation35_spill] sm:$0xff] %v15318_v36  ;;  %v3438_v46 = vld [vmem:[%s18209_s24 + $0x24] sm:$0xf] }
 0x1bc   : > { %1433 = vmatmul.mubr.bf16.gmra.mrb[16].mxu0 %v13163_v45  ;;  %v15274_v18 = vpop.permute.xlu1 %1754 }
 0x1bd   : > { %2963 = vperm.xlu1 %13019, %v2846_v41   ;;  %1442 = vmatprep.mubr.bf16.mxu0 %v13164_v47  ;;  %18211 = vst [vmem:[#allocation30_spill] sm:$0xff] %v15274_v18  ;;  %v15332_v45 = vpop.permute.xlu0 %1742  ;;  %v3443_v47 = vld [vmem:[%s18209_s24 + $0x38] sm:$0xf] }
 0x1be   : > { %3023 = vperm.xlu0 %13020, %v2851_v50   ;;  %18218 = vst [vmem:[#allocation37_spill] sm:$0xff] %v15332_v45  ;;  %v13183_v50 = vld [vmem:[%s14879_s4 + $0x2c] ss:$16 sps:$4 sm:$0xff]  }
 0x1bf   : > { %8950 = vmatprep.subr.bf16.mxu0 %v13183_v50  ;;  %v3721_v50 = vld [vmem:[%s18209_s24 + $0x10] sm:$0xf] }
 0x1c1   : > { %2987 = vperm.xlu1 %13019, %v2848_v44   ;;  %v15284_v22 = vpop.permute.xlu1 %1890  ;;  %v13178_v44 = vld [vmem:[%s14879_s4] ss:$16 sps:$4 sm:$0xff]  }
 0x1c2   : > { %13021 = vset.pattern.permute.xlu0 %v14452_v56  ;;  %18212 = vst [vmem:[#allocation31_spill] sm:$0xff] %v15284_v22  ;;  %7932 = vmatpush1.bf16.msra.mxu1 %v13178_v44  ;;  %v13211_v44 = vld [vmem:[%s14879_s4 + $0xc8] ss:$16 sps:$4 sm:$0xff]  }
 0x1c3   : > { %3159 = vperm.xlu0 %13021, %v3141_v54  }
 0x1c4   : > { %1443 = vmatmul.mubr.bf16.gmra.mrb[20].mxu0 %v13166_v53  ;;  %v13184_v53 = vld [vmem:[%s14879_s4 + $0x20] ss:$16 sps:$4 sm:$0xff]  }
 0x1c5   : > { %3011 = vperm.xlu1 %13019, %v2850_v49   ;;  %1452 = vmatprep.mubr.bf16.mxu0 %v13167_v55  ;;  %v15300_v29 = vpop.permute.xlu1 %1902  ;;  %v13179_v49 = vld [vmem:[%s14879_s4 + $0x24] ss:$16 sps:$4 sm:$0xff]   ;;  %v3440_v55 = vld [vmem:[%s18209_s24 + $0x2c] sm:$0xf] }
 0x1c6   : > { %18213 = vst [vmem:[#allocation32_spill] sm:$0xff] %v15300_v29  ;;  %7933 = vmatprep.subr.bf16.mxu1 %v13179_v49  ;;  %v3728_v49 = vld [vmem:[%s18209_s24 + $0x2c] sm:$0xf] }
 0x1c7   : > { %3195 = vperm.xlu0 %13021, %v3144_v58   ;;  %7934 = vmatpush1.bf16.msra.mxu1 %v13184_v53  ;;  %v13189_v58 = vld [vmem:[%s14879_s4 + $0x4c] ss:$16 sps:$4 sm:$0xff]  }
 0x1c8   : > { %v13219_v53 = vld [vmem:[%s14879_s4 + $0xec] ss:$16 sps:$4 sm:$0xff]  }
 0x1c9   : > { %3035 = vperm.xlu1 %13019, %v2852_v51   ;;  %v15310_v33 = vpop.permute.xlu1 %1926  ;;  %v13181_v51 = vld [vmem:[%s14879_s4 + $0x28] ss:$16 sps:$4 sm:$0xff]  }
 0x1ca   : > { %18215 = vst [vmem:[#allocation34_spill] sm:$0xff] %v15310_v33  ;;  %8951 = vmatpush1.bf16.msra.mxu0 %v13181_v51  ;;  %v13215_v51 = vld [vmem:[%s14879_s4 + $0xe4] ss:$16 sps:$4 sm:$0xff]  }
 0x1cb   : > { %3219 = vperm.xlu0 %13021, %v3146_v63   ;;  %8952 = vmatprep.subr.bf16.mxu0 %v13189_v58  ;;  %v3442_v63 = vld [vmem:[%s18209_s24 + $0x34] sm:$0xf] }
 0x1cc   : > { %1453 = vmatmul.mubr.bf16.gmra.mrb[24].mxu0 %v13169_v61  ;;  %v13190_v61 = vld [vmem:[%s14879_s4 + $0x40] ss:$16 sps:$4 sm:$0xff]  }
 0x1cd   : > { %13022 = vset.pattern.permute.xlu1 %v14452_v56  ;;  %1462 = vmatprep.mubr.bf16.mxu0 %v13170_v62  ;;  %v15328_v41 = vpop.permute.xlu1 %1950  ;;  %v3717_v56 = vld [vmem:[%s18209_s24] sm:$0xf]  ;;  %v15356_v62 = vpop.permute.xlu0 %1878  ;;  %v3730_v58 = vld [vmem:[%s18209_s24 + $0x34] sm:$0xf] }
 0x1ce   : > { %3171 = vperm.xlu1 %13022, %v3142_v57   ;;  %18217 = vst [vmem:[#allocation36_spill] sm:$0xff] %v15328_v41  ;;  %v13185_v57 = vld [vmem:[%s14879_s4 + $0x44] ss:$16 sps:$4 sm:$0xff]   ;;  %18220 = vst [vmem:[#allocation39_spill] sm:$0xff] %v15356_v62 }
 0x1cf   : > { %3243 = vperm.xlu0 %13021, %v3148_v3   ;;  %7935 = vmatprep.subr.bf16.mxu1 %v13185_v57  ;;  %v3720_v3 = vld [vmem:[%s18209_s24 + $0xc] sm:$0xf]  ;;  %v13220_v57 = vld [vmem:[%s14879_s4 + $0xe0] ss:$16 sps:$4 sm:$0xff]  }
 0x1d0   : > { %7936 = vmatpush1.bf16.msra.mxu1 %v13190_v61 }
 0x1d1   : > { %v15344_v54 = vpop.permute.xlu1 %1974 }
 0x1d2   : > { %3183 = vperm.xlu1 %13022, %v3143_v60   ;;  %18219 = vst [vmem:[#allocation38_spill] sm:$0xff] %v15344_v54  ;;  %v13187_v60 = vld [vmem:[%s14879_s4 + $0x48] ss:$16 sps:$4 sm:$0xff]  }
 0x1d3   : > { %3267 = vperm.xlu0 %13021, %v3150_v7   ;;  %8953 = vmatpush1.bf16.msra.mxu0 %v13187_v60  ;;  %v3723_v60 = vld [vmem:[%s18209_s24 + $0x18] sm:$0xf] }
 0x1d4   : > { %1463 = vmatmul.mubr.bf16.gmra.mrb[28].mxu0 %v13172_v6  ;;  %v13195_v6 = vld [vmem:[%s14879_s4 + $0x6c] ss:$16 sps:$4 sm:$0xff]  }
 0x1d5   : > { %v15366_v7 = vpop.permute.xlu1 %1998  ;;  %8954 = vmatprep.subr.bf16.mxu0 %v13195_v6  ;;  %v3732_v6 = vld [vmem:[%s18209_s24 + $0x3c] sm:$0xf] }
 0x1d6   : > { %3207 = vperm.xlu1 %13022, %v3145_v2   ;;  %v14454_v2 = vmov 7   ;;  %18221 = vst [vmem:[#allocation40_spill] sm:$0xff] %v15366_v7 }
 0x1d7   : > { %3291 = vperm.xlu0 %13021, %v3152_v9   ;;  %v13193_v9 = vld [vmem:[%s14879_s4 + $0x68] ss:$16 sps:$4 sm:$0xff]  }
 0x1d8   : > { %8955 = vmatpush1.bf16.msra.mxu0 %v13193_v9 }
 0x1da   : > { %3231 = vperm.xlu1 %13022, %v3147_v5   ;;  %v13191_v5 = vld [vmem:[%s14879_s4 + $0x64] ss:$16 sps:$4 sm:$0xff]  }
 0x1db   : > { %3315 = vperm.xlu0 %13021, %v3154_v12   ;;  %7937 = vmatprep.subr.bf16.mxu1 %v13191_v5  ;;  %v15370_v12 = vpop.permute.xlu0 %1914  ;;  %v13226_v5 = vld [vmem:[%s14879_s4 + $0x100] ss:$16 sps:$4 sm:$0xff]  }
 0x1dc   : > { %18222 = vst [vmem:[#allocation41_spill] sm:$0xff] %v15370_v12 }
 0x1de   : > { %3255 = vperm.xlu1 %13022, %v3149_v10   ;;  %v13196_v10 = vld [vmem:[%s14879_s4 + $0x60] ss:$16 sps:$4 sm:$0xff]  }
 0x1df   : > { %3339 = vperm.xlu0 %13021, %v3156_v16   ;;  %7938 = vmatpush1.bf16.msra.mxu1 %v13196_v10  ;;  %v3722_v16 = vld [vmem:[%s18209_s24 + $0x14] sm:$0xf]  ;;  %v3725_v10 = vld [vmem:[%s18209_s24 + $0x20] sm:$0xf] }
 0x1e2   : > { %3279 = vperm.xlu1 %13022, %v3151_v14   ;;  %v3444_v14 = vld [vmem:[%s18209_s24 + $0x3c] sm:$0xf] }
 0x1e3   : > { %13024 = vset.pattern.permute.xlu0 %v14453_v23 }
 0x1e4   : > { %3459 = vperm.xlu0 %13024, %v3430_v20   ;;  %v13199_v20 = vld [vmem:[%s14879_s4 + $0x88] ss:$16 sps:$4 sm:$0xff]  }
 0x1e6   : > { %3303 = vperm.xlu1 %13022, %v3153_v17   ;;  %v13197_v17 = vld [vmem:[%s14879_s4 + $0x84] ss:$16 sps:$4 sm:$0xff]  }
 0x1e7   : > { %7939 = vmatprep.subr.bf16.mxu1 %v13197_v17  ;;  %v13229_v17 = vld [vmem:[%s14879_s4 + $0x128] ss:$16 sps:$4 sm:$0xff]  }
 0x1e8   : > { %3495 = vperm.xlu0 %13024, %v3433_v24   ;;  %v15382_v24 = vpop.permute.xlu1 %2022 }
 0x1e9   : > { %18223 = vst [vmem:[#allocation42_spill] sm:$0xff] %v15382_v24 }
 0x1ea   : > { %3327 = vperm.xlu1 %13022, %v3155_v19   ;;  %v13201_v19 = vld [vmem:[%s14879_s4 + $0x8c] ss:$16 sps:$4 sm:$0xff]  }
 0x1eb   : > { %8956 = vmatprep.subr.bf16.mxu0 %v13201_v19  ;;  %v13232_v19 = vld [vmem:[%s14879_s4 + $0x120] ss:$16 sps:$4 sm:$0xff]  }
 0x1ec   : > { %3519 = vperm.xlu0 %13024, %v3435_v27   ;;  %8957 = vmatpush1.bf16.msra.mxu0 %v13199_v20  ;;  %v13203_v27 = vld [vmem:[%s14879_s4 + $0xa4] ss:$16 sps:$4 sm:$0xff]  }
 0x1ee   : > { %13023 = vset.pattern.permute.xlu1 %v14453_v23  ;;  %v13202_v23 = vld [vmem:[%s14879_s4 + $0x80] ss:$16 sps:$4 sm:$0xff]  }
 0x1ef   : > { %3447 = vperm.xlu1 %13023, %v3429_v25   ;;  %7940 = vmatpush1.bf16.msra.mxu1 %v13202_v23  ;;  %v3724_v25 = vld [vmem:[%s18209_s24 + $0x1c] sm:$0xf]  ;;  %v3727_v23 = vld [vmem:[%s18209_s24 + $0x28] sm:$0xf] }
 0x1f0   : > { %3543 = vperm.xlu0 %13024, %v3437_v32   ;;  %v13205_v32 = vld [vmem:[%s14879_s4 + $0xa8] ss:$16 sps:$4 sm:$0xff]   ;;  %7941 = vmatprep.subr.bf16.mxu1 %v13203_v27  ;;  %v13233_v27 = vld [vmem:[%s14879_s4 + $0x144] ss:$16 sps:$4 sm:$0xff]  }
 0x1f3   : > { %3471 = vperm.xlu1 %13023, %v3431_v28   ;;  %v13207_v28 = vld [vmem:[%s14879_s4 + $0xac] ss:$16 sps:$4 sm:$0xff]  }
 0x1f4   : > { %3567 = vperm.xlu0 %13024, %v3439_v34   ;;  %v13208_v34 = vld [vmem:[%s14879_s4 + $0xa0] ss:$16 sps:$4 sm:$0xff]   ;;  %8958 = vmatprep.subr.bf16.mxu0 %v13207_v28  ;;  %v13237_v28 = vld [vmem:[%s14879_s4 + $0x14c] ss:$16 sps:$4 sm:$0xff]  }
 0x1f5   : > { %7942 = vmatpush1.bf16.msra.mxu1 %v13208_v34  ;;  %8959 = vmatpush1.bf16.msra.mxu0 %v13205_v32  ;;  %v13235_v32 = vld [vmem:[%s14879_s4 + $0x148] ss:$16 sps:$4 sm:$0xff]   ;;  %v13238_v34 = vld [vmem:[%s14879_s4 + $0x140] ss:$16 sps:$4 sm:$0xff]  }
 0x1f6   : > { %7943 = vmatprep.subr.bf16.mxu1 %v13209_v40  ;;  %8960 = vmatprep.subr.bf16.mxu0 %v13213_v43  ;;  %v4009_v40 = vld [vmem:[%s18209_s24 + $0x10] sm:$0xf] }
 0x1f7   : > { %3483 = vperm.xlu1 %13023, %v3432_v31   ;;  %v3718_v31 = vld [vmem:[%s18209_s24 + $0x4] sm:$0xf] }
 0x1f8   : > { %3591 = vperm.xlu0 %13024, %v3441_v37   ;;  %v3726_v37 = vld [vmem:[%s18209_s24 + $0x24] sm:$0xf] }
 0x1f9   : > { %8961 = vmatpush1.bf16.msra.mxu0 %v13211_v44  ;;  %v13239_v44 = vld [vmem:[%s14879_s4 + $0x164] ss:$16 sps:$4 sm:$0xff]  }
 0x1fa   : > { %8962 = vmatprep.subr.bf16.mxu0 %v13219_v53  ;;  %v3731_v53 = vld [vmem:[%s18209_s24 + $0x38] sm:$0xf] }
 0x1fb   : > { %3507 = vperm.xlu1 %13023, %v3434_v35   ;;  %v15394_v35 = vpop.permute.xlu0 %1938 }
 0x1fc   : > { %3615 = vperm.xlu0 %13024, %v3443_v47   ;;  %18224 = vst [vmem:[#allocation43_spill] sm:$0xff] %v15394_v35 }
 0x1ff   : > { %3531 = vperm.xlu1 %13023, %v3436_v38   ;;  %v15399_v38 = vpop.permute.xlu1 %2046  ;;  %v15408_v47 = vpop.permute.xlu0 %1962 }
 0x200   : > { %13025 = vset.pattern.permute.xlu0 %v14454_v2  ;;  %18225 = vst [vmem:[#allocation44_spill] sm:$0xff] %v15399_v38  ;;  %18226 = vst [vmem:[#allocation45_spill] sm:$0xff] %v15408_v47 }
 0x201   : > { %3735 = vperm.xlu0 %13025, %v3717_v56   ;;  %v13217_v56 = vld [vmem:[%s14879_s4 + $0xe8] ss:$16 sps:$4 sm:$0xff]  }
 0x202   : > { %8963 = vmatpush1.bf16.msra.mxu0 %v13217_v56  ;;  %v4011_v56 = vld [vmem:[%s18209_s24 + $0x18] sm:$0xf] }
 0x203   : > { %3555 = vperm.xlu1 %13023, %v3438_v46   ;;  %v13214_v46 = vld [vmem:[%s14879_s4 + $0xc0] ss:$16 sps:$4 sm:$0xff]   ;;  %v15428_v61 = vpop.permute.xlu0 %1986 }
 0x204   : > { %7944 = vmatpush1.bf16.msra.mxu1 %v13214_v46  ;;  %18228 = vst [vmem:[#allocation47_spill] sm:$0xff] %v15428_v61  ;;  %v13243_v46 = vld [vmem:[%s14879_s4 + $0x16c] ss:$16 sps:$4 sm:$0xff]  }
 0x205   : > { %3771 = vperm.xlu0 %13025, %v3720_v3   ;;  %7945 = vmatprep.subr.bf16.mxu1 %v13215_v51  ;;  %v13223_v3 = vld [vmem:[%s14879_s4 + $0x108] ss:$16 sps:$4 sm:$0xff]  }
 0x207   : > { %3579 = vperm.xlu1 %13023, %v3440_v55   ;;  %v15418_v55 = vpop.permute.xlu1 %2247  ;;  %v15446_v20 = vpop.permute.xlu0 %2010 }
 0x208   : > { %18227 = vst [vmem:[#allocation46_spill] sm:$0xff] %v15418_v55  ;;  %7946 = vmatpush1.bf16.msra.mxu1 %v13220_v57  ;;  %18230 = vst [vmem:[#allocation49_spill] sm:$0xff] %v15446_v20  ;;  %v13245_v57 = vld [vmem:[%s14879_s4 + $0x184] ss:$16 sps:$4 sm:$0xff]  }
 0x209   : > { %3795 = vperm.xlu0 %13025, %v3722_v16   ;;  %v13231_v16 = vld [vmem:[%s14879_s4 + $0x12c] ss:$16 sps:$4 sm:$0xff]  }
 0x20b   : > { %3603 = vperm.xlu1 %13023, %v3442_v63   ;;  %v13221_v63 = vld [vmem:[%s14879_s4 + $0x104] ss:$16 sps:$4 sm:$0xff]   ;;  %v15437_v9 = vpop.permute.xlu1 %2271  ;;  %v15466_v43 = vpop.permute.xlu0 %2034 }
 0x20c   : > { %7947 = vmatprep.subr.bf16.mxu1 %v13221_v63  ;;  %18229 = vst [vmem:[#allocation48_spill] sm:$0xff] %v15437_v9  ;;  %18232 = vst [vmem:[#allocation51_spill] sm:$0xff] %v15466_v43  ;;  %v13250_v63 = vld [vmem:[%s14879_s4 + $0x180] ss:$16 sps:$4 sm:$0xff]  }
 0x20d   : > { %3819 = vperm.xlu0 %13025, %v3724_v25   ;;  %7948 = vmatpush1.bf16.msra.mxu1 %v13226_v5  ;;  %v4006_v25 = vld [vmem:[%s18209_s24 + $0x4] sm:$0xf]  ;;  %v4005_v5 = vld [vmem:[%s18209_s24] sm:$0xf] }
 0x20f   : > { %3627 = vperm.xlu1 %13023, %v3444_v14   ;;  %v13227_v14 = vld [vmem:[%s14879_s4 + $0x124] ss:$16 sps:$4 sm:$0xff]  }
 0x210   : > { %7949 = vmatprep.subr.bf16.mxu1 %v13227_v14 }
 0x211   : > { %3843 = vperm.xlu0 %13025, %v3726_v37   ;;  %7950 = vmatpush1.bf16.msra.mxu1 %v13232_v19  ;;  %v3729_v37 = vld [vmem:[%s18209_s24 + $0x30] sm:$0xf]  ;;  %v4015_v19 = vld [vmem:[%s18209_s24 + $0x28] sm:$0xf] }
 0x212   : > { %7951 = vmatprep.subr.bf16.mxu1 %v13233_v27  ;;  %v13257_v27 = vld [vmem:[%s14879_s4 + $0x1c4] ss:$16 sps:$4 sm:$0xff]  }
 0x213   : > { %13026 = vset.pattern.permute.xlu1 %v14454_v2  ;;  %v13225_v2 = vld [vmem:[%s14879_s4 + $0x10c] ss:$16 sps:$4 sm:$0xff]  }
 0x214   : > { %3747 = vperm.xlu1 %13026, %v3718_v31   ;;  %8964 = vmatprep.subr.bf16.mxu0 %v13225_v2  ;;  %v15456_v31 = vpop.permute.xlu1 %2283  ;;  %v15484_v2 = vpop.permute.xlu0 %2058 }
 0x215   : > { %3867 = vperm.xlu0 %13025, %v3728_v49   ;;  %8965 = vmatpush1.bf16.msra.mxu0 %v13223_v3  ;;  %18231 = vst [vmem:[#allocation50_spill] sm:$0xff] %v15456_v31  ;;  %v13241_v49 = vld [vmem:[%s14879_s4 + $0x168] ss:$16 sps:$4 sm:$0xff]   ;;  %18234 = vst [vmem:[#allocation53_spill] sm:$0xff] %v15484_v2  ;;  %v4013_v3 = vld [vmem:[%s18209_s24 + $0x20] sm:$0xf] }
 0x216   : > { %8966 = vmatprep.subr.bf16.mxu0 %v13231_v16  ;;  %7952 = vmatpush1.bf16.msra.mxu1 %v13238_v34  ;;  %v13253_v16 = vld [vmem:[%s14879_s4 + $0x1a8] ss:$16 sps:$4 sm:$0xff]   ;;  %v13262_v34 = vld [vmem:[%s14879_s4 + $0x1c0] ss:$16 sps:$4 sm:$0xff]  }
 0x217   : > { %7953 = vmatprep.subr.bf16.mxu1 %v13239_v44  ;;  %v13263_v44 = vld [vmem:[%s14879_s4 + $0x1e4] ss:$16 sps:$4 sm:$0xff]  }
 0x218   : > { %3759 = vperm.xlu1 %13026, %v3719_v39   ;;  %v14455_v39 = vmov 8   ;;  %v15472_v51 = vpop.permute.xlu1 %2307 }
 0x219   : > { %3891 = vperm.xlu0 %13025, %v3730_v58   ;;  %8967 = vmatpush1.bf16.msra.mxu0 %v13229_v17  ;;  %18233 = vst [vmem:[#allocation52_spill] sm:$0xff] %v15472_v51  ;;  %v13249_v58 = vld [vmem:[%s14879_s4 + $0x18c] ss:$16 sps:$4 sm:$0xff]   ;;  %v13256_v17 = vld [vmem:[%s14879_s4 + $0x1a0] ss:$16 sps:$4 sm:$0xff]  }
 0x21a   : > { %8968 = vmatprep.subr.bf16.mxu0 %v13237_v28  ;;  %v13261_v28 = vld [vmem:[%s14879_s4 + $0x1cc] ss:$16 sps:$4 sm:$0xff]   ;;  %v14456_v51 = vmov 839922192  }
 0x21b   : > { %v1578_v31 = vunpack.c.l.s4 %v14456_v51 }
 0x21c   : > { %3783 = vperm.xlu1 %13026, %v3721_v50   ;;  %v13244_v50 = vld [vmem:[%s14879_s4 + $0x160] ss:$16 sps:$4 sm:$0xff]   ;;  %v15494_v14 = vpop.permute.xlu1 %2331 }
 0x21d   : > { %3915 = vperm.xlu0 %13025, %v3732_v6   ;;  %8969 = vmatpush1.bf16.msra.mxu0 %v13235_v32  ;;  %v13251_v6 = vld [vmem:[%s14879_s4 + $0x1a4] ss:$16 sps:$4 sm:$0xff]   ;;  %18235 = vst [vmem:[#allocation54_spill] sm:$0xff] %v15494_v14  ;;  %v13259_v32 = vld [vmem:[%s14879_s4 + $0x1c8] ss:$16 sps:$4 sm:$0xff]   ;;  %v1579_v43 = vunpack.c.0.s8 %v1578_v31 }
 0x21e   : > { %8970 = vmatprep.subr.bf16.mxu0 %v13243_v46  ;;  %7954 = vmatpush1.bf16.msra.mxu1 %v13244_v50  ;;  %v13267_v46 = vld [vmem:[%s14879_s4 + $0x1ec] ss:$16 sps:$4 sm:$0xff]   ;;  %v13268_v50 = vld [vmem:[%s14879_s4 + $0x1e0] ss:$16 sps:$4 sm:$0xff]  }
 0x21f   : > { %7955 = vmatprep.subr.bf16.mxu1 %v13245_v57  ;;  %v4010_v57 = vld [vmem:[%s18209_s24 + $0x14] sm:$0xf] }
 0x220   : > { %3807 = vperm.xlu1 %13026, %v3723_v60   ;;  %v13247_v60 = vld [vmem:[%s14879_s4 + $0x188] ss:$16 sps:$4 sm:$0xff]  }
 0x221   : > { %13028 = vset.pattern.permute.xlu0 %v14455_v39  ;;  %8971 = vmatpush1.bf16.msra.mxu0 %v13241_v49  ;;  %v13265_v49 = vld [vmem:[%s14879_s4 + $0x1e8] ss:$16 sps:$4 sm:$0xff]  }
 0x222   : > { %4035 = vperm.xlu0 %13028, %v4006_v25   ;;  %8972 = vmatprep.subr.bf16.mxu0 %v13249_v58  ;;  %v4007_v25 = vld [vmem:[%s18209_s24 + $0x8] sm:$0xf]  ;;  %v13274_v58 = vld [vmem:[%s14879_s4 + $0x20c] ss:$16 sps:$4 sm:$0xff]  }
 0x223   : > { %7956 = vmatpush1.bf16.msra.mxu1 %v13250_v63  ;;  %v4019_v63 = vld [vmem:[%s18209_s24 + $0x38] sm:$0xf] }
 0x224   : > { %3831 = vperm.xlu1 %13026, %v3725_v10   ;;  %v13255_v10 = vld [vmem:[%s14879_s4 + $0x1ac] ss:$16 sps:$4 sm:$0xff]   ;;  %7957 = vmatprep.subr.bf16.mxu1 %v13251_v6 }
 0x225   : > { %8973 = vmatpush1.bf16.msra.mxu0 %v13247_v60 }
 0x226   : > { %4071 = vperm.xlu0 %13028, %v4009_v40   ;;  %8974 = vmatprep.subr.bf16.mxu0 %v13255_v10  ;;  %v4008_v40 = vld [vmem:[%s18209_s24 + $0xc] sm:$0xf]  ;;  %v4014_v10 = vld [vmem:[%s18209_s24 + $0x24] sm:$0xf] }
 0x227   : > { %7958 = vmatpush1.bf16.msra.mxu1 %v13256_v17 }
 0x228   : > { %3855 = vperm.xlu1 %13026, %v3727_v23   ;;  %v15501_v23 = vpop.permute.xlu0 %2259  ;;  %7959 = vmatprep.subr.bf16.mxu1 %v13257_v27  ;;  %v4020_v27 = vld [vmem:[%s18209_s24 + $0x3c] sm:$0xf] }
 0x229   : > { %18236 = vst [vmem:[#allocation55_spill] sm:$0xff] %v15501_v23  ;;  %8975 = vmatpush1.bf16.msra.mxu0 %v13253_v16  ;;  %v4016_v16 = vld [vmem:[%s18209_s24 + $0x2c] sm:$0xf] }
 0x22a   : > { %4095 = vperm.xlu0 %13028, %v4011_v56   ;;  %8976 = vmatprep.subr.bf16.mxu0 %v13261_v28  ;;  %v13271_v56 = vld [vmem:[%s14879_s4 + $0x204] ss:$16 sps:$4 sm:$0xff]  }
 0x22b   : > { %7960 = vmatpush1.bf16.msra.mxu1 %v13262_v34 }
 0x22c   : > { %3879 = vperm.xlu1 %13026, %v3729_v37   ;;  %v15510_v37 = vpop.permute.xlu1 %2355  ;;  %7961 = vmatprep.subr.bf16.mxu1 %v13263_v44 }
 0x22d   : > { %18237 = vst [vmem:[#allocation56_spill] sm:$0xff] %v15510_v37  ;;  %8977 = vmatpush1.bf16.msra.mxu0 %v13259_v32  ;;  %v757_v32 = vlaneseq }
 0x22e   : > { %4119 = vperm.xlu0 %13028, %v4013_v3   ;;  %8978 = vmatprep.subr.bf16.mxu0 %v13267_v46 }
 0x22f   : > { %7962 = vmatpush1.bf16.msra.mxu1 %v13268_v50  ;;  %v15559_v34 = vshrl.u32 %v757_v32, 7 }
 0x230   : > { %3903 = vperm.xlu1 %13026, %v3731_v53   ;;  %v15522_v53 = vpop.permute.xlu0 %2295  ;;  %v15529_v60 = vpop.permute.xlu1 %2379  ;;  %8044 = vmatprep.subr.bf16.mxu1 %v13271_v56 }
 0x231   : > { %18238 = vst [vmem:[#allocation57_spill] sm:$0xff] %v15522_v53  ;;  %18239 = vst [vmem:[#allocation58_spill] sm:$0xff] %v15529_v60  ;;  %8979 = vmatpush1.bf16.msra.mxu0 %v13265_v49  ;;  %vm2180_vm0 = vcmp.lt.s32.totalorder %v15559_v34, 7  ;;  %vm1507_vm1 = vcmp.lt.s32.totalorder %v15559_v34, 1  ;;  %v15670_v61 = vsub.s32 %v1579_v43, %v15559_v34 }
 0x232   : > { %4143 = vperm.xlu0 %13028, %v4015_v19   ;;  %9061 = vmatprep.subr.bf16.mxu0 %v13274_v58  ;;  %v4018_v19 = vld [vmem:[%s18209_s24 + $0x34] sm:$0xf]  ;;  %18245 = vst [vmem:[#allocation64_spill] sm:$0xff] %v15559_v34 }
 0x233   : > { %v1607_v47 = vrot.slane %v15191_v42, %v15670_v61  ;;  %v1619_v41 = vrot.slane %v15202_v48, %v15670_v61 }
 0x234   : > { %13027 = vset.pattern.permute.xlu1 %v14455_v39  ;;  %v4017_v39 = vld [vmem:[%s18209_s24 + $0x30] sm:$0xf]  ;;  %v15534_v3 = vpop.permute.xlu0 %2319  ;;  %v15539_v6 = vpop.permute.xlu1 %2403 }
 0x235   : > { %4023 = vperm.xlu1 %13027, %v4005_v5   ;;  %18240 = vst [vmem:[#allocation59_spill] sm:$0xff] %v15534_v3  ;;  %v4012_v5 = vld [vmem:[%s18209_s24 + $0x1c] sm:$0xf]  ;;  %18241 = vst [vmem:[#allocation60_spill] sm:$0xff] %v15539_v6 }
 0x236   : > { %4167 = vperm.xlu0 %13028, %v4017_v39   ;;  %v755_v39 = vld [vmem:[%s14877_s22] sm:$0x3]  ;;  %s18613_s22 = sld [smem:[#allocation26_spill]] }
 0x238   : > { %v15547_v17 = vpop.permute.xlu1 %2427 }
 0x239   : > { %4047 = vperm.xlu1 %13027, %v4007_v25   ;;  %18242 = vst [vmem:[#allocation61_spill] sm:$0xff] %v15547_v17 }
 0x23a   : > { %4191 = vperm.xlu0 %13028, %v4019_v63  }
 0x23c   : > { %v15552_v25 = vpop.permute.xlu1 %2563  ;;  %p649_p5 = scmp.lt.s32.totalorder %s18613_s22, 1 }
 0x23d   : > { %4059 = vperm.xlu1 %13027, %v4008_v40   ;;  %18243 = vst [vmem:[#allocation62_spill] sm:$0xff] %v15552_v25  ;;  %v15563_v40 = vsub.s32 0, %v15559_v34 }
 0x23f   : > { %18246 = vst [vmem:[#allocation65_spill] sm:$0xff] %v15563_v40  ;;  %v15566_v44 = vrot.slane %v755_v39, %v15563_v40 }
 0x240   : > { %v15557_v28 = vpop.permute.xlu1 %2575 }
 0x241   : > { %4083 = vperm.xlu1 %13027, %v4010_v57   ;;  %18244 = vst [vmem:[#allocation63_spill] sm:$0xff] %v15557_v28 }
 0x245   : > { %4107 = vperm.xlu1 %13027, %v4012_v5  }
 0x249   : > { %4131 = vperm.xlu1 %13027, %v4014_v10  }
 0x24d   : > { %4155 = vperm.xlu1 %13027, %v4016_v16  }
 0x251   : > { %4179 = vperm.xlu1 %13027, %v4018_v19  }
 0x255   : > { %4203 = vperm.xlu1 %13027, %v4020_v27  }
 0x26f   : > { %v1394_v46 = vpop.f32.mrb[0].mxu0 }
 0x270   : > { %v15569_v49 = vadd.f32 %v1394_v46, %v15566_v44  ;;  %v15571_v50 = vpop.f32.mrb[1].mxu0 }
 0x271   : > { %v1398_v56 = vpop.f32.mrb[2].mxu0 }
 0x272   : > { %18247 = vst [vmem:[#allocation66_spill] sm:$0xff] %v15569_v49  ;;  %v15574_v57 = vadd.f32 %v1398_v56, %v15566_v44  ;;  %v15576_v58 = vpop.f32.mrb[3].mxu0  ;;  %v18025_v63 = vrot.slane %v15569_v49, 7  ;;  %v18023_v5 = vrot.slane %v15569_v49, 1 }
 0x274   : > { %18248 = vst [vmem:[#allocation67_spill] sm:$0xff] %v15574_v57  ;;  %v18024_v10 = vrot.slane %v15574_v57, 7  ;;  %v2150_v16 = vrot.slane %v15574_v57, 1 }
 0x276   : > { %v15590_v27 = vsel %vm2180_vm0, %v18023_v5, %v2150_v16  ;;  %v15598_v32 = vsel %vm1507_vm1, %v18025_v63, %v18024_v10 }
 0x277   : > { %18249 = vst [vmem:[#allocation68_spill] sm:$0xff] %v15590_v27  ;;  %18250 = vst [vmem:[#allocation69_spill] sm:$0xff] %v15598_v32  ;;  %v1404_v46 = vpop.f32.mrb[4].mxu0 }
 0x278   : > { %v15601_v56 = vadd.f32 %v1404_v46, %v15566_v44  ;;  %v1406_v0 = vpop.f32.mrb[5].mxu0 }
 0x279   : > { %v15603_v19 = vpop.f32.mrb[6].mxu0 }
 0x27a   : > { %18251 = vst [vmem:[#allocation70_spill] sm:$0xff] %v15601_v56  ;;  %v18026_v40 = vrot.slane %v15601_v56, 1  ;;  %v15606_v28 = vpop.f32.mrb[7].mxu0 }
 0x27c   : > { %v15612_v5 = vsel %vm2180_vm0, %v2150_v16, %v18026_v40  ;;  %v15633_v16 = vsub.s32 1, %v15559_v34 }
 0x27d   : > { %18252 = vst [vmem:[#allocation71_spill] sm:$0xff] %v15612_v5 }
 0x27e   : > { %18253 = vst [vmem:[#allocation72_spill] sm:$0xff] %v15633_v16  ;;  %v15640_v53 = vrot.slane %v755_v39, %v15633_v16 }
 0x27f   : > { %v15616_v63 = vpop.f32.mrb[8].mxu0 }
 0x280   : > { %v15618_v46 = vpop.f32.mrb[9].mxu0  ;;  %v15709_v29 = vadd.f32 %v15576_v58, %v15640_v53  ;;  %v15726_v58 = vadd.f32 %v15571_v50, %v15640_v53 }
 0x281   : > { %v15620_v25 = vpop.f32.mrb[10].mxu0 }
 0x282   : > { %v15622_v17 = vpop.f32.mrb[11].mxu0  ;;  %18267 = vst [vmem:[#allocation84_spill] sm:$0xff] %v15726_v58  ;;  %v1476_v18 = vrot.slane %v15709_v29, 7 }
 0x287   : > { %v15624_v6 = vpop.f32.mrb[12].mxu0 }
 0x288   : > { %v15626_v60 = vpop.f32.mrb[13].mxu0 }
 0x289   : > { %v15628_v37 = vpop.f32.mrb[14].mxu0 }
 0x28a   : > { %v15630_v3 = vpop.f32.mrb[15].mxu0 }
 0x28f   : > { %v15635_v10 = vpop.f32.mrb[16].mxu0 }
 0x290   : > { %v1436_v40 = vpop.f32.mrb[17].mxu0 }
 0x291   : > { %v15637_v14 = vpop.f32.mrb[18].mxu0  ;;  %v15646_v23 = vadd.f32 %v1436_v40, %v15640_v53 }
 0x292   : > { %v1440_v5 = vpop.f32.mrb[19].mxu0 }
 0x293   : > { %v15643_v9 = vadd.f32 %v1440_v5, %v15640_v53 }
 0x295   : > { %18254 = vst [vmem:[#allocation73_spill] sm:$0xff] %v15643_v9  ;;  %v1492_v24 = vrot.slane %v15643_v9, 7 }
 0x297   : > { %v1444_v55 = vpop.f32.mrb[20].mxu0 }
 0x298   : > { %v15649_v2 = vadd.f32 %v1444_v55, %v15566_v44  ;;  %v1446_v38 = vpop.f32.mrb[21].mxu0 }
 0x299   : > { %v15653_v20 = vadd.f32 %v1446_v38, %v15640_v53  ;;  %v1448_v39 = vpop.f32.mrb[22].mxu0 }
 0x29a   : > { %v15656_v51 = vadd.f32 %v1448_v39, %v15566_v44  ;;  %v1450_v5 = vpop.f32.mrb[23].mxu0 }
 0x29b   : > { %v1494_v40 = vrot.slane %v15653_v20, 7  ;;  %v15661_v7 = vadd.f32 %v1450_v5, %v15640_v53  ;;  %v15667_v38 = vpack.c.bf16 %v15653_v20, %v15643_v9  ;;  %v18257_v5 = vrot.slane %v15646_v23, 7 }
 0x29c   : > { %v1495_v31 = vrot.slane %v15656_v51, 7 }
 0x29d   : > { %18255 = vst [vmem:[#allocation74_spill] sm:$0xff] %v15667_v38  ;;  %v1496_v39 = vrot.slane %v15661_v7, 7  ;;  %v15675_v16 = vsel %vm1507_vm1, %v1492_v24, %v1494_v40  ;;  %v15681_v55 = vsel %vm1507_vm1, %v18257_v5, %v1492_v24  ;;  %v18260_v38 = vrot.slane %v15649_v2, 7 }
 0x29e   : > { %18256 = vst [vmem:[#allocation75_spill] sm:$0xff] %v15675_v16  ;;  %18258 = vst [vmem:[#allocation76_spill] sm:$0xff] %v15681_v55  ;;  %v15685_v54 = vpack.c.bf16 %v15675_v16, %v15681_v55 }
 0x29f   : > { %v15691_v43 = vsel %vm1507_vm1, %v18260_v38, %v1495_v31  ;;  %v1454_v35 = vpop.f32.mrb[24].mxu0  ;;  %v15699_v24 = vsel %vm1507_vm1, %v1494_v40, %v1496_v39  ;;  %v15715_v40 = vcombine.low %v1607_v47, %v1619_v41 }
 0x2a0   : > { %18259 = vst [vmem:[#allocation77_spill] sm:$0xff] %v15685_v54  ;;  %18261 = vst [vmem:[#allocation78_spill] sm:$0xff] %v15691_v43  ;;  %v15702_v5 = vadd.f32 %v1454_v35, %v15566_v44  ;;  %v1456_v33 = vpop.f32.mrb[25].mxu0  ;;  %v15718_v35 = vadd.f32 %v1406_v0, %v15640_v53  ;;  %v1583_v0 = vrot.slane %v15240_v4, %v15670_v61 }
 0x2a1   : > { %18262 = vst [vmem:[#allocation79_spill] sm:$0xff] %v15699_v24  ;;  %v15705_v12 = vadd.f32 %v1456_v33, %v15640_v53  ;;  %v1458_v38 = vpop.f32.mrb[26].mxu0 }
 0x2a2   : > { %18263 = vst [vmem:[#allocation80_spill] sm:$0xff] %v15702_v5  ;;  %v1497_v42 = vrot.slane %v15702_v5, 7  ;;  %v15713_v48 = vadd.f32 %v1458_v38, %v15566_v44  ;;  %v1460_v62 = vpop.f32.mrb[27].mxu0 }
 0x2a3   : > { %18264 = vst [vmem:[#allocation81_spill] sm:$0xff] %v15705_v12  ;;  %v1498_v22 = vrot.slane %v15705_v12, 7  ;;  %v15722_v33 = vadd.f32 %v1460_v62, %v15640_v53  ;;  %v15735_v41 = vpack.c.bf16 %v15705_v12, %v15661_v7  ;;  %v1595_v62 = vrot.slane %v15256_v11, %v15670_v61 }
 0x2a4   : > { %18265 = vst [vmem:[#allocation82_spill] sm:$0xff] %v15713_v48  ;;  %v1499_v45 = vrot.slane %v15713_v48, 7  ;;  %v15731_v38 = vsel %vm1507_vm1, %v1495_v31, %v1497_v42 }
 0x2a5   : > { %18266 = vst [vmem:[#allocation83_spill] sm:$0xff] %v15722_v33  ;;  %18268 = vst [vmem:[#allocation85_spill] sm:$0xff] %v15731_v38  ;;  %v1500_v47 = vrot.slane %v15722_v33, 7  ;;  %v15744_v50 = vsel %vm1507_vm1, %v1496_v39, %v1498_v22 }
 0x2a6   : > { %18269 = vst [vmem:[#allocation86_spill] sm:$0xff] %v15735_v41  ;;  %18270 = vst [vmem:[#allocation87_spill] sm:$0xff] %v15744_v50  ;;  %v15749_v31 = vpack.c.bf16 %v15744_v50, %v15699_v24  ;;  %v15753_v41 = vpack.c.bf16 %v15731_v38, %v15691_v43  ;;  %v15757_v4 = vsel %vm1507_vm1, %v1497_v42, %v1499_v45  ;;  %v1474_v38 = vrot.slane %v15726_v58, 7 }
 0x2a7   : > { %18273 = vst [vmem:[#allocation90_spill] sm:$0xff] %v15757_v4  ;;  %v1464_v54 = vpop.f32.mrb[28].mxu0  ;;  %v15764_v36 = vsel %vm1507_vm1, %v1498_v22, %v1500_v47  ;;  %v11467_v24 = vcombine.low %v1583_v0, %v1595_v62  ;;  %v15794_v22 = vadd.f32 %v15618_v46, %v15640_v53  ;;  %v18280_v62 = vrot.slane %v15718_v35, 7 }
 0x2a8   : > { %18271 = vst [vmem:[#allocation88_spill] sm:$0xff] %v15749_v31  ;;  %18272 = vst [vmem:[#allocation89_spill] sm:$0xff] %v15753_v41  ;;  %v15768_v31 = vpack.c.bf16 %v15702_v5, %v15656_v51  ;;  %v15776_v11 = vadd.f32 %v1464_v54, %v15566_v44  ;;  %v1466_v39 = vpop.f32.mrb[29].mxu0  ;;  %v15790_v54 = vsel %vm1507_vm1, %v1474_v38, %v1476_v18 }
 0x2a9   : > { %18274 = vst [vmem:[#allocation91_spill] sm:$0xff] %v15764_v36  ;;  %v15781_v43 = vadd.f32 %v1466_v39, %v15640_v53  ;;  %18279 = vst [vmem:[#allocation96_spill] sm:$0xff] %v15790_v54  ;;  %v15831_v46 = vadd.f32 %v15616_v63, %v15566_v44 }
 0x2aa   : > { %18275 = vst [vmem:[#allocation92_spill] sm:$0xff] %v15768_v31  ;;  %18276 = vst [vmem:[#allocation93_spill] sm:$0xff] %v15776_v11  ;;  %v1468_v31 = vpop.f32.mrb[30].mxu0  ;;  %v1501_v16 = vrot.slane %v15776_v11, 7 }
 0x2ab   : > { %18277 = vst [vmem:[#allocation94_spill] sm:$0xff] %v15781_v43  ;;  %v15786_v42 = vadd.f32 %v1468_v31, %v15566_v44  ;;  %v1470_v55 = vpop.f32.mrb[31].mxu0  ;;  %v1502_v39 = vrot.slane %v15781_v43, 7  ;;  %v15804_v31 = vsel %vm1507_vm1, %v1476_v18, %v18280_v62 }
 0x2ac   : > { %v15798_v0 = vadd.f32 %v1470_v55, %v15640_v53  ;;  %18281 = vst [vmem:[#allocation97_spill] sm:$0xff] %v15804_v31  ;;  %v15814_v30 = vsel %vm1507_vm1, %v1499_v45, %v1501_v16  ;;  %v15818_v55 = vadd.f32 %v15606_v28, %v15640_v53  ;;  %v18286_v45 = vrot.slane %v15569_v49, 1 }
 0x2ad   : > { %18278 = vst [vmem:[#allocation95_spill] sm:$0xff] %v15786_v42  ;;  %v1503_v50 = vrot.slane %v15786_v42, 7  ;;  %v15809_v41 = vpack.c.bf16 %v15569_v49, %v15786_v42  ;;  %18283 = vst [vmem:[#allocation99_spill] sm:$0xff] %v15814_v30  ;;  %v15823_v18 = vsel %vm1507_vm1, %v1500_v47, %v1502_v39  ;;  %v15827_v62 = vpack.c.bf16 %v15814_v30, %v15757_v4 }
 0x2ae   : > { %v1504_v13 = vrot.slane %v15798_v0, 7  ;;  %18284 = vst [vmem:[#allocation100_spill] sm:$0xff] %v15823_v18  ;;  %v15847_v30 = vpack.c.bf16 %v15804_v31, %v15790_v54  ;;  %v13269_v31 = vld [vmem:[%s14879_s4 + $0x200] ss:$16 sps:$4 sm:$0xff]  }
 0x2af   : > { %18282 = vst [vmem:[#allocation98_spill] sm:$0xff] %v15809_v41  ;;  %18285 = vst [vmem:[#allocation101_spill] sm:$0xff] %v15827_v62  ;;  %v18287_v41 = vrot.slane %v15786_v42, 1  ;;  %v15843_v47 = vsel %vm1507_vm1, %v1501_v16, %v1503_v50  ;;  %v18294_v16 = vrot.slane %v15569_v49, 7 }
 0x2b0   : > { %18289 = vst [vmem:[#allocation103_spill] sm:$0xff] %v15843_v47  ;;  %18290 = vst [vmem:[#allocation104_spill] sm:$0xff] %v15847_v30  ;;  %v15855_v62 = vsel %vm1507_vm1, %v1502_v39, %v1504_v13  ;;  %v15889_v39 = vadd.f32 %v15603_v19, %v15566_v44  ;;  %v15908_v19 = vadd.f32 %v15622_v17, %v15640_v53 }
 0x2b1   : > { %v15839_v28 = vsel %vm2180_vm0, %v18287_v41, %v18286_v45  ;;  %18292 = vst [vmem:[#allocation106_spill] sm:$0xff] %v15855_v62  ;;  %v15859_v41 = vsel %vm1507_vm1, %v1504_v13, %v1474_v38  ;;  %v15865_v45 = vsel %vm1507_vm1, %v1503_v50, %v18294_v16  ;;  %v15885_v16 = vpack.c.bf16 %v15823_v18, %v15764_v36  ;;  %v18381_v36 = vld [vmem:[#allocation77_spill] sm:$0xff] }
 0x2b2   : > { %18288 = vst [vmem:[#allocation102_spill] sm:$0xff] %v15839_v28  ;;  %v15851_v63 = vpack.c.bf16 %v15590_v27, %v15839_v28  ;;  %18293 = vst [vmem:[#allocation107_spill] sm:$0xff] %v15859_v41  ;;  %v15870_v27 = vpack.c.bf16 %v15859_v41, %v15855_v62  ;;  %v15879_v49 = vpack.c.bf16 %v15865_v45, %v15843_v47  ;;  %v1480_v13 = vrot.slane %v15818_v55, 7 }
 0x2b3   : > { %18295 = vst [vmem:[#allocation108_spill] sm:$0xff] %v15865_v45  ;;  %18298 = vst [vmem:[#allocation111_spill] sm:$0xff] %v15885_v16  ;;  %v18300_v62 = vrot.slane %v15601_v56, 7  ;;  %v18301_v41 = vrot.slane %v15574_v57, 7  ;;  %v15904_v18 = vadd.f32 %v15620_v25, %v15566_v44  ;;  %v1815_v54 = vmul.bf16 %v15715_v40, %v15847_v30  ;;  %v13280_v25 = vld [vmem:[%s14879_s4 + $0x22c] ss:$16 sps:$4 sm:$0xff]  }
 0x2b4   : > { %18291 = vst [vmem:[#allocation105_spill] sm:$0xff] %v15851_v63  ;;  %18296 = vst [vmem:[#allocation109_spill] sm:$0xff] %v15870_v27  ;;  %v1813_v38 = vmul.bf16 %v11467_v24, %v15870_v27  ;;  %v1812_v45 = vmul.bf16 %v11467_v24, %v15879_v49  ;;  %v13272_v27 = vld [vmem:[%s14879_s4 + $0x208] ss:$16 sps:$4 sm:$0xff]   ;;  %v15916_v63 = vadd.f32 %v15626_v60, %v15640_v53  ;;  %v1481_v60 = vrot.slane %v15831_v46, 7 }
 0x2b5   : > { %18297 = vst [vmem:[#allocation110_spill] sm:$0xff] %v15879_v49  ;;  %18299 = vst [vmem:[#allocation112_spill] sm:$0xff] %v15889_v39  ;;  %v15900_v50 = vsel %vm1507_vm1, %v18301_v41, %v18300_v62  ;;  %v13277_v62 = vld [vmem:[%s14879_s4 + $0x224] ss:$16 sps:$4 sm:$0xff]   ;;  %v15922_v41 = vpack.c.bf16 %v15781_v43, %v15722_v33  ;;  %v15926_v17 = vpack.c.bf16 %v15776_v11, %v15713_v48  ;;  %v18307_v30 = vrot.slane %v15726_v58, 1 }
 0x2b6   : > { %18302 = vst [vmem:[#allocation113_spill] sm:$0xff] %v15900_v50  ;;  %7963 = vmatprep.mubr.bf16.mxu1 %v1813_v38  ;;  %8980 = vmatprep.mubr.bf16.mxu0 %v1813_v38  ;;  %v1655_v24 = vrot.slane %v15282_v21, %v15670_v61  ;;  %v18305_v38 = vrot.slane %v15794_v22, 7  ;;  %v1479_v21 = vrot.slane %v15889_v39, 7  ;;  %v15949_v57 = vpack.c.bf16 %v15900_v50, %v15598_v32 }
 0x2b7   : > { %18303 = vst [vmem:[#allocation114_spill] sm:$0xff] %v15922_v41  ;;  %18304 = vst [vmem:[#allocation115_spill] sm:$0xff] %v15926_v17  ;;  %7964 = vmatmul.mubr.bf16.vlgmr.msra.gmra.mrb[0].mxu1 %v1812_v45  ;;  %8981 = vmatmul.mubr.bf16.vlgmr.msra.gmra.mrb[32].mxu0 %v1812_v45  ;;  %v18308_v41 = vrot.slane %v15798_v0, 1  ;;  %v13275_v45 = vld [vmem:[%s14879_s4 + $0x220] ss:$16 sps:$4 sm:$0xff]   ;;  %v18312_v16 = vmov %v18307_v30  ;;  %v18314_v39 = vrot.slane %v15718_v35, 7 }
 0x2b8   : > { %v15935_v49 = vsel %vm1507_vm1, %v1480_v13, %v18305_v38  ;;  %7973 = vmatprep.mubr.bf16.mxu1 %v1815_v54  ;;  %8045 = vmatpush1.bf16.msra.mxu1 %v13269_v31  ;;  %18310 = vst [vmem:[#allocation118_spill] sm:$0xff] %v15949_v57  ;;  %v18311_v38 = vrot.slane %v15709_v29, 1  ;;  %v13283_v31 = vld [vmem:[%s14879_s4 + $0x244] ss:$16 sps:$4 sm:$0xff]  }
 0x2b9   : > { %18306 = vst [vmem:[#allocation116_spill] sm:$0xff] %v15935_v49  ;;  %v15943_v17 = vsel %vm2180_vm0, %v18308_v41, %v18307_v30  ;;  %8990 = vmatprep.mubr.bf16.mxu0 %v1815_v54  ;;  %9062 = vmatpush1.bf16.msra.mxu0 %v13272_v27  ;;  %v13278_v41 = vld [vmem:[%s14879_s4 + $0x228] ss:$16 sps:$4 sm:$0xff]   ;;  %v15966_v50 = vsel %vm1507_vm1, %v18314_v39, %v1480_v13  ;;  %v13286_v39 = vld [vmem:[%s14879_s4 + $0x24c] ss:$16 sps:$4 sm:$0xff]  }
 0x2ba   : > { %18309 = vst [vmem:[#allocation117_spill] sm:$0xff] %v15943_v17  ;;  %v15957_v28 = vsel %vm2180_vm0, %v18312_v16, %v18311_v38  ;;  %18315 = vst [vmem:[#allocation120_spill] sm:$0xff] %v15966_v50  ;;  %v18317_v16 = vrot.slane %v15213_v52, %v15670_v61  ;;  %v18318_v54 = vrot.slane %v15266_v15, %v15670_v61  ;;  %v1484_v38 = vrot.slane %v15908_v19, 7 }
 0x2bb   : > { %18313 = vst [vmem:[#allocation119_spill] sm:$0xff] %v15957_v28  ;;  %v15970_v32 = vpack.c.bf16 %v15957_v28, %v15943_v17  ;;  %8046 = vmatprep.subr.bf16.mxu1 %v13277_v62  ;;  %9063 = vmatprep.subr.bf16.mxu0 %v13280_v25  ;;  %v15983_v13 = vpack.c.bf16 %v15935_v49, %v15966_v50  ;;  %v2169_v62 = vrot.slane %v15653_v20, 1  ;;  %v18329_v49 = vrot.slane %v15794_v22, 7 }
 0x2bc   : > { %v11469_v27 = vcombine.low %v18318_v54, %v18317_v16  ;;  %v18320_v52 = vrot.slane %v15224_v59, %v15670_v61  ;;  %v15994_v16 = vsel %vm1507_vm1, %v1479_v21, %v1481_v60  ;;  %v16000_v25 = vadd.f32 %v15624_v6, %v15566_v44  ;;  %8047 = vmatpush1.bf16.msra.mxu1 %v13275_v45  ;;  %v13281_v59 = vld [vmem:[%s14879_s4 + $0x240] ss:$16 sps:$4 sm:$0xff]   ;;  %v13284_v45 = vld [vmem:[%s14879_s4 + $0x248] ss:$16 sps:$4 sm:$0xff]  }
 0x2bd   : > { %18316 = vst [vmem:[#allocation121_spill] sm:$0xff] %v15970_v32  ;;  %18319 = vst [vmem:[#allocation122_spill] sm:$0xff] %v15983_v13  ;;  %v1814_v54 = vmul.bf16 %v15715_v40, %v15949_v57  ;;  %v16013_v32 = vadd.f32 %v15637_v14, %v15566_v44  ;;  %v2171_v6 = vrot.slane %v15661_v7, 1  ;;  %9064 = vmatpush1.bf16.msra.mxu0 %v13278_v41  ;;  %8048 = vmatprep.subr.bf16.mxu1 %v13283_v31  ;;  %v13292_v57 = vld [vmem:[%s14879_s4 + $0x26c] ss:$16 sps:$4 sm:$0xff]  }
 0x2be   : > { %v15990_v15 = vcombine.low %v1655_v24, %v18320_v52  ;;  %18321 = vst [vmem:[#allocation123_spill] sm:$0xff] %v15994_v16  ;;  %v18322_v24 = vrot.slane %v15601_v56, 7  ;;  %v18324_v40 = vrot.slane %v15904_v18, 7  ;;  %9065 = vmatprep.subr.bf16.mxu0 %v13286_v39  ;;  %v18327_v41 = vrot.slane %v15916_v63, 7  ;;  %v13287_v39 = vld [vmem:[%s14879_s4 + $0x260] ss:$16 sps:$4 sm:$0xff]  }
 0x2bf   : > { %7974 = vmatmul.mubr.bf16.gmra.mrb[4].mxu1 %v1814_v54  ;;  %8991 = vmatmul.mubr.bf16.gmra.mrb[36].mxu0 %v1814_v54  ;;  %v2174_v54 = vrot.slane %v15713_v48, 1  ;;  %v13295_v56 = vld [vmem:[%s14879_s4 + $0x284] ss:$16 sps:$4 sm:$0xff]   ;;  %v2177_v50 = vrot.slane %v15781_v43, 1  ;;  %v13332_v43 = vld [vmem:[%s14879_s4 + $0x348] ss:$16 sps:$4 sm:$0xff]  }
 0x2c0   : > { %v16009_v52 = vsel %vm1507_vm1, %v18322_v24, %v1479_v21  ;;  %v16022_v30 = vsel %vm1507_vm1, %v1481_v60, %v18324_v40  ;;  %v1817_v21 = vmul.bf16 %v11469_v27, %v15983_v13  ;;  %v13289_v24 = vld [vmem:[%s14879_s4 + $0x264] ss:$16 sps:$4 sm:$0xff]   ;;  %v16035_v31 = vsel %vm1507_vm1, %v1484_v38, %v18327_v41  ;;  %8049 = vmatpush1.bf16.msra.mxu1 %v13281_v59  ;;  %v13290_v41 = vld [vmem:[%s14879_s4 + $0x268] ss:$16 sps:$4 sm:$0xff]   ;;  %v13340_v48 = vld [vmem:[%s14879_s4 + $0x36c] ss:$16 sps:$4 sm:$0xff]  }
 0x2c1   : > { %18323 = vst [vmem:[#allocation124_spill] sm:$0xff] %v16009_v52  ;;  %18325 = vst [vmem:[#allocation125_spill] sm:$0xff] %v16022_v30  ;;  %v16029_v14 = vpack.c.bf16 %v15994_v16, %v16009_v52  ;;  %v16041_v60 = vsel %vm1507_vm1, %v18329_v49, %v1484_v38  ;;  %v2168_v40 = vrot.slane %v15649_v2, 1  ;;  %v2170_v13 = vrot.slane %v15656_v51, 1  ;;  %9066 = vmatpush1.bf16.msra.mxu0 %v13284_v45 }
 0x2c2   : > { %18328 = vst [vmem:[#allocation127_spill] sm:$0xff] %v16035_v31  ;;  %18330 = vst [vmem:[#allocation128_spill] sm:$0xff] %v16041_v60  ;;  %v2175_v16 = vrot.slane %v15722_v33, 1  ;;  %v16050_v52 = vadd.f32 %v15628_v37, %v15566_v44  ;;  %v16054_v49 = vadd.f32 %v15630_v3, %v15640_v53  ;;  %v2173_v38 = vrot.slane %v15705_v12, 1  ;;  %7983 = vmatprep.mubr.bf16.mxu1 %v1817_v21 }
 0x2c3   : > { %18326 = vst [vmem:[#allocation126_spill] sm:$0xff] %v16029_v14  ;;  %9000 = vmatprep.mubr.bf16.mxu0 %v1817_v21  ;;  %v16064_v37 = vsel %vm2180_vm0, %v2169_v62, %v2171_v6  ;;  %v18332_v53 = vrot.slane %v15643_v9, 1  ;;  %v2172_v59 = vrot.slane %v15702_v5, 1  ;;  %8050 = vmatprep.subr.bf16.mxu1 %v13289_v24  ;;  %v1816_v45 = vmul.bf16 %v11469_v27, %v16029_v14  ;;  %v13298_v21 = vld [vmem:[%s14879_s4 + $0x28c] ss:$16 sps:$4 sm:$0xff]  }
 0x2c4   : > { %18331 = vst [vmem:[#allocation129_spill] sm:$0xff] %v16064_v37  ;;  %9067 = vmatprep.subr.bf16.mxu0 %v13292_v57  ;;  %v16078_v58 = vpack.c.bf16 %v16035_v31, %v16041_v60  ;;  %v16096_v27 = vsel %vm2180_vm0, %v2173_v38, %v2175_v16  ;;  %8051 = vmatpush1.bf16.msra.mxu1 %v13287_v39  ;;  %v13293_v14 = vld [vmem:[%s14879_s4 + $0x280] ss:$16 sps:$4 sm:$0xff]   ;;  %v18340_v60 = vrot.slane %v16000_v25, 7  ;;  %v1488_v39 = vrot.slane %v16054_v49, 7 }
 0x2c5   : > { %v16070_v3 = vsel %vm2180_vm0, %v18332_v53, %v2169_v62  ;;  %v16086_v62 = vsel %vm2180_vm0, %v2168_v40, %v2170_v13  ;;  %v18337_v53 = vrot.slane %v16013_v32, 1  ;;  %18339 = vst [vmem:[#allocation135_spill] sm:$0xff] %v16096_v27  ;;  %v2176_v24 = vrot.slane %v15776_v11, 1  ;;  %9068 = vmatpush1.bf16.msra.mxu0 %v13290_v41  ;;  %8052 = vmatprep.subr.bf16.mxu1 %v13295_v56  ;;  %v13301_v41 = vld [vmem:[%s14879_s4 + $0x2a4] ss:$16 sps:$4 sm:$0xff]   ;;  %v18385_v11 = vld [vmem:[#allocation30_spill] sm:$0xff] }
 0x2c6   : > { %18333 = vst [vmem:[#allocation130_spill] sm:$0xff] %v16070_v3  ;;  %18334 = vst [vmem:[#allocation131_spill] sm:$0xff] %v16078_v58  ;;  %v16082_v17 = vpack.c.bf16 %v16064_v37, %v16070_v3  ;;  %v13296_v3 = vld [vmem:[%s14879_s4 + $0x288] ss:$16 sps:$4 sm:$0xff]   ;;  %9069 = vmatprep.subr.bf16.mxu0 %v13298_v21  ;;  %v13304_v56 = vld [vmem:[%s14879_s4 + $0x2ac] ss:$16 sps:$4 sm:$0xff]  }
 0x2c7   : > { %18336 = vst [vmem:[#allocation133_spill] sm:$0xff] %v16086_v62  ;;  %v16092_v57 = vsel %vm2180_vm0, %v18337_v53, %v2168_v40  ;;  %v16114_v53 = vsel %vm2180_vm0, %v2171_v6, %v2173_v38  ;;  %v16129_v6 = vadd.f32 %v15635_v10, %v15566_v44  ;;  %v16137_v38 = vsel %vm2180_vm0, %v2170_v13, %v2172_v59  ;;  %v13337_v5 = vld [vmem:[%s14879_s4 + $0x364] ss:$16 sps:$4 sm:$0xff]  }
 0x2c8   : > { %18335 = vst [vmem:[#allocation132_spill] sm:$0xff] %v16082_v17  ;;  %18338 = vst [vmem:[#allocation134_spill] sm:$0xff] %v16092_v57  ;;  %v18341_v17 = vrot.slane %v15904_v18, 7  ;;  %v16110_v40 = vpack.c.bf16 %v16086_v62, %v16092_v57  ;;  %v16121_v9 = vpack.c.bf16 %v16096_v27, %v16114_v53  ;;  %7984 = vmatmul.mubr.bf16.gmra.mrb[8].mxu1 %v1816_v45  ;;  %9001 = vmatmul.mubr.bf16.gmra.mrb[40].mxu0 %v1816_v45  ;;  %v13299_v45 = vld [vmem:[%s14879_s4 + $0x2a0] ss:$16 sps:$4 sm:$0xff]  }
 0x2c9   : > { %18344 = vst [vmem:[#allocation138_spill] sm:$0xff] %v16114_v53  ;;  %18347 = vst [vmem:[#allocation141_spill] sm:$0xff] %v16137_v38  ;;  %v18350_v44 = vrot.slane %v15646_v23, 7  ;;  %8053 = vmatpush1.bf16.msra.mxu1 %v13293_v14  ;;  %9070 = vmatpush1.bf16.msra.mxu0 %v13296_v3  ;;  %v13307_v14 = vld [vmem:[%s14879_s4 + $0x2c4] ss:$16 sps:$4 sm:$0xff]   ;;  %v18362_v3 = vrot.slane %v15232_v1, %v15670_v61  ;;  %v2163_v47 = vrot.slane %v16054_v49, 1 }
 0x2ca   : > { %v16106_v37 = vsel %vm1507_vm1, %v18341_v17, %v18340_v60  ;;  %18343 = vst [vmem:[#allocation137_spill] sm:$0xff] %v16110_v40  ;;  %18345 = vst [vmem:[#allocation139_spill] sm:$0xff] %v16121_v9  ;;  %v16125_v17 = vsel %vm2180_vm0, %v2172_v59, %v2174_v54  ;;  %v1819_v60 = vmul.bf16 %v15990_v15, %v16078_v58  ;;  %v18348_v9 = vrot.slane %v15798_v0, 1  ;;  %v13305_v1 = vld [vmem:[%s14879_s4 + $0x2c0] ss:$16 sps:$4 sm:$0xff]  }
 0x2cb   : > { %18342 = vst [vmem:[#allocation136_spill] sm:$0xff] %v16106_v37  ;;  %18346 = vst [vmem:[#allocation140_spill] sm:$0xff] %v16125_v17  ;;  %v16149_v10 = vsel %vm1507_vm1, %v1488_v39, %v18350_v44  ;;  %v16153_v13 = vpack.c.bf16 %v16125_v17, %v16137_v38  ;;  %v16157_v59 = vsel %vm2180_vm0, %v2175_v16, %v2177_v50  ;;  %v18355_v58 = vrot.slane %v15786_v42, 1  ;;  %v13302_v16 = vld [vmem:[%s14879_s4 + $0x2a8] ss:$16 sps:$4 sm:$0xff]  }
 0x2cc   : > { %v16143_v40 = vsel %vm2180_vm0, %v2177_v50, %v18348_v9  ;;  %18352 = vst [vmem:[#allocation144_spill] sm:$0xff] %v16157_v59  ;;  %v1491_v9 = vrot.slane %v16013_v32, 7  ;;  %7993 = vmatprep.mubr.bf16.mxu1 %v1819_v60  ;;  %v16163_v21 = vpack.c.bf16 %v16106_v37, %v16022_v30  ;;  %9010 = vmatprep.mubr.bf16.mxu0 %v1819_v60  ;;  %v13316_v37 = vld [vmem:[%s14879_s4 + $0x2ec] ss:$16 sps:$4 sm:$0xff]   ;;  %v2162_v4 = vrot.slane %v16050_v52, 1  ;;  %v18403_v57 = vld [vmem:[#allocation31_spill] sm:$0xff] }
 0x2cd   : > { %18349 = vst [vmem:[#allocation142_spill] sm:$0xff] %v16143_v40  ;;  %18351 = vst [vmem:[#allocation143_spill] sm:$0xff] %v16153_v13  ;;  %v16167_v44 = vpack.c.bf16 %v16143_v40, %v16157_v59  ;;  %v16173_v50 = vsel %vm2180_vm0, %v2176_v24, %v18355_v58  ;;  %v18357_v13 = vrot.slane %v15916_v63, 7  ;;  %v18359_v40 = vrot.slane %v16050_v52, 7  ;;  %8054 = vmatprep.subr.bf16.mxu1 %v13301_v41  ;;  %v13310_v59 = vld [vmem:[%s14879_s4 + $0x2cc] ss:$16 sps:$4 sm:$0xff]  }
 0x2ce   : > { %18353 = vst [vmem:[#allocation145_spill] sm:$0xff] %v16163_v21  ;;  %18356 = vst [vmem:[#allocation147_spill] sm:$0xff] %v16173_v50  ;;  %v16193_v58 = vsel %vm2180_vm0, %v2174_v54, %v2176_v24  ;;  %v18363_v60 = vrot.slane %v15292_v26, %v15670_v61  ;;  %9071 = vmatprep.subr.bf16.mxu0 %v13304_v56  ;;  %8055 = vmatpush1.bf16.msra.mxu1 %v13299_v45  ;;  %v13313_v41 = vld [vmem:[%s14879_s4 + $0x2e4] ss:$16 sps:$4 sm:$0xff]   ;;  %v13341_v53 = vld [vmem:[%s14879_s4 + $0x380] ss:$16 sps:$4 sm:$0xff]  }
 0x2cf   : > { %18354 = vst [vmem:[#allocation146_spill] sm:$0xff] %v16167_v44  ;;  %v16181_v30 = vsel %vm1507_vm1, %v18357_v13, %v1488_v39  ;;  %v18360_v44 = vrot.slane %v16000_v25, 7  ;;  %18361 = vst [vmem:[#allocation149_spill] sm:$0xff] %v16193_v58  ;;  %v1489_v13 = vrot.slane %v16129_v6, 7  ;;  %v16209_v54 = vpack.c.bf16 %v16173_v50, %v16193_v58  ;;  %9072 = vmatpush1.bf16.msra.mxu0 %v13302_v16  ;;  %v18480_v38 = vld [vmem:[#allocation108_spill] sm:$0xff] }
 0x2d0   : > { %18358 = vst [vmem:[#allocation148_spill] sm:$0xff] %v16181_v30  ;;  %v11471_v39 = vcombine.low %v18363_v60, %v18362_v3  ;;  %v1715_v56 = vrot.slane %v15248_v8, %v15670_v61  ;;  %v1818_v45 = vmul.bf16 %v15990_v15, %v16163_v21  ;;  %8056 = vmatprep.subr.bf16.mxu1 %v13307_v14  ;;  %v13308_v60 = vld [vmem:[%s14879_s4 + $0x2c8] ss:$16 sps:$4 sm:$0xff]   ;;  %v18368_v8 = vrot.slane %v16050_v52, 7 }
 0x2d1   : > { %v16189_v17 = vsel %vm1507_vm1, %v18360_v44, %v18359_v40  ;;  %v16205_v40 = vpack.c.bf16 %v16149_v10, %v16181_v30  ;;  %18365 = vst [vmem:[#allocation151_spill] sm:$0xff] %v16209_v54  ;;  %v16214_v26 = vsel %vm1507_vm1, %v1489_v13, %v1491_v9  ;;  %v18366_v44 = vld [vmem:[#allocation29_spill] sm:$0xff]  ;;  %9073 = vmatprep.subr.bf16.mxu0 %v13310_v59  ;;  %v18370_v15 = vrot.slane %v15649_v2, 7  ;;  %v18372_v59 = vld [vmem:[#allocation76_spill] sm:$0xff] }
 0x2d2   : > { %v1739_v3 = vrot.slane %v18366_v44, %v15670_v61  ;;  %v18367_v54 = vld [vmem:[#allocation33_spill] sm:$0xff]  ;;  %v16236_v16 = vsel %vm1507_vm1, %v18368_v8, %v1489_v13  ;;  %7994 = vmatmul.mubr.bf16.gmra.mrb[12].mxu1 %v1818_v45  ;;  %9011 = vmatmul.mubr.bf16.gmra.mrb[44].mxu0 %v1818_v45  ;;  %v18375_v8 = vld [vmem:[#allocation35_spill] sm:$0xff]  ;;  %v2153_v30 = vrot.slane %v15718_v35, 1  ;;  %v2155_v58 = vrot.slane %v15818_v55, 1  ;;  %v13328_v45 = vld [vmem:[%s14879_s4 + $0x32c] ss:$16 sps:$4 sm:$0xff]  }
 0x2d3   : > { %18364 = vst [vmem:[#allocation150_spill] sm:$0xff] %v16205_v40  ;;  %v1703_v50 = vrot.slane %v18367_v54, %v15670_v61  ;;  %v1821_v24 = vmul.bf16 %v11471_v39, %v16205_v40  ;;  %18369 = vst [vmem:[#allocation29_spill] sm:$0xff] %v16236_v16  ;;  %v16242_v14 = vsel %vm1507_vm1, %v1491_v9, %v18370_v15  ;;  %8057 = vmatpush1.bf16.msra.mxu1 %v13305_v1  ;;  %v13311_v9 = vld [vmem:[%s14879_s4 + $0x2e0] ss:$16 sps:$4 sm:$0xff]   ;;  %v13314_v44 = vld [vmem:[%s14879_s4 + $0x2e8] ss:$16 sps:$4 sm:$0xff]  }
 0x2d4   : > { %18371 = vst [vmem:[#allocation33_spill] sm:$0xff] %v16242_v14  ;;  %v1727_v31 = vrot.slane %v18375_v8, %v15670_v61  ;;  %9074 = vmatpush1.bf16.msra.mxu0 %v13308_v60  ;;  %v16260_v13 = vpack.c.bf16 %v16236_v16, %v16189_v17  ;;  %v13319_v54 = vld [vmem:[%s14879_s4 + $0x304] ss:$16 sps:$4 sm:$0xff]   ;;  %8058 = vmatprep.subr.bf16.mxu1 %v13313_v41  ;;  %v13322_v1 = vld [vmem:[%s14879_s4 + $0x30c] ss:$16 sps:$4 sm:$0xff]   ;;  %v2157_v41 = vrot.slane %v15794_v22, 1 }
 0x2d5   : > { %8003 = vmatprep.mubr.bf16.mxu1 %v1821_v24  ;;  %9020 = vmatprep.mubr.bf16.mxu0 %v1821_v24  ;;  %v16263_v8 = vcombine.low %v1703_v50, %v1715_v56  ;;  %v13317_v50 = vld [vmem:[%s14879_s4 + $0x300] ss:$16 sps:$4 sm:$0xff]   ;;  %v2160_v56 = vrot.slane %v16000_v25, 1  ;;  %v2161_v21 = vrot.slane %v15916_v63, 1  ;;  %v13325_v24 = vld [vmem:[%s14879_s4 + $0x324] ss:$16 sps:$4 sm:$0xff]   ;;  %v1763_v42 = vrot.slane %v18385_v11, %v15670_v61 }
 0x2d6   : > { %18378 = vst [vmem:[#allocation76_spill] sm:$0xff] %v16260_v13  ;;  %9075 = vmatprep.subr.bf16.mxu0 %v13316_v37  ;;  %v16272_v15 = vcombine.low %v1727_v31, %v1739_v3  ;;  %v13320_v37 = vld [vmem:[%s14879_s4 + $0x308] ss:$16 sps:$4 sm:$0xff]   ;;  %v1820_v60 = vmul.bf16 %v11471_v39, %v16260_v13  ;;  %v2158_v31 = vrot.slane %v15904_v18, 1  ;;  %v2159_v3 = vrot.slane %v15908_v19, 1 }
 0x2d7   : > { %8059 = vmatpush1.bf16.msra.mxu1 %v13311_v9  ;;  %v2165_v9 = vrot.slane %v15646_v23, 1  ;;  %v1823_v40 = vmul.bf16 %v16263_v8, %v18381_v36  ;;  %v16291_v39 = vpack.c.bf16 %v16242_v14, %v16214_v26  ;;  %v2164_v36 = vrot.slane %v16129_v6, 1  ;;  %v13326_v16 = vld [vmem:[%s14879_s4 + $0x328] ss:$16 sps:$4 sm:$0xff]  }
 0x2d8   : > { %9076 = vmatpush1.bf16.msra.mxu0 %v13314_v44  ;;  %8060 = vmatprep.subr.bf16.mxu1 %v13319_v54  ;;  %v16295_v54 = vsel %vm2180_vm0, %v2153_v30, %v2155_v58  ;;  %v18383_v44 = vrot.slane %v15709_v29, 1  ;;  %v16323_v13 = vsel %vm2180_vm0, %v2158_v31, %v2160_v56  ;;  %v16377_v11 = vsel %vm2180_vm0, %v2160_v56, %v2162_v4  ;;  %v13335_v56 = vld [vmem:[%s14879_s4 + $0x360] ss:$16 sps:$4 sm:$0xff]  }
 0x2d9   : > { %9077 = vmatprep.subr.bf16.mxu0 %v13322_v1  ;;  %18382 = vst [vmem:[#allocation35_spill] sm:$0xff] %v16291_v39  ;;  %v16339_v12 = vsel %vm2180_vm0, %v2163_v47, %v2165_v9  ;;  %v1822_v28 = vmul.bf16 %v16263_v8, %v16291_v39  ;;  %v1899_v39 = vrot.slane %v18403_v57, %v15670_v61  ;;  %v13355_v57 = vld [vmem:[%s14879_s4 + $0x3c4] ss:$16 sps:$4 sm:$0xff]  }
 0x2da   : > { %8004 = vmatmul.mubr.bf16.gmra.mrb[16].mxu1 %v1820_v60  ;;  %9021 = vmatmul.mubr.bf16.gmra.mrb[48].mxu0 %v1820_v60  ;;  %v16301_v1 = vsel %vm2180_vm0, %v18383_v44, %v2153_v30  ;;  %v13323_v60 = vld [vmem:[%s14879_s4 + $0x320] ss:$16 sps:$4 sm:$0xff]   ;;  %v13331_v30 = vld [vmem:[%s14879_s4 + $0x344] ss:$16 sps:$4 sm:$0xff]   ;;  %v16315_v44 = vsel %vm2180_vm0, %v2155_v58, %v2157_v41  ;;  %v18384_v58 = vrot.slane %v15831_v46, 1 }
 0x2db   : > { %8013 = vmatprep.mubr.bf16.mxu1 %v1823_v40  ;;  %8061 = vmatpush1.bf16.msra.mxu1 %v13317_v50  ;;  %v16319_v50 = vsel %vm2180_vm0, %v2159_v3, %v2161_v21 }
 0x2dc   : > { %9030 = vmatprep.mubr.bf16.mxu0 %v1823_v40  ;;  %9078 = vmatpush1.bf16.msra.mxu0 %v13320_v37  ;;  %v13334_v40 = vld [vmem:[%s14879_s4 + $0x34c] ss:$16 sps:$4 sm:$0xff]   ;;  %v16329_v37 = vsel %vm2180_vm0, %v2157_v41, %v2159_v3  ;;  %v16335_v14 = vsel %vm2180_vm0, %v18384_v58, %v2158_v31  ;;  %v13329_v31 = vld [vmem:[%s14879_s4 + $0x340] ss:$16 sps:$4 sm:$0xff]   ;;  %v16352_v58 = vsel %vm2180_vm0, %v2162_v4, %v2164_v36  ;;  %v13343_v4 = vld [vmem:[%s14879_s4 + $0x384] ss:$16 sps:$4 sm:$0xff]  }
 0x2dd   : > { %8062 = vmatprep.subr.bf16.mxu1 %v13325_v24  ;;  %9079 = vmatprep.subr.bf16.mxu0 %v13328_v45  ;;  %v18386_v3 = vld [vmem:[#allocation37_spill] sm:$0xff]  ;;  %v18387_v24 = vld [vmem:[#allocation88_spill] sm:$0xff]  ;;  %v16373_v41 = vsel %vm2180_vm0, %v2161_v21, %v2163_v47 }
 0x2de   : > { %v1825_v45 = vmul.bf16 %v16272_v15, %v18387_v24  ;;  %v13344_v24 = vld [vmem:[%s14879_s4 + $0x388] ss:$16 sps:$4 sm:$0xff]   ;;  %v16654_v34 = vpack.c.bf16 %v16373_v41, %v16319_v50 }
 0x2df   : > { %8063 = vmatpush1.bf16.msra.mxu1 %v13323_v60  ;;  %v1751_v60 = vrot.slane %v18386_v3, %v15670_v61 }
 0x2e0   : > { %9080 = vmatpush1.bf16.msra.mxu0 %v13326_v16  ;;  %8064 = vmatprep.subr.bf16.mxu1 %v13331_v30  ;;  %v18388_v16 = vld [vmem:[#allocation73_spill] sm:$0xff] }
 0x2e1   : > { %9081 = vmatprep.subr.bf16.mxu0 %v13334_v40  ;;  %v18389_v8 = vrot.slane %v18388_v16, 1  ;;  %v18391_v40 = vrot.slane %v16013_v32, 1 }
 0x2e2   : > { %8014 = vmatmul.mubr.bf16.gmra.mrb[20].mxu1 %v1822_v28  ;;  %9031 = vmatmul.mubr.bf16.gmra.mrb[52].mxu0 %v1822_v28 }
 0x2e3   : > { %v16383_v30 = vsel %vm2180_vm0, %v2165_v9, %v18389_v8  ;;  %v16389_v47 = vsel %vm2180_vm0, %v2164_v36, %v18391_v40  ;;  %8023 = vmatprep.mubr.bf16.mxu1 %v1825_v45  ;;  %8065 = vmatpush1.bf16.msra.mxu1 %v13329_v31  ;;  %v13338_v40 = vld [vmem:[%s14879_s4 + $0x368] ss:$16 sps:$4 sm:$0xff]   ;;  %v13346_v31 = vld [vmem:[%s14879_s4 + $0x38c] ss:$16 sps:$4 sm:$0xff]   ;;  %v11474_v8 = vcombine.low %v1751_v60, %v1763_v42  ;;  %v13349_v36 = vld [vmem:[%s14879_s4 + $0x3a4] ss:$16 sps:$4 sm:$0xff]  }
 0x2e4   : > { %18390 = vst [vmem:[#allocation30_spill] sm:$0xff] %v16383_v30  ;;  %18392 = vst [vmem:[#allocation37_spill] sm:$0xff] %v16389_v47  ;;  %9040 = vmatprep.mubr.bf16.mxu0 %v1825_v45  ;;  %9082 = vmatpush1.bf16.msra.mxu0 %v13332_v43  ;;  %v18404_v43 = vld [vmem:[#allocation39_spill] sm:$0xff]  ;;  %v13364_v9 = vld [vmem:[%s14879_s4 + $0x3ec] ss:$16 sps:$4 sm:$0xff]  }
 0x2e5   : > { %8066 = vmatprep.subr.bf16.mxu1 %v13337_v5  ;;  %9083 = vmatprep.subr.bf16.mxu0 %v13340_v48  ;;  %v18402_v48 = vld [vmem:[#allocation89_spill] sm:$0xff]  ;;  %v1887_v42 = vrot.slane %v18404_v43, %v15670_v61  ;;  %v18405_v60 = vld [vmem:[#allocation111_spill] sm:$0xff]  ;;  %v13352_v5 = vld [vmem:[%s14879_s4 + $0x3ac] ss:$16 sps:$4 sm:$0xff]  }
 0x2e6   : > { %v1824_v21 = vmul.bf16 %v16272_v15, %v18402_v48  ;;  %v13347_v15 = vld [vmem:[%s14879_s4 + $0x3a0] ss:$16 sps:$4 sm:$0xff]  }
 0x2e7   : > { %8067 = vmatpush1.bf16.msra.mxu1 %v13335_v56  ;;  %v1827_v56 = vmul.bf16 %v11474_v8, %v18405_v60  ;;  %v18406_v43 = vld [vmem:[#allocation84_spill] sm:$0xff] }
 0x2e8   : > { %9084 = vmatpush1.bf16.msra.mxu0 %v13338_v40  ;;  %8068 = vmatprep.subr.bf16.mxu1 %v13343_v4  ;;  %v13350_v4 = vld [vmem:[%s14879_s4 + $0x3a8] ss:$16 sps:$4 sm:$0xff]   ;;  %v11475_v40 = vcombine.low %v1887_v42, %v1899_v39  ;;  %v16432_v60 = vpack.c.bf16 %v18406_v43, %v15798_v0 }
 0x2e9   : > { %9085 = vmatprep.subr.bf16.mxu0 %v13346_v31  ;;  %v13358_v31 = vld [vmem:[%s14879_s4 + $0x3cc] ss:$16 sps:$4 sm:$0xff]  }
 0x2ea   : > { %8024 = vmatmul.mubr.bf16.gmra.mrb[24].mxu1 %v1824_v21  ;;  %9041 = vmatmul.mubr.bf16.gmra.mrb[56].mxu0 %v1824_v21  ;;  %18407 = vst [vmem:[#allocation73_spill] sm:$0xff] %v16432_v60  ;;  %v13353_v21 = vld [vmem:[%s14879_s4 + $0x3c0] ss:$16 sps:$4 sm:$0xff]  }
 0x2eb   : > { %8033 = vmatprep.mubr.bf16.mxu1 %v1827_v56  ;;  %8069 = vmatpush1.bf16.msra.mxu1 %v13341_v53  ;;  %v18408_v53 = vld [vmem:[#allocation101_spill] sm:$0xff]  ;;  %v18409_v39 = vld [vmem:[#allocation32_spill] sm:$0xff] }
 0x2ec   : > { %9050 = vmatprep.mubr.bf16.mxu0 %v1827_v56  ;;  %9086 = vmatpush1.bf16.msra.mxu0 %v13344_v24  ;;  %v1826_v48 = vmul.bf16 %v11474_v8, %v18408_v53  ;;  %v13356_v24 = vld [vmem:[%s14879_s4 + $0x3c8] ss:$16 sps:$4 sm:$0xff]   ;;  %v1911_v42 = vrot.slane %v18409_v39, %v15670_v61  ;;  %v2117_v56 = vmul.bf16 %v11475_v40, %v16432_v60  ;;  %v13359_v8 = vld [vmem:[%s14879_s4 + $0x3e0] ss:$16 sps:$4 sm:$0xff]   ;;  %v13373_v53 = vld [vmem:[%s14879_s4 + $0x424] ss:$16 sps:$4 sm:$0xff]  }
 0x2ed   : > { %8070 = vmatprep.subr.bf16.mxu1 %v13349_v36  ;;  %9087 = vmatprep.subr.bf16.mxu0 %v13352_v5  ;;  %v18410_v36 = vld [vmem:[#allocation41_spill] sm:$0xff] }
 0x2ee   : > { %v1923_v5 = vrot.slane %v18410_v36, %v15670_v61  ;;  %v16450_v36 = vpack.c.bf16 %v15718_v35, %v15709_v29 }
 0x2ef   : > { %8071 = vmatpush1.bf16.msra.mxu1 %v13347_v15  ;;  %v13361_v15 = vld [vmem:[%s14879_s4 + $0x3e4] ss:$16 sps:$4 sm:$0xff]  }
 0x2f0   : > { %9088 = vmatpush1.bf16.msra.mxu0 %v13350_v4  ;;  %8072 = vmatprep.subr.bf16.mxu1 %v13355_v57  ;;  %v13362_v4 = vld [vmem:[%s14879_s4 + $0x3e8] ss:$16 sps:$4 sm:$0xff]   ;;  %v13367_v57 = vld [vmem:[%s14879_s4 + $0x404] ss:$16 sps:$4 sm:$0xff]   ;;  %v11476_v39 = vcombine.low %v1911_v42, %v1923_v5  ;;  %18411 = vst [vmem:[#allocation31_spill] sm:$0xff] %v16450_v36 }
 0x2f1   : > { %9089 = vmatprep.subr.bf16.mxu0 %v13358_v31  ;;  %v13370_v31 = vld [vmem:[%s14879_s4 + $0x40c] ss:$16 sps:$4 sm:$0xff]   ;;  %v18414_v42 = vld [vmem:[#allocation43_spill] sm:$0xff] }
 0x2f2   : > { %8034 = vmatmul.mubr.bf16.gmra.mrb[28].mxu1 %v1826_v48  ;;  %9051 = vmatmul.mubr.bf16.gmra.mrb[60].mxu0 %v1826_v48  ;;  %v18412_v48 = vld [vmem:[#allocation98_spill] sm:$0xff]  ;;  %v1947_v5 = vrot.slane %v18414_v42, %v15670_v61 }
 0x2f3   : > { %8073 = vmatpush1.bf16.msra.mxu1 %v13353_v21  ;;  %8076 = vmatprep.mubr.bf16.mxu1 %v2117_v56  ;;  %v2116_v21 = vmul.bf16 %v11475_v40, %v18412_v48  ;;  %v13376_v40 = vld [vmem:[%s14879_s4 + $0x42c] ss:$16 sps:$4 sm:$0xff]   ;;  %v13379_v48 = vld [vmem:[%s14879_s4 + $0x444] ss:$16 sps:$4 sm:$0xff]  }
 0x2f4   : > { %9090 = vmatpush1.bf16.msra.mxu0 %v13356_v24  ;;  %9093 = vmatprep.mubr.bf16.mxu0 %v2117_v56  ;;  %v13365_v24 = vld [vmem:[%s14879_s4 + $0x400] ss:$16 sps:$4 sm:$0xff]  }
 0x2f5   : > { %8074 = vmatprep.subr.bf16.mxu1 %v13361_v15  ;;  %9091 = vmatprep.subr.bf16.mxu0 %v13364_v9  ;;  %v18413_v56 = vld [vmem:[#allocation34_spill] sm:$0xff]  ;;  %v2119_v15 = vmul.bf16 %v11476_v39, %v16450_v36 }
 0x2f6   : > { %v1935_v60 = vrot.slane %v18413_v56, %v15670_v61  ;;  %v13368_v9 = vld [vmem:[%s14879_s4 + $0x408] ss:$16 sps:$4 sm:$0xff]   ;;  %v13371_v56 = vld [vmem:[%s14879_s4 + $0x420] ss:$16 sps:$4 sm:$0xff]   ;;  %v13382_v36 = vld [vmem:[%s14879_s4 + $0x44c] ss:$16 sps:$4 sm:$0xff]  }
 0x2f7   : > { %8075 = vmatpush1.bf16.msra.mxu1 %v13359_v8  ;;  %v18415_v8 = vld [vmem:[#allocation67_spill] sm:$0xff] }
 0x2f8   : > { %9092 = vmatpush1.bf16.msra.mxu0 %v13362_v4  ;;  %8157 = vmatprep.subr.bf16.mxu1 %v13367_v57  ;;  %v18416_v4 = vld [vmem:[#allocation70_spill] sm:$0xff]  ;;  %v11477_v42 = vcombine.low %v1935_v60, %v1947_v5  ;;  %v18420_v5 = vld [vmem:[#allocation45_spill] sm:$0xff] }
 0x2f9   : > { %9174 = vmatprep.subr.bf16.mxu0 %v13370_v31  ;;  %v16464_v57 = vpack.c.bf16 %v18416_v4, %v18415_v8  ;;  %v13374_v31 = vld [vmem:[%s14879_s4 + $0x428] ss:$16 sps:$4 sm:$0xff]  }
 0x2fa   : > { %8077 = vmatmul.mubr.bf16.vlgmr.msra.gmra.mrb[0].mxu1 %v2116_v21 }
 0x2fb   : > { %9094 = vmatmul.mubr.bf16.vlgmr.msra.gmra.mrb[32].mxu0 %v2116_v21  ;;  %8086 = vmatprep.mubr.bf16.mxu1 %v2119_v15  ;;  %18417 = vst [vmem:[#allocation39_spill] sm:$0xff] %v16464_v57  ;;  %v16471_v21 = vpack.c.bf16 %v15794_v22, %v15818_v55  ;;  %v2118_v33 = vmul.bf16 %v11476_v39, %v16464_v57  ;;  %v13388_v39 = vld [vmem:[%s14879_s4 + $0x46c] ss:$16 sps:$4 sm:$0xff]  }
 0x2fc   : > { %8158 = vmatpush1.bf16.msra.mxu1 %v13365_v24  ;;  %9103 = vmatprep.mubr.bf16.mxu0 %v2119_v15  ;;  %v13377_v24 = vld [vmem:[%s14879_s4 + $0x440] ss:$16 sps:$4 sm:$0xff]  }
 0x2fd   : > { %9175 = vmatpush1.bf16.msra.mxu0 %v13368_v9  ;;  %8159 = vmatprep.subr.bf16.mxu1 %v13373_v53  ;;  %18418 = vst [vmem:[#allocation84_spill] sm:$0xff] %v16471_v21  ;;  %v18419_v15 = vld [vmem:[#allocation36_spill] sm:$0xff]  ;;  %v1971_v53 = vrot.slane %v18420_v5, %v15670_v61  ;;  %v2121_v45 = vmul.bf16 %v11477_v42, %v16471_v21  ;;  %v13391_v21 = vld [vmem:[%s14879_s4 + $0x484] ss:$16 sps:$4 sm:$0xff]   ;;  %v18424_v57 = vld [vmem:[#allocation38_spill] sm:$0xff] }
 0x2fe   : > { %9176 = vmatprep.subr.bf16.mxu0 %v13376_v40  ;;  %v1959_v60 = vrot.slane %v18419_v15, %v15670_v61  ;;  %v13380_v9 = vld [vmem:[%s14879_s4 + $0x448] ss:$16 sps:$4 sm:$0xff]   ;;  %v13385_v40 = vld [vmem:[%s14879_s4 + $0x464] ss:$16 sps:$4 sm:$0xff]  }
 0x2ff   : > { %v18421_v15 = vld [vmem:[#allocation112_spill] sm:$0xff] }
 0x300   : > { %8160 = vmatpush1.bf16.msra.mxu1 %v13371_v56  ;;  %v13383_v56 = vld [vmem:[%s14879_s4 + $0x460] ss:$16 sps:$4 sm:$0xff]   ;;  %v13386_v5 = vld [vmem:[%s14879_s4 + $0x468] ss:$16 sps:$4 sm:$0xff]  }
 0x301   : > { %9177 = vmatpush1.bf16.msra.mxu0 %v13374_v31  ;;  %8161 = vmatprep.subr.bf16.mxu1 %v13379_v48  ;;  %v16487_v31 = vpack.c.bf16 %v15831_v46, %v18421_v15  ;;  %v11478_v48 = vcombine.low %v1959_v60, %v1971_v53  ;;  %v1983_v60 = vrot.slane %v18424_v57, %v15670_v61  ;;  %v18425_v53 = vld [vmem:[#allocation47_spill] sm:$0xff] }
 0x302   : > { %8087 = vmatmul.mubr.bf16.gmra.mrb[4].mxu1 %v2118_v33  ;;  %9178 = vmatprep.subr.bf16.mxu0 %v13382_v36  ;;  %v13394_v36 = vld [vmem:[%s14879_s4 + $0x48c] ss:$16 sps:$4 sm:$0xff]   ;;  %v13395_v57 = vld [vmem:[%s14879_s4 + $0x4a0] ss:$16 sps:$4 sm:$0xff]   ;;  %18458 = vst [vmem:[#allocation47_spill] sm:$0xff] %v16654_v34 }
 0x303   : > { %9104 = vmatmul.mubr.bf16.gmra.mrb[36].mxu0 %v2118_v33  ;;  %8096 = vmatprep.mubr.bf16.mxu1 %v2121_v45  ;;  %18422 = vst [vmem:[#allocation32_spill] sm:$0xff] %v16487_v31  ;;  %v16493_v33 = vpack.c.bf16 %v15916_v63, %v15908_v19 }
 0x304   : > { %8162 = vmatpush1.bf16.msra.mxu1 %v13377_v24  ;;  %9113 = vmatprep.mubr.bf16.mxu0 %v2121_v45  ;;  %v2120_v45 = vmul.bf16 %v11477_v42, %v16487_v31  ;;  %v13389_v24 = vld [vmem:[%s14879_s4 + $0x480] ss:$16 sps:$4 sm:$0xff]   ;;  %v13400_v42 = vld [vmem:[%s14879_s4 + $0x4ac] ss:$16 sps:$4 sm:$0xff]  }
 0x305   : > { %9179 = vmatpush1.bf16.msra.mxu0 %v13380_v9  ;;  %8163 = vmatprep.subr.bf16.mxu1 %v13385_v40  ;;  %18423 = vst [vmem:[#allocation41_spill] sm:$0xff] %v16493_v33  ;;  %v1995_v9 = vrot.slane %v18425_v53, %v15670_v61  ;;  %v13392_v40 = vld [vmem:[%s14879_s4 + $0x488] ss:$16 sps:$4 sm:$0xff]   ;;  %v2123_v28 = vmul.bf16 %v11478_v48, %v16493_v33  ;;  %v13403_v53 = vld [vmem:[%s14879_s4 + $0x4c4] ss:$16 sps:$4 sm:$0xff]  }
 0x306   : > { %9180 = vmatprep.subr.bf16.mxu0 %v13388_v39  ;;  %v13397_v39 = vld [vmem:[%s14879_s4 + $0x4a4] ss:$16 sps:$4 sm:$0xff]   ;;  %v18428_v33 = vld [vmem:[#allocation40_spill] sm:$0xff] }
 0x308   : > { %8164 = vmatpush1.bf16.msra.mxu1 %v13383_v56  ;;  %v16509_v56 = vpack.c.bf16 %v16000_v25, %v15904_v18 }
 0x309   : > { %9181 = vmatpush1.bf16.msra.mxu0 %v13386_v5  ;;  %8165 = vmatprep.subr.bf16.mxu1 %v13391_v21  ;;  %v11479_v21 = vcombine.low %v1983_v60, %v1995_v9  ;;  %v13398_v5 = vld [vmem:[%s14879_s4 + $0x4a8] ss:$16 sps:$4 sm:$0xff]   ;;  %v2007_v60 = vrot.slane %v18428_v33, %v15670_v61  ;;  %v13407_v33 = vld [vmem:[%s14879_s4 + $0x4e0] ss:$16 sps:$4 sm:$0xff]  }
 0x30a   : > { %8097 = vmatmul.mubr.bf16.gmra.mrb[8].mxu1 %v2120_v45  ;;  %9182 = vmatprep.subr.bf16.mxu0 %v13394_v36  ;;  %18426 = vst [vmem:[#allocation34_spill] sm:$0xff] %v16509_v56  ;;  %v16515_v36 = vpack.c.bf16 %v15646_v23, %v16054_v49  ;;  %v18429_v9 = vld [vmem:[#allocation49_spill] sm:$0xff] }
 0x30b   : > { %9114 = vmatmul.mubr.bf16.gmra.mrb[40].mxu0 %v2120_v45  ;;  %8106 = vmatprep.mubr.bf16.mxu1 %v2123_v28  ;;  %v13406_v45 = vld [vmem:[%s14879_s4 + $0x4cc] ss:$16 sps:$4 sm:$0xff]  }
 0x30c   : > { %8166 = vmatpush1.bf16.msra.mxu1 %v13389_v24  ;;  %9123 = vmatprep.mubr.bf16.mxu0 %v2123_v28  ;;  %18427 = vst [vmem:[#allocation43_spill] sm:$0xff] %v16515_v36  ;;  %v2122_v28 = vmul.bf16 %v11478_v48, %v16509_v56  ;;  %v13401_v24 = vld [vmem:[%s14879_s4 + $0x4c0] ss:$16 sps:$4 sm:$0xff]   ;;  %v2125_v31 = vmul.bf16 %v11479_v21, %v16515_v36  ;;  %v13412_v48 = vld [vmem:[%s14879_s4 + $0x4ec] ss:$16 sps:$4 sm:$0xff]  }
 0x30d   : > { %9183 = vmatpush1.bf16.msra.mxu0 %v13392_v40  ;;  %8167 = vmatprep.subr.bf16.mxu1 %v13397_v39  ;;  %v2019_v40 = vrot.slane %v18429_v9, %v15670_v61  ;;  %v13404_v39 = vld [vmem:[%s14879_s4 + $0x4c8] ss:$16 sps:$4 sm:$0xff]   ;;  %v13415_v9 = vld [vmem:[%s14879_s4 + $0x504] ss:$16 sps:$4 sm:$0xff]  }
 0x30e   : > { %9184 = vmatprep.subr.bf16.mxu0 %v13400_v42  ;;  %v13409_v42 = vld [vmem:[%s14879_s4 + $0x4e4] ss:$16 sps:$4 sm:$0xff]  }
 0x30f   : > { %v18432_v56 = vld [vmem:[#allocation51_spill] sm:$0xff] }
 0x310   : > { %8168 = vmatpush1.bf16.msra.mxu1 %v13395_v57  ;;  %v16531_v57 = vpack.c.bf16 %v16129_v6, %v16050_v52  ;;  %v2043_v27 = vrot.slane %v18432_v56, %v15670_v61  ;;  %v16549_v56 = vpack.c.bf16 %v15649_v2, %v16013_v32 }
 0x311   : > { %9185 = vmatpush1.bf16.msra.mxu0 %v13398_v5  ;;  %8169 = vmatprep.subr.bf16.mxu1 %v13403_v53  ;;  %v11480_v5 = vcombine.low %v2007_v60, %v2019_v40  ;;  %v13410_v53 = vld [vmem:[%s14879_s4 + $0x4e8] ss:$16 sps:$4 sm:$0xff]  }
 0x312   : > { %8107 = vmatmul.mubr.bf16.gmra.mrb[12].mxu1 %v2122_v28  ;;  %9186 = vmatprep.subr.bf16.mxu0 %v13406_v45  ;;  %18430 = vst [vmem:[#allocation67_spill] sm:$0xff] %v16531_v57  ;;  %v13418_v45 = vld [vmem:[%s14879_s4 + $0x50c] ss:$16 sps:$4 sm:$0xff]   ;;  %v13416_v60 = vld [vmem:[%s14879_s4 + $0x508] ss:$16 sps:$4 sm:$0xff]   ;;  %18434 = vst [vmem:[#allocation70_spill] sm:$0xff] %v16549_v56 }
 0x313   : > { %9124 = vmatmul.mubr.bf16.gmra.mrb[44].mxu0 %v2122_v28  ;;  %8116 = vmatprep.mubr.bf16.mxu1 %v2125_v31  ;;  %v2124_v28 = vmul.bf16 %v11479_v21, %v16531_v57  ;;  %v18433_v40 = vld [vmem:[#allocation74_spill] sm:$0xff] }
 0x314   : > { %8170 = vmatpush1.bf16.msra.mxu1 %v13401_v24  ;;  %9133 = vmatprep.mubr.bf16.mxu0 %v2125_v31  ;;  %v13413_v31 = vld [vmem:[%s14879_s4 + $0x500] ss:$16 sps:$4 sm:$0xff]   ;;  %v13424_v21 = vld [vmem:[%s14879_s4 + $0x52c] ss:$16 sps:$4 sm:$0xff]  }
 0x315   : > { %9187 = vmatpush1.bf16.msra.mxu0 %v13404_v39  ;;  %8171 = vmatprep.subr.bf16.mxu1 %v13409_v42  ;;  %v18431_v24 = vld [vmem:[#allocation42_spill] sm:$0xff]  ;;  %v2127_v39 = vmul.bf16 %v11480_v5, %v18433_v40  ;;  %v13421_v42 = vld [vmem:[%s14879_s4 + $0x524] ss:$16 sps:$4 sm:$0xff]  }
 0x316   : > { %9188 = vmatprep.subr.bf16.mxu0 %v13412_v48  ;;  %v2031_v36 = vrot.slane %v18431_v24, %v15670_v61  ;;  %v13419_v48 = vld [vmem:[%s14879_s4 + $0x520] ss:$16 sps:$4 sm:$0xff]  }
 0x317   : > { %v18435_v24 = vld [vmem:[#allocation44_spill] sm:$0xff]  ;;  %v18436_v40 = vld [vmem:[#allocation53_spill] sm:$0xff] }
 0x318   : > { %8172 = vmatpush1.bf16.msra.mxu1 %v13407_v33  ;;  %v11481_v33 = vcombine.low %v2031_v36, %v2043_v27  ;;  %v2067_v57 = vrot.slane %v18436_v40, %v15670_v61  ;;  %v13428_v27 = vld [vmem:[%s14879_s4 + $0x548] ss:$16 sps:$4 sm:$0xff]  }
 0x319   : > { %9189 = vmatpush1.bf16.msra.mxu0 %v13410_v53  ;;  %8173 = vmatprep.subr.bf16.mxu1 %v13415_v9  ;;  %v13422_v53 = vld [vmem:[%s14879_s4 + $0x528] ss:$16 sps:$4 sm:$0xff]   ;;  %v13427_v9 = vld [vmem:[%s14879_s4 + $0x544] ss:$16 sps:$4 sm:$0xff]  }
 0x31a   : > { %8117 = vmatmul.mubr.bf16.gmra.mrb[16].mxu1 %v2124_v28  ;;  %9190 = vmatprep.subr.bf16.mxu0 %v13418_v45  ;;  %v13430_v45 = vld [vmem:[%s14879_s4 + $0x54c] ss:$16 sps:$4 sm:$0xff]  }
 0x31b   : > { %9134 = vmatmul.mubr.bf16.gmra.mrb[48].mxu0 %v2124_v28  ;;  %8126 = vmatprep.mubr.bf16.mxu1 %v2127_v39  ;;  %v2126_v28 = vmul.bf16 %v11480_v5, %v16549_v56  ;;  %v18437_v36 = vld [vmem:[#allocation86_spill] sm:$0xff] }
 0x31c   : > { %8174 = vmatpush1.bf16.msra.mxu1 %v13413_v31  ;;  %9143 = vmatprep.mubr.bf16.mxu0 %v2127_v39  ;;  %v13425_v31 = vld [vmem:[%s14879_s4 + $0x540] ss:$16 sps:$4 sm:$0xff]   ;;  %v2055_v39 = vrot.slane %v18435_v24, %v15670_v61  ;;  %v13436_v5 = vld [vmem:[%s14879_s4 + $0x56c] ss:$16 sps:$4 sm:$0xff]  }
 0x31d   : > { %9191 = vmatpush1.bf16.msra.mxu0 %v13416_v60  ;;  %8175 = vmatprep.subr.bf16.mxu1 %v13421_v42  ;;  %v2129_v60 = vmul.bf16 %v11481_v33, %v18437_v36  ;;  %v13433_v42 = vld [vmem:[%s14879_s4 + $0x564] ss:$16 sps:$4 sm:$0xff]   ;;  %v18438_v24 = vld [vmem:[#allocation92_spill] sm:$0xff] }
 0x31e   : > { %9192 = vmatprep.subr.bf16.mxu0 %v13424_v21  ;;  %v13431_v21 = vld [vmem:[%s14879_s4 + $0x560] ss:$16 sps:$4 sm:$0xff]   ;;  %v11482_v40 = vcombine.low %v2055_v39, %v2067_v57  ;;  %v13440_v57 = vld [vmem:[%s14879_s4 + $0x588] ss:$16 sps:$4 sm:$0xff]  }
 0x31f   : > { %v13437_v36 = vld [vmem:[%s14879_s4 + $0x580] ss:$16 sps:$4 sm:$0xff]  }
 0x320   : > { %8176 = vmatpush1.bf16.msra.mxu1 %v13419_v48  ;;  %v13434_v48 = vld [vmem:[%s14879_s4 + $0x568] ss:$16 sps:$4 sm:$0xff]  }
 0x321   : > { %9193 = vmatpush1.bf16.msra.mxu0 %v13422_v53  ;;  %8177 = vmatprep.subr.bf16.mxu1 %v13427_v9  ;;  %v13439_v53 = vld [vmem:[%s14879_s4 + $0x584] ss:$16 sps:$4 sm:$0xff]   ;;  %v13442_v9 = vld [vmem:[%s14879_s4 + $0x58c] ss:$16 sps:$4 sm:$0xff]  }
 0x322   : > { %8127 = vmatmul.mubr.bf16.gmra.mrb[20].mxu1 %v2126_v28  ;;  %9194 = vmatprep.subr.bf16.mxu0 %v13430_v45  ;;  %v2128_v45 = vmul.bf16 %v11481_v33, %v18438_v24  ;;  %v18441_v39 = vld [vmem:[#allocation114_spill] sm:$0xff] }
 0x323   : > { %9144 = vmatmul.mubr.bf16.gmra.mrb[52].mxu0 %v2126_v28  ;;  %8136 = vmatprep.mubr.bf16.mxu1 %v2129_v60  ;;  %v18439_v28 = vld [vmem:[#allocation46_spill] sm:$0xff] }
 0x324   : > { %8178 = vmatpush1.bf16.msra.mxu1 %v13425_v31  ;;  %9153 = vmatprep.mubr.bf16.mxu0 %v2129_v60  ;;  %v2256_v31 = vrot.slane %v18439_v28, %v15670_v61  ;;  %v18440_v60 = vld [vmem:[#allocation55_spill] sm:$0xff]  ;;  %v13448_v33 = vld [vmem:[%s14879_s4 + $0x5ac] ss:$16 sps:$4 sm:$0xff]  }
 0x325   : > { %9195 = vmatpush1.bf16.msra.mxu0 %v13428_v27  ;;  %8179 = vmatprep.subr.bf16.mxu1 %v13433_v42  ;;  %v2268_v56 = vrot.slane %v18440_v60, %v15670_v61  ;;  %v2131_v27 = vmul.bf16 %v11482_v40, %v18441_v39  ;;  %v13445_v42 = vld [vmem:[%s14879_s4 + $0x5a4] ss:$16 sps:$4 sm:$0xff]   ;;  %v13454_v28 = vld [vmem:[%s14879_s4 + $0x5cc] ss:$16 sps:$4 sm:$0xff]   ;;  %v13449_v39 = vld [vmem:[%s14879_s4 + $0x5c0] ss:$16 sps:$4 sm:$0xff]  }
 0x326   : > { %9196 = vmatprep.subr.bf16.mxu0 %v13436_v5  ;;  %v13443_v5 = vld [vmem:[%s14879_s4 + $0x5a0] ss:$16 sps:$4 sm:$0xff]   ;;  %v13478_v24 = vld [vmem:[%s14879_s4 + $0x64c] ss:$16 sps:$4 sm:$0xff]  }
 0x327   : > { %v18442_v60 = vld [vmem:[#allocation115_spill] sm:$0xff] }
 0x328   : > { %8180 = vmatpush1.bf16.msra.mxu1 %v13431_v21  ;;  %v11483_v21 = vcombine.low %v2256_v31, %v2268_v56  ;;  %v13457_v56 = vld [vmem:[%s14879_s4 + $0x5e4] ss:$16 sps:$4 sm:$0xff]   ;;  %v18444_v31 = vld [vmem:[#allocation48_spill] sm:$0xff] }
 0x329   : > { %9197 = vmatpush1.bf16.msra.mxu0 %v13434_v48  ;;  %8181 = vmatprep.subr.bf16.mxu1 %v13439_v53  ;;  %v13446_v48 = vld [vmem:[%s14879_s4 + $0x5a8] ss:$16 sps:$4 sm:$0xff]   ;;  %v13451_v53 = vld [vmem:[%s14879_s4 + $0x5c4] ss:$16 sps:$4 sm:$0xff]  }
 0x32a   : > { %8137 = vmatmul.mubr.bf16.gmra.mrb[24].mxu1 %v2128_v45  ;;  %9198 = vmatprep.subr.bf16.mxu0 %v13442_v9  ;;  %v2130_v9 = vmul.bf16 %v11482_v40, %v18442_v60  ;;  %v13460_v40 = vld [vmem:[%s14879_s4 + $0x5ec] ss:$16 sps:$4 sm:$0xff]  }
 0x32b   : > { %9154 = vmatmul.mubr.bf16.gmra.mrb[56].mxu0 %v2128_v45  ;;  %8146 = vmatprep.mubr.bf16.mxu1 %v2131_v27  ;;  %v18443_v45 = vld [vmem:[#allocation121_spill] sm:$0xff] }
 0x32c   : > { %8182 = vmatpush1.bf16.msra.mxu1 %v13437_v36  ;;  %9163 = vmatprep.mubr.bf16.mxu0 %v2131_v27  ;;  %v13452_v36 = vld [vmem:[%s14879_s4 + $0x5c8] ss:$16 sps:$4 sm:$0xff]   ;;  %v2486_v27 = vmul.bf16 %v11483_v21, %v18443_v45 }
 0x32d   : > { %9199 = vmatpush1.bf16.msra.mxu0 %v13440_v57  ;;  %8183 = vmatprep.subr.bf16.mxu1 %v13445_v42  ;;  %v2280_v57 = vrot.slane %v18444_v31, %v15670_v61  ;;  %v18445_v42 = vld [vmem:[#allocation50_spill] sm:$0xff]  ;;  %v2154_v31 = vrot.slane %v18421_v15, 1 }
 0x32e   : > { %9200 = vmatprep.subr.bf16.mxu0 %v13448_v33  ;;  %v2292_v33 = vrot.slane %v18445_v42, %v15670_v61  ;;  %v13466_v42 = vld [vmem:[%s14879_s4 + $0x60c] ss:$16 sps:$4 sm:$0xff]  }
 0x330   : > { %8184 = vmatpush1.bf16.msra.mxu1 %v13443_v5  ;;  %v13455_v5 = vld [vmem:[%s14879_s4 + $0x5e0] ss:$16 sps:$4 sm:$0xff]   ;;  %v11484_v45 = vcombine.low %v2280_v57, %v2292_v33 }
 0x331   : > { %9201 = vmatpush1.bf16.msra.mxu0 %v13446_v48  ;;  %8185 = vmatprep.subr.bf16.mxu1 %v13451_v53  ;;  %v13458_v48 = vld [vmem:[%s14879_s4 + $0x5e8] ss:$16 sps:$4 sm:$0xff]   ;;  %v13463_v53 = vld [vmem:[%s14879_s4 + $0x604] ss:$16 sps:$4 sm:$0xff]  }
 0x332   : > { %8147 = vmatmul.mubr.bf16.gmra.mrb[28].mxu1 %v2130_v9  ;;  %9202 = vmatprep.subr.bf16.mxu0 %v13454_v28  ;;  %v16599_v28 = vpack.c.bf16 %v16295_v54, %v16301_v1  ;;  %v18449_v57 = vld [vmem:[#allocation57_spill] sm:$0xff] }
 0x333   : > { %9164 = vmatmul.mubr.bf16.gmra.mrb[60].mxu0 %v2130_v9  ;;  %8189 = vmatprep.mubr.bf16.mxu1 %v2486_v27  ;;  %v2304_v33 = vrot.slane %v18449_v57, %v15670_v61 }
 0x334   : > { %8186 = vmatpush1.bf16.msra.mxu1 %v13449_v39  ;;  %9206 = vmatprep.mubr.bf16.mxu0 %v2486_v27  ;;  %18446 = vst [vmem:[#allocation36_spill] sm:$0xff] %v16599_v28  ;;  %v18447_v39 = vld [vmem:[#allocation105_spill] sm:$0xff]  ;;  %v18448_v27 = vld [vmem:[#allocation52_spill] sm:$0xff] }
 0x335   : > { %9203 = vmatpush1.bf16.msra.mxu0 %v13452_v36  ;;  %8187 = vmatprep.subr.bf16.mxu1 %v13457_v56  ;;  %v2485_v9 = vmul.bf16 %v11483_v21, %v18447_v39  ;;  %v13461_v36 = vld [vmem:[%s14879_s4 + $0x600] ss:$16 sps:$4 sm:$0xff]   ;;  %v2316_v56 = vrot.slane %v18448_v27, %v15670_v61  ;;  %v2488_v21 = vmul.bf16 %v11484_v45, %v16599_v28  ;;  %v13475_v28 = vld [vmem:[%s14879_s4 + $0x644] ss:$16 sps:$4 sm:$0xff]  }
 0x336   : > { %9204 = vmatprep.subr.bf16.mxu0 %v13460_v40  ;;  %v18450_v40 = vrot.slane %v18416_v4, 1  ;;  %v18451_v27 = vld [vmem:[#allocation71_spill] sm:$0xff] }
 0x337   : > { %v11485_v39 = vcombine.low %v2304_v33, %v2316_v56  ;;  %v18455_v33 = vld [vmem:[#allocation59_spill] sm:$0xff] }
 0x338   : > { %8188 = vmatpush1.bf16.msra.mxu1 %v13455_v5  ;;  %v16611_v60 = vsel %vm2180_vm0, %v18450_v40, %v2154_v31  ;;  %v13464_v5 = vld [vmem:[%s14879_s4 + $0x608] ss:$16 sps:$4 sm:$0xff]   ;;  %v13467_v40 = vld [vmem:[%s14879_s4 + $0x620] ss:$16 sps:$4 sm:$0xff]  }
 0x339   : > { %9205 = vmatpush1.bf16.msra.mxu0 %v13458_v48  ;;  %8270 = vmatprep.subr.bf16.mxu1 %v13463_v53  ;;  %v13469_v48 = vld [vmem:[%s14879_s4 + $0x624] ss:$16 sps:$4 sm:$0xff]   ;;  %v13472_v53 = vld [vmem:[%s14879_s4 + $0x62c] ss:$16 sps:$4 sm:$0xff]   ;;  %v16619_v57 = vpack.c.bf16 %v16611_v60, %v18451_v27 }
 0x33a   : > { %9287 = vmatprep.subr.bf16.mxu0 %v13466_v42  ;;  %v13470_v42 = vld [vmem:[%s14879_s4 + $0x628] ss:$16 sps:$4 sm:$0xff]  }
 0x33b   : > { %8190 = vmatmul.mubr.bf16.vlgmr.msra.gmra.mrb[0].mxu1 %v2485_v9  ;;  %18452 = vst [vmem:[#allocation45_spill] sm:$0xff] %v16619_v57  ;;  %v2487_v3 = vmul.bf16 %v11484_v45, %v16619_v57  ;;  %v13484_v45 = vld [vmem:[%s14879_s4 + $0x66c] ss:$16 sps:$4 sm:$0xff]  }
 0x33c   : > { %9207 = vmatmul.mubr.bf16.vlgmr.msra.gmra.mrb[32].mxu0 %v2485_v9  ;;  %8199 = vmatprep.mubr.bf16.mxu1 %v2488_v21  ;;  %v16626_v9 = vpack.c.bf16 %v16329_v37, %v16315_v44 }
 0x33d   : > { %8271 = vmatpush1.bf16.msra.mxu1 %v13461_v36  ;;  %9216 = vmatprep.mubr.bf16.mxu0 %v2488_v21  ;;  %v13473_v36 = vld [vmem:[%s14879_s4 + $0x640] ss:$16 sps:$4 sm:$0xff]  }
 0x33e   : > { %9288 = vmatpush1.bf16.msra.mxu0 %v13464_v5  ;;  %8272 = vmatprep.subr.bf16.mxu1 %v13469_v48  ;;  %18453 = vst [vmem:[#allocation112_spill] sm:$0xff] %v16626_v9  ;;  %v18454_v21 = vld [vmem:[#allocation54_spill] sm:$0xff]  ;;  %v2328_v5 = vrot.slane %v18455_v33, %v15670_v61  ;;  %v2490_v62 = vmul.bf16 %v11485_v39, %v16626_v9 }
 0x33f   : > { %9289 = vmatprep.subr.bf16.mxu0 %v13472_v53  ;;  %v2340_v56 = vrot.slane %v18454_v21, %v15670_v61  ;;  %v13476_v48 = vld [vmem:[%s14879_s4 + $0x648] ss:$16 sps:$4 sm:$0xff]   ;;  %v13481_v53 = vld [vmem:[%s14879_s4 + $0x664] ss:$16 sps:$4 sm:$0xff]  }
 0x341   : > { %8273 = vmatpush1.bf16.msra.mxu1 %v13467_v40  ;;  %v18456_v40 = vrot.slane %v15831_v46, 1  ;;  %v11486_v33 = vcombine.low %v2328_v5, %v2340_v56  ;;  %v18459_v56 = vld [vmem:[#allocation56_spill] sm:$0xff] }
 0x342   : > { %9290 = vmatpush1.bf16.msra.mxu0 %v13470_v42  ;;  %8274 = vmatprep.subr.bf16.mxu1 %v13475_v28  ;;  %v13479_v28 = vld [vmem:[%s14879_s4 + $0x660] ss:$16 sps:$4 sm:$0xff]   ;;  %v2364_v5 = vrot.slane %v18459_v56, %v15670_v61  ;;  %v13499_v56 = vld [vmem:[%s14879_s4 + $0x6c4] ss:$16 sps:$4 sm:$0xff]  }
 0x343   : > { %8200 = vmatmul.mubr.bf16.gmra.mrb[4].mxu1 %v2487_v3  ;;  %9291 = vmatprep.subr.bf16.mxu0 %v13478_v24  ;;  %v16643_v21 = vsel %vm2180_vm0, %v2154_v31, %v18456_v40  ;;  %v13487_v24 = vld [vmem:[%s14879_s4 + $0x684] ss:$16 sps:$4 sm:$0xff]   ;;  %v13490_v31 = vld [vmem:[%s14879_s4 + $0x68c] ss:$16 sps:$4 sm:$0xff]   ;;  %v13485_v40 = vld [vmem:[%s14879_s4 + $0x680] ss:$16 sps:$4 sm:$0xff]   ;;  %v2492_v9 = vmul.bf16 %v11486_v33, %v16654_v34 }
 0x344   : > { %9217 = vmatmul.mubr.bf16.gmra.mrb[36].mxu0 %v2487_v3  ;;  %8209 = vmatprep.mubr.bf16.mxu1 %v2490_v62  ;;  %v16648_v42 = vpack.c.bf16 %v16335_v14, %v16643_v21  ;;  %v13482_v3 = vld [vmem:[%s14879_s4 + $0x668] ss:$16 sps:$4 sm:$0xff]   ;;  %v13497_v34 = vld [vmem:[%s14879_s4 + $0x6c0] ss:$16 sps:$4 sm:$0xff]  }
 0x345   : > { %8275 = vmatpush1.bf16.msra.mxu1 %v13473_v36  ;;  %9226 = vmatprep.mubr.bf16.mxu0 %v2490_v62  ;;  %v2344_v62 = vpop.permute.xlu0 %2343 }
 0x346   : > { %18457 = vst [vmem:[#allocation38_spill] sm:$0xff] %v16648_v42  ;;  %9292 = vmatpush1.bf16.msra.mxu0 %v13476_v48  ;;  %8276 = vmatprep.subr.bf16.mxu1 %v13481_v53  ;;  %v2489_v36 = vmul.bf16 %v11485_v39, %v16648_v42  ;;  %v2352_v48 = vrot.slane %v2344_v62, %v15670_v61  ;;  %v13488_v53 = vld [vmem:[%s14879_s4 + $0x688] ss:$16 sps:$4 sm:$0xff]   ;;  %v13491_v39 = vld [vmem:[%s14879_s4 + $0x6a0] ss:$16 sps:$4 sm:$0xff]  }
 0x347   : > { %9293 = vmatprep.subr.bf16.mxu0 %v13484_v45  ;;  %v13493_v45 = vld [vmem:[%s14879_s4 + $0x6a4] ss:$16 sps:$4 sm:$0xff]   ;;  %v13494_v62 = vld [vmem:[%s14879_s4 + $0x6a8] ss:$16 sps:$4 sm:$0xff]  }
 0x349   : > { %8277 = vmatpush1.bf16.msra.mxu1 %v13479_v28  ;;  %v13496_v28 = vld [vmem:[%s14879_s4 + $0x6ac] ss:$16 sps:$4 sm:$0xff]  }
 0x34a   : > { %9294 = vmatpush1.bf16.msra.mxu0 %v13482_v3  ;;  %8278 = vmatprep.subr.bf16.mxu1 %v13487_v24  ;;  %v16669_v3 = vpack.c.bf16 %v16377_v11, %v16323_v13  ;;  %v11487_v24 = vcombine.low %v2352_v48, %v2364_v5  ;;  %v18462_v5 = vld [vmem:[#allocation58_spill] sm:$0xff] }
 0x34b   : > { %8210 = vmatmul.mubr.bf16.gmra.mrb[8].mxu1 %v2489_v36  ;;  %9295 = vmatprep.subr.bf16.mxu0 %v13490_v31  ;;  %v16675_v31 = vpack.c.bf16 %v16383_v30, %v16339_v12  ;;  %v2388_v48 = vrot.slane %v18462_v5, %v15670_v61  ;;  %v13511_v5 = vld [vmem:[%s14879_s4 + $0x704] ss:$16 sps:$4 sm:$0xff]   ;;  %v13569_v30 = vld [vmem:[%s14879_s4 + $0x840] ss:$16 sps:$4 sm:$0xff]  }
 0x34c   : > { %9227 = vmatmul.mubr.bf16.gmra.mrb[40].mxu0 %v2489_v36  ;;  %8219 = vmatprep.mubr.bf16.mxu1 %v2492_v9  ;;  %18460 = vst [vmem:[#allocation40_spill] sm:$0xff] %v16669_v3  ;;  %v13502_v36 = vld [vmem:[%s14879_s4 + $0x6cc] ss:$16 sps:$4 sm:$0xff]  }
 0x34d   : > { %8279 = vmatpush1.bf16.msra.mxu1 %v13485_v40  ;;  %9236 = vmatprep.mubr.bf16.mxu0 %v2492_v9  ;;  %18461 = vst [vmem:[#allocation49_spill] sm:$0xff] %v16675_v31  ;;  %v2368_v9 = vpop.permute.xlu0 %2367  ;;  %v2491_v40 = vmul.bf16 %v11486_v33, %v16669_v3  ;;  %v2494_v42 = vmul.bf16 %v11487_v24, %v16675_v31  ;;  %v13503_v33 = vld [vmem:[%s14879_s4 + $0x6e0] ss:$16 sps:$4 sm:$0xff]  }
 0x34e   : > { %9296 = vmatpush1.bf16.msra.mxu0 %v13488_v53  ;;  %8280 = vmatprep.subr.bf16.mxu1 %v13493_v45  ;;  %v2376_v53 = vrot.slane %v2368_v9, %v15670_v61  ;;  %v13500_v45 = vld [vmem:[%s14879_s4 + $0x6c8] ss:$16 sps:$4 sm:$0xff]  }
 0x34f   : > { %9297 = vmatprep.subr.bf16.mxu0 %v13496_v28  ;;  %v13505_v28 = vld [vmem:[%s14879_s4 + $0x6e4] ss:$16 sps:$4 sm:$0xff]   ;;  %v13506_v9 = vld [vmem:[%s14879_s4 + $0x6e8] ss:$16 sps:$4 sm:$0xff]  }
 0x350   : > { %v18464_v31 = vld [vmem:[#allocation60_spill] sm:$0xff] }
 0x351   : > { %8281 = vmatpush1.bf16.msra.mxu1 %v13491_v39  ;;  %v13508_v39 = vld [vmem:[%s14879_s4 + $0x6ec] ss:$16 sps:$4 sm:$0xff]   ;;  %v2412_v3 = vrot.slane %v18464_v31, %v15670_v61 }
 0x352   : > { %9298 = vmatpush1.bf16.msra.mxu0 %v13494_v62  ;;  %8282 = vmatprep.subr.bf16.mxu1 %v13499_v56  ;;  %v16690_v62 = vpack.c.bf16 %v16389_v47, %v16352_v58  ;;  %v11488_v56 = vcombine.low %v2376_v53, %v2388_v48  ;;  %v13512_v48 = vld [vmem:[%s14879_s4 + $0x708] ss:$16 sps:$4 sm:$0xff]  }
 0x353   : > { %8220 = vmatmul.mubr.bf16.gmra.mrb[12].mxu1 %v2491_v40  ;;  %9299 = vmatprep.subr.bf16.mxu0 %v13502_v36  ;;  %v13514_v36 = vld [vmem:[%s14879_s4 + $0x70c] ss:$16 sps:$4 sm:$0xff]  }
 0x354   : > { %9237 = vmatmul.mubr.bf16.gmra.mrb[44].mxu0 %v2491_v40  ;;  %8229 = vmatprep.mubr.bf16.mxu1 %v2494_v42  ;;  %18463 = vst [vmem:[#allocation42_spill] sm:$0xff] %v16690_v62  ;;  %v2392_v40 = vpop.permute.xlu0 %2391  ;;  %v18465_v53 = vld [vmem:[#allocation132_spill] sm:$0xff] }
 0x355   : > { %8283 = vmatpush1.bf16.msra.mxu1 %v13497_v34  ;;  %9246 = vmatprep.mubr.bf16.mxu0 %v2494_v42  ;;  %v2493_v34 = vmul.bf16 %v11487_v24, %v16690_v62  ;;  %v13509_v42 = vld [vmem:[%s14879_s4 + $0x700] ss:$16 sps:$4 sm:$0xff]   ;;  %v2400_v57 = vrot.slane %v2392_v40, %v15670_v61 }
 0x356   : > { %9300 = vmatpush1.bf16.msra.mxu0 %v13500_v45  ;;  %8284 = vmatprep.subr.bf16.mxu1 %v13505_v28  ;;  %v2496_v45 = vmul.bf16 %v11488_v56, %v18465_v53  ;;  %v13517_v28 = vld [vmem:[%s14879_s4 + $0x724] ss:$16 sps:$4 sm:$0xff]   ;;  %v13515_v24 = vld [vmem:[%s14879_s4 + $0x720] ss:$16 sps:$4 sm:$0xff]  }
 0x357   : > { %9301 = vmatprep.subr.bf16.mxu0 %v13508_v39  ;;  %v13520_v39 = vld [vmem:[%s14879_s4 + $0x72c] ss:$16 sps:$4 sm:$0xff]   ;;  %v11489_v31 = vcombine.low %v2400_v57, %v2412_v3  ;;  %v13524_v57 = vld [vmem:[%s14879_s4 + $0x748] ss:$16 sps:$4 sm:$0xff]  }
 0x358   : > { %v2416_v40 = vpop.permute.xlu0 %2415  ;;  %v18468_v3 = vld [vmem:[#allocation139_spill] sm:$0xff] }
 0x359   : > { %8285 = vmatpush1.bf16.msra.mxu1 %v13503_v33  ;;  %v13518_v33 = vld [vmem:[%s14879_s4 + $0x728] ss:$16 sps:$4 sm:$0xff]   ;;  %v2424_v62 = vrot.slane %v2416_v40, %v15670_v61  ;;  %v13538_v40 = vld [vmem:[%s14879_s4 + $0x78c] ss:$16 sps:$4 sm:$0xff]  }
 0x35a   : > { %9302 = vmatpush1.bf16.msra.mxu0 %v13506_v9  ;;  %8286 = vmatprep.subr.bf16.mxu1 %v13511_v5  ;;  %v13523_v9 = vld [vmem:[%s14879_s4 + $0x744] ss:$16 sps:$4 sm:$0xff]   ;;  %v13526_v5 = vld [vmem:[%s14879_s4 + $0x74c] ss:$16 sps:$4 sm:$0xff]  }
 0x35b   : > { %8230 = vmatmul.mubr.bf16.gmra.mrb[16].mxu1 %v2493_v34  ;;  %9303 = vmatprep.subr.bf16.mxu0 %v13514_v36  ;;  %v18466_v36 = vld [vmem:[#allocation137_spill] sm:$0xff] }
 0x35c   : > { %9247 = vmatmul.mubr.bf16.gmra.mrb[48].mxu0 %v2493_v34  ;;  %8239 = vmatprep.mubr.bf16.mxu1 %v2496_v45  ;;  %v2495_v53 = vmul.bf16 %v11488_v56, %v18466_v36  ;;  %v13521_v34 = vld [vmem:[%s14879_s4 + $0x740] ss:$16 sps:$4 sm:$0xff]  }
 0x35d   : > { %8287 = vmatpush1.bf16.msra.mxu1 %v13509_v42  ;;  %9256 = vmatprep.mubr.bf16.mxu0 %v2496_v45  ;;  %v18467_v42 = vld [vmem:[#allocation61_spill] sm:$0xff] }
 0x35e   : > { %9304 = vmatpush1.bf16.msra.mxu0 %v13512_v48  ;;  %8288 = vmatprep.subr.bf16.mxu1 %v13517_v28  ;;  %v2436_v45 = vrot.slane %v18467_v42, %v15670_v61  ;;  %v2498_v48 = vmul.bf16 %v11489_v31, %v18468_v3  ;;  %v13529_v28 = vld [vmem:[%s14879_s4 + $0x764] ss:$16 sps:$4 sm:$0xff]   ;;  %v13527_v56 = vld [vmem:[%s14879_s4 + $0x760] ss:$16 sps:$4 sm:$0xff]   ;;  %v2552_v42 = vpop.permute.xlu0 %2551 }
 0x35f   : > { %9305 = vmatprep.subr.bf16.mxu0 %v13520_v39  ;;  %v13532_v39 = vld [vmem:[%s14879_s4 + $0x76c] ss:$16 sps:$4 sm:$0xff]   ;;  %v2560_v36 = vrot.slane %v2552_v42, %v15670_v61 }
 0x360   : > { %v13550_v42 = vld [vmem:[%s14879_s4 + $0x7cc] ss:$16 sps:$4 sm:$0xff]  }
 0x361   : > { %8289 = vmatpush1.bf16.msra.mxu1 %v13515_v24  ;;  %v11490_v24 = vcombine.low %v2424_v62, %v2436_v45  ;;  %v13536_v62 = vld [vmem:[%s14879_s4 + $0x788] ss:$16 sps:$4 sm:$0xff]  }
 0x362   : > { %9306 = vmatpush1.bf16.msra.mxu0 %v13518_v33  ;;  %8290 = vmatprep.subr.bf16.mxu1 %v13523_v9  ;;  %v13530_v33 = vld [vmem:[%s14879_s4 + $0x768] ss:$16 sps:$4 sm:$0xff]   ;;  %v13535_v9 = vld [vmem:[%s14879_s4 + $0x784] ss:$16 sps:$4 sm:$0xff]  }
 0x363   : > { %8240 = vmatmul.mubr.bf16.gmra.mrb[20].mxu1 %v2495_v53  ;;  %9307 = vmatprep.subr.bf16.mxu0 %v13526_v5  ;;  %v18469_v5 = vld [vmem:[#allocation143_spill] sm:$0xff]  ;;  %v18471_v45 = vld [vmem:[#allocation146_spill] sm:$0xff] }
 0x364   : > { %9257 = vmatmul.mubr.bf16.gmra.mrb[52].mxu0 %v2495_v53  ;;  %8249 = vmatprep.mubr.bf16.mxu1 %v2498_v48  ;;  %v2497_v3 = vmul.bf16 %v11489_v31, %v18469_v5  ;;  %v13533_v53 = vld [vmem:[%s14879_s4 + $0x780] ss:$16 sps:$4 sm:$0xff]   ;;  %v13544_v31 = vld [vmem:[%s14879_s4 + $0x7ac] ss:$16 sps:$4 sm:$0xff]  }
 0x365   : > { %8291 = vmatpush1.bf16.msra.mxu1 %v13521_v34  ;;  %9266 = vmatprep.mubr.bf16.mxu0 %v2498_v48  ;;  %v18470_v34 = vld [vmem:[#allocation62_spill] sm:$0xff]  ;;  %v18474_v5 = vld [vmem:[#allocation107_spill] sm:$0xff] }
 0x366   : > { %9308 = vmatpush1.bf16.msra.mxu0 %v13524_v57  ;;  %8292 = vmatprep.subr.bf16.mxu1 %v13529_v28  ;;  %v2572_v48 = vrot.slane %v18470_v34, %v15670_v61  ;;  %v2500_v57 = vmul.bf16 %v11490_v24, %v18471_v45  ;;  %v13541_v28 = vld [vmem:[%s14879_s4 + $0x7a4] ss:$16 sps:$4 sm:$0xff]   ;;  %v13545_v45 = vld [vmem:[%s14879_s4 + $0x7c0] ss:$16 sps:$4 sm:$0xff]  }
 0x367   : > { %9309 = vmatprep.subr.bf16.mxu0 %v13532_v39  ;;  %v13539_v39 = vld [vmem:[%s14879_s4 + $0x7a0] ss:$16 sps:$4 sm:$0xff]  }
 0x368   : > { %v18472_v34 = vld [vmem:[#allocation151_spill] sm:$0xff] }
 0x369   : > { %8293 = vmatpush1.bf16.msra.mxu1 %v13527_v56  ;;  %v11491_v56 = vcombine.low %v2560_v36, %v2572_v48 }
 0x36a   : > { %9310 = vmatpush1.bf16.msra.mxu0 %v13530_v33  ;;  %8294 = vmatprep.subr.bf16.mxu1 %v13535_v9  ;;  %v13542_v33 = vld [vmem:[%s14879_s4 + $0x7a8] ss:$16 sps:$4 sm:$0xff]   ;;  %v13547_v9 = vld [vmem:[%s14879_s4 + $0x7c4] ss:$16 sps:$4 sm:$0xff]  }
 0x36b   : > { %8250 = vmatmul.mubr.bf16.gmra.mrb[24].mxu1 %v2497_v3  ;;  %9311 = vmatprep.subr.bf16.mxu0 %v13538_v40  ;;  %v2499_v40 = vmul.bf16 %v11490_v24, %v18472_v34  ;;  %v13556_v24 = vld [vmem:[%s14879_s4 + $0x7ec] ss:$16 sps:$4 sm:$0xff]  }
 0x36c   : > { %9267 = vmatmul.mubr.bf16.gmra.mrb[56].mxu0 %v2497_v3  ;;  %8259 = vmatprep.mubr.bf16.mxu1 %v2500_v57  ;;  %v2588_v3 = vpop.permute.xlu0 %2587 }
 0x36d   : > { %8295 = vmatpush1.bf16.msra.mxu1 %v13533_v53  ;;  %9276 = vmatprep.mubr.bf16.mxu0 %v2500_v57  ;;  %v13548_v53 = vld [vmem:[%s14879_s4 + $0x7c8] ss:$16 sps:$4 sm:$0xff]  }
 0x36e   : > { %9312 = vmatpush1.bf16.msra.mxu0 %v13536_v62  ;;  %8296 = vmatprep.subr.bf16.mxu1 %v13541_v28  ;;  %v18473_v57 = vld [vmem:[#allocation96_spill] sm:$0xff]  ;;  %v13553_v62 = vld [vmem:[%s14879_s4 + $0x7e4] ss:$16 sps:$4 sm:$0xff]  }
 0x36f   : > { %9313 = vmatprep.subr.bf16.mxu0 %v13544_v31  ;;  %v18475_v36 = vpack.c.bf16 %v18473_v57, %v18474_v5  ;;  %v18476_v28 = vld [vmem:[#allocation63_spill] sm:$0xff] }
 0x370   : > { %v2584_v31 = vrot.slane %v18476_v28, %v15670_v61  ;;  %v13554_v5 = vld [vmem:[%s14879_s4 + $0x7e8] ss:$16 sps:$4 sm:$0xff]   ;;  %v2612_v34 = vpop.permute.xlu0 %2611 }
 0x371   : > { %8297 = vmatpush1.bf16.msra.mxu1 %v13539_v39  ;;  %v2790_v48 = vmul.bf16 %v11491_v56, %v18475_v36  ;;  %v2596_v39 = vrot.slane %v2588_v3, %v15670_v61  ;;  %v13562_v36 = vld [vmem:[%s14879_s4 + $0x80c] ss:$16 sps:$4 sm:$0xff]   ;;  %v18477_v28 = vld [vmem:[#allocation97_spill] sm:$0xff] }
 0x372   : > { %9314 = vmatpush1.bf16.msra.mxu0 %v13542_v33  ;;  %8298 = vmatprep.subr.bf16.mxu1 %v13547_v9  ;;  %v13551_v33 = vld [vmem:[%s14879_s4 + $0x7e0] ss:$16 sps:$4 sm:$0xff]   ;;  %v13559_v9 = vld [vmem:[%s14879_s4 + $0x804] ss:$16 sps:$4 sm:$0xff]  }
 0x373   : > { %8260 = vmatmul.mubr.bf16.gmra.mrb[28].mxu1 %v2499_v40  ;;  %9315 = vmatprep.subr.bf16.mxu0 %v13550_v42  ;;  %v11492_v57 = vcombine.low %v2584_v31, %v2596_v39  ;;  %v18478_v3 = vld [vmem:[#allocation120_spill] sm:$0xff]  ;;  %v2620_v31 = vrot.slane %v2612_v34, %v15670_v61 }
 0x374   : > { %9277 = vmatmul.mubr.bf16.gmra.mrb[60].mxu0 %v2499_v40  ;;  %8302 = vmatprep.mubr.bf16.mxu1 %v2790_v48  ;;  %v2520_v42 = vpack.c.bf16 %v18478_v3, %v18477_v28  ;;  %v2600_v40 = vpop.permute.xlu1 %2599  ;;  %v13560_v39 = vld [vmem:[%s14879_s4 + $0x808] ss:$16 sps:$4 sm:$0xff]   ;;  %v13568_v28 = vld [vmem:[%s14879_s4 + $0x82c] ss:$16 sps:$4 sm:$0xff]  }
 0x375   : > { %8299 = vmatpush1.bf16.msra.mxu1 %v13545_v45  ;;  %9319 = vmatprep.mubr.bf16.mxu0 %v2790_v48  ;;  %v18479_v45 = vld [vmem:[#allocation69_spill] sm:$0xff] }
 0x376   : > { %9316 = vmatpush1.bf16.msra.mxu0 %v13548_v53  ;;  %8300 = vmatprep.subr.bf16.mxu1 %v13553_v62  ;;  %v18481_v48 = vpack.c.bf16 %v18479_v45, %v18480_v38  ;;  %v13557_v53 = vld [vmem:[%s14879_s4 + $0x800] ss:$16 sps:$4 sm:$0xff]   ;;  %v2608_v62 = vrot.slane %v2600_v40, %v15670_v61  ;;  %v13566_v34 = vld [vmem:[%s14879_s4 + $0x828] ss:$16 sps:$4 sm:$0xff]  }
 0x377   : > { %9317 = vmatprep.subr.bf16.mxu0 %v13556_v24  ;;  %v2792_v24 = vmul.bf16 %v11492_v57, %v2520_v42  ;;  %v13563_v38 = vld [vmem:[%s14879_s4 + $0x820] ss:$16 sps:$4 sm:$0xff]  }
 0x378   : > { %v2789_v47 = vmul.bf16 %v11491_v56, %v18481_v48  ;;  %v18482_v56 = vld [vmem:[#allocation113_spill] sm:$0xff]  ;;  %v11493_v3 = vcombine.low %v2608_v62, %v2620_v31  ;;  %v18484_v42 = vld [vmem:[#allocation116_spill] sm:$0xff]  ;;  %v2624_v48 = vpop.permute.xlu1 %2623 }
 0x379   : > { %8301 = vmatpush1.bf16.msra.mxu1 %v13551_v33  ;;  %v13565_v33 = vld [vmem:[%s14879_s4 + $0x824] ss:$16 sps:$4 sm:$0xff]   ;;  %v18485_v40 = vld [vmem:[#allocation128_spill] sm:$0xff]  ;;  %v2632_v62 = vrot.slane %v2624_v48, %v15670_v61 }
 0x37a   : > { %9318 = vmatpush1.bf16.msra.mxu0 %v13554_v5  ;;  %8383 = vmatprep.subr.bf16.mxu1 %v13559_v9  ;;  %v18483_v5 = vld [vmem:[#allocation124_spill] sm:$0xff]  ;;  %v2522_v45 = vpack.c.bf16 %v18485_v40, %v18484_v42  ;;  %v13583_v42 = vld [vmem:[%s14879_s4 + $0x884] ss:$16 sps:$4 sm:$0xff]  }
 0x37b   : > { %9400 = vmatprep.subr.bf16.mxu0 %v13562_v36  ;;  %v2519_v9 = vpack.c.bf16 %v18483_v5, %v18482_v56  ;;  %v13571_v36 = vld [vmem:[%s14879_s4 + $0x844] ss:$16 sps:$4 sm:$0xff]   ;;  %v13586_v40 = vld [vmem:[%s14879_s4 + $0x88c] ss:$16 sps:$4 sm:$0xff]  }
 0x37c   : > { %8303 = vmatmul.mubr.bf16.vlgmr.msra.gmra.mrb[0].mxu1 %v2789_v47  ;;  %v13577_v56 = vld [vmem:[%s14879_s4 + $0x864] ss:$16 sps:$4 sm:$0xff]  }
 0x37d   : > { %9320 = vmatmul.mubr.bf16.vlgmr.msra.gmra.mrb[32].mxu0 %v2789_v47  ;;  %8312 = vmatprep.mubr.bf16.mxu1 %v2792_v24  ;;  %v13574_v47 = vld [vmem:[%s14879_s4 + $0x84c] ss:$16 sps:$4 sm:$0xff]   ;;  %v18487_v5 = vld [vmem:[#allocation125_spill] sm:$0xff] }
 0x37e   : > { %8384 = vmatpush1.bf16.msra.mxu1 %v13557_v53  ;;  %9329 = vmatprep.mubr.bf16.mxu0 %v2792_v24  ;;  %v2636_v53 = vpop.permute.xlu0 %2635  ;;  %v2791_v24 = vmul.bf16 %v11492_v57, %v2519_v9  ;;  %v13575_v57 = vld [vmem:[%s14879_s4 + $0x860] ss:$16 sps:$4 sm:$0xff]  }
 0x37f   : > { %9401 = vmatpush1.bf16.msra.mxu0 %v13560_v39  ;;  %8385 = vmatprep.subr.bf16.mxu1 %v13565_v33  ;;  %v2644_v31 = vrot.slane %v2636_v53, %v15670_v61  ;;  %v13572_v39 = vld [vmem:[%s14879_s4 + $0x848] ss:$16 sps:$4 sm:$0xff]   ;;  %v2794_v33 = vmul.bf16 %v11493_v3, %v2522_v45  ;;  %v2648_v45 = vpop.permute.xlu1 %2647 }
 0x380   : > { %9402 = vmatprep.subr.bf16.mxu0 %v13568_v28  ;;  %v13580_v28 = vld [vmem:[%s14879_s4 + $0x86c] ss:$16 sps:$4 sm:$0xff]   ;;  %v2656_v53 = vrot.slane %v2648_v45, %v15670_v61 }
 0x382   : > { %8386 = vmatpush1.bf16.msra.mxu1 %v13563_v38  ;;  %v18486_v38 = vld [vmem:[#allocation123_spill] sm:$0xff] }
 0x383   : > { %9403 = vmatpush1.bf16.msra.mxu0 %v13566_v34  ;;  %8387 = vmatprep.subr.bf16.mxu1 %v13571_v36  ;;  %v2521_v9 = vpack.c.bf16 %v18487_v5, %v18486_v38  ;;  %v11494_v34 = vcombine.low %v2632_v62, %v2644_v31  ;;  %v13578_v36 = vld [vmem:[%s14879_s4 + $0x868] ss:$16 sps:$4 sm:$0xff]  }
 0x384   : > { %8313 = vmatmul.mubr.bf16.gmra.mrb[4].mxu1 %v2791_v24  ;;  %9404 = vmatprep.subr.bf16.mxu0 %v13574_v47  ;;  %v2660_v47 = vpop.permute.xlu0 %2659  ;;  %v13584_v62 = vld [vmem:[%s14879_s4 + $0x888] ss:$16 sps:$4 sm:$0xff]  }
 0x385   : > { %9330 = vmatmul.mubr.bf16.gmra.mrb[36].mxu0 %v2791_v24  ;;  %8322 = vmatprep.mubr.bf16.mxu1 %v2794_v33  ;;  %v2793_v48 = vmul.bf16 %v11493_v3, %v2521_v9  ;;  %v2668_v24 = vrot.slane %v2660_v47, %v15670_v61  ;;  %v18488_v31 = vld [vmem:[#allocation148_spill] sm:$0xff]  ;;  %v13595_v9 = vld [vmem:[%s14879_s4 + $0x8c4] ss:$16 sps:$4 sm:$0xff]  }
 0x386   : > { %8388 = vmatpush1.bf16.msra.mxu1 %v13569_v30  ;;  %9339 = vmatprep.mubr.bf16.mxu0 %v2794_v33  ;;  %v13581_v30 = vld [vmem:[%s14879_s4 + $0x880] ss:$16 sps:$4 sm:$0xff]   ;;  %v13592_v3 = vld [vmem:[%s14879_s4 + $0x8ac] ss:$16 sps:$4 sm:$0xff]   ;;  %v13590_v5 = vld [vmem:[%s14879_s4 + $0x8a8] ss:$16 sps:$4 sm:$0xff]  }
 0x387   : > { %9405 = vmatpush1.bf16.msra.mxu0 %v13572_v39  ;;  %8389 = vmatprep.subr.bf16.mxu1 %v13577_v56  ;;  %v18489_v39 = vld [vmem:[#allocation127_spill] sm:$0xff]  ;;  %v11495_v38 = vcombine.low %v2656_v53, %v2668_v24 }
 0x388   : > { %9406 = vmatprep.subr.bf16.mxu0 %v13580_v28  ;;  %v18490_v33 = vpack.c.bf16 %v18488_v31, %v18489_v39  ;;  %v13589_v28 = vld [vmem:[%s14879_s4 + $0x8a4] ss:$16 sps:$4 sm:$0xff]   ;;  %v2684_v45 = vpop.permute.xlu0 %2683  ;;  %v18493_v31 = vpack.c.bf16 %v18372_v59, %v16149_v10  ;;  %v13610_v10 = vld [vmem:[%s14879_s4 + $0x90c] ss:$16 sps:$4 sm:$0xff]  }
 0x389   : > { %v2692_v24 = vrot.slane %v2684_v45, %v15670_v61 }
 0x38a   : > { %8390 = vmatpush1.bf16.msra.mxu1 %v13575_v57  ;;  %v2796_v56 = vmul.bf16 %v11494_v34, %v18490_v33  ;;  %v13587_v57 = vld [vmem:[%s14879_s4 + $0x8a0] ss:$16 sps:$4 sm:$0xff]   ;;  %v2798_v39 = vmul.bf16 %v11495_v38, %v18493_v31  ;;  %v13601_v33 = vld [vmem:[%s14879_s4 + $0x8e4] ss:$16 sps:$4 sm:$0xff]  }
 0x38b   : > { %9407 = vmatpush1.bf16.msra.mxu0 %v13578_v36  ;;  %8391 = vmatprep.subr.bf16.mxu1 %v13583_v42  ;;  %v13598_v36 = vld [vmem:[%s14879_s4 + $0x8cc] ss:$16 sps:$4 sm:$0xff]   ;;  %v2672_v42 = vpop.permute.xlu1 %2671 }
 0x38c   : > { %8323 = vmatmul.mubr.bf16.gmra.mrb[8].mxu1 %v2793_v48  ;;  %9408 = vmatprep.subr.bf16.mxu0 %v13586_v40  ;;  %v18491_v40 = vld [vmem:[#allocation136_spill] sm:$0xff]  ;;  %v2680_v53 = vrot.slane %v2672_v42, %v15670_v61 }
 0x38d   : > { %9340 = vmatmul.mubr.bf16.gmra.mrb[40].mxu0 %v2793_v48  ;;  %8332 = vmatprep.mubr.bf16.mxu1 %v2796_v56  ;;  %v18492_v47 = vpack.c.bf16 %v16189_v17, %v18491_v40  ;;  %v13604_v17 = vld [vmem:[%s14879_s4 + $0x8ec] ss:$16 sps:$4 sm:$0xff]   ;;  %v13605_v42 = vld [vmem:[%s14879_s4 + $0x900] ss:$16 sps:$4 sm:$0xff]  }
 0x38e   : > { %8392 = vmatpush1.bf16.msra.mxu1 %v13581_v30  ;;  %9349 = vmatprep.mubr.bf16.mxu0 %v2796_v56  ;;  %v13593_v30 = vld [vmem:[%s14879_s4 + $0x8c0] ss:$16 sps:$4 sm:$0xff]   ;;  %v11496_v56 = vcombine.low %v2680_v53, %v2692_v24 }
 0x38f   : > { %9409 = vmatpush1.bf16.msra.mxu0 %v13584_v62  ;;  %8393 = vmatprep.subr.bf16.mxu1 %v13589_v28  ;;  %v2795_v48 = vmul.bf16 %v11494_v34, %v18492_v47  ;;  %v13596_v62 = vld [vmem:[%s14879_s4 + $0x8c8] ss:$16 sps:$4 sm:$0xff]   ;;  %v13599_v34 = vld [vmem:[%s14879_s4 + $0x8e0] ss:$16 sps:$4 sm:$0xff]   ;;  %v2696_v59 = vpop.permute.xlu1 %2695 }
 0x390   : > { %9410 = vmatprep.subr.bf16.mxu0 %v13592_v3  ;;  %v13602_v28 = vld [vmem:[%s14879_s4 + $0x8e8] ss:$16 sps:$4 sm:$0xff]   ;;  %v13607_v3 = vld [vmem:[%s14879_s4 + $0x904] ss:$16 sps:$4 sm:$0xff]   ;;  %v2704_v45 = vrot.slane %v2696_v59, %v15670_v61 }
 0x391   : > { %v13608_v47 = vld [vmem:[%s14879_s4 + $0x908] ss:$16 sps:$4 sm:$0xff]  }
 0x392   : > { %8394 = vmatpush1.bf16.msra.mxu1 %v13587_v57  ;;  %v2708_v57 = vpop.permute.xlu0 %2707 }
 0x393   : > { %9411 = vmatpush1.bf16.msra.mxu0 %v13590_v5  ;;  %8395 = vmatprep.subr.bf16.mxu1 %v13595_v9  ;;  %v18494_v5 = vld [vmem:[#allocation29_spill] sm:$0xff]  ;;  %v2716_v40 = vrot.slane %v2708_v57, %v15670_v61 }
 0x394   : > { %8333 = vmatmul.mubr.bf16.gmra.mrb[12].mxu1 %v2795_v48  ;;  %9412 = vmatprep.subr.bf16.mxu0 %v13598_v36  ;;  %v18495_v9 = vpack.c.bf16 %v16214_v26, %v18494_v5  ;;  %v13616_v26 = vld [vmem:[%s14879_s4 + $0x92c] ss:$16 sps:$4 sm:$0xff]   ;;  %v13617_v5 = vld [vmem:[%s14879_s4 + $0x940] ss:$16 sps:$4 sm:$0xff]  }
 0x395   : > { %9350 = vmatmul.mubr.bf16.gmra.mrb[44].mxu0 %v2795_v48  ;;  %8342 = vmatprep.mubr.bf16.mxu1 %v2798_v39  ;;  %v18496_v48 = vld [vmem:[#allocation79_spill] sm:$0xff]  ;;  %v11497_v31 = vcombine.low %v2704_v45, %v2716_v40 }
 0x396   : > { %8396 = vmatpush1.bf16.msra.mxu1 %v13593_v30  ;;  %9359 = vmatprep.mubr.bf16.mxu0 %v2798_v39  ;;  %v2797_v36 = vmul.bf16 %v11495_v38, %v18495_v9  ;;  %v18497_v30 = vld [vmem:[#allocation75_spill] sm:$0xff] }
 0x397   : > { %9413 = vmatpush1.bf16.msra.mxu0 %v13596_v62  ;;  %8397 = vmatprep.subr.bf16.mxu1 %v13601_v33  ;;  %v18498_v53 = vpack.c.bf16 %v18496_v48, %v18497_v30  ;;  %v13613_v62 = vld [vmem:[%s14879_s4 + $0x924] ss:$16 sps:$4 sm:$0xff]   ;;  %v13611_v38 = vld [vmem:[%s14879_s4 + $0x920] ss:$16 sps:$4 sm:$0xff]   ;;  %v13614_v39 = vld [vmem:[%s14879_s4 + $0x928] ss:$16 sps:$4 sm:$0xff]  }
 0x398   : > { %9414 = vmatprep.subr.bf16.mxu0 %v13604_v17  ;;  %v13619_v33 = vld [vmem:[%s14879_s4 + $0x944] ss:$16 sps:$4 sm:$0xff]   ;;  %v13622_v17 = vld [vmem:[%s14879_s4 + $0x94c] ss:$16 sps:$4 sm:$0xff]  }
 0x399   : > { %v2800_v24 = vmul.bf16 %v11496_v56, %v18498_v53  ;;  %v18502_v45 = vld [vmem:[#allocation91_spill] sm:$0xff] }
 0x39a   : > { %8398 = vmatpush1.bf16.msra.mxu1 %v13599_v34  ;;  %v2720_v34 = vpop.permute.xlu1 %2719  ;;  %v18503_v40 = vld [vmem:[#allocation87_spill] sm:$0xff] }
 0x39b   : > { %9415 = vmatpush1.bf16.msra.mxu0 %v13602_v28  ;;  %8399 = vmatprep.subr.bf16.mxu1 %v13607_v3  ;;  %v2732_v28 = vpop.permute.xlu0 %2731  ;;  %v18499_v3 = vld [vmem:[#allocation78_spill] sm:$0xff]  ;;  %v2728_v9 = vrot.slane %v2720_v34, %v15670_v61  ;;  %v13625_v30 = vld [vmem:[%s14879_s4 + $0x964] ss:$16 sps:$4 sm:$0xff]  }
 0x39c   : > { %8343 = vmatmul.mubr.bf16.gmra.mrb[16].mxu1 %v2797_v36  ;;  %9416 = vmatprep.subr.bf16.mxu0 %v13610_v10  ;;  %v18500_v10 = vld [vmem:[#allocation33_spill] sm:$0xff] }
 0x39d   : > { %9360 = vmatmul.mubr.bf16.gmra.mrb[48].mxu0 %v2797_v36  ;;  %8352 = vmatprep.mubr.bf16.mxu1 %v2800_v24  ;;  %v18501_v59 = vpack.c.bf16 %v18499_v3, %v18500_v10  ;;  %v2740_v36 = vrot.slane %v2732_v28, %v15670_v61  ;;  %v13623_v53 = vld [vmem:[%s14879_s4 + $0x960] ss:$16 sps:$4 sm:$0xff]  }
 0x39e   : > { %8400 = vmatpush1.bf16.msra.mxu1 %v13605_v42  ;;  %9369 = vmatprep.mubr.bf16.mxu0 %v2800_v24  ;;  %v13620_v42 = vld [vmem:[%s14879_s4 + $0x948] ss:$16 sps:$4 sm:$0xff]   ;;  %v2856_v24 = vpop.permute.xlu1 %2855  ;;  %v13629_v10 = vld [vmem:[%s14879_s4 + $0x980] ss:$16 sps:$4 sm:$0xff]  }
 0x39f   : > { %9417 = vmatpush1.bf16.msra.mxu0 %v13608_v47  ;;  %8401 = vmatprep.subr.bf16.mxu1 %v13613_v62  ;;  %v2799_v57 = vmul.bf16 %v11496_v56, %v18501_v59  ;;  %v18504_v47 = vpack.c.bf16 %v18502_v45, %v18503_v40  ;;  %v13628_v56 = vld [vmem:[%s14879_s4 + $0x96c] ss:$16 sps:$4 sm:$0xff]   ;;  %v11498_v62 = vcombine.low %v2728_v9, %v2740_v36  ;;  %v18506_v34 = vld [vmem:[#allocation85_spill] sm:$0xff] }
 0x3a0   : > { %9418 = vmatprep.subr.bf16.mxu0 %v13616_v26  ;;  %v13626_v26 = vld [vmem:[%s14879_s4 + $0x968] ss:$16 sps:$4 sm:$0xff]   ;;  %v2864_v59 = vrot.slane %v2856_v24, %v15670_v61  ;;  %v13637_v40 = vld [vmem:[%s14879_s4 + $0x9a4] ss:$16 sps:$4 sm:$0xff]   ;;  %v2822_v24 = vpack.c.bf16 %v15709_v29, %v18406_v43 }
 0x3a1   : > { %v2802_v48 = vmul.bf16 %v11497_v31, %v18504_v47  ;;  %v18508_v9 = vld [vmem:[#allocation106_spill] sm:$0xff]  ;;  %v18509_v36 = vld [vmem:[#allocation100_spill] sm:$0xff] }
 0x3a2   : > { %8402 = vmatpush1.bf16.msra.mxu1 %v13611_v38  ;;  %v13631_v38 = vld [vmem:[%s14879_s4 + $0x984] ss:$16 sps:$4 sm:$0xff]   ;;  %v2880_v47 = vpop.permute.xlu1 %2879 }
 0x3a3   : > { %9419 = vmatpush1.bf16.msra.mxu0 %v13614_v39  ;;  %8403 = vmatprep.subr.bf16.mxu1 %v13619_v33  ;;  %v13634_v39 = vld [vmem:[%s14879_s4 + $0x98c] ss:$16 sps:$4 sm:$0xff]   ;;  %v2868_v33 = vpop.permute.xlu0 %2867  ;;  %v2888_v29 = vrot.slane %v2880_v47, %v15670_v61 }
 0x3a4   : > { %8353 = vmatmul.mubr.bf16.gmra.mrb[20].mxu1 %v2799_v57  ;;  %9420 = vmatprep.subr.bf16.mxu0 %v13622_v17  ;;  %v18505_v17 = vld [vmem:[#allocation90_spill] sm:$0xff] }
 0x3a5   : > { %9370 = vmatmul.mubr.bf16.gmra.mrb[52].mxu0 %v2799_v57  ;;  %8362 = vmatprep.mubr.bf16.mxu1 %v2802_v48  ;;  %v18507_v28 = vpack.c.bf16 %v18505_v17, %v18506_v34  ;;  %v2876_v57 = vrot.slane %v2868_v33, %v15670_v61  ;;  %v13641_v34 = vld [vmem:[%s14879_s4 + $0x9c0] ss:$16 sps:$4 sm:$0xff]  }
 0x3a6   : > { %8404 = vmatpush1.bf16.msra.mxu1 %v13617_v5  ;;  %9379 = vmatprep.mubr.bf16.mxu0 %v2802_v48  ;;  %v13632_v5 = vld [vmem:[%s14879_s4 + $0x988] ss:$16 sps:$4 sm:$0xff]   ;;  %v13635_v48 = vld [vmem:[%s14879_s4 + $0x9a0] ss:$16 sps:$4 sm:$0xff]  }
 0x3a7   : > { %9421 = vmatpush1.bf16.msra.mxu0 %v13620_v42  ;;  %8405 = vmatprep.subr.bf16.mxu1 %v13625_v30  ;;  %v2801_v3 = vmul.bf16 %v11497_v31, %v18507_v28  ;;  %v18510_v42 = vpack.c.bf16 %v18508_v9, %v18509_v36  ;;  %v13640_v31 = vld [vmem:[%s14879_s4 + $0x9ac] ss:$16 sps:$4 sm:$0xff]   ;;  %v11499_v30 = vcombine.low %v2864_v59, %v2876_v57  ;;  %v2892_v28 = vpop.permute.xlu1 %2891  ;;  %v13649_v59 = vld [vmem:[%s14879_s4 + $0x9e4] ss:$16 sps:$4 sm:$0xff]  }
 0x3a8   : > { %9422 = vmatprep.subr.bf16.mxu0 %v13628_v56  ;;  %v13638_v56 = vld [vmem:[%s14879_s4 + $0x9a8] ss:$16 sps:$4 sm:$0xff]   ;;  %v2900_v43 = vrot.slane %v2892_v28, %v15670_v61  ;;  %v13652_v57 = vld [vmem:[%s14879_s4 + $0x9ec] ss:$16 sps:$4 sm:$0xff]   ;;  %v13655_v9 = vld [vmem:[%s14879_s4 + $0xa04] ss:$16 sps:$4 sm:$0xff]   ;;  %v2826_v28 = vpack.c.bf16 %v15908_v19, %v15794_v22 }
 0x3a9   : > { %v2804_v45 = vmul.bf16 %v11498_v62, %v18510_v42  ;;  %v13658_v42 = vld [vmem:[%s14879_s4 + $0xa0c] ss:$16 sps:$4 sm:$0xff]   ;;  %v13673_v22 = vld [vmem:[%s14879_s4 + $0xa64] ss:$16 sps:$4 sm:$0xff]  }
 0x3aa   : > { %8406 = vmatpush1.bf16.msra.mxu1 %v13623_v53  ;;  %v13643_v53 = vld [vmem:[%s14879_s4 + $0x9c4] ss:$16 sps:$4 sm:$0xff]   ;;  %v11500_v36 = vcombine.low %v2888_v29, %v2900_v43  ;;  %v18514_v47 = vld [vmem:[#allocation66_spill] sm:$0xff] }
 0x3ab   : > { %9423 = vmatpush1.bf16.msra.mxu0 %v13626_v26  ;;  %8407 = vmatprep.subr.bf16.mxu1 %v13631_v38  ;;  %v13646_v26 = vld [vmem:[%s14879_s4 + $0x9cc] ss:$16 sps:$4 sm:$0xff]   ;;  %v18511_v38 = vld [vmem:[#allocation103_spill] sm:$0xff] }
 0x3ac   : > { %8363 = vmatmul.mubr.bf16.gmra.mrb[24].mxu1 %v2801_v3  ;;  %9424 = vmatprep.subr.bf16.mxu0 %v13634_v39  ;;  %v18512_v39 = vld [vmem:[#allocation99_spill] sm:$0xff]  ;;  %v13676_v19 = vld [vmem:[%s14879_s4 + $0xa6c] ss:$16 sps:$4 sm:$0xff]  }
 0x3ad   : > { %9380 = vmatmul.mubr.bf16.gmra.mrb[56].mxu0 %v2801_v3  ;;  %8372 = vmatprep.mubr.bf16.mxu1 %v2804_v45  ;;  %v18513_v33 = vpack.c.bf16 %v18511_v38, %v18512_v39  ;;  %v13644_v3 = vld [vmem:[%s14879_s4 + $0x9c8] ss:$16 sps:$4 sm:$0xff]   ;;  %v13664_v39 = vld [vmem:[%s14879_s4 + $0xa2c] ss:$16 sps:$4 sm:$0xff]   ;;  %v13665_v43 = vld [vmem:[%s14879_s4 + $0xa40] ss:$16 sps:$4 sm:$0xff]  }
 0x3ae   : > { %8408 = vmatpush1.bf16.msra.mxu1 %v13629_v10  ;;  %9389 = vmatprep.mubr.bf16.mxu0 %v2804_v45  ;;  %v3094_v10 = vmul.bf16 %v11499_v30, %v2822_v24  ;;  %v2824_v45 = vpack.c.bf16 %v15818_v55, %v15718_v35  ;;  %v13656_v38 = vld [vmem:[%s14879_s4 + $0xa08] ss:$16 sps:$4 sm:$0xff]   ;;  %v13661_v55 = vld [vmem:[%s14879_s4 + $0xa24] ss:$16 sps:$4 sm:$0xff]  }
 0x3af   : > { %9425 = vmatpush1.bf16.msra.mxu0 %v13632_v5  ;;  %8409 = vmatprep.subr.bf16.mxu1 %v13637_v40  ;;  %v2803_v17 = vmul.bf16 %v11498_v62, %v18513_v33  ;;  %v13647_v62 = vld [vmem:[%s14879_s4 + $0x9e0] ss:$16 sps:$4 sm:$0xff]   ;;  %v13650_v5 = vld [vmem:[%s14879_s4 + $0x9e8] ss:$16 sps:$4 sm:$0xff]   ;;  %v2916_v40 = vpop.permute.xlu1 %2915 }
 0x3b0   : > { %9426 = vmatprep.subr.bf16.mxu0 %v13640_v31  ;;  %v2904_v31 = vpop.permute.xlu0 %2903  ;;  %v2924_v24 = vrot.slane %v2916_v40, %v15670_v61  ;;  %v3096_v35 = vmul.bf16 %v11500_v36, %v2824_v45  ;;  %v13679_v45 = vld [vmem:[%s14879_s4 + $0xa84] ss:$16 sps:$4 sm:$0xff]   ;;  %v2828_v40 = vpack.c.bf16 %v16054_v49, %v15916_v63  ;;  %v13688_v49 = vld [vmem:[%s14879_s4 + $0xaac] ss:$16 sps:$4 sm:$0xff]  }
 0x3b1   : > { %v13685_v63 = vld [vmem:[%s14879_s4 + $0xaa4] ss:$16 sps:$4 sm:$0xff]  }
 0x3b2   : > { %8410 = vmatpush1.bf16.msra.mxu1 %v13635_v48  ;;  %v18515_v48 = vpack.c.bf16 %v18415_v8, %v18514_v47  ;;  %v13659_v8 = vld [vmem:[%s14879_s4 + $0xa20] ss:$16 sps:$4 sm:$0xff]  }
 0x3b3   : > { %9427 = vmatpush1.bf16.msra.mxu0 %v13638_v56  ;;  %8411 = vmatprep.subr.bf16.mxu1 %v13643_v53  ;;  %v13653_v53 = vld [vmem:[%s14879_s4 + $0xa00] ss:$16 sps:$4 sm:$0xff]  }
 0x3b4   : > { %8373 = vmatmul.mubr.bf16.gmra.mrb[28].mxu1 %v2803_v17  ;;  %9428 = vmatprep.subr.bf16.mxu0 %v13646_v26  ;;  %v3093_v56 = vmul.bf16 %v11499_v30, %v18515_v48  ;;  %v2912_v26 = vrot.slane %v2904_v31, %v15670_v61  ;;  %v2823_v30 = vpack.c.bf16 %v18421_v15, %v18416_v4  ;;  %v13682_v31 = vld [vmem:[%s14879_s4 + $0xa8c] ss:$16 sps:$4 sm:$0xff]  }
 0x3b5   : > { %9390 = vmatmul.mubr.bf16.gmra.mrb[60].mxu0 %v2803_v17  ;;  %8415 = vmatprep.mubr.bf16.mxu1 %v3094_v10  ;;  %v13662_v17 = vld [vmem:[%s14879_s4 + $0xa28] ss:$16 sps:$4 sm:$0xff]  }
 0x3b6   : > { %8412 = vmatpush1.bf16.msra.mxu1 %v13641_v34  ;;  %9432 = vmatprep.mubr.bf16.mxu0 %v3094_v10  ;;  %v11501_v33 = vcombine.low %v2912_v26, %v2924_v24  ;;  %v13667_v34 = vld [vmem:[%s14879_s4 + $0xa44] ss:$16 sps:$4 sm:$0xff]   ;;  %v2940_v10 = vpop.permute.xlu1 %2939  ;;  %v3095_v29 = vmul.bf16 %v11500_v36, %v2823_v30  ;;  %v13680_v24 = vld [vmem:[%s14879_s4 + $0xa88] ss:$16 sps:$4 sm:$0xff]   ;;  %v2830_v30 = vpack.c.bf16 %v18388_v16, %v15646_v23  ;;  %v13700_v16 = vld [vmem:[%s14879_s4 + $0xaec] ss:$16 sps:$4 sm:$0xff]  }
 0x3b7   : > { %9429 = vmatpush1.bf16.msra.mxu0 %v13644_v3  ;;  %8413 = vmatprep.subr.bf16.mxu1 %v13649_v59  ;;  %v13670_v3 = vld [vmem:[%s14879_s4 + $0xa4c] ss:$16 sps:$4 sm:$0xff]   ;;  %v2928_v59 = vpop.permute.xlu0 %2927  ;;  %v2948_v4 = vrot.slane %v2940_v10, %v15670_v61  ;;  %v13692_v10 = vld [vmem:[%s14879_s4 + $0xac8] ss:$16 sps:$4 sm:$0xff]   ;;  %v13697_v23 = vld [vmem:[%s14879_s4 + $0xae4] ss:$16 sps:$4 sm:$0xff]  }
 0x3b8   : > { %9430 = vmatprep.subr.bf16.mxu0 %v13652_v57  ;;  %v2936_v15 = vrot.slane %v2928_v59, %v15670_v61  ;;  %v13668_v57 = vld [vmem:[%s14879_s4 + $0xa48] ss:$16 sps:$4 sm:$0xff]  }
 0x3ba   : > { %8414 = vmatpush1.bf16.msra.mxu1 %v13647_v62  ;;  %v3098_v62 = vmul.bf16 %v11501_v33, %v2826_v28  ;;  %v11502_v36 = vcombine.low %v2936_v15, %v2948_v4  ;;  %v2964_v47 = vpop.permute.xlu1 %2963  ;;  %v13698_v15 = vld [vmem:[%s14879_s4 + $0xae8] ss:$16 sps:$4 sm:$0xff]  }
 0x3bb   : > { %9431 = vmatpush1.bf16.msra.mxu0 %v13650_v5  ;;  %8496 = vmatprep.subr.bf16.mxu1 %v13655_v9  ;;  %v13671_v5 = vld [vmem:[%s14879_s4 + $0xa60] ss:$16 sps:$4 sm:$0xff]   ;;  %v2825_v9 = vpack.c.bf16 %v15904_v18, %v15831_v46  ;;  %v2952_v48 = vpop.permute.xlu0 %2951  ;;  %v2972_v46 = vrot.slane %v2964_v47, %v15670_v61 }
 0x3bc   : > { %9513 = vmatprep.subr.bf16.mxu0 %v13658_v42  ;;  %v13674_v42 = vld [vmem:[%s14879_s4 + $0xa68] ss:$16 sps:$4 sm:$0xff]   ;;  %v2960_v18 = vrot.slane %v2952_v48, %v15670_v61  ;;  %v3100_v26 = vmul.bf16 %v11502_v36, %v2828_v40  ;;  %v13709_v40 = vld [vmem:[%s14879_s4 + $0xb24] ss:$16 sps:$4 sm:$0xff]   ;;  %v13707_v47 = vld [vmem:[%s14879_s4 + $0xb20] ss:$16 sps:$4 sm:$0xff]  }
 0x3bd   : > { %8416 = vmatmul.mubr.bf16.vlgmr.msra.gmra.mrb[0].mxu1 %v3093_v56 }
 0x3be   : > { %9433 = vmatmul.mubr.bf16.vlgmr.msra.gmra.mrb[32].mxu0 %v3093_v56  ;;  %8425 = vmatprep.mubr.bf16.mxu1 %v3096_v35  ;;  %v3097_v56 = vmul.bf16 %v11501_v33, %v2825_v9  ;;  %v13694_v33 = vld [vmem:[%s14879_s4 + $0xacc] ss:$16 sps:$4 sm:$0xff]   ;;  %v13701_v9 = vld [vmem:[%s14879_s4 + $0xb00] ss:$16 sps:$4 sm:$0xff]  }
 0x3bf   : > { %8497 = vmatpush1.bf16.msra.mxu1 %v13653_v53  ;;  %9442 = vmatprep.mubr.bf16.mxu0 %v3096_v35  ;;  %v13677_v53 = vld [vmem:[%s14879_s4 + $0xa80] ss:$16 sps:$4 sm:$0xff]   ;;  %v2827_v35 = vpack.c.bf16 %v16050_v52, %v16000_v25 }
 0x3c0   : > { %9514 = vmatpush1.bf16.msra.mxu0 %v13656_v38  ;;  %8498 = vmatprep.subr.bf16.mxu1 %v13661_v55  ;;  %v13683_v38 = vld [vmem:[%s14879_s4 + $0xaa0] ss:$16 sps:$4 sm:$0xff]   ;;  %v11503_v55 = vcombine.low %v2960_v18, %v2972_v46  ;;  %v18517_v18 = vpack.c.bf16 %v15656_v51, %v15649_v2  ;;  %v13724_v2 = vld [vmem:[%s14879_s4 + $0xb6c] ss:$16 sps:$4 sm:$0xff]  }
 0x3c1   : > { %9515 = vmatprep.subr.bf16.mxu0 %v13664_v39  ;;  %v13686_v39 = vld [vmem:[%s14879_s4 + $0xaa8] ss:$16 sps:$4 sm:$0xff]   ;;  %v3099_v28 = vmul.bf16 %v11502_v36, %v2827_v35  ;;  %v13719_v51 = vld [vmem:[%s14879_s4 + $0xb60] ss:$16 sps:$4 sm:$0xff]  }
 0x3c2   : > { %v3102_v59 = vmul.bf16 %v11503_v55, %v2830_v30  ;;  %v18518_v35 = vld [vmem:[#allocation83_spill] sm:$0xff] }
 0x3c3   : > { %8499 = vmatpush1.bf16.msra.mxu1 %v13659_v8  ;;  %v13691_v8 = vld [vmem:[%s14879_s4 + $0xac4] ss:$16 sps:$4 sm:$0xff]  }
 0x3c4   : > { %9516 = vmatpush1.bf16.msra.mxu0 %v13662_v17  ;;  %8500 = vmatprep.subr.bf16.mxu1 %v13667_v34  ;;  %v2988_v17 = vpop.permute.xlu1 %2987  ;;  %v2976_v34 = vpop.permute.xlu0 %2975  ;;  %v13721_v30 = vld [vmem:[%s14879_s4 + $0xb64] ss:$16 sps:$4 sm:$0xff]  }
 0x3c5   : > { %8426 = vmatmul.mubr.bf16.gmra.mrb[4].mxu1 %v3095_v29  ;;  %9517 = vmatprep.subr.bf16.mxu0 %v13670_v3  ;;  %v13689_v3 = vld [vmem:[%s14879_s4 + $0xac0] ss:$16 sps:$4 sm:$0xff]   ;;  %v2996_v25 = vrot.slane %v2988_v17, %v15670_v61  ;;  %v2984_v52 = vrot.slane %v2976_v34, %v15670_v61  ;;  %v13722_v17 = vld [vmem:[%s14879_s4 + $0xb68] ss:$16 sps:$4 sm:$0xff]   ;;  %v13727_v34 = vld [vmem:[%s14879_s4 + $0xb84] ss:$16 sps:$4 sm:$0xff]  }
 0x3c6   : > { %9443 = vmatmul.mubr.bf16.gmra.mrb[36].mxu0 %v3095_v29  ;;  %8435 = vmatprep.mubr.bf16.mxu1 %v3098_v62  ;;  %v13695_v29 = vld [vmem:[%s14879_s4 + $0xae0] ss:$16 sps:$4 sm:$0xff]  }
 0x3c7   : > { %8501 = vmatpush1.bf16.msra.mxu1 %v13665_v43  ;;  %9452 = vmatprep.mubr.bf16.mxu0 %v3098_v62  ;;  %v2829_v43 = vpack.c.bf16 %v16013_v32, %v16129_v6  ;;  %v11504_v4 = vcombine.low %v2984_v52, %v2996_v25  ;;  %v13706_v62 = vld [vmem:[%s14879_s4 + $0xb0c] ss:$16 sps:$4 sm:$0xff]   ;;  %v13704_v6 = vld [vmem:[%s14879_s4 + $0xb08] ss:$16 sps:$4 sm:$0xff]  }
 0x3c8   : > { %9518 = vmatpush1.bf16.msra.mxu0 %v13668_v57  ;;  %8502 = vmatprep.subr.bf16.mxu1 %v13673_v22  ;;  %v13703_v57 = vld [vmem:[%s14879_s4 + $0xb04] ss:$16 sps:$4 sm:$0xff]   ;;  %v3012_v22 = vpop.permute.xlu1 %3011  ;;  %v18521_v52 = vld [vmem:[#allocation82_spill] sm:$0xff] }
 0x3c9   : > { %9519 = vmatprep.subr.bf16.mxu0 %v13676_v19  ;;  %v3000_v19 = vpop.permute.xlu0 %2999  ;;  %v3020_v36 = vrot.slane %v3012_v22, %v15670_v61  ;;  %v13733_v22 = vld [vmem:[%s14879_s4 + $0xba4] ss:$16 sps:$4 sm:$0xff]  }
 0x3ca   : > { %v3008_v32 = vrot.slane %v3000_v19, %v15670_v61  ;;  %v13736_v19 = vld [vmem:[%s14879_s4 + $0xbac] ss:$16 sps:$4 sm:$0xff]  }
 0x3cb   : > { %8503 = vmatpush1.bf16.msra.mxu1 %v13671_v5  ;;  %v3101_v5 = vmul.bf16 %v11503_v55, %v2829_v43  ;;  %v18519_v55 = vld [vmem:[#allocation81_spill] sm:$0xff] }
 0x3cc   : > { %9520 = vmatpush1.bf16.msra.mxu0 %v13674_v42  ;;  %8504 = vmatprep.subr.bf16.mxu1 %v13679_v45  ;;  %v18516_v42 = vpack.c.bf16 %v15661_v7, %v15653_v20  ;;  %v11505_v48 = vcombine.low %v3008_v32, %v3020_v36  ;;  %v13718_v7 = vld [vmem:[%s14879_s4 + $0xb4c] ss:$16 sps:$4 sm:$0xff]   ;;  %v3036_v20 = vpop.permute.xlu1 %3035  ;;  %v13734_v36 = vld [vmem:[%s14879_s4 + $0xba8] ss:$16 sps:$4 sm:$0xff]   ;;  %v13739_v32 = vld [vmem:[%s14879_s4 + $0xbc4] ss:$16 sps:$4 sm:$0xff]  }
 0x3cd   : > { %8436 = vmatmul.mubr.bf16.gmra.mrb[8].mxu1 %v3097_v56  ;;  %9521 = vmatprep.subr.bf16.mxu0 %v13682_v31  ;;  %v13712_v31 = vld [vmem:[%s14879_s4 + $0xb2c] ss:$16 sps:$4 sm:$0xff]   ;;  %v3024_v46 = vpop.permute.xlu0 %3023 }
 0x3ce   : > { %9453 = vmatmul.mubr.bf16.gmra.mrb[40].mxu0 %v3097_v56  ;;  %8445 = vmatprep.mubr.bf16.mxu1 %v3100_v26  ;;  %v3104_v45 = vmul.bf16 %v11504_v4, %v18516_v42  ;;  %v13710_v56 = vld [vmem:[%s14879_s4 + $0xb28] ss:$16 sps:$4 sm:$0xff]  }
 0x3cf   : > { %8505 = vmatpush1.bf16.msra.mxu1 %v13677_v53  ;;  %9462 = vmatprep.mubr.bf16.mxu0 %v3100_v26  ;;  %v13715_v53 = vld [vmem:[%s14879_s4 + $0xb44] ss:$16 sps:$4 sm:$0xff]   ;;  %v13713_v26 = vld [vmem:[%s14879_s4 + $0xb40] ss:$16 sps:$4 sm:$0xff]  }
 0x3d0   : > { %9522 = vmatpush1.bf16.msra.mxu0 %v13680_v24  ;;  %8506 = vmatprep.subr.bf16.mxu1 %v13685_v63  ;;  %v3103_v24 = vmul.bf16 %v11504_v4, %v18517_v18  ;;  %v3044_v63 = vrot.slane %v3036_v20, %v15670_v61  ;;  %v13728_v4 = vld [vmem:[%s14879_s4 + $0xb88] ss:$16 sps:$4 sm:$0xff]  }
 0x3d1   : > { %9523 = vmatprep.subr.bf16.mxu0 %v13688_v49  ;;  %v3032_v49 = vrot.slane %v3024_v46, %v15670_v61  ;;  %v3160_v25 = vpop.permute.xlu0 %3159  ;;  %v18527_v42 = vld [vmem:[#allocation93_spill] sm:$0xff] }
 0x3d2   : > { %v3168_v43 = vrot.slane %v3160_v25, %v15670_v61  ;;  %v13745_v46 = vld [vmem:[%s14879_s4 + $0xbe4] ss:$16 sps:$4 sm:$0xff]  }
 0x3d3   : > { %8507 = vmatpush1.bf16.msra.mxu1 %v13683_v38  ;;  %v13716_v38 = vld [vmem:[%s14879_s4 + $0xb48] ss:$16 sps:$4 sm:$0xff]   ;;  %v13757_v25 = vld [vmem:[%s14879_s4 + $0xc24] ss:$16 sps:$4 sm:$0xff]  }
 0x3d4   : > { %9524 = vmatpush1.bf16.msra.mxu0 %v13686_v39  ;;  %8508 = vmatprep.subr.bf16.mxu1 %v13691_v8  ;;  %v18520_v39 = vpack.c.bf16 %v18518_v35, %v18519_v55  ;;  %v13754_v35 = vld [vmem:[%s14879_s4 + $0xc0c] ss:$16 sps:$4 sm:$0xff]  }
 0x3d5   : > { %8446 = vmatmul.mubr.bf16.gmra.mrb[12].mxu1 %v3099_v28  ;;  %9525 = vmatprep.subr.bf16.mxu0 %v13694_v33  ;;  %v11506_v33 = vcombine.low %v3032_v49, %v3044_v63  ;;  %v13743_v63 = vld [vmem:[%s14879_s4 + $0xbe0] ss:$16 sps:$4 sm:$0xff]   ;;  %v13751_v49 = vld [vmem:[%s14879_s4 + $0xc04] ss:$16 sps:$4 sm:$0xff]  }
 0x3d6   : > { %9463 = vmatmul.mubr.bf16.gmra.mrb[44].mxu0 %v3099_v28  ;;  %8455 = vmatprep.mubr.bf16.mxu1 %v3102_v59  ;;  %v3106_v8 = vmul.bf16 %v11505_v48, %v18520_v39  ;;  %v13730_v28 = vld [vmem:[%s14879_s4 + $0xb8c] ss:$16 sps:$4 sm:$0xff]  }
 0x3d7   : > { %8509 = vmatpush1.bf16.msra.mxu1 %v13689_v3  ;;  %9472 = vmatprep.mubr.bf16.mxu0 %v3102_v59  ;;  %v3172_v3 = vpop.permute.xlu1 %3171 }
 0x3d8   : > { %9526 = vmatpush1.bf16.msra.mxu0 %v13692_v10  ;;  %8510 = vmatprep.subr.bf16.mxu1 %v13697_v23  ;;  %v18522_v10 = vld [vmem:[#allocation80_spill] sm:$0xff] }
 0x3d9   : > { %9527 = vmatprep.subr.bf16.mxu0 %v13700_v16  ;;  %v18523_v59 = vpack.c.bf16 %v18521_v52, %v18522_v10  ;;  %v13725_v16 = vld [vmem:[%s14879_s4 + $0xb80] ss:$16 sps:$4 sm:$0xff]   ;;  %v3127_v10 = vpack.c.bf16 %v16643_v21, %v16611_v60  ;;  %v13764_v21 = vld [vmem:[%s14879_s4 + $0xc48] ss:$16 sps:$4 sm:$0xff]  }
 0x3da   : > { %v13755_v52 = vld [vmem:[%s14879_s4 + $0xc20] ss:$16 sps:$4 sm:$0xff]  }
 0x3db   : > { %8511 = vmatpush1.bf16.msra.mxu1 %v13695_v29  ;;  %v3105_v23 = vmul.bf16 %v11505_v48, %v18523_v59  ;;  %v3180_v29 = vrot.slane %v3172_v3, %v15670_v61  ;;  %v3196_v48 = vpop.permute.xlu0 %3195 }
 0x3dc   : > { %9528 = vmatpush1.bf16.msra.mxu0 %v13698_v15  ;;  %8512 = vmatprep.subr.bf16.mxu1 %v13703_v57  ;;  %v18524_v15 = vld [vmem:[#allocation94_spill] sm:$0xff] }
 0x3dd   : > { %8456 = vmatmul.mubr.bf16.gmra.mrb[16].mxu1 %v3101_v5  ;;  %9529 = vmatprep.subr.bf16.mxu0 %v13706_v62  ;;  %v18525_v57 = vpack.c.bf16 %v15798_v0, %v18524_v15  ;;  %v13742_v0 = vld [vmem:[%s14879_s4 + $0xbcc] ss:$16 sps:$4 sm:$0xff]  }
 0x3de   : > { %9473 = vmatmul.mubr.bf16.gmra.mrb[48].mxu0 %v3101_v5  ;;  %8465 = vmatprep.mubr.bf16.mxu1 %v3104_v45  ;;  %v13731_v5 = vld [vmem:[%s14879_s4 + $0xba0] ss:$16 sps:$4 sm:$0xff]  }
 0x3df   : > { %8513 = vmatpush1.bf16.msra.mxu1 %v13701_v9  ;;  %9482 = vmatprep.mubr.bf16.mxu0 %v3104_v45  ;;  %v3108_v62 = vmul.bf16 %v11506_v33, %v18525_v57  ;;  %v11507_v9 = vcombine.low %v3168_v43, %v3180_v29  ;;  %v3220_v39 = vpop.permute.xlu0 %3219  ;;  %v18534_v57 = vpack.c.bf16 %v16319_v50, %v16329_v37  ;;  %v13778_v50 = vld [vmem:[%s14879_s4 + $0xc8c] ss:$16 sps:$4 sm:$0xff]  }
 0x3e0   : > { %9530 = vmatpush1.bf16.msra.mxu0 %v13704_v6  ;;  %8514 = vmatprep.subr.bf16.mxu1 %v13709_v40  ;;  %v18526_v6 = vld [vmem:[#allocation95_spill] sm:$0xff] }
 0x3e1   : > { %9531 = vmatprep.subr.bf16.mxu0 %v13712_v31  ;;  %v18528_v45 = vpack.c.bf16 %v18526_v6, %v18527_v42  ;;  %v13737_v31 = vld [vmem:[%s14879_s4 + $0xbc0] ss:$16 sps:$4 sm:$0xff]   ;;  %v18535_v6 = vpack.c.bf16 %v16323_v13, %v16335_v14  ;;  %v13784_v14 = vld [vmem:[%s14879_s4 + $0xcac] ss:$16 sps:$4 sm:$0xff]  }
 0x3e2   : > { %v13779_v13 = vld [vmem:[%s14879_s4 + $0xca0] ss:$16 sps:$4 sm:$0xff]  }
 0x3e3   : > { %8515 = vmatpush1.bf16.msra.mxu1 %v13707_v47  ;;  %v3107_v40 = vmul.bf16 %v11506_v33, %v18528_v45  ;;  %v3184_v47 = vpop.permute.xlu1 %3183  ;;  %v3244_v29 = vpop.permute.xlu0 %3243  ;;  %v13773_v45 = vld [vmem:[%s14879_s4 + $0xc80] ss:$16 sps:$4 sm:$0xff]  }
 0x3e4   : > { %9532 = vmatpush1.bf16.msra.mxu0 %v13710_v56  ;;  %8516 = vmatprep.subr.bf16.mxu1 %v13715_v53  ;;  %v13740_v56 = vld [vmem:[%s14879_s4 + $0xbc8] ss:$16 sps:$4 sm:$0xff]   ;;  %v3192_v18 = vrot.slane %v3184_v47, %v15670_v61  ;;  %v3252_v60 = vrot.slane %v3244_v29, %v15670_v61 }
 0x3e5   : > { %8466 = vmatmul.mubr.bf16.gmra.mrb[20].mxu1 %v3103_v24  ;;  %9533 = vmatprep.subr.bf16.mxu0 %v13718_v7  ;;  %v18529_v53 = vld [vmem:[#allocation119_spill] sm:$0xff] }
 0x3e6   : > { %9483 = vmatmul.mubr.bf16.gmra.mrb[52].mxu0 %v3103_v24  ;;  %8475 = vmatprep.mubr.bf16.mxu1 %v3106_v8  ;;  %v18530_v7 = vpack.c.bf16 %v16301_v1, %v18529_v53  ;;  %v3204_v24 = vrot.slane %v3196_v48, %v15670_v61  ;;  %v13746_v1 = vld [vmem:[%s14879_s4 + $0xbe8] ss:$16 sps:$4 sm:$0xff]   ;;  %v18536_v48 = vpack.c.bf16 %v16339_v12, %v16373_v41  ;;  %v13781_v53 = vld [vmem:[%s14879_s4 + $0xca4] ss:$16 sps:$4 sm:$0xff]   ;;  %v13790_v12 = vld [vmem:[%s14879_s4 + $0xccc] ss:$16 sps:$4 sm:$0xff]  }
 0x3e7   : > { %8517 = vmatpush1.bf16.msra.mxu1 %v13713_v26  ;;  %9492 = vmatprep.mubr.bf16.mxu0 %v3106_v8  ;;  %v13748_v26 = vld [vmem:[%s14879_s4 + $0xbec] ss:$16 sps:$4 sm:$0xff]   ;;  %v3208_v55 = vpop.permute.xlu1 %3207  ;;  %v13776_v47 = vld [vmem:[%s14879_s4 + $0xc88] ss:$16 sps:$4 sm:$0xff]  }
 0x3e8   : > { %9534 = vmatpush1.bf16.msra.mxu0 %v13716_v38  ;;  %8518 = vmatprep.subr.bf16.mxu1 %v13721_v30  ;;  %v3398_v20 = vmul.bf16 %v11507_v9, %v18530_v7  ;;  %v11508_v38 = vcombine.low %v3192_v18, %v3204_v24  ;;  %v18531_v8 = vld [vmem:[#allocation68_spill] sm:$0xff]  ;;  %v3216_v33 = vrot.slane %v3208_v55, %v15670_v61  ;;  %v18539_v55 = vld [vmem:[#allocation30_spill] sm:$0xff] }
 0x3e9   : > { %9535 = vmatprep.subr.bf16.mxu0 %v13724_v2  ;;  %v18532_v30 = vpack.c.bf16 %v18451_v27, %v18531_v8  ;;  %v13760_v27 = vld [vmem:[%s14879_s4 + $0xc2c] ss:$16 sps:$4 sm:$0xff]   ;;  %v18537_v24 = vpack.c.bf16 %v16352_v58, %v16377_v11  ;;  %v13791_v11 = vld [vmem:[%s14879_s4 + $0xce0] ss:$16 sps:$4 sm:$0xff]  }
 0x3ea   : > { %v3399_v43 = vmul.bf16 %v11508_v38, %v3127_v10  ;;  %v13796_v58 = vld [vmem:[%s14879_s4 + $0xcec] ss:$16 sps:$4 sm:$0xff]   ;;  %v13797_v10 = vld [vmem:[%s14879_s4 + $0xd00] ss:$16 sps:$4 sm:$0xff]  }
 0x3eb   : > { %8519 = vmatpush1.bf16.msra.mxu1 %v13719_v51  ;;  %v3397_v2 = vmul.bf16 %v11507_v9, %v18532_v30  ;;  %v13749_v51 = vld [vmem:[%s14879_s4 + $0xc00] ss:$16 sps:$4 sm:$0xff]   ;;  %v13793_v30 = vld [vmem:[%s14879_s4 + $0xce4] ss:$16 sps:$4 sm:$0xff]  }
 0x3ec   : > { %9536 = vmatpush1.bf16.msra.mxu0 %v13722_v17  ;;  %8520 = vmatprep.subr.bf16.mxu1 %v13727_v34  ;;  %v3228_v17 = vrot.slane %v3220_v39, %v15670_v61  ;;  %v13752_v34 = vld [vmem:[%s14879_s4 + $0xc08] ss:$16 sps:$4 sm:$0xff]  }
 0x3ed   : > { %8476 = vmatmul.mubr.bf16.gmra.mrb[24].mxu1 %v3105_v23  ;;  %9537 = vmatprep.subr.bf16.mxu0 %v13730_v28  ;;  %v18533_v28 = vpack.c.bf16 %v16315_v44, %v16295_v54  ;;  %v13758_v54 = vld [vmem:[%s14879_s4 + $0xc28] ss:$16 sps:$4 sm:$0xff]   ;;  %v13763_v44 = vld [vmem:[%s14879_s4 + $0xc44] ss:$16 sps:$4 sm:$0xff]  }
 0x3ee   : > { %9493 = vmatmul.mubr.bf16.gmra.mrb[56].mxu0 %v3105_v23  ;;  %8485 = vmatprep.mubr.bf16.mxu1 %v3108_v62  ;;  %v11509_v59 = vcombine.low %v3216_v33, %v3228_v17  ;;  %v13766_v23 = vld [vmem:[%s14879_s4 + $0xc4c] ss:$16 sps:$4 sm:$0xff]   ;;  %v13799_v33 = vld [vmem:[%s14879_s4 + $0xd04] ss:$16 sps:$4 sm:$0xff]  }
 0x3ef   : > { %8521 = vmatpush1.bf16.msra.mxu1 %v13725_v16  ;;  %9502 = vmatprep.mubr.bf16.mxu0 %v3108_v62  ;;  %v3400_v3 = vmul.bf16 %v11508_v38, %v18533_v28  ;;  %v3232_v16 = vpop.permute.xlu1 %3231  ;;  %v13788_v38 = vld [vmem:[%s14879_s4 + $0xcc8] ss:$16 sps:$4 sm:$0xff]   ;;  %v13802_v17 = vld [vmem:[%s14879_s4 + $0xd0c] ss:$16 sps:$4 sm:$0xff]  }
 0x3f0   : > { %9538 = vmatpush1.bf16.msra.mxu0 %v13728_v4  ;;  %8522 = vmatprep.subr.bf16.mxu1 %v13733_v22  ;;  %v13761_v4 = vld [vmem:[%s14879_s4 + $0xc40] ss:$16 sps:$4 sm:$0xff]   ;;  %v3240_v15 = vrot.slane %v3232_v16, %v15670_v61  ;;  %v3402_v62 = vmul.bf16 %v11509_v59, %v18534_v57  ;;  %v13769_v22 = vld [vmem:[%s14879_s4 + $0xc64] ss:$16 sps:$4 sm:$0xff]   ;;  %v3401_v42 = vmul.bf16 %v11509_v59, %v18535_v6  ;;  %v13806_v57 = vld [vmem:[%s14879_s4 + $0xd28] ss:$16 sps:$4 sm:$0xff]  }
 0x3f1   : > { %9539 = vmatprep.subr.bf16.mxu0 %v13736_v19  ;;  %v13772_v19 = vld [vmem:[%s14879_s4 + $0xc6c] ss:$16 sps:$4 sm:$0xff]   ;;  %v18545_v16 = vld [vmem:[#allocation129_spill] sm:$0xff] }
 0x3f2   : > { %v11510_v9 = vcombine.low %v3240_v15, %v3252_v60  ;;  %v13808_v15 = vld [vmem:[%s14879_s4 + $0xd2c] ss:$16 sps:$4 sm:$0xff]   ;;  %v13803_v60 = vld [vmem:[%s14879_s4 + $0xd20] ss:$16 sps:$4 sm:$0xff]  }
 0x3f3   : > { %8523 = vmatpush1.bf16.msra.mxu1 %v13731_v5  ;;  %v13767_v5 = vld [vmem:[%s14879_s4 + $0xc60] ss:$16 sps:$4 sm:$0xff]   ;;  %v3256_v37 = vpop.permute.xlu1 %3255 }
 0x3f4   : > { %9540 = vmatpush1.bf16.msra.mxu0 %v13734_v36  ;;  %8524 = vmatprep.subr.bf16.mxu1 %v13739_v32  ;;  %v13770_v36 = vld [vmem:[%s14879_s4 + $0xc68] ss:$16 sps:$4 sm:$0xff]   ;;  %v13775_v32 = vld [vmem:[%s14879_s4 + $0xc84] ss:$16 sps:$4 sm:$0xff]  }
 0x3f5   : > { %8486 = vmatmul.mubr.bf16.gmra.mrb[28].mxu1 %v3107_v40  ;;  %9541 = vmatprep.subr.bf16.mxu0 %v13742_v0  ;;  %v3268_v0 = vpop.permute.xlu0 %3267 }
 0x3f6   : > { %9503 = vmatmul.mubr.bf16.gmra.mrb[60].mxu0 %v3107_v40  ;;  %8528 = vmatprep.mubr.bf16.mxu1 %v3398_v20  ;;  %v3264_v40 = vrot.slane %v3256_v37, %v15670_v61  ;;  %v13809_v37 = vld [vmem:[%s14879_s4 + $0xd40] ss:$16 sps:$4 sm:$0xff]  }
 0x3f7   : > { %8525 = vmatpush1.bf16.msra.mxu1 %v13737_v31  ;;  %9545 = vmatprep.mubr.bf16.mxu0 %v3398_v20  ;;  %v3276_v31 = vrot.slane %v3268_v0, %v15670_v61  ;;  %v13782_v20 = vld [vmem:[%s14879_s4 + $0xca8] ss:$16 sps:$4 sm:$0xff]   ;;  %v3280_v41 = vpop.permute.xlu1 %3279 }
 0x3f8   : > { %9542 = vmatpush1.bf16.msra.mxu0 %v13740_v56  ;;  %8526 = vmatprep.subr.bf16.mxu1 %v13745_v46  ;;  %v3404_v56 = vmul.bf16 %v11510_v9, %v18536_v48  ;;  %v13787_v46 = vld [vmem:[%s14879_s4 + $0xcc4] ss:$16 sps:$4 sm:$0xff]  }
 0x3f9   : > { %9543 = vmatprep.subr.bf16.mxu0 %v13748_v26  ;;  %v11511_v7 = vcombine.low %v3264_v40, %v3276_v31  ;;  %v3292_v18 = vpop.permute.xlu0 %3291  ;;  %v3403_v26 = vmul.bf16 %v11510_v9, %v18537_v24  ;;  %v18547_v9 = vld [vmem:[#allocation141_spill] sm:$0xff]  ;;  %v18551_v40 = vld [vmem:[#allocation135_spill] sm:$0xff] }
 0x3fa   : > { %v13817_v48 = vld [vmem:[%s14879_s4 + $0xd64] ss:$16 sps:$4 sm:$0xff]  }
 0x3fb   : > { %8527 = vmatpush1.bf16.msra.mxu1 %v13743_v63  ;;  %v13785_v63 = vld [vmem:[%s14879_s4 + $0xcc0] ss:$16 sps:$4 sm:$0xff]  }
 0x3fc   : > { %9544 = vmatpush1.bf16.msra.mxu0 %v13746_v1  ;;  %8609 = vmatprep.subr.bf16.mxu1 %v13751_v49  ;;  %v3288_v1 = vrot.slane %v3280_v41, %v15670_v61  ;;  %v3300_v49 = vrot.slane %v3292_v18, %v15670_v61  ;;  %v18553_v41 = vld [vmem:[#allocation149_spill] sm:$0xff]  ;;  %v18554_v18 = vld [vmem:[#allocation140_spill] sm:$0xff] }
 0x3fd   : > { %9626 = vmatprep.subr.bf16.mxu0 %v13754_v35  ;;  %v18538_v35 = vld [vmem:[#allocation130_spill] sm:$0xff]  ;;  %v3316_v28 = vpop.permute.xlu0 %3315  ;;  %v18555_v24 = vpack.c.bf16 %v18553_v41, %v18554_v18  ;;  %v18566_v41 = vld [vmem:[#allocation131_spill] sm:$0xff] }
 0x3fe   : > { %8529 = vmatmul.mubr.bf16.vlgmr.msra.gmra.mrb[0].mxu1 %v3397_v2  ;;  %v18540_v39 = vpack.c.bf16 %v18538_v35, %v18539_v55  ;;  %v18556_v35 = vld [vmem:[#allocation117_spill] sm:$0xff]  ;;  %v18557_v55 = vld [vmem:[#allocation142_spill] sm:$0xff] }
 0x3ff   : > { %9546 = vmatmul.mubr.bf16.vlgmr.msra.gmra.mrb[32].mxu0 %v3397_v2  ;;  %8538 = vmatprep.mubr.bf16.mxu1 %v3400_v3  ;;  %v11512_v2 = vcombine.low %v3288_v1, %v3300_v49 }
 0x400   : > { %8610 = vmatpush1.bf16.msra.mxu1 %v13749_v51  ;;  %9555 = vmatprep.mubr.bf16.mxu0 %v3400_v3  ;;  %v3406_v8 = vmul.bf16 %v11511_v7, %v18540_v39  ;;  %v13794_v51 = vld [vmem:[%s14879_s4 + $0xce8] ss:$16 sps:$4 sm:$0xff]   ;;  %v18558_v39 = vpack.c.bf16 %v18556_v35, %v18557_v55  ;;  %v13874_v35 = vld [vmem:[%s14879_s4 + $0xe8c] ss:$16 sps:$4 sm:$0xff]  }
 0x401   : > { %9627 = vmatpush1.bf16.msra.mxu0 %v13752_v34  ;;  %8611 = vmatprep.subr.bf16.mxu1 %v13757_v25  ;;  %v3304_v34 = vpop.permute.xlu1 %3303  ;;  %v18541_v3 = vld [vmem:[#allocation134_spill] sm:$0xff]  ;;  %v18542_v25 = vld [vmem:[#allocation37_spill] sm:$0xff] }
 0x402   : > { %9628 = vmatprep.subr.bf16.mxu0 %v13760_v27  ;;  %v18543_v27 = vpack.c.bf16 %v18541_v3, %v18542_v25  ;;  %v3312_v59 = vrot.slane %v3304_v34, %v15670_v61  ;;  %v13838_v34 = vld [vmem:[%s14879_s4 + $0xdcc] ss:$16 sps:$4 sm:$0xff]   ;;  %v18560_v3 = vld [vmem:[#allocation147_spill] sm:$0xff] }
 0x404   : > { %8612 = vmatpush1.bf16.msra.mxu1 %v13755_v52  ;;  %v3405_v52 = vmul.bf16 %v11511_v7, %v18543_v27  ;;  %v13818_v7 = vld [vmem:[%s14879_s4 + $0xd68] ss:$16 sps:$4 sm:$0xff]  }
 0x405   : > { %9629 = vmatpush1.bf16.msra.mxu0 %v13758_v54  ;;  %8613 = vmatprep.subr.bf16.mxu1 %v13763_v44  ;;  %v3324_v54 = vrot.slane %v3316_v28, %v15670_v61  ;;  %v13800_v44 = vld [vmem:[%s14879_s4 + $0xd08] ss:$16 sps:$4 sm:$0xff]  }
 0x406   : > { %8539 = vmatmul.mubr.bf16.gmra.mrb[4].mxu1 %v3399_v43  ;;  %9630 = vmatprep.subr.bf16.mxu0 %v13766_v23  ;;  %v18544_v23 = vld [vmem:[#allocation138_spill] sm:$0xff] }
 0x407   : > { %9556 = vmatmul.mubr.bf16.gmra.mrb[36].mxu0 %v3399_v43  ;;  %8548 = vmatprep.mubr.bf16.mxu1 %v3402_v62  ;;  %v18546_v29 = vpack.c.bf16 %v18544_v23, %v18545_v16  ;;  %v18559_v28 = vld [vmem:[#allocation102_spill] sm:$0xff]  ;;  %v13841_v23 = vld [vmem:[%s14879_s4 + $0xde4] ss:$16 sps:$4 sm:$0xff]  }
 0x408   : > { %8614 = vmatpush1.bf16.msra.mxu1 %v13761_v4  ;;  %9565 = vmatprep.mubr.bf16.mxu0 %v3402_v62  ;;  %v13805_v4 = vld [vmem:[%s14879_s4 + $0xd24] ss:$16 sps:$4 sm:$0xff]   ;;  %v18561_v25 = vpack.c.bf16 %v18559_v28, %v18560_v3  ;;  %v13880_v28 = vld [vmem:[%s14879_s4 + $0xeac] ss:$16 sps:$4 sm:$0xff]   ;;  %v13875_v3 = vld [vmem:[%s14879_s4 + $0xea0] ss:$16 sps:$4 sm:$0xff]  }
 0x409   : > { %9631 = vmatpush1.bf16.msra.mxu0 %v13764_v21  ;;  %8615 = vmatprep.subr.bf16.mxu1 %v13769_v22  ;;  %v3408_v43 = vmul.bf16 %v11512_v2, %v18546_v29  ;;  %v11513_v21 = vcombine.low %v3312_v59, %v3324_v54  ;;  %v13811_v62 = vld [vmem:[%s14879_s4 + $0xd44] ss:$16 sps:$4 sm:$0xff]   ;;  %v13814_v22 = vld [vmem:[%s14879_s4 + $0xd4c] ss:$16 sps:$4 sm:$0xff]   ;;  %v13836_v59 = vld [vmem:[%s14879_s4 + $0xdc8] ss:$16 sps:$4 sm:$0xff]  }
 0x40a   : > { %9632 = vmatprep.subr.bf16.mxu0 %v13772_v19  ;;  %v3328_v19 = vpop.permute.xlu1 %3327  ;;  %v18562_v54 = vld [vmem:[#allocation104_spill] sm:$0xff] }
 0x40b   : > { %v3336_v0 = vrot.slane %v3328_v19, %v15670_v61  ;;  %v18563_v19 = vld [vmem:[#allocation118_spill] sm:$0xff] }
 0x40c   : > { %8616 = vmatpush1.bf16.msra.mxu1 %v13767_v5  ;;  %v3340_v5 = vpop.permute.xlu0 %3339 }
 0x40d   : > { %9633 = vmatpush1.bf16.msra.mxu0 %v13770_v36  ;;  %8617 = vmatprep.subr.bf16.mxu1 %v13775_v32  ;;  %v18548_v36 = vld [vmem:[#allocation133_spill] sm:$0xff]  ;;  %v3348_v6 = vrot.slane %v3340_v5, %v15670_v61 }
 0x40e   : > { %8549 = vmatmul.mubr.bf16.gmra.mrb[8].mxu1 %v3401_v42  ;;  %9634 = vmatprep.subr.bf16.mxu0 %v13778_v50  ;;  %v18549_v32 = vpack.c.bf16 %v18547_v9, %v18548_v36  ;;  %v13845_v9 = vld [vmem:[%s14879_s4 + $0xe00] ss:$16 sps:$4 sm:$0xff]  }
 0x40f   : > { %9566 = vmatmul.mubr.bf16.gmra.mrb[40].mxu0 %v3401_v42  ;;  %8558 = vmatprep.mubr.bf16.mxu1 %v3404_v56  ;;  %v13812_v42 = vld [vmem:[%s14879_s4 + $0xd48] ss:$16 sps:$4 sm:$0xff]  }
 0x410   : > { %8618 = vmatpush1.bf16.msra.mxu1 %v13773_v45  ;;  %9575 = vmatprep.mubr.bf16.mxu0 %v3404_v56  ;;  %v3407_v50 = vmul.bf16 %v11512_v2, %v18549_v32  ;;  %v18550_v45 = vld [vmem:[#allocation144_spill] sm:$0xff] }
 0x411   : > { %9635 = vmatpush1.bf16.msra.mxu0 %v13776_v47  ;;  %8619 = vmatprep.subr.bf16.mxu1 %v13781_v53  ;;  %v18552_v31 = vpack.c.bf16 %v18550_v45, %v18551_v40  ;;  %v13820_v56 = vld [vmem:[%s14879_s4 + $0xd6c] ss:$16 sps:$4 sm:$0xff]   ;;  %v13815_v53 = vld [vmem:[%s14879_s4 + $0xd60] ss:$16 sps:$4 sm:$0xff]  }
 0x412   : > { %9636 = vmatprep.subr.bf16.mxu0 %v13784_v14  ;;  %v3448_v14 = vpop.permute.xlu1 %3447  ;;  %v13827_v2 = vld [vmem:[%s14879_s4 + $0xda0] ss:$16 sps:$4 sm:$0xff]  }
 0x413   : > { %v3410_v47 = vmul.bf16 %v11513_v21, %v18552_v31  ;;  %v3456_v1 = vrot.slane %v3448_v14, %v15670_v61  ;;  %v13851_v45 = vld [vmem:[%s14879_s4 + $0xe20] ss:$16 sps:$4 sm:$0xff]   ;;  %v13854_v31 = vld [vmem:[%s14879_s4 + $0xe28] ss:$16 sps:$4 sm:$0xff]  }
 0x414   : > { %8620 = vmatpush1.bf16.msra.mxu1 %v13779_v13  ;;  %v11514_v13 = vcombine.low %v3336_v0, %v3348_v6  ;;  %v13853_v6 = vld [vmem:[%s14879_s4 + $0xe24] ss:$16 sps:$4 sm:$0xff]   ;;  %v18565_v14 = vld [vmem:[#allocation126_spill] sm:$0xff] }
 0x415   : > { %9637 = vmatpush1.bf16.msra.mxu0 %v13782_v20  ;;  %8621 = vmatprep.subr.bf16.mxu1 %v13787_v46  ;;  %v13823_v20 = vld [vmem:[%s14879_s4 + $0xd84] ss:$16 sps:$4 sm:$0xff]   ;;  %v13826_v46 = vld [vmem:[%s14879_s4 + $0xd8c] ss:$16 sps:$4 sm:$0xff]  }
 0x416   : > { %8559 = vmatmul.mubr.bf16.gmra.mrb[12].mxu1 %v3403_v26  ;;  %9638 = vmatprep.subr.bf16.mxu0 %v13790_v12  ;;  %v3460_v12 = vpop.permute.xlu0 %3459  ;;  %v3411_v27 = vmul.bf16 %v11514_v13, %v18561_v25 }
 0x417   : > { %9576 = vmatmul.mubr.bf16.gmra.mrb[44].mxu0 %v3403_v26  ;;  %8568 = vmatprep.mubr.bf16.mxu1 %v3406_v8  ;;  %v3409_v26 = vmul.bf16 %v11513_v21, %v18555_v24  ;;  %v3468_v49 = vrot.slane %v3460_v12, %v15670_v61  ;;  %v13860_v12 = vld [vmem:[%s14879_s4 + $0xe48] ss:$16 sps:$4 sm:$0xff]   ;;  %v13865_v24 = vld [vmem:[%s14879_s4 + $0xe64] ss:$16 sps:$4 sm:$0xff]  }
 0x418   : > { %8622 = vmatpush1.bf16.msra.mxu1 %v13785_v63  ;;  %9585 = vmatprep.mubr.bf16.mxu0 %v3406_v8  ;;  %v13821_v63 = vld [vmem:[%s14879_s4 + $0xd80] ss:$16 sps:$4 sm:$0xff]   ;;  %v3412_v8 = vmul.bf16 %v11514_v13, %v18558_v39 }
 0x419   : > { %9639 = vmatpush1.bf16.msra.mxu0 %v13788_v38  ;;  %8623 = vmatprep.subr.bf16.mxu1 %v13793_v30  ;;  %v13824_v38 = vld [vmem:[%s14879_s4 + $0xd88] ss:$16 sps:$4 sm:$0xff]   ;;  %v13829_v30 = vld [vmem:[%s14879_s4 + $0xda4] ss:$16 sps:$4 sm:$0xff]  }
 0x41a   : > { %9640 = vmatprep.subr.bf16.mxu0 %v13796_v58  ;;  %v13832_v58 = vld [vmem:[%s14879_s4 + $0xdac] ss:$16 sps:$4 sm:$0xff]  }
 0x41c   : > { %8624 = vmatpush1.bf16.msra.mxu1 %v13791_v11  ;;  %v3472_v11 = vpop.permute.xlu1 %3471 }
 0x41d   : > { %9641 = vmatpush1.bf16.msra.mxu0 %v13794_v51  ;;  %8625 = vmatprep.subr.bf16.mxu1 %v13799_v33  ;;  %v11515_v51 = vcombine.low %v3456_v1, %v3468_v49  ;;  %v13830_v33 = vld [vmem:[%s14879_s4 + $0xda8] ss:$16 sps:$4 sm:$0xff]   ;;  %v3480_v16 = vrot.slane %v3472_v11, %v15670_v61 }
 0x41e   : > { %8569 = vmatmul.mubr.bf16.gmra.mrb[16].mxu1 %v3405_v52  ;;  %9642 = vmatprep.subr.bf16.mxu0 %v13802_v17  ;;  %v13835_v17 = vld [vmem:[%s14879_s4 + $0xdc4] ss:$16 sps:$4 sm:$0xff]   ;;  %v13866_v49 = vld [vmem:[%s14879_s4 + $0xe68] ss:$16 sps:$4 sm:$0xff]  }
 0x41f   : > { %9586 = vmatmul.mubr.bf16.gmra.mrb[48].mxu0 %v3405_v52  ;;  %8578 = vmatprep.mubr.bf16.mxu1 %v3408_v43  ;;  %v13833_v52 = vld [vmem:[%s14879_s4 + $0xdc0] ss:$16 sps:$4 sm:$0xff]   ;;  %v3685_v5 = vmul.bf16 %v11515_v51, %v18563_v19  ;;  %v13890_v19 = vld [vmem:[%s14879_s4 + $0xee8] ss:$16 sps:$4 sm:$0xff]  }
 0x420   : > { %8626 = vmatpush1.bf16.msra.mxu1 %v13797_v10  ;;  %9595 = vmatprep.mubr.bf16.mxu0 %v3408_v43  ;;  %v3484_v10 = vpop.permute.xlu1 %3483  ;;  %v13844_v43 = vld [vmem:[%s14879_s4 + $0xdec] ss:$16 sps:$4 sm:$0xff]  }
 0x421   : > { %9643 = vmatpush1.bf16.msra.mxu0 %v13800_v44  ;;  %8627 = vmatprep.subr.bf16.mxu1 %v13805_v4  ;;  %v3686_v44 = vmul.bf16 %v11515_v51, %v18562_v54  ;;  %v3492_v29 = vrot.slane %v3484_v10, %v15670_v61  ;;  %v13839_v4 = vld [vmem:[%s14879_s4 + $0xde0] ss:$16 sps:$4 sm:$0xff]   ;;  %v13872_v51 = vld [vmem:[%s14879_s4 + $0xe88] ss:$16 sps:$4 sm:$0xff]   ;;  %v13886_v10 = vld [vmem:[%s14879_s4 + $0xecc] ss:$16 sps:$4 sm:$0xff]  }
 0x422   : > { %9644 = vmatprep.subr.bf16.mxu0 %v13808_v15  ;;  %v13842_v15 = vld [vmem:[%s14879_s4 + $0xde8] ss:$16 sps:$4 sm:$0xff]  }
 0x423   : > { %v11516_v21 = vcombine.low %v3480_v16, %v3492_v29  ;;  %v13881_v16 = vld [vmem:[%s14879_s4 + $0xec0] ss:$16 sps:$4 sm:$0xff]  }
 0x424   : > { %8628 = vmatpush1.bf16.msra.mxu1 %v13803_v60  ;;  %v13847_v60 = vld [vmem:[%s14879_s4 + $0xe04] ss:$16 sps:$4 sm:$0xff]  }
 0x425   : > { %9645 = vmatpush1.bf16.msra.mxu0 %v13806_v57  ;;  %8629 = vmatprep.subr.bf16.mxu1 %v13811_v62  ;;  %v13850_v57 = vld [vmem:[%s14879_s4 + $0xe0c] ss:$16 sps:$4 sm:$0xff]   ;;  %v3508_v62 = vpop.permute.xlu1 %3507  ;;  %v3687_v13 = vmul.bf16 %v11516_v21, %v18565_v14  ;;  %v13902_v14 = vld [vmem:[%s14879_s4 + $0xf28] ss:$16 sps:$4 sm:$0xff]  }
 0x426   : > { %8579 = vmatmul.mubr.bf16.gmra.mrb[20].mxu1 %v3407_v50  ;;  %9646 = vmatprep.subr.bf16.mxu0 %v13814_v22  ;;  %v3496_v22 = vpop.permute.xlu0 %3495  ;;  %v3516_v36 = vrot.slane %v3508_v62, %v15670_v61  ;;  %v13887_v62 = vld [vmem:[%s14879_s4 + $0xee0] ss:$16 sps:$4 sm:$0xff]  }
 0x427   : > { %9596 = vmatmul.mubr.bf16.gmra.mrb[52].mxu0 %v3407_v50  ;;  %8588 = vmatprep.mubr.bf16.mxu1 %v3410_v47  ;;  %v3504_v32 = vrot.slane %v3496_v22, %v15670_v61  ;;  %v13848_v50 = vld [vmem:[%s14879_s4 + $0xe08] ss:$16 sps:$4 sm:$0xff]  }
 0x428   : > { %8630 = vmatpush1.bf16.msra.mxu1 %v13809_v37  ;;  %9605 = vmatprep.mubr.bf16.mxu0 %v3410_v47  ;;  %v18564_v37 = vld [vmem:[#allocation122_spill] sm:$0xff]  ;;  %v13859_v47 = vld [vmem:[%s14879_s4 + $0xe44] ss:$16 sps:$4 sm:$0xff]  }
 0x429   : > { %9647 = vmatpush1.bf16.msra.mxu0 %v13812_v42  ;;  %8631 = vmatprep.subr.bf16.mxu1 %v13817_v48  ;;  %v3688_v0 = vmul.bf16 %v11516_v21, %v18564_v37  ;;  %v13856_v42 = vld [vmem:[%s14879_s4 + $0xe2c] ss:$16 sps:$4 sm:$0xff]   ;;  %v11517_v40 = vcombine.low %v3504_v32, %v3516_v36  ;;  %v13889_v21 = vld [vmem:[%s14879_s4 + $0xee4] ss:$16 sps:$4 sm:$0xff]  }
 0x42a   : > { %9648 = vmatprep.subr.bf16.mxu0 %v13820_v56  ;;  %v13862_v48 = vld [vmem:[%s14879_s4 + $0xe4c] ss:$16 sps:$4 sm:$0xff]   ;;  %v3532_v56 = vpop.permute.xlu1 %3531 }
 0x42b   : > { %v3690_v18 = vmul.bf16 %v11517_v40, %v18566_v41 }
 0x42c   : > { %8632 = vmatpush1.bf16.msra.mxu1 %v13815_v53  ;;  %v3520_v53 = vpop.permute.xlu0 %3519 }
 0x42d   : > { %9649 = vmatpush1.bf16.msra.mxu0 %v13818_v7  ;;  %8633 = vmatprep.subr.bf16.mxu1 %v13823_v20  ;;  %v13857_v7 = vld [vmem:[%s14879_s4 + $0xe40] ss:$16 sps:$4 sm:$0xff]   ;;  %v3540_v20 = vrot.slane %v3532_v56, %v15670_v61 }
 0x42e   : > { %8589 = vmatmul.mubr.bf16.gmra.mrb[24].mxu1 %v3409_v26  ;;  %9650 = vmatprep.subr.bf16.mxu0 %v13826_v46  ;;  %v3528_v46 = vrot.slane %v3520_v53, %v15670_v61  ;;  %v3556_v55 = vpop.permute.xlu1 %3555  ;;  %v13899_v56 = vld [vmem:[%s14879_s4 + $0xf20] ss:$16 sps:$4 sm:$0xff]  }
 0x42f   : > { %9606 = vmatmul.mubr.bf16.gmra.mrb[56].mxu0 %v3409_v26  ;;  %8598 = vmatprep.mubr.bf16.mxu1 %v3412_v8  ;;  %v13868_v26 = vld [vmem:[%s14879_s4 + $0xe6c] ss:$16 sps:$4 sm:$0xff]   ;;  %v3564_v11 = vrot.slane %v3556_v55, %v15670_v61  ;;  %v13911_v55 = vld [vmem:[%s14879_s4 + $0xf60] ss:$16 sps:$4 sm:$0xff]  }
 0x430   : > { %8634 = vmatpush1.bf16.msra.mxu1 %v13821_v63  ;;  %9615 = vmatprep.mubr.bf16.mxu0 %v3412_v8  ;;  %v13863_v63 = vld [vmem:[%s14879_s4 + $0xe60] ss:$16 sps:$4 sm:$0xff]   ;;  %v11518_v1 = vcombine.low %v3528_v46, %v3540_v20  ;;  %v3544_v39 = vpop.permute.xlu0 %3543 }
 0x431   : > { %9651 = vmatpush1.bf16.msra.mxu0 %v13824_v38  ;;  %8635 = vmatprep.subr.bf16.mxu1 %v13829_v30  ;;  %v13871_v38 = vld [vmem:[%s14879_s4 + $0xe84] ss:$16 sps:$4 sm:$0xff]  }
 0x432   : > { %9652 = vmatprep.subr.bf16.mxu0 %v13832_v58  ;;  %v18567_v8 = vld [vmem:[#allocation145_spill] sm:$0xff] }
 0x433   : > { %v3689_v30 = vmul.bf16 %v11517_v40, %v18567_v8  ;;  %v13869_v58 = vld [vmem:[%s14879_s4 + $0xe80] ss:$16 sps:$4 sm:$0xff]   ;;  %v13914_v8 = vld [vmem:[%s14879_s4 + $0xf68] ss:$16 sps:$4 sm:$0xff]  }
 0x434   : > { %8636 = vmatpush1.bf16.msra.mxu1 %v13827_v2  ;;  %v3552_v2 = vrot.slane %v3544_v39, %v15670_v61  ;;  %v3568_v54 = vpop.permute.xlu0 %3567  ;;  %v18572_v40 = vld [vmem:[#allocation88_spill] sm:$0xff] }
 0x435   : > { %9653 = vmatpush1.bf16.msra.mxu0 %v13830_v33  ;;  %8637 = vmatprep.subr.bf16.mxu1 %v13835_v17  ;;  %v18568_v33 = vld [vmem:[#allocation150_spill] sm:$0xff] }
 0x436   : > { %8599 = vmatmul.mubr.bf16.gmra.mrb[28].mxu1 %v3411_v27  ;;  %9654 = vmatprep.subr.bf16.mxu0 %v13838_v34  ;;  %v3692_v17 = vmul.bf16 %v11518_v1, %v18568_v33  ;;  %v13877_v34 = vld [vmem:[%s14879_s4 + $0xea4] ss:$16 sps:$4 sm:$0xff]   ;;  %v11519_v25 = vcombine.low %v3552_v2, %v3564_v11  ;;  %v13922_v2 = vld [vmem:[%s14879_s4 + $0xf8c] ss:$16 sps:$4 sm:$0xff]  }
 0x437   : > { %9616 = vmatmul.mubr.bf16.gmra.mrb[60].mxu0 %v3411_v27  ;;  %8641 = vmatprep.mubr.bf16.mxu1 %v3686_v44  ;;  %v13878_v27 = vld [vmem:[%s14879_s4 + $0xea8] ss:$16 sps:$4 sm:$0xff]  }
 0x438   : > { %8638 = vmatpush1.bf16.msra.mxu1 %v13833_v52  ;;  %9658 = vmatprep.mubr.bf16.mxu0 %v3686_v44  ;;  %v13883_v52 = vld [vmem:[%s14879_s4 + $0xec4] ss:$16 sps:$4 sm:$0xff]   ;;  %v18569_v44 = vld [vmem:[#allocation76_spill] sm:$0xff]  ;;  %v3592_v32 = vpop.permute.xlu0 %3591 }
 0x439   : > { %9655 = vmatpush1.bf16.msra.mxu0 %v13836_v59  ;;  %8639 = vmatprep.subr.bf16.mxu1 %v13841_v23  ;;  %v3580_v59 = vpop.permute.xlu1 %3579  ;;  %v3691_v23 = vmul.bf16 %v11518_v1, %v18569_v44  ;;  %v18574_v1 = vld [vmem:[#allocation111_spill] sm:$0xff] }
 0x43a   : > { %9656 = vmatprep.subr.bf16.mxu0 %v13844_v43  ;;  %v3588_v29 = vrot.slane %v3580_v59, %v15670_v61  ;;  %v3576_v43 = vrot.slane %v3568_v54, %v15670_v61  ;;  %v13923_v59 = vld [vmem:[%s14879_s4 + $0xfa0] ss:$16 sps:$4 sm:$0xff]   ;;  %v13926_v44 = vld [vmem:[%s14879_s4 + $0xfa8] ss:$16 sps:$4 sm:$0xff]  }
 0x43c   : > { %8640 = vmatpush1.bf16.msra.mxu1 %v13839_v4  ;;  %v13884_v4 = vld [vmem:[%s14879_s4 + $0xec8] ss:$16 sps:$4 sm:$0xff]   ;;  %v11520_v22 = vcombine.low %v3576_v43, %v3588_v29  ;;  %v3616_v46 = vpop.permute.xlu0 %3615 }
 0x43d   : > { %9657 = vmatpush1.bf16.msra.mxu0 %v13842_v15  ;;  %8722 = vmatprep.subr.bf16.mxu1 %v13847_v60  ;;  %v18570_v15 = vld [vmem:[#allocation77_spill] sm:$0xff]  ;;  %v3604_v36 = vpop.permute.xlu1 %3603 }
 0x43e   : > { %9739 = vmatprep.subr.bf16.mxu0 %v13850_v57  ;;  %v3694_v60 = vmul.bf16 %v11519_v25, %v18570_v15  ;;  %v13892_v57 = vld [vmem:[%s14879_s4 + $0xeec] ss:$16 sps:$4 sm:$0xff]  }
 0x43f   : > { %8642 = vmatmul.mubr.bf16.vlgmr.msra.gmra.mrb[0].mxu1 %v3685_v5 }
 0x440   : > { %9659 = vmatmul.mubr.bf16.vlgmr.msra.gmra.mrb[32].mxu0 %v3685_v5  ;;  %8651 = vmatprep.mubr.bf16.mxu1 %v3688_v0  ;;  %v13895_v5 = vld [vmem:[%s14879_s4 + $0xf04] ss:$16 sps:$4 sm:$0xff]   ;;  %v3736_v11 = vpop.permute.xlu0 %3735 }
 0x441   : > { %8723 = vmatpush1.bf16.msra.mxu1 %v13845_v9  ;;  %9668 = vmatprep.mubr.bf16.mxu0 %v3688_v0  ;;  %v13898_v9 = vld [vmem:[%s14879_s4 + $0xf0c] ss:$16 sps:$4 sm:$0xff]   ;;  %v13893_v0 = vld [vmem:[%s14879_s4 + $0xf00] ss:$16 sps:$4 sm:$0xff]   ;;  %v3628_v20 = vpop.permute.xlu1 %3627 }
 0x442   : > { %9740 = vmatpush1.bf16.msra.mxu0 %v13848_v50  ;;  %8724 = vmatprep.subr.bf16.mxu1 %v13853_v6  ;;  %v18571_v50 = vld [vmem:[#allocation35_spill] sm:$0xff]  ;;  %v3612_v6 = vrot.slane %v3604_v36, %v15670_v61 }
 0x443   : > { %9741 = vmatprep.subr.bf16.mxu0 %v13856_v42  ;;  %v3693_v37 = vmul.bf16 %v11519_v25, %v18571_v50  ;;  %v3600_v42 = vrot.slane %v3592_v32, %v15670_v61  ;;  %v18576_v25 = vld [vmem:[#allocation109_spill] sm:$0xff] }
 0x444   : > { %v3772_v43 = vpop.permute.xlu0 %3771  ;;  %v13935_v36 = vld [vmem:[%s14879_s4 + $0xfe0] ss:$16 sps:$4 sm:$0xff]   ;;  %v13938_v32 = vld [vmem:[%s14879_s4 + $0xfe8] ss:$16 sps:$4 sm:$0xff]   ;;  %v13943_v50 = vld [vmem:[%s14879_s4 + $0x1004] ss:$16 sps:$4 sm:$0xff]  }
 0x445   : > { %8725 = vmatpush1.bf16.msra.mxu1 %v13851_v45  ;;  %v13896_v45 = vld [vmem:[%s14879_s4 + $0xf08] ss:$16 sps:$4 sm:$0xff]   ;;  %v11521_v53 = vcombine.low %v3600_v42, %v3612_v6 }
 0x446   : > { %9742 = vmatpush1.bf16.msra.mxu0 %v13854_v31  ;;  %8726 = vmatprep.subr.bf16.mxu1 %v13859_v47  ;;  %v3696_v31 = vmul.bf16 %v11520_v22, %v18572_v40  ;;  %v13901_v47 = vld [vmem:[%s14879_s4 + $0xf24] ss:$16 sps:$4 sm:$0xff]  }
 0x447   : > { %8652 = vmatmul.mubr.bf16.gmra.mrb[4].mxu1 %v3687_v13  ;;  %9743 = vmatprep.subr.bf16.mxu0 %v13862_v48  ;;  %v13904_v48 = vld [vmem:[%s14879_s4 + $0xf2c] ss:$16 sps:$4 sm:$0xff]  }
 0x448   : > { %9669 = vmatmul.mubr.bf16.gmra.mrb[36].mxu0 %v3687_v13  ;;  %8661 = vmatprep.mubr.bf16.mxu1 %v3690_v18  ;;  %v13907_v13 = vld [vmem:[%s14879_s4 + $0xf44] ss:$16 sps:$4 sm:$0xff]   ;;  %v3796_v42 = vpop.permute.xlu0 %3795 }
 0x449   : > { %8727 = vmatpush1.bf16.msra.mxu1 %v13857_v7  ;;  %9678 = vmatprep.mubr.bf16.mxu0 %v3690_v18  ;;  %v13910_v7 = vld [vmem:[%s14879_s4 + $0xf4c] ss:$16 sps:$4 sm:$0xff]   ;;  %v13905_v18 = vld [vmem:[%s14879_s4 + $0xf40] ss:$16 sps:$4 sm:$0xff]  }
 0x44a   : > { %9744 = vmatpush1.bf16.msra.mxu0 %v13860_v12  ;;  %8728 = vmatprep.subr.bf16.mxu1 %v13865_v24  ;;  %v18573_v12 = vld [vmem:[#allocation89_spill] sm:$0xff]  ;;  %v3636_v24 = vrot.slane %v3628_v20, %v15670_v61 }
 0x44b   : > { %9745 = vmatprep.subr.bf16.mxu0 %v13868_v26  ;;  %v3695_v41 = vmul.bf16 %v11520_v22, %v18573_v12  ;;  %v3624_v26 = vrot.slane %v3616_v46, %v15670_v61  ;;  %v13937_v22 = vld [vmem:[%s14879_s4 + $0xfe4] ss:$16 sps:$4 sm:$0xff]   ;;  %v13947_v20 = vld [vmem:[%s14879_s4 + $0x1020] ss:$16 sps:$4 sm:$0xff]   ;;  %v17231_v12 = vld [vmem:[%s14879_s4 + $0x1028] ss:$16 sps:$4 sm:$0xff]  }
 0x44d   : > { %8729 = vmatpush1.bf16.msra.mxu1 %v13863_v63  ;;  %v13908_v63 = vld [vmem:[%s14879_s4 + $0xf48] ss:$16 sps:$4 sm:$0xff]   ;;  %v11522_v39 = vcombine.low %v3624_v26, %v3636_v24  ;;  %v3820_v24 = vpop.permute.xlu0 %3819  ;;  %v17236_v26 = vld [vmem:[%s14879_s4 + $0x104c] ss:$16 sps:$4 sm:$0xff]  }
 0x44e   : > { %9746 = vmatpush1.bf16.msra.mxu0 %v13866_v49  ;;  %8730 = vmatprep.subr.bf16.mxu1 %v13871_v38  ;;  %v3698_v49 = vmul.bf16 %v11521_v53, %v18574_v1  ;;  %v13913_v38 = vld [vmem:[%s14879_s4 + $0xf64] ss:$16 sps:$4 sm:$0xff]  }
 0x44f   : > { %8662 = vmatmul.mubr.bf16.gmra.mrb[8].mxu1 %v3689_v30  ;;  %9747 = vmatprep.subr.bf16.mxu0 %v13874_v35  ;;  %v13916_v35 = vld [vmem:[%s14879_s4 + $0xf6c] ss:$16 sps:$4 sm:$0xff]  }
 0x450   : > { %9679 = vmatmul.mubr.bf16.gmra.mrb[40].mxu0 %v3689_v30  ;;  %8671 = vmatprep.mubr.bf16.mxu1 %v3692_v17  ;;  %v13919_v30 = vld [vmem:[%s14879_s4 + $0xf84] ss:$16 sps:$4 sm:$0xff]  }
 0x451   : > { %8731 = vmatpush1.bf16.msra.mxu1 %v13869_v58  ;;  %9688 = vmatprep.mubr.bf16.mxu0 %v3692_v17  ;;  %v3748_v58 = vpop.permute.xlu1 %3747  ;;  %v13917_v17 = vld [vmem:[%s14879_s4 + $0xf80] ss:$16 sps:$4 sm:$0xff]  }
 0x452   : > { %9748 = vmatpush1.bf16.msra.mxu0 %v13872_v51  ;;  %8732 = vmatprep.subr.bf16.mxu1 %v13877_v34  ;;  %v18575_v51 = vld [vmem:[#allocation101_spill] sm:$0xff]  ;;  %v3756_v34 = vrot.slane %v3748_v58, %v15670_v61  ;;  %v17250_v58 = vld [vmem:[%s14879_s4 + $0x106c] ss:$16 sps:$4 sm:$0xff]  }
 0x453   : > { %9749 = vmatprep.subr.bf16.mxu0 %v13880_v28  ;;  %v3697_v33 = vmul.bf16 %v11521_v53, %v18575_v51  ;;  %v3744_v28 = vrot.slane %v3736_v11, %v15670_v61  ;;  %v18580_v53 = vld [vmem:[#allocation84_spill] sm:$0xff] }
 0x454   : > { %v13959_v11 = vld [vmem:[%s14879_s4 + $0x1060] ss:$16 sps:$4 sm:$0xff]   ;;  %v17255_v51 = vld [vmem:[%s14879_s4 + $0x1068] ss:$16 sps:$4 sm:$0xff]  }
 0x455   : > { %8733 = vmatpush1.bf16.msra.mxu1 %v13875_v3  ;;  %v13920_v3 = vld [vmem:[%s14879_s4 + $0xf88] ss:$16 sps:$4 sm:$0xff]   ;;  %v11523_v54 = vcombine.low %v3744_v28, %v3756_v34  ;;  %v3760_v29 = vpop.permute.xlu1 %3759  ;;  %v3844_v34 = vpop.permute.xlu0 %3843  ;;  %v17260_v28 = vld [vmem:[%s14879_s4 + $0x108c] ss:$16 sps:$4 sm:$0xff]  }
 0x456   : > { %9750 = vmatpush1.bf16.msra.mxu0 %v13878_v27  ;;  %8734 = vmatprep.subr.bf16.mxu1 %v13883_v52  ;;  %v3700_v27 = vmul.bf16 %v11522_v39, %v18576_v25  ;;  %v13925_v52 = vld [vmem:[%s14879_s4 + $0xfa4] ss:$16 sps:$4 sm:$0xff]  }
 0x457   : > { %8672 = vmatmul.mubr.bf16.gmra.mrb[12].mxu1 %v3691_v23  ;;  %9751 = vmatprep.subr.bf16.mxu0 %v13886_v10  ;;  %v13928_v10 = vld [vmem:[%s14879_s4 + $0xfac] ss:$16 sps:$4 sm:$0xff]  }
 0x458   : > { %9689 = vmatmul.mubr.bf16.gmra.mrb[44].mxu0 %v3691_v23  ;;  %8681 = vmatprep.mubr.bf16.mxu1 %v3694_v60  ;;  %v13931_v23 = vld [vmem:[%s14879_s4 + $0xfc4] ss:$16 sps:$4 sm:$0xff]  }
 0x459   : > { %8735 = vmatpush1.bf16.msra.mxu1 %v13881_v16  ;;  %9698 = vmatprep.mubr.bf16.mxu0 %v3694_v60  ;;  %v13934_v16 = vld [vmem:[%s14879_s4 + $0xfcc] ss:$16 sps:$4 sm:$0xff]   ;;  %v13929_v60 = vld [vmem:[%s14879_s4 + $0xfc0] ss:$16 sps:$4 sm:$0xff]   ;;  %v3784_v6 = vpop.permute.xlu1 %3783 }
 0x45a   : > { %9752 = vmatpush1.bf16.msra.mxu0 %v13884_v4  ;;  %8736 = vmatprep.subr.bf16.mxu1 %v13889_v21  ;;  %v18577_v4 = vld [vmem:[#allocation110_spill] sm:$0xff] }
 0x45b   : > { %9753 = vmatprep.subr.bf16.mxu0 %v13892_v57  ;;  %v3699_v15 = vmul.bf16 %v11522_v39, %v18577_v4  ;;  %v13932_v21 = vld [vmem:[%s14879_s4 + $0xfc8] ss:$16 sps:$4 sm:$0xff]  }
 0x45c   : > { %v18578_v57 = vld [vmem:[#allocation31_spill] sm:$0xff]  ;;  %v18582_v39 = vld [vmem:[#allocation41_spill] sm:$0xff] }
 0x45d   : > { %8737 = vmatpush1.bf16.msra.mxu1 %v13887_v62  ;;  %v3974_v62 = vmul.bf16 %v11523_v54, %v18578_v57  ;;  %v17279_v4 = vld [vmem:[%s14879_s4 + $0x10a8] ss:$16 sps:$4 sm:$0xff]   ;;  %v17284_v57 = vld [vmem:[%s14879_s4 + $0x10cc] ss:$16 sps:$4 sm:$0xff]  }
 0x45e   : > { %9754 = vmatpush1.bf16.msra.mxu0 %v13890_v19  ;;  %8738 = vmatprep.subr.bf16.mxu1 %v13895_v5  ;;  %v3768_v19 = vrot.slane %v3760_v29, %v15670_v61  ;;  %v3780_v5 = vrot.slane %v3772_v43, %v15670_v61  ;;  %v13971_v29 = vld [vmem:[%s14879_s4 + $0x10a0] ss:$16 sps:$4 sm:$0xff]  }
 0x45f   : > { %8682 = vmatmul.mubr.bf16.gmra.mrb[16].mxu1 %v3693_v37  ;;  %9755 = vmatprep.subr.bf16.mxu0 %v13898_v9  ;;  %v13940_v9 = vld [vmem:[%s14879_s4 + $0xfec] ss:$16 sps:$4 sm:$0xff]  }
 0x460   : > { %9699 = vmatmul.mubr.bf16.gmra.mrb[48].mxu0 %v3693_v37  ;;  %8691 = vmatprep.mubr.bf16.mxu1 %v3696_v31  ;;  %v11524_v37 = vcombine.low %v3768_v19, %v3780_v5  ;;  %v13977_v19 = vld [vmem:[%s14879_s4 + $0x10c0] ss:$16 sps:$4 sm:$0xff]  }
 0x461   : > { %8739 = vmatpush1.bf16.msra.mxu1 %v13893_v0  ;;  %9708 = vmatprep.mubr.bf16.mxu0 %v3696_v31  ;;  %v17213_v0 = vld [vmem:[%s14879_s4 + $0x100c] ss:$16 sps:$4 sm:$0xff]   ;;  %v13941_v31 = vld [vmem:[%s14879_s4 + $0x1000] ss:$16 sps:$4 sm:$0xff]  }
 0x462   : > { %9756 = vmatpush1.bf16.msra.mxu0 %v13896_v45  ;;  %8740 = vmatprep.subr.bf16.mxu1 %v13901_v47  ;;  %v18579_v45 = vld [vmem:[#allocation39_spill] sm:$0xff]  ;;  %v3792_v47 = vrot.slane %v3784_v6, %v15670_v61  ;;  %v17298_v6 = vld [vmem:[%s14879_s4 + $0x10ec] ss:$16 sps:$4 sm:$0xff]  }
 0x463   : > { %9757 = vmatprep.subr.bf16.mxu0 %v13904_v48  ;;  %v3973_v40 = vmul.bf16 %v11523_v54, %v18579_v45  ;;  %v3804_v48 = vrot.slane %v3796_v42, %v15670_v61  ;;  %v18584_v54 = vld [vmem:[#allocation43_spill] sm:$0xff] }
 0x464   : > { %v13983_v42 = vld [vmem:[%s14879_s4 + $0x10e0] ss:$16 sps:$4 sm:$0xff]  }
 0x465   : > { %8741 = vmatpush1.bf16.msra.mxu1 %v13899_v56  ;;  %v17220_v56 = vld [vmem:[%s14879_s4 + $0x1008] ss:$16 sps:$4 sm:$0xff]   ;;  %v11525_v46 = vcombine.low %v3792_v47, %v3804_v48  ;;  %v17308_v47 = vld [vmem:[%s14879_s4 + $0x110c] ss:$16 sps:$4 sm:$0xff]  }
 0x466   : > { %9758 = vmatpush1.bf16.msra.mxu0 %v13902_v14  ;;  %8742 = vmatprep.subr.bf16.mxu1 %v13907_v13  ;;  %v3976_v14 = vmul.bf16 %v11524_v37, %v18580_v53  ;;  %v13949_v13 = vld [vmem:[%s14879_s4 + $0x1024] ss:$16 sps:$4 sm:$0xff]  }
 0x467   : > { %8692 = vmatmul.mubr.bf16.gmra.mrb[20].mxu1 %v3695_v41  ;;  %9759 = vmatprep.subr.bf16.mxu0 %v13910_v7  ;;  %v17226_v7 = vld [vmem:[%s14879_s4 + $0x102c] ss:$16 sps:$4 sm:$0xff]  }
 0x468   : > { %9709 = vmatmul.mubr.bf16.gmra.mrb[52].mxu0 %v3695_v41  ;;  %8701 = vmatprep.mubr.bf16.mxu1 %v3698_v49  ;;  %v13955_v41 = vld [vmem:[%s14879_s4 + $0x1044] ss:$16 sps:$4 sm:$0xff]  }
 0x469   : > { %8743 = vmatpush1.bf16.msra.mxu1 %v13905_v18  ;;  %9718 = vmatprep.mubr.bf16.mxu0 %v3698_v49  ;;  %v3808_v18 = vpop.permute.xlu1 %3807  ;;  %v13953_v49 = vld [vmem:[%s14879_s4 + $0x1040] ss:$16 sps:$4 sm:$0xff]  }
 0x46a   : > { %9760 = vmatpush1.bf16.msra.mxu0 %v13908_v63  ;;  %8744 = vmatprep.subr.bf16.mxu1 %v13913_v38  ;;  %v18581_v63 = vld [vmem:[#allocation32_spill] sm:$0xff]  ;;  %v3816_v38 = vrot.slane %v3808_v18, %v15670_v61 }
 0x46b   : > { %9761 = vmatprep.subr.bf16.mxu0 %v13916_v35  ;;  %v3975_v1 = vmul.bf16 %v11524_v37, %v18581_v63  ;;  %v3828_v35 = vrot.slane %v3820_v24, %v15670_v61  ;;  %v13985_v37 = vld [vmem:[%s14879_s4 + $0x10e4] ss:$16 sps:$4 sm:$0xff]   ;;  %v17316_v18 = vld [vmem:[%s14879_s4 + $0x1108] ss:$16 sps:$4 sm:$0xff]  }
 0x46c   : > { %v18588_v24 = vld [vmem:[#allocation86_spill] sm:$0xff] }
 0x46d   : > { %8745 = vmatpush1.bf16.msra.mxu1 %v13911_v55  ;;  %v17244_v55 = vld [vmem:[%s14879_s4 + $0x1048] ss:$16 sps:$4 sm:$0xff]  }
 0x46e   : > { %9762 = vmatpush1.bf16.msra.mxu0 %v13914_v8  ;;  %8746 = vmatprep.subr.bf16.mxu1 %v13919_v30  ;;  %v3978_v8 = vmul.bf16 %v11525_v46, %v18582_v39  ;;  %v13961_v30 = vld [vmem:[%s14879_s4 + $0x1064] ss:$16 sps:$4 sm:$0xff]  }
 0x46f   : > { %8702 = vmatmul.mubr.bf16.gmra.mrb[24].mxu1 %v3697_v33  ;;  %9763 = vmatprep.subr.bf16.mxu0 %v13922_v2  ;;  %v11526_v2 = vcombine.low %v3816_v38, %v3828_v35  ;;  %v13995_v38 = vld [vmem:[%s14879_s4 + $0x1120] ss:$16 sps:$4 sm:$0xff]  }
 0x470   : > { %9719 = vmatmul.mubr.bf16.gmra.mrb[56].mxu0 %v3697_v33  ;;  %8711 = vmatprep.mubr.bf16.mxu1 %v3700_v27  ;;  %v13967_v33 = vld [vmem:[%s14879_s4 + $0x1084] ss:$16 sps:$4 sm:$0xff]  }
 0x471   : > { %8747 = vmatpush1.bf16.msra.mxu1 %v13917_v17  ;;  %9728 = vmatprep.mubr.bf16.mxu0 %v3700_v27  ;;  %v3832_v17 = vpop.permute.xlu1 %3831  ;;  %v13965_v27 = vld [vmem:[%s14879_s4 + $0x1080] ss:$16 sps:$4 sm:$0xff]  }
 0x472   : > { %9764 = vmatpush1.bf16.msra.mxu0 %v13920_v3  ;;  %8748 = vmatprep.subr.bf16.mxu1 %v13925_v52  ;;  %v18583_v3 = vld [vmem:[#allocation34_spill] sm:$0xff]  ;;  %v3840_v52 = vrot.slane %v3832_v17, %v15670_v61 }
 0x473   : > { %9765 = vmatprep.subr.bf16.mxu0 %v13928_v10  ;;  %v3977_v25 = vmul.bf16 %v11525_v46, %v18583_v3  ;;  %v3852_v10 = vrot.slane %v3844_v34, %v15670_v61  ;;  %v14001_v34 = vld [vmem:[%s14879_s4 + $0x1140] ss:$16 sps:$4 sm:$0xff]  }
 0x475   : > { %8749 = vmatpush1.bf16.msra.mxu1 %v13923_v59  ;;  %v17268_v59 = vld [vmem:[%s14879_s4 + $0x1088] ss:$16 sps:$4 sm:$0xff]   ;;  %v11527_v43 = vcombine.low %v3840_v52, %v3852_v10 }
 0x476   : > { %9766 = vmatpush1.bf16.msra.mxu0 %v13926_v44  ;;  %8750 = vmatprep.subr.bf16.mxu1 %v13931_v23  ;;  %v3980_v44 = vmul.bf16 %v11526_v2, %v18584_v54  ;;  %v13973_v23 = vld [vmem:[%s14879_s4 + $0x10a4] ss:$16 sps:$4 sm:$0xff]   ;;  %v18590_v52 = vld [vmem:[#allocation114_spill] sm:$0xff] }
 0x477   : > { %8712 = vmatmul.mubr.bf16.gmra.mrb[28].mxu1 %v3699_v15  ;;  %9767 = vmatprep.subr.bf16.mxu0 %v13934_v16  ;;  %v17274_v16 = vld [vmem:[%s14879_s4 + $0x10ac] ss:$16 sps:$4 sm:$0xff]   ;;  %v14009_v54 = vld [vmem:[%s14879_s4 + $0x1164] ss:$16 sps:$4 sm:$0xff]  }
 0x478   : > { %9729 = vmatmul.mubr.bf16.gmra.mrb[60].mxu0 %v3699_v15  ;;  %8754 = vmatprep.mubr.bf16.mxu1 %v3974_v62  ;;  %v13979_v15 = vld [vmem:[%s14879_s4 + $0x10c4] ss:$16 sps:$4 sm:$0xff]  }
 0x479   : > { %8751 = vmatpush1.bf16.msra.mxu1 %v13929_v60  ;;  %9771 = vmatprep.mubr.bf16.mxu0 %v3974_v62  ;;  %v3856_v60 = vpop.permute.xlu1 %3855  ;;  %v18585_v62 = vld [vmem:[#allocation67_spill] sm:$0xff] }
 0x47a   : > { %9768 = vmatpush1.bf16.msra.mxu0 %v13932_v21  ;;  %8752 = vmatprep.subr.bf16.mxu1 %v13937_v22  ;;  %v3868_v21 = vpop.permute.xlu0 %3867  ;;  %v3979_v22 = vmul.bf16 %v11526_v2, %v18585_v62  ;;  %v3864_v5 = vrot.slane %v3856_v60, %v15670_v61  ;;  %v17332_v2 = vld [vmem:[%s14879_s4 + $0x114c] ss:$16 sps:$4 sm:$0xff]   ;;  %v14015_v60 = vld [vmem:[%s14879_s4 + $0x1184] ss:$16 sps:$4 sm:$0xff]  }
 0x47b   : > { %9769 = vmatprep.subr.bf16.mxu0 %v13940_v9  ;;  %v3876_v9 = vrot.slane %v3868_v21, %v15670_v61  ;;  %v17356_v62 = vld [vmem:[%s14879_s4 + $0x118c] ss:$16 sps:$4 sm:$0xff]  }
 0x47d   : > { %8753 = vmatpush1.bf16.msra.mxu1 %v13935_v36  ;;  %v17292_v36 = vld [vmem:[%s14879_s4 + $0x10c8] ss:$16 sps:$4 sm:$0xff]   ;;  %v11528_v45 = vcombine.low %v3864_v5, %v3876_v9  ;;  %v3880_v48 = vpop.permute.xlu1 %3879  ;;  %v14013_v5 = vld [vmem:[%s14879_s4 + $0x1180] ss:$16 sps:$4 sm:$0xff]  }
 0x47e   : > { %9770 = vmatpush1.bf16.msra.mxu0 %v13938_v32  ;;  %8835 = vmatprep.subr.bf16.mxu1 %v13943_v50  ;;  %v18586_v32 = vld [vmem:[#allocation74_spill] sm:$0xff]  ;;  %v3892_v53 = vpop.permute.xlu0 %3891  ;;  %v3888_v46 = vrot.slane %v3880_v48, %v15670_v61 }
 0x47f   : > { %9852 = vmatprep.subr.bf16.mxu0 %v17213_v0  ;;  %v3982_v50 = vmul.bf16 %v11527_v43, %v18586_v32  ;;  %v3984_v63 = vmul.bf16 %v11528_v45, %v18588_v24  ;;  %v17370_v48 = vld [vmem:[%s14879_s4 + $0x11ac] ss:$16 sps:$4 sm:$0xff]  }
 0x480   : > { %8755 = vmatmul.mubr.bf16.vlgmr.msra.gmra.mrb[0].mxu1 %v3973_v40  ;;  %v18593_v24 = vld [vmem:[#allocation98_spill] sm:$0xff] }
 0x481   : > { %9772 = vmatmul.mubr.bf16.vlgmr.msra.gmra.mrb[32].mxu0 %v3973_v40  ;;  %8764 = vmatprep.mubr.bf16.mxu1 %v3976_v14  ;;  %v17303_v40 = vld [vmem:[%s14879_s4 + $0x10e8] ss:$16 sps:$4 sm:$0xff]   ;;  %v3904_v39 = vpop.permute.xlu1 %3903 }
 0x482   : > { %8836 = vmatpush1.bf16.msra.mxu1 %v13941_v31  ;;  %9781 = vmatprep.mubr.bf16.mxu0 %v3976_v14  ;;  %v13991_v31 = vld [vmem:[%s14879_s4 + $0x1104] ss:$16 sps:$4 sm:$0xff]   ;;  %v18587_v14 = vld [vmem:[#allocation70_spill] sm:$0xff]  ;;  %v3912_v3 = vrot.slane %v3904_v39, %v15670_v61 }
 0x483   : > { %9853 = vmatpush1.bf16.msra.mxu0 %v17220_v56  ;;  %8837 = vmatprep.subr.bf16.mxu1 %v13949_v13  ;;  %v3981_v13 = vmul.bf16 %v11527_v43, %v18587_v14 }
 0x484   : > { %9854 = vmatprep.subr.bf16.mxu0 %v17226_v7 }
 0x486   : > { %8838 = vmatpush1.bf16.msra.mxu1 %v13947_v20  ;;  %v13989_v20 = vld [vmem:[%s14879_s4 + $0x1100] ss:$16 sps:$4 sm:$0xff]  }
 0x487   : > { %9855 = vmatpush1.bf16.msra.mxu0 %v17231_v12  ;;  %8839 = vmatprep.subr.bf16.mxu1 %v13955_v41  ;;  %v3900_v41 = vrot.slane %v3892_v53, %v15670_v61  ;;  %v14019_v53 = vld [vmem:[%s14879_s4 + $0x11a0] ss:$16 sps:$4 sm:$0xff]  }
 0x488   : > { %8765 = vmatmul.mubr.bf16.gmra.mrb[4].mxu1 %v3975_v1  ;;  %9856 = vmatprep.subr.bf16.mxu0 %v17236_v26 }
 0x489   : > { %9782 = vmatmul.mubr.bf16.gmra.mrb[36].mxu0 %v3975_v1  ;;  %8774 = vmatprep.mubr.bf16.mxu1 %v3978_v8  ;;  %v13997_v1 = vld [vmem:[%s14879_s4 + $0x1124] ss:$16 sps:$4 sm:$0xff]   ;;  %v11529_v35 = vcombine.low %v3888_v46, %v3900_v41  ;;  %v17380_v46 = vld [vmem:[%s14879_s4 + $0x11cc] ss:$16 sps:$4 sm:$0xff]  }
 0x48a   : > { %8840 = vmatpush1.bf16.msra.mxu1 %v13953_v49  ;;  %9791 = vmatprep.mubr.bf16.mxu0 %v3978_v8  ;;  %v17322_v49 = vld [vmem:[%s14879_s4 + $0x112c] ss:$16 sps:$4 sm:$0xff]   ;;  %v17327_v8 = vld [vmem:[%s14879_s4 + $0x1128] ss:$16 sps:$4 sm:$0xff]  }
 0x48b   : > { %9857 = vmatpush1.bf16.msra.mxu0 %v17244_v55  ;;  %8841 = vmatprep.subr.bf16.mxu1 %v13961_v30  ;;  %v14003_v30 = vld [vmem:[%s14879_s4 + $0x1144] ss:$16 sps:$4 sm:$0xff]   ;;  %v3986_v10 = vmul.bf16 %v11529_v35, %v18590_v52 }
 0x48c   : > { %9858 = vmatprep.subr.bf16.mxu0 %v17250_v58 }
 0x48e   : > { %8842 = vmatpush1.bf16.msra.mxu1 %v13959_v11  ;;  %v3916_v11 = vpop.permute.xlu0 %3915 }
 0x48f   : > { %9859 = vmatpush1.bf16.msra.mxu0 %v17255_v51  ;;  %8843 = vmatprep.subr.bf16.mxu1 %v13967_v33  ;;  %v18589_v33 = vld [vmem:[#allocation92_spill] sm:$0xff] }
 0x490   : > { %8775 = vmatmul.mubr.bf16.gmra.mrb[8].mxu1 %v3977_v25  ;;  %9860 = vmatprep.subr.bf16.mxu0 %v17260_v28  ;;  %v3983_v17 = vmul.bf16 %v11528_v45, %v18589_v33 }
 0x491   : > { %9792 = vmatmul.mubr.bf16.gmra.mrb[40].mxu0 %v3977_v25  ;;  %8784 = vmatprep.mubr.bf16.mxu1 %v3980_v44  ;;  %v3924_v25 = vrot.slane %v3916_v11, %v15670_v61 }
 0x492   : > { %8844 = vmatpush1.bf16.msra.mxu1 %v13965_v27  ;;  %9801 = vmatprep.mubr.bf16.mxu0 %v3980_v44  ;;  %v17340_v27 = vld [vmem:[%s14879_s4 + $0x1148] ss:$16 sps:$4 sm:$0xff]   ;;  %v17346_v44 = vld [vmem:[%s14879_s4 + $0x116c] ss:$16 sps:$4 sm:$0xff]   ;;  %v4036_v21 = vpop.permute.xlu0 %4035 }
 0x493   : > { %9861 = vmatpush1.bf16.msra.mxu0 %v17268_v59  ;;  %8845 = vmatprep.subr.bf16.mxu1 %v13973_v23  ;;  %v4024_v23 = vpop.permute.xlu1 %4023  ;;  %v11530_v43 = vcombine.low %v3912_v3, %v3924_v25  ;;  %v4044_v32 = vrot.slane %v4036_v21, %v15670_v61  ;;  %v17399_v3 = vld [vmem:[%s14879_s4 + $0x11e8] ss:$16 sps:$4 sm:$0xff]  }
 0x494   : > { %9862 = vmatprep.subr.bf16.mxu0 %v17274_v16  ;;  %v4032_v9 = vrot.slane %v4024_v23, %v15670_v61 }
 0x496   : > { %8846 = vmatpush1.bf16.msra.mxu1 %v13971_v29  ;;  %v14007_v29 = vld [vmem:[%s14879_s4 + $0x1160] ss:$16 sps:$4 sm:$0xff]   ;;  %v11531_v14 = vcombine.low %v4032_v9, %v4044_v32 }
 0x497   : > { %9863 = vmatpush1.bf16.msra.mxu0 %v17279_v4  ;;  %8847 = vmatprep.subr.bf16.mxu1 %v13979_v15  ;;  %v17351_v15 = vld [vmem:[%s14879_s4 + $0x1168] ss:$16 sps:$4 sm:$0xff]  }
 0x498   : > { %8785 = vmatmul.mubr.bf16.gmra.mrb[12].mxu1 %v3979_v22  ;;  %9864 = vmatprep.subr.bf16.mxu0 %v17284_v57 }
 0x499   : > { %9802 = vmatmul.mubr.bf16.gmra.mrb[44].mxu0 %v3979_v22  ;;  %8794 = vmatprep.mubr.bf16.mxu1 %v3982_v50  ;;  %v18591_v22 = vld [vmem:[#allocation115_spill] sm:$0xff] }
 0x49a   : > { %8848 = vmatpush1.bf16.msra.mxu1 %v13977_v19  ;;  %9811 = vmatprep.mubr.bf16.mxu0 %v3982_v50  ;;  %v3985_v19 = vmul.bf16 %v11529_v35, %v18591_v22  ;;  %v4048_v50 = vpop.permute.xlu1 %4047  ;;  %v18594_v35 = vld [vmem:[#allocation36_spill] sm:$0xff] }
 0x49b   : > { %9865 = vmatpush1.bf16.msra.mxu0 %v17292_v36  ;;  %8849 = vmatprep.subr.bf16.mxu1 %v13985_v37  ;;  %v17364_v37 = vld [vmem:[%s14879_s4 + $0x1188] ss:$16 sps:$4 sm:$0xff]   ;;  %v4262_v39 = vmul.bf16 %v11531_v14, %v18594_v35  ;;  %v4056_v11 = vrot.slane %v4048_v50, %v15670_v61 }
 0x49c   : > { %9866 = vmatprep.subr.bf16.mxu0 %v17298_v6  ;;  %v18602_v35 = vld [vmem:[#allocation132_spill] sm:$0xff] }
 0x49e   : > { %8850 = vmatpush1.bf16.msra.mxu1 %v13983_v42  ;;  %v18592_v42 = vld [vmem:[#allocation73_spill] sm:$0xff]  ;;  %v4060_v41 = vpop.permute.xlu1 %4059 }
 0x49f   : > { %9867 = vmatpush1.bf16.msra.mxu0 %v17303_v40  ;;  %8851 = vmatprep.subr.bf16.mxu1 %v13991_v31  ;;  %v3988_v45 = vmul.bf16 %v11530_v43, %v18592_v42  ;;  %v14021_v31 = vld [vmem:[%s14879_s4 + $0x11a4] ss:$16 sps:$4 sm:$0xff]   ;;  %v4068_v33 = vrot.slane %v4060_v41, %v15670_v61 }
 0x4a0   : > { %8795 = vmatmul.mubr.bf16.gmra.mrb[16].mxu1 %v3981_v13  ;;  %9868 = vmatprep.subr.bf16.mxu0 %v17308_v47  ;;  %v18598_v42 = vld [vmem:[#allocation47_spill] sm:$0xff] }
 0x4a1   : > { %9812 = vmatmul.mubr.bf16.gmra.mrb[48].mxu0 %v3981_v13  ;;  %8804 = vmatprep.mubr.bf16.mxu1 %v3984_v63  ;;  %v17375_v13 = vld [vmem:[%s14879_s4 + $0x11a8] ss:$16 sps:$4 sm:$0xff]   ;;  %v11532_v25 = vcombine.low %v4056_v11, %v4068_v33 }
 0x4a2   : > { %8852 = vmatpush1.bf16.msra.mxu1 %v13989_v20  ;;  %9821 = vmatprep.mubr.bf16.mxu0 %v3984_v63  ;;  %v14027_v20 = vld [vmem:[%s14879_s4 + $0x11c4] ss:$16 sps:$4 sm:$0xff]   ;;  %v3987_v63 = vmul.bf16 %v11530_v43, %v18593_v24  ;;  %v4084_v52 = vpop.permute.xlu1 %4083  ;;  %v18601_v24 = vld [vmem:[#allocation42_spill] sm:$0xff] }
 0x4a3   : > { %9869 = vmatpush1.bf16.msra.mxu0 %v17316_v18  ;;  %8853 = vmatprep.subr.bf16.mxu1 %v13997_v1  ;;  %v14025_v1 = vld [vmem:[%s14879_s4 + $0x11c0] ss:$16 sps:$4 sm:$0xff]  }
 0x4a4   : > { %9870 = vmatprep.subr.bf16.mxu0 %v17322_v49 }
 0x4a6   : > { %8854 = vmatpush1.bf16.msra.mxu1 %v13995_v38  ;;  %v17386_v38 = vld [vmem:[%s14879_s4 + $0x11c8] ss:$16 sps:$4 sm:$0xff]  }
 0x4a7   : > { %9871 = vmatpush1.bf16.msra.mxu0 %v17327_v8  ;;  %8855 = vmatprep.subr.bf16.mxu1 %v14003_v30  ;;  %v14033_v30 = vld [vmem:[%s14879_s4 + $0x11e4] ss:$16 sps:$4 sm:$0xff]  }
 0x4a8   : > { %8805 = vmatmul.mubr.bf16.gmra.mrb[20].mxu1 %v3983_v17  ;;  %9872 = vmatprep.subr.bf16.mxu0 %v17332_v2 }
 0x4a9   : > { %9822 = vmatmul.mubr.bf16.gmra.mrb[52].mxu0 %v3983_v17  ;;  %8814 = vmatprep.mubr.bf16.mxu1 %v3986_v10  ;;  %v17394_v17 = vld [vmem:[%s14879_s4 + $0x11ec] ss:$16 sps:$4 sm:$0xff]  }
 0x4aa   : > { %8856 = vmatpush1.bf16.msra.mxu1 %v14001_v34  ;;  %9831 = vmatprep.mubr.bf16.mxu0 %v3986_v10  ;;  %v14031_v34 = vld [vmem:[%s14879_s4 + $0x11e0] ss:$16 sps:$4 sm:$0xff]   ;;  %v4072_v10 = vpop.permute.xlu0 %4071  ;;  %s650_s4 = scalar_select %p649_p5, %s18613_s22, 1 }
 0x4ab   : > { %9873 = vmatpush1.bf16.msra.mxu0 %v17340_v27  ;;  %8857 = vmatprep.subr.bf16.mxu1 %v14009_v54  ;;  %v18595_v54 = vld [vmem:[#allocation45_spill] sm:$0xff]  ;;  %v4080_v43 = vrot.slane %v4072_v10, %v15670_v61 }
 0x4ac   : > { %9874 = vmatprep.subr.bf16.mxu0 %v17346_v44  ;;  %v4261_v23 = vmul.bf16 %v11531_v14, %v18595_v54 }
 0x4ae   : > { %8858 = vmatpush1.bf16.msra.mxu1 %v14007_v29  ;;  %v4092_v29 = vrot.slane %v4084_v52, %v15670_v61 }
 0x4af   : > { %9875 = vmatpush1.bf16.msra.mxu0 %v17351_v15  ;;  %8859 = vmatprep.subr.bf16.mxu1 %v14015_v60  ;;  %v18596_v60 = vld [vmem:[#allocation112_spill] sm:$0xff] }
 0x4b0   : > { %8815 = vmatmul.mubr.bf16.gmra.mrb[24].mxu1 %v3985_v19  ;;  %9876 = vmatprep.subr.bf16.mxu0 %v17356_v62  ;;  %v4264_v21 = vmul.bf16 %v11532_v25, %v18596_v60  ;;  %v11533_v22 = vcombine.low %v4080_v43, %v4092_v29  ;;  %v18608_v43 = vld [vmem:[#allocation121_spill] sm:$0xff] }
 0x4b1   : > { %9832 = vmatmul.mubr.bf16.gmra.mrb[56].mxu0 %v3985_v19  ;;  %8824 = vmatprep.mubr.bf16.mxu1 %v3988_v45  ;;  %v4108_v19 = vpop.permute.xlu1 %4107 }
 0x4b2   : > { %8860 = vmatpush1.bf16.msra.mxu1 %v14013_v5  ;;  %9841 = vmatprep.mubr.bf16.mxu0 %v3988_v45  ;;  %v4096_v5 = vpop.permute.xlu0 %4095  ;;  %v4116_v32 = vrot.slane %v4108_v19, %v15670_v61  ;;  %v4266_v45 = vmul.bf16 %v11533_v22, %v18598_v42 }
 0x4b3   : > { %9877 = vmatpush1.bf16.msra.mxu0 %v17364_v37  ;;  %8861 = vmatprep.subr.bf16.mxu1 %v14021_v31  ;;  %v4104_v50 = vrot.slane %v4096_v5, %v15670_v61  ;;  %v18599_v31 = vld [vmem:[#allocation40_spill] sm:$0xff] }
 0x4b4   : > { %9878 = vmatprep.subr.bf16.mxu0 %v17370_v48 }
 0x4b6   : > { %8862 = vmatpush1.bf16.msra.mxu1 %v14019_v53  ;;  %v4265_v53 = vmul.bf16 %v11533_v22, %v18599_v31 }
 0x4b7   : > { %9879 = vmatpush1.bf16.msra.mxu0 %v17375_v13  ;;  %8863 = vmatprep.subr.bf16.mxu1 %v14027_v20  ;;  %v18600_v20 = vld [vmem:[#allocation49_spill] sm:$0xff] }
 0x4b8   : > { %8825 = vmatmul.mubr.bf16.gmra.mrb[28].mxu1 %v3987_v63  ;;  %9880 = vmatprep.subr.bf16.mxu0 %v17380_v46 }
 0x4b9   : > { %9842 = vmatmul.mubr.bf16.gmra.mrb[60].mxu0 %v3987_v63  ;;  %8867 = vmatprep.mubr.bf16.mxu1 %v4262_v39 }
 0x4ba   : > { %8864 = vmatpush1.bf16.msra.mxu1 %v14025_v1  ;;  %9884 = vmatprep.mubr.bf16.mxu0 %v4262_v39 }
 0x4bb   : > { %9881 = vmatpush1.bf16.msra.mxu0 %v17386_v38  ;;  %8865 = vmatprep.subr.bf16.mxu1 %v14033_v30  ;;  %v18603_v30 = vld [vmem:[#allocation137_spill] sm:$0xff] }
 0x4bc   : > { %9882 = vmatprep.subr.bf16.mxu0 %v17394_v17 }
 0x4be   : > { %8866 = vmatpush1.bf16.msra.mxu1 %v14031_v34  ;;  %v18604_v34 = vld [vmem:[#allocation139_spill] sm:$0xff] }
 0x4bf   : > { %9883 = vmatpush1.bf16.msra.mxu0 %v17399_v3  ;;  %12218 = vmatprep.subr.bf16.mxu1 %v17213_v0  ;;  %v18597_v0 = vld [vmem:[#allocation38_spill] sm:$0xff] }
 0x4c0   : > { %v4263_v9 = vmul.bf16 %v11532_v25, %v18597_v0 }
 0x4c1   : > { %8868 = vmatmul.mubr.bf16.vlgmr.msra.gmra.mrb[0].mxu1 %v4261_v23 }
 0x4c2   : > { %9885 = vmatmul.mubr.bf16.vlgmr.msra.gmra.mrb[32].mxu0 %v4261_v23  ;;  %8877 = vmatprep.mubr.bf16.mxu1 %v4264_v21 }
 0x4c3   : > { %12234 = vmatpush1.bf16.msra.mxu1 %v17220_v56  ;;  %9894 = vmatprep.mubr.bf16.mxu0 %v4264_v21  ;;  %v11534_v56 = vcombine.low %v4104_v50, %v4116_v32 }
 0x4c4   : > { %12219 = vmatprep.subr.bf16.mxu1 %v17226_v7  ;;  %v4132_v7 = vpop.permute.xlu1 %4131 }
 0x4c5   : > { %v4140_v14 = vrot.slane %v4132_v7, %v15670_v61  ;;  %v4268_v41 = vmul.bf16 %v11534_v56, %v18600_v20  ;;  %v4267_v63 = vmul.bf16 %v11534_v56, %v18601_v24 }
 0x4c7   : > { %12235 = vmatpush1.bf16.msra.mxu1 %v17231_v12  ;;  %v4120_v12 = vpop.permute.xlu0 %4119 }
 0x4c8   : > { %12220 = vmatprep.subr.bf16.mxu1 %v17236_v26  ;;  %v4128_v26 = vrot.slane %v4120_v12, %v15670_v61 }
 0x4c9   : > { %8878 = vmatmul.mubr.bf16.gmra.mrb[4].mxu1 %v4263_v9 }
 0x4ca   : > { %9895 = vmatmul.mubr.bf16.gmra.mrb[36].mxu0 %v4263_v9  ;;  %8887 = vmatprep.mubr.bf16.mxu1 %v4266_v45 }
 0x4cb   : > { %12236 = vmatpush1.bf16.msra.mxu1 %v17244_v55  ;;  %9904 = vmatprep.mubr.bf16.mxu0 %v4266_v45  ;;  %v11535_v55 = vcombine.low %v4128_v26, %v4140_v14 }
 0x4cc   : > { %12221 = vmatprep.subr.bf16.mxu1 %v17250_v58  ;;  %v4156_v58 = vpop.permute.xlu1 %4155 }
 0x4cd   : > { %v4164_v1 = vrot.slane %v4156_v58, %v15670_v61  ;;  %v4270_v39 = vmul.bf16 %v11535_v55, %v18602_v35  ;;  %v4269_v11 = vmul.bf16 %v11535_v55, %v18603_v30 }
 0x4cf   : > { %12237 = vmatpush1.bf16.msra.mxu1 %v17255_v51  ;;  %v4144_v51 = vpop.permute.xlu0 %4143 }
 0x4d0   : > { %12222 = vmatprep.subr.bf16.mxu1 %v17260_v28  ;;  %v4152_v28 = vrot.slane %v4144_v51, %v15670_v61 }
 0x4d1   : > { %8888 = vmatmul.mubr.bf16.gmra.mrb[8].mxu1 %v4265_v53 }
 0x4d2   : > { %9905 = vmatmul.mubr.bf16.gmra.mrb[40].mxu0 %v4265_v53  ;;  %8897 = vmatprep.mubr.bf16.mxu1 %v4268_v41 }
 0x4d3   : > { %12238 = vmatpush1.bf16.msra.mxu1 %v17268_v59  ;;  %9914 = vmatprep.mubr.bf16.mxu0 %v4268_v41  ;;  %v11536_v59 = vcombine.low %v4152_v28, %v4164_v1  ;;  %v18611_v28 = vld [vmem:[#allocation65_spill] sm:$0xff] }
 0x4d4   : > { %12223 = vmatprep.subr.bf16.mxu1 %v17274_v16  ;;  %v4180_v16 = vpop.permute.xlu1 %4179 }
 0x4d5   : > { %v4188_v33 = vrot.slane %v4180_v16, %v15670_v61  ;;  %v4272_v25 = vmul.bf16 %v11536_v59, %v18604_v34 }
 0x4d7   : > { %12239 = vmatpush1.bf16.msra.mxu1 %v17279_v4  ;;  %v4168_v4 = vpop.permute.xlu0 %4167 }
 0x4d8   : > { %12224 = vmatprep.subr.bf16.mxu1 %v17284_v57  ;;  %v4176_v57 = vrot.slane %v4168_v4, %v15670_v61 }
 0x4d9   : > { %8898 = vmatmul.mubr.bf16.gmra.mrb[12].mxu1 %v4267_v63 }
 0x4da   : > { %9915 = vmatmul.mubr.bf16.gmra.mrb[44].mxu0 %v4267_v63  ;;  %8907 = vmatprep.mubr.bf16.mxu1 %v4270_v39 }
 0x4db   : > { %12240 = vmatpush1.bf16.msra.mxu1 %v17292_v36  ;;  %v11537_v36 = vcombine.low %v4176_v57, %v4188_v33  ;;  %v4192_v52 = vpop.permute.xlu0 %4191 }
 0x4dc   : > { %12225 = vmatprep.subr.bf16.mxu1 %v17298_v6  ;;  %v4204_v6 = vpop.permute.xlu1 %4203  ;;  %v4200_v23 = vrot.slane %v4192_v52, %v15670_v61 }
 0x4dd   : > { %v4212_v54 = vrot.slane %v4204_v6, %v15670_v61  ;;  %v18609_v61 = vld [vmem:[#allocation105_spill] sm:$0xff] }
 0x4df   : > { %12241 = vmatpush1.bf16.msra.mxu1 %v17303_v40  ;;  %v18605_v40 = vld [vmem:[#allocation143_spill] sm:$0xff] }
 0x4e0   : > { %12226 = vmatprep.subr.bf16.mxu1 %v17308_v47  ;;  %v4271_v10 = vmul.bf16 %v11536_v59, %v18605_v40  ;;  %v18606_v47 = vld [vmem:[#allocation146_spill] sm:$0xff] }
 0x4e1   : > { %8908 = vmatmul.mubr.bf16.gmra.mrb[16].mxu1 %v4269_v11  ;;  %v4274_v29 = vmul.bf16 %v11537_v36, %v18606_v47 }
 0x4e2   : > { %8917 = vmatprep.mubr.bf16.mxu1 %v4272_v25 }
 0x4e3   : > { %12242 = vmatpush1.bf16.msra.mxu1 %v17316_v18  ;;  %v11538_v18 = vcombine.low %v4200_v23, %v4212_v54 }
 0x4e4   : > { %12227 = vmatprep.subr.bf16.mxu1 %v17322_v49  ;;  %v18607_v49 = vld [vmem:[#allocation151_spill] sm:$0xff] }
 0x4e5   : > { %v4276_v60 = vmul.bf16 %v11538_v18, %v18608_v43 }
 0x4e7   : > { %12243 = vmatpush1.bf16.msra.mxu1 %v17327_v8  ;;  %v4273_v8 = vmul.bf16 %v11537_v36, %v18607_v49 }
 0x4e8   : > { %12228 = vmatprep.subr.bf16.mxu1 %v17332_v2  ;;  %v4275_v2 = vmul.bf16 %v11538_v18, %v18609_v61 }
 0x4e9   : > { %8918 = vmatmul.mubr.bf16.gmra.mrb[20].mxu1 %v4271_v10 }
 0x4ea   : > { %8927 = vmatprep.mubr.bf16.mxu1 %v4274_v29 }
 0x4eb   : > { %12244 = vmatpush1.bf16.msra.mxu1 %v17340_v27  ;;  %v18610_v27 = vld [vmem:[#allocation64_spill] sm:$0xff] }
 0x4ec   : > { %12229 = vmatprep.subr.bf16.mxu1 %v17346_v44  ;;  %v18163_v44 = vsub.s32 2, %v18610_v27 }
 0x4ef   : > { %12245 = vmatpush1.bf16.msra.mxu1 %v17351_v15  ;;  %v5029_v15 = vld [vmem:[%s14886_s3] sm:$0xf]  ;;  %s12172_s3 = sshll.u32 %s650_s4, 8 }
 0x4f0   : > { %12230 = vmatprep.subr.bf16.mxu1 %v17356_v62  ;;  %v18162_v62 = vsub.s32 3, %v18610_v27  ;;  %v17520_v35 = vrot.slane %v5029_v15, %v18611_v28  ;;  %s17611_s10 = scalar_lea.vmem %s18614_s15, %s12172_s3 }
 0x4f1   : > { %8928 = vmatmul.mubr.bf16.gmra.mrb[24].mxu1 %v4273_v8 }
 0x4f2   : > { %8937 = vmatprep.mubr.bf16.mxu1 %v4276_v60 }
 0x4f3   : > { %12246 = vmatpush1.bf16.msra.mxu1 %v17364_v37 }
 0x4f4   : > { %12231 = vmatprep.subr.bf16.mxu1 %v17370_v48  ;;  %v17469_v48 = vrot.slane %v5029_v15, %v18163_v44 }
 0x4f7   : > { %12247 = vmatpush1.bf16.msra.mxu1 %v17375_v13 }
 0x4f8   : > { %12232 = vmatprep.subr.bf16.mxu1 %v17380_v46  ;;  %v17475_v46 = vrot.slane %v5029_v15, %v18162_v62 }
 0x4f9   : > { %8938 = vmatmul.mubr.bf16.gmra.mrb[28].mxu1 %v4275_v2 }
 0x4fa   : > { %9924 = vmatprep.mubr.bf16.mxu1 %v4270_v39  ;;  %v18612_v39 = vld [vmem:[#allocation72_spill] sm:$0xff] }
 0x4fb   : > { %12248 = vmatpush1.bf16.msra.mxu1 %v17386_v38  ;;  %v17523_v59 = vrot.slane %v5029_v15, %v18612_v39 }
 0x4fc   : > { %12233 = vmatprep.subr.bf16.mxu1 %v17394_v17 }
 0x4ff   : > { %12249 = vmatpush1.bf16.msra.mxu1 %v17399_v3 }
 0x502   : > { %9925 = vmatmul.mubr.bf16.vlgmr.msra.gmra.mrb[32].mxu1 %v4269_v11 }
 0x503   : > { %9934 = vmatprep.mubr.bf16.mxu1 %v4272_v25 }
 0x50a   : > { %9935 = vmatmul.mubr.bf16.gmra.mrb[36].mxu1 %v4271_v10 }
 0x50b   : > { %9944 = vmatprep.mubr.bf16.mxu1 %v4274_v29 }
 0x512   : > { %9945 = vmatmul.mubr.bf16.gmra.mrb[40].mxu1 %v4273_v8 }
 0x513   : > { %9954 = vmatprep.mubr.bf16.mxu1 %v4276_v60 }
 0x51a   : > { %9955 = vmatmul.mubr.bf16.gmra.mrb[44].mxu1 %v4275_v2 }
 0x574   : > { %v17465_v37 = vpop.f32.mrb[48].mxu0 }
 0x575   : > { %v17471_v13 = vpop.f32.mrb[49].mxu0 }
 0x576   : > { %v9817_v38 = vpop.f32.mrb[50].mxu0 }
 0x577   : > { %v17478_v17 = vadd.f32 %v9817_v38, %v17469_v48  ;;  %v9819_v3 = vpop.f32.mrb[51].mxu0 }
 0x578   : > { %v17481_v21 = vadd.f32 %v9819_v3, %v17475_v46 }
 0x57c   : > { %v9823_v22 = vpop.f32.mrb[52].mxu0 }
 0x57d   : > { %v17484_v19 = vadd.f32 %v9823_v22, %v17469_v48  ;;  %v9825_v5 = vpop.f32.mrb[53].mxu0 }
 0x57e   : > { %v17487_v0 = vadd.f32 %v9825_v5, %v17475_v46  ;;  %v9827_v9 = vpop.f32.mrb[54].mxu0 }
 0x57f   : > { %v17490_v32 = vadd.f32 %v9827_v9, %v17469_v48  ;;  %v9829_v50 = vpop.f32.mrb[55].mxu0 }
 0x580   : > { %v17493_v42 = vadd.f32 %v9829_v50, %v17475_v46 }
 0x584   : > { %v9833_v45 = vpop.f32.mrb[56].mxu0 }
 0x585   : > { %v17496_v56 = vadd.f32 %v9833_v45, %v17469_v48  ;;  %v9835_v7 = vpop.f32.mrb[57].mxu0 }
 0x586   : > { %v17499_v12 = vadd.f32 %v9835_v7, %v17475_v46  ;;  %v9837_v31 = vpop.f32.mrb[58].mxu0 }
 0x587   : > { %v17502_v53 = vadd.f32 %v9837_v31, %v17469_v48  ;;  %v9839_v14 = vpop.f32.mrb[59].mxu0 }
 0x588   : > { %v17505_v26 = vadd.f32 %v9839_v14, %v17475_v46 }
 0x58c   : > { %v9843_v20 = vpop.f32.mrb[60].mxu0 }
 0x58d   : > { %v17508_v41 = vadd.f32 %v9843_v20, %v17469_v48  ;;  %v9845_v55 = vpop.f32.mrb[61].mxu0 }
 0x58e   : > { %v17511_v58 = vadd.f32 %v9845_v55, %v17475_v46  ;;  %v9847_v51 = vpop.f32.mrb[62].mxu0 }
 0x58f   : > { %v17514_v24 = vadd.f32 %v9847_v51, %v17469_v48  ;;  %v9849_v63 = vpop.f32.mrb[63].mxu0 }
 0x590   : > { %v17517_v1 = vadd.f32 %v9849_v63, %v17475_v46 }
 0x594   : > { %v8869_v16 = vpop.f32.mrb[0].mxu1 }
 0x595   : > { %v12282_v4 = vadd.f32 %v8869_v16, %v17520_v35  ;;  %v9886_v30 = vpop.f32.mrb[32].mxu0  ;;  %v8871_v11 = vpop.f32.mrb[1].mxu1 }
 0x596   : > { %v12314_v33 = vadd.f32 %v9886_v30, %v17469_v48  ;;  %v12283_v57 = vadd.f32 %v8871_v11, %v17523_v59  ;;  %v9888_v34 = vpop.f32.mrb[33].mxu0  ;;  %v8873_v25 = vpop.f32.mrb[2].mxu1 }
 0x597   : > { %v9965_v36 = vmax.f32 %v12282_v4, 0.0  ;;  %v12284_v6 = vadd.f32 %v8873_v25, %v17520_v35  ;;  %v9890_v52 = vpop.f32.mrb[34].mxu0  ;;  %v8875_v40 = vpop.f32.mrb[3].mxu1  ;;  %v12315_v54 = vadd.f32 %v9888_v34, %v17475_v46 }
 0x598   : > { %v9966_v10 = vmax.f32 %v12283_v57, 0.0  ;;  %v12316_v23 = vadd.f32 %v9890_v52, %v17469_v48  ;;  %v12285_v47 = vadd.f32 %v8875_v40, %v17523_v59  ;;  %v9892_v29 = vpop.f32.mrb[35].mxu0  ;;  %v9967_v8 = vmax.f32 %v12314_v33, 0.0 }
 0x599   : > { %v9969_v18 = vmax.f32 %v12284_v6, 0.0  ;;  %v12317_v49 = vadd.f32 %v9892_v29, %v17475_v46  ;;  %v9968_v61 = vmax.f32 %v12315_v54, 0.0 }
 0x59a   : > { %v10061_v43 = vadd.f32 %v9966_v10, %v9965_v36  ;;  %v9970_v60 = vmax.f32 %v12285_v47, 0.0  ;;  %v9971_v15 = vmax.f32 %v12316_v23, 0.0 }
 0x59b   : > { %v9972_v22 = vmax.f32 %v12317_v49, 0.0 }
 0x59c   : > { %v10077_v2 = vadd.f32 %v10061_v43, %v9967_v8  ;;  %v10062_v38 = vadd.f32 %v9970_v60, %v9969_v18  ;;  %v8879_v3 = vpop.f32.mrb[4].mxu1 }
 0x59d   : > { %v12286_v5 = vadd.f32 %v8879_v3, %v17520_v35  ;;  %v9896_v9 = vpop.f32.mrb[36].mxu0  ;;  %v8881_v50 = vpop.f32.mrb[5].mxu1 }
 0x59e   : > { %v10093_v45 = vadd.f32 %v10077_v2, %v9968_v61  ;;  %v10078_v7 = vadd.f32 %v10062_v38, %v9971_v15  ;;  %v12318_v31 = vadd.f32 %v9896_v9, %v17469_v48  ;;  %v12287_v14 = vadd.f32 %v8881_v50, %v17523_v59  ;;  %v9898_v20 = vpop.f32.mrb[37].mxu0  ;;  %v8883_v55 = vpop.f32.mrb[6].mxu1 }
 0x59f   : > { %v9973_v51 = vmax.f32 %v12286_v5, 0.0  ;;  %v12288_v63 = vadd.f32 %v8883_v55, %v17520_v35  ;;  %v9900_v16 = vpop.f32.mrb[38].mxu0  ;;  %v8885_v4 = vpop.f32.mrb[7].mxu1  ;;  %v12319_v33 = vadd.f32 %v9898_v20, %v17475_v46 }
 0x5a0   : > { %v10094_v30 = vadd.f32 %v10078_v7, %v9972_v22  ;;  %v9974_v11 = vmax.f32 %v12287_v14, 0.0  ;;  %v9902_v57 = vpop.f32.mrb[39].mxu0  ;;  %10144 = vadd.xlane.f32.xlu0 %v10093_v45  ;;  %v12320_v25 = vadd.f32 %v9900_v16, %v17469_v48  ;;  %v12289_v36 = vadd.f32 %v8885_v4, %v17523_v59 }
 0x5a1   : > { %v9977_v34 = vmax.f32 %v12288_v63, 0.0  ;;  %v9975_v6 = vmax.f32 %v12318_v31, 0.0  ;;  %v12321_v10 = vadd.f32 %v9902_v57, %v17475_v46  ;;  %v9976_v54 = vmax.f32 %v12319_v33, 0.0 }
 0x5a2   : > { %v10063_v52 = vadd.f32 %v9974_v11, %v9973_v51  ;;  %10146 = vadd.xlane.f32.xlu1 %v10094_v30  ;;  %v9978_v40 = vmax.f32 %v12289_v36, 0.0  ;;  %v9979_v29 = vmax.f32 %v12320_v25, 0.0 }
 0x5a3   : > { %v9980_v3 = vmax.f32 %v12321_v10, 0.0 }
 0x5a4   : > { %v10079_v23 = vadd.f32 %v10063_v52, %v9975_v6  ;;  %v8889_v47 = vpop.f32.mrb[8].mxu1  ;;  %v10064_v18 = vadd.f32 %v9978_v40, %v9977_v34 }
 0x5a5   : > { %v12290_v49 = vadd.f32 %v8889_v47, %v17520_v35  ;;  %v9906_v8 = vpop.f32.mrb[40].mxu0  ;;  %v8891_v43 = vpop.f32.mrb[9].mxu1 }
 0x5a6   : > { %v10095_v60 = vadd.f32 %v10079_v23, %v9976_v54  ;;  %v12322_v61 = vadd.f32 %v9906_v8, %v17469_v48  ;;  %v12291_v2 = vadd.f32 %v8891_v43, %v17523_v59  ;;  %v9908_v15 = vpop.f32.mrb[41].mxu0  ;;  %v8893_v38 = vpop.f32.mrb[10].mxu1  ;;  %v10080_v22 = vadd.f32 %v10064_v18, %v9979_v29 }
 0x5a7   : > { %v9981_v5 = vmax.f32 %v12290_v49, 0.0  ;;  %v12292_v9 = vadd.f32 %v8893_v38, %v17520_v35  ;;  %v9910_v50 = vpop.f32.mrb[42].mxu0  ;;  %v8895_v45 = vpop.f32.mrb[11].mxu1  ;;  %v12323_v31 = vadd.f32 %v9908_v15, %v17475_v46 }
 0x5a8   : > { %v9982_v7 = vmax.f32 %v12291_v2, 0.0  ;;  %v12324_v14 = vadd.f32 %v9910_v50, %v17469_v48  ;;  %v12293_v20 = vadd.f32 %v8895_v45, %v17523_v59  ;;  %v9912_v55 = vpop.f32.mrb[43].mxu0  ;;  %10148 = vadd.xlane.f32.xlu1 %v10095_v60  ;;  %v10096_v51 = vadd.f32 %v10080_v22, %v9980_v3 }
 0x5a9   : > { %v9985_v63 = vmax.f32 %v12292_v9, 0.0  ;;  %v12325_v16 = vadd.f32 %v9912_v55, %v17475_v46  ;;  %v9983_v4 = vmax.f32 %v12322_v61, 0.0  ;;  %v9984_v33 = vmax.f32 %v12323_v31, 0.0 }
 0x5aa   : > { %v10065_v30 = vadd.f32 %v9982_v7, %v9981_v5  ;;  %v9986_v11 = vmax.f32 %v12293_v20, 0.0  ;;  %v9987_v34 = vmax.f32 %v12324_v14, 0.0 }
 0x5ab   : > { %v9988_v6 = vmax.f32 %v12325_v16, 0.0 }
 0x5ac   : > { %v10081_v57 = vadd.f32 %v10065_v30, %v9983_v4  ;;  %v10066_v25 = vadd.f32 %v9986_v11, %v9985_v63  ;;  %v8899_v36 = vpop.f32.mrb[12].mxu1  ;;  %10150 = vadd.xlane.f32.xlu1 %v10096_v51 }
 0x5ad   : > { %v12294_v52 = vadd.f32 %v8899_v36, %v17520_v35  ;;  %v9916_v40 = vpop.f32.mrb[44].mxu0  ;;  %v8901_v10 = vpop.f32.mrb[13].mxu1 }
 0x5ae   : > { %v10097_v54 = vadd.f32 %v10081_v57, %v9984_v33  ;;  %v10082_v23 = vadd.f32 %v10066_v25, %v9987_v34  ;;  %v12326_v47 = vadd.f32 %v9916_v40, %v17469_v48  ;;  %v12295_v29 = vadd.f32 %v8901_v10, %v17523_v59  ;;  %v9918_v18 = vpop.f32.mrb[45].mxu0  ;;  %v8903_v49 = vpop.f32.mrb[14].mxu1 }
 0x5af   : > { %v9989_v8 = vmax.f32 %v12294_v52, 0.0  ;;  %v12296_v43 = vadd.f32 %v8903_v49, %v17520_v35  ;;  %v9920_v60 = vpop.f32.mrb[46].mxu0  ;;  %v8905_v61 = vpop.f32.mrb[15].mxu1  ;;  %v12327_v38 = vadd.f32 %v9918_v18, %v17475_v46 }
 0x5b0   : > { %v10098_v2 = vadd.f32 %v10082_v23, %v9988_v6  ;;  %v9990_v15 = vmax.f32 %v12295_v29, 0.0  ;;  %v9922_v3 = vpop.f32.mrb[47].mxu0  ;;  %10152 = vadd.xlane.f32.xlu1 %v10097_v54  ;;  %v12328_v5 = vadd.f32 %v9920_v60, %v17469_v48  ;;  %v12297_v9 = vadd.f32 %v8905_v61, %v17523_v59 }
 0x5b1   : > { %v9993_v22 = vmax.f32 %v12296_v43, 0.0  ;;  %v9991_v50 = vmax.f32 %v12326_v47, 0.0  ;;  %v12329_v31 = vadd.f32 %v9922_v3, %v17475_v46  ;;  %v9992_v14 = vmax.f32 %v12327_v38, 0.0 }
 0x5b2   : > { %v10067_v45 = vadd.f32 %v9990_v15, %v9989_v8  ;;  %v9994_v7 = vmax.f32 %v12297_v9, 0.0  ;;  %v9995_v51 = vmax.f32 %v12328_v5, 0.0 }
 0x5b3   : > { %v9996_v57 = vmax.f32 %v12329_v31, 0.0 }
 0x5b4   : > { %v10083_v20 = vadd.f32 %v10067_v45, %v9991_v50  ;;  %v8909_v55 = vpop.f32.mrb[16].mxu1  ;;  %10154 = vadd.xlane.f32.xlu1 %v10098_v2  ;;  %v10068_v63 = vadd.f32 %v9994_v7, %v9993_v22 }
 0x5b5   : > { %v12298_v16 = vadd.f32 %v8909_v55, %v17520_v35  ;;  %v8911_v4 = vpop.f32.mrb[17].mxu1 }
 0x5b6   : > { %v10099_v30 = vadd.f32 %v10083_v20, %v9992_v14  ;;  %v12299_v11 = vadd.f32 %v8911_v4, %v17523_v59  ;;  %v8913_v33 = vpop.f32.mrb[18].mxu1  ;;  %v10084_v34 = vadd.f32 %v10068_v63, %v9995_v51 }
 0x5b7   : > { %v9997_v25 = vmax.f32 %v12298_v16, 0.0  ;;  %v12300_v36 = vadd.f32 %v8913_v33, %v17520_v35  ;;  %v8915_v6 = vpop.f32.mrb[19].mxu1 }
 0x5b8   : > { %v9998_v52 = vmax.f32 %v12299_v11, 0.0  ;;  %v12301_v40 = vadd.f32 %v8915_v6, %v17523_v59  ;;  %10156 = vadd.xlane.f32.xlu1 %v10099_v30  ;;  %v10100_v10 = vadd.f32 %v10084_v34, %v9996_v57 }
 0x5b9   : > { %v10001_v54 = vmax.f32 %v12300_v36, 0.0 }
 0x5ba   : > { %v10069_v23 = vadd.f32 %v9998_v52, %v9997_v25  ;;  %v10002_v47 = vmax.f32 %v12301_v40, 0.0 }
 0x5bc   : > { %v10070_v29 = vadd.f32 %v10002_v47, %v10001_v54  ;;  %v8919_v18 = vpop.f32.mrb[20].mxu1  ;;  %10158 = vadd.xlane.f32.xlu1 %v10100_v10 }
 0x5bd   : > { %v12302_v49 = vadd.f32 %v8919_v18, %v17520_v35  ;;  %v8921_v8 = vpop.f32.mrb[21].mxu1 }
 0x5be   : > { %v12303_v43 = vadd.f32 %v8921_v8, %v17523_v59  ;;  %v8923_v60 = vpop.f32.mrb[22].mxu1 }
 0x5bf   : > { %v10005_v61 = vmax.f32 %v12302_v49, 0.0  ;;  %v12304_v2 = vadd.f32 %v8923_v60, %v17520_v35  ;;  %v8925_v15 = vpop.f32.mrb[23].mxu1  ;;  %v12330_v60 = vadd.f32 %v17465_v37, %v17469_v48 }
 0x5c0   : > { %v10006_v38 = vmax.f32 %v12303_v43, 0.0  ;;  %v12305_v3 = vadd.f32 %v8925_v15, %v17523_v59 }
 0x5c1   : > { %v10009_v22 = vmax.f32 %v12304_v2, 0.0  ;;  %v12332_v2 = vadd.f32 %v17471_v13, %v17475_v46 }
 0x5c2   : > { %v10071_v5 = vadd.f32 %v10006_v38, %v10005_v61  ;;  %v10010_v9 = vmax.f32 %v12305_v3, 0.0 }
 0x5c4   : > { %v17565_v50 = vadd.f32 %v10010_v9, %v10009_v22  ;;  %v8929_v45 = vpop.f32.mrb[24].mxu1 }
 0x5c5   : > { %v12306_v7 = vadd.f32 %v8929_v45, %v17520_v35  ;;  %v8931_v31 = vpop.f32.mrb[25].mxu1 }
 0x5c6   : > { %v12307_v14 = vadd.f32 %v8931_v31, %v17523_v59  ;;  %v8933_v20 = vpop.f32.mrb[26].mxu1 }
 0x5c7   : > { %v10013_v55 = vmax.f32 %v12306_v7, 0.0  ;;  %v12308_v51 = vadd.f32 %v8933_v20, %v17520_v35  ;;  %v8935_v63 = vpop.f32.mrb[27].mxu1 }
 0x5c8   : > { %v10014_v16 = vmax.f32 %v12307_v14, 0.0  ;;  %v12309_v4 = vadd.f32 %v8935_v63, %v17523_v59 }
 0x5c9   : > { %v10017_v30 = vmax.f32 %v12308_v51, 0.0 }
 0x5ca   : > { %v17571_v11 = vadd.f32 %v10014_v16, %v10013_v55  ;;  %v10018_v33 = vmax.f32 %v12309_v4, 0.0 }
 0x5cc   : > { %v17573_v57 = vadd.f32 %v10018_v33, %v10017_v30  ;;  %v8939_v34 = vpop.f32.mrb[28].mxu1 }
 0x5cd   : > { %v12310_v25 = vadd.f32 %v8939_v34, %v17520_v35  ;;  %v8941_v36 = vpop.f32.mrb[29].mxu1 }
 0x5ce   : > { %v12311_v6 = vadd.f32 %v8941_v36, %v17523_v59  ;;  %v8943_v52 = vpop.f32.mrb[30].mxu1 }
 0x5cf   : > { %v10021_v40 = vmax.f32 %v12310_v25, 0.0  ;;  %v12312_v10 = vadd.f32 %v8943_v52, %v17520_v35  ;;  %v8945_v54 = vpop.f32.mrb[31].mxu1 }
 0x5d0   : > { %v10022_v47 = vmax.f32 %v12311_v6, 0.0  ;;  %v12313_v18 = vadd.f32 %v8945_v54, %v17523_v59 }
 0x5d1   : > { %v10025_v49 = vmax.f32 %v12312_v10, 0.0 }
 0x5d2   : > { %v17579_v8 = vadd.f32 %v10022_v47, %v10021_v40  ;;  %v10026_v43 = vmax.f32 %v12313_v18, 0.0 }
 0x5d4   : > { %v17583_v61 = vadd.f32 %v10026_v43, %v10025_v49 }
 0x5d5   : > { %v9926_v15 = vpop.f32.mrb[32].mxu1 }
 0x5d6   : > { %v12331_v38 = vadd.f32 %v12330_v60, %v9926_v15  ;;  %v9928_v3 = vpop.f32.mrb[33].mxu1 }
 0x5d7   : > { %v12333_v35 = vadd.f32 %v12332_v2, %v9928_v3  ;;  %v9930_v22 = vpop.f32.mrb[34].mxu1 }
 0x5d8   : > { %v9999_v9 = vmax.f32 %v12331_v38, 0.0  ;;  %v12335_v59 = vadd.f32 %v17478_v17, %v9930_v22  ;;  %v9932_v45 = vpop.f32.mrb[35].mxu1 }
 0x5d9   : > { %v10000_v7 = vmax.f32 %v12333_v35, 0.0  ;;  %v12337_v31 = vadd.f32 %v17481_v21, %v9932_v45 }
 0x5da   : > { %v10085_v14 = vadd.f32 %v10069_v23, %v9999_v9  ;;  %v10003_v20 = vmax.f32 %v12335_v59, 0.0 }
 0x5db   : > { %v10004_v37 = vmax.f32 %v12337_v31, 0.0 }
 0x5dc   : > { %v10101_v48 = vadd.f32 %v10085_v14, %v10000_v7  ;;  %v10086_v55 = vadd.f32 %v10070_v29, %v10003_v20  ;;  %v14042_v14 = vld [vmem:[%s17611_s10 + $0x10] sm:$0xff]   ;;  %v14043_v20 = vld [vmem:[%s17611_s10 + $0x58] sm:$0xff]  }
 0x5dd   : > { %v9936_v51 = vpop.f32.mrb[36].mxu1 }
 0x5de   : > { %v10102_v63 = vadd.f32 %v10086_v55, %v10004_v37  ;;  %v12339_v13 = vadd.f32 %v17484_v19, %v9936_v51  ;;  %v9938_v46 = vpop.f32.mrb[37].mxu1  ;;  %10160 = vadd.xlane.f32.xlu0 %v10101_v48  ;;  %v14044_v37 = vld [vmem:[%s17611_s10 + $0x18] sm:$0xff]   ;;  %v14045_v48 = vld [vmem:[%s17611_s10 + $0x60] sm:$0xff]   ;;  %v14047_v51 = vld [vmem:[%s17611_s10 + $0x68] sm:$0xff]  }
 0x5df   : > { %v12341_v16 = vadd.f32 %v17487_v0, %v9938_v46  ;;  %v9940_v4 = vpop.f32.mrb[38].mxu1  ;;  %v14046_v55 = vld [vmem:[%s17611_s10 + $0x20] sm:$0xff]   ;;  %v14050_v46 = vld [vmem:[%s17611_s10 + $0x30] sm:$0xff]  }
 0x5e0   : > { %v10007_v30 = vmax.f32 %v12339_v13, 0.0  ;;  %v12343_v17 = vadd.f32 %v17490_v32, %v9940_v4  ;;  %v9942_v33 = vpop.f32.mrb[39].mxu1  ;;  %v14049_v13 = vld [vmem:[%s17611_s10 + $0x70] sm:$0xff]   ;;  %v14052_v4 = vld [vmem:[%s17611_s10 + $0x38] sm:$0xff]  }
 0x5e1   : > { %v10008_v34 = vmax.f32 %v12341_v16, 0.0  ;;  %v12345_v21 = vadd.f32 %v17493_v42, %v9942_v33  ;;  %v14051_v16 = vld [vmem:[%s17611_s10 + $0x78] sm:$0xff]  }
 0x5e2   : > { %v10087_v23 = vadd.f32 %v10071_v5, %v10007_v30  ;;  %v10011_v25 = vmax.f32 %v12343_v17, 0.0  ;;  %10162 = vadd.xlane.f32.xlu0 %v10102_v63  ;;  %v14048_v63 = vld [vmem:[%s17611_s10 + $0x28] sm:$0xff]   ;;  %v14053_v30 = vld [vmem:[%s17611_s10 + $0xc0] sm:$0xff]  }
 0x5e3   : > { %v10012_v29 = vmax.f32 %v12345_v21, 0.0  ;;  %v10176_v21 = vld [vmem:[#allocation4] sm:$0xff] }
 0x5e4   : > { %v10103_v36 = vadd.f32 %v10087_v23, %v10008_v34  ;;  %v10088_v6 = vadd.f32 %v17565_v50, %v10011_v25  ;;  %v17638_v25 = vld [vmem:[#allocation4 + $0x8] sm:$0xff] }
 0x5e5   : > { %v9946_v19 = vpop.f32.mrb[40].mxu1 }
 0x5e6   : > { %v10104_v52 = vadd.f32 %v10088_v6, %v10012_v29  ;;  %v12347_v40 = vadd.f32 %v17496_v56, %v9946_v19  ;;  %v9948_v0 = vpop.f32.mrb[41].mxu1  ;;  %10164 = vadd.xlane.f32.xlu0 %v10103_v36  ;;  %v10178_v29 = vld [vmem:[#allocation4 + $0x10] sm:$0xff]  ;;  %v17640_v36 = vld [vmem:[#allocation4 + $0x18] sm:$0xff]  ;;  %v10180_v6 = vld [vmem:[#allocation4 + $0x20] sm:$0xff]  ;;  %v10208_v19 = vunpack.c.l.bf16 %v10176_v21 }
 0x5e7   : > { %v12349_v10 = vadd.f32 %v17499_v12, %v9948_v0  ;;  %v9950_v32 = vpop.f32.mrb[42].mxu1  ;;  %v10182_v0 = vld [vmem:[#allocation4 + $0x30] sm:$0xff] }
 0x5e8   : > { %v10015_v54 = vmax.f32 %v12347_v40, 0.0  ;;  %v12351_v47 = vadd.f32 %v17502_v53, %v9950_v32  ;;  %v9952_v42 = vpop.f32.mrb[43].mxu1  ;;  %v17642_v40 = vld [vmem:[#allocation4 + $0x28] sm:$0xff]  ;;  %v10211_v32 = vunpack.c.h.bf16 %v17638_v25 }
 0x5e9   : > { %v10016_v5 = vmax.f32 %v12349_v10, 0.0  ;;  %v12353_v18 = vadd.f32 %v17505_v26, %v9952_v42  ;;  %v10210_v10 = vunpack.c.l.bf16 %v17638_v25  ;;  %v17646_v42 = vld [vmem:[#allocation4 + $0x38] sm:$0xff] }
 0x5ea   : > { %v10089_v49 = vadd.f32 %v17571_v11, %v10015_v54  ;;  %v10019_v43 = vmax.f32 %v12351_v47, 0.0  ;;  %10166 = vadd.xlane.f32.xlu0 %v10104_v52  ;;  %v10209_v52 = vunpack.c.h.bf16 %v10176_v21  ;;  %v10212_v54 = vunpack.c.l.bf16 %v10178_v29 }
 0x5eb   : > { %v10020_v50 = vmax.f32 %v12353_v18, 0.0  ;;  %v10213_v47 = vunpack.c.h.bf16 %v10178_v29  ;;  %v10214_v18 = vunpack.c.l.bf16 %v17640_v36 }
 0x5ec   : > { %v10105_v60 = vadd.f32 %v10089_v49, %v10016_v5  ;;  %v10090_v56 = vadd.f32 %v17573_v57, %v10019_v43  ;;  %v10184_v5 = vld [vmem:[#allocation4 + $0x40] sm:$0xff]  ;;  %v10215_v49 = vunpack.c.h.bf16 %v17640_v36  ;;  %v10216_v43 = vunpack.c.l.bf16 %v10180_v6 }
 0x5ed   : > { %v9956_v2 = vpop.f32.mrb[44].mxu1 }
 0x5ee   : > { %v10106_v15 = vadd.f32 %v10090_v56, %v10020_v50  ;;  %v12355_v12 = vadd.f32 %v17508_v41, %v9956_v2  ;;  %v9958_v38 = vpop.f32.mrb[45].mxu1  ;;  %10168 = vadd.xlane.f32.xlu0 %v10105_v60  ;;  %v10217_v50 = vunpack.c.h.bf16 %v10180_v6  ;;  %v17650_v60 = vld [vmem:[#allocation4 + $0x48] sm:$0xff]  ;;  %v17652_v56 = vld [vmem:[#allocation4 + $0x50] sm:$0xff]  ;;  %v17694_v6 = vld [vmem:[#allocation4 + $0x80] sm:$0xff] }
 0x5ef   : > { %v12357_v53 = vadd.f32 %v17511_v58, %v9958_v38  ;;  %v9960_v3 = vpop.f32.mrb[46].mxu1  ;;  %v14037_v58 = vld [vmem:[%s17611_s10 + $0x40] sm:$0xff]   ;;  %v10221_v38 = vunpack.c.h.bf16 %v10182_v0  ;;  %v18619_v25 = vunpack.c.h.bf16 %v17694_v6 }
 0x5f0   : > { %v10023_v26 = vmax.f32 %v12355_v12, 0.0  ;;  %v12359_v11 = vadd.f32 %v17514_v24, %v9960_v3  ;;  %v9962_v35 = vpop.f32.mrb[47].mxu1  ;;  %v14038_v24 = vld [vmem:[%s17611_s10] sm:$0xff]   ;;  %12174 = vmatprep.subr.bf16.mxu1 %v14037_v58  ;;  %v10220_v12 = vunpack.c.l.bf16 %v10182_v0  ;;  %v17672_v58 = vld [vmem:[#allocation4 + $0x70] sm:$0xff] }
 0x5f1   : > { %v10024_v22 = vmax.f32 %v12357_v53, 0.0  ;;  %v12361_v9 = vadd.f32 %v17517_v1, %v9962_v35  ;;  %v14039_v1 = vld [vmem:[%s17611_s10 + $0x48] sm:$0xff]   ;;  %12175 = vmatpush3.bf16.msra.mxu1 %v14038_v24  ;;  %v17656_v53 = vld [vmem:[#allocation4 + $0x58] sm:$0xff]  ;;  %v10223_v35 = vunpack.c.h.bf16 %v17646_v42 }
 0x5f2   : > { %v10091_v57 = vadd.f32 %v17579_v8, %v10023_v26  ;;  %v10027_v59 = vmax.f32 %v12359_v11, 0.0  ;;  %10170 = vadd.xlane.f32.xlu0 %v10106_v15  ;;  %v14040_v8 = vld [vmem:[%s17611_s10 + $0x8] sm:$0xff]   ;;  %12176 = vmatprep.subr.bf16.mxu1 %v14039_v1  ;;  %v10219_v15 = vunpack.c.h.bf16 %v17642_v40  ;;  %v17660_v26 = vld [vmem:[#allocation4 + $0x60] sm:$0xff]  ;;  %v17752_v1 = vld [vmem:[#allocation4 + $0xd0] sm:$0xff] }
 0x5f3   : > { %v10028_v45 = vmax.f32 %v12361_v9, 0.0  ;;  %v10225_v9 = vunpack.c.h.bf16 %v10184_v5  ;;  %v17761_v11 = vld [vmem:[#allocation4 + $0xe8] sm:$0xff] }
 0x5f4   : > { %v10107_v41 = vadd.f32 %v10091_v57, %v10024_v22  ;;  %v10092_v7 = vadd.f32 %v17583_v61, %v10027_v59  ;;  %v14041_v61 = vld [vmem:[%s17611_s10 + $0x50] sm:$0xff]   ;;  %v10224_v22 = vunpack.c.l.bf16 %v10184_v5  ;;  %v17664_v57 = vld [vmem:[#allocation4 + $0x68] sm:$0xff] }
 0x5f5   : > { %12177 = vmatpush3.bf16.msra.mxu1 %v14040_v8  ;;  %18615 = vst [vmem:[#allocation51_spill] sm:$0xff] %v17664_v57  ;;  %v10231_v8 = vunpack.c.h.bf16 %v17656_v53 }
 0x5f6   : > { %v10108_v31 = vadd.f32 %v10092_v7, %v10028_v45  ;;  %10172 = vadd.xlane.f32.xlu0 %v10107_v41  ;;  %12178 = vmatprep.subr.bf16.mxu1 %v14041_v61  ;;  %v10227_v41 = vunpack.c.h.bf16 %v17650_v60  ;;  %v10228_v7 = vunpack.c.l.bf16 %v17652_v56  ;;  %v10232_v61 = vunpack.c.l.bf16 %v17660_v26 }
 0x5f9   : > { %12179 = vmatpush3.bf16.msra.mxu1 %v14042_v14 }
 0x5fa   : > { %10174 = vadd.xlane.f32.xlu0 %v10108_v31  ;;  %12180 = vmatprep.subr.bf16.mxu1 %v14043_v20  ;;  %v10229_v31 = vunpack.c.h.bf16 %v17652_v56 }
 0x5fd   : > { %12181 = vmatpush3.bf16.msra.mxu1 %v14044_v37  ;;  %v10233_v37 = vunpack.c.h.bf16 %v17660_v26 }
 0x5fe   : > { %12182 = vmatprep.subr.bf16.mxu1 %v14045_v48 }
 0x601   : > { %12183 = vmatpush3.bf16.msra.mxu1 %v14046_v55  ;;  %v17682_v55 = vld [vmem:[#allocation4 + $0x78] sm:$0xff] }
 0x602   : > { %12184 = vmatprep.subr.bf16.mxu1 %v14047_v51  ;;  %18616 = vst [vmem:[#allocation44_spill] sm:$0xff] %v17682_v55 }
 0x605   : > { %12185 = vmatpush3.bf16.msra.mxu1 %v14048_v63 }
 0x606   : > { %12186 = vmatprep.subr.bf16.mxu1 %v14049_v13  ;;  %v10235_v13 = vunpack.c.h.bf16 %v17664_v57 }
 0x609   : > { %12187 = vmatpush3.bf16.msra.mxu1 %v14050_v46  ;;  %v10236_v46 = vunpack.c.l.bf16 %v17672_v58 }
 0x60a   : > { %12188 = vmatprep.subr.bf16.mxu1 %v14051_v16 }
 0x60d   : > { %12189 = vmatpush3.bf16.msra.mxu1 %v14052_v4 }
 0x60e   : > { %12196 = vmatprep.subr.bf16.mxu1 %v14053_v30 }
 0x62d   : > { %v17666_v59 = vpop.xlane.xlu0 %10144 }
 0x62e   : > { %v10272_v51 = vmul.f32 %v10208_v19, %v17666_v59  ;;  %v10273_v16 = vmul.f32 %v10209_v52, %v17666_v59  ;;  %v10275_v4 = vmul.f32 %v10211_v32, %v17666_v59 }
 0x62f   : > { %v17630_v17 = vpop.xlane.xlu1 %10146 }
 0x630   : > { %v10276_v24 = vmul.f32 %v10212_v54, %v17630_v17  ;;  %v10277_v14 = vmul.f32 %v10213_v47, %v17630_v17  ;;  %v10279_v20 = vmul.f32 %v10215_v49, %v17630_v17  ;;  %v10237_v54 = vunpack.c.h.bf16 %v17672_v58 }
 0x632   : > { %v10336_v0 = vadd.f32 %v10276_v24, %v10272_v51  ;;  %v10349_v5 = vadd.f32 %v10277_v14, %v10273_v16  ;;  %v10375_v49 = vadd.f32 %v10279_v20, %v10275_v4  ;;  %v17715_v16 = vld [vmem:[#allocation4 + $0x98] sm:$0xff] }
 0x635   : > { %v17632_v33 = vpop.xlane.xlu1 %10148 }
 0x636   : > { %v10280_v63 = vmul.f32 %v10216_v43, %v17632_v33  ;;  %v10281_v30 = vmul.f32 %v10217_v50, %v17632_v33  ;;  %v10283_v21 = vmul.f32 %v10219_v15, %v17632_v33  ;;  %v17701_v43 = vld [vmem:[#allocation4 + $0x88] sm:$0xff]  ;;  %v10239_v15 = vunpack.c.h.bf16 %v17682_v55 }
 0x638   : > { %v10337_v50 = vadd.f32 %v10336_v0, %v10280_v63  ;;  %v10376_v24 = vadd.f32 %v10375_v49, %v10283_v21  ;;  %v17724_v49 = vld [vmem:[#allocation4 + $0xa0] sm:$0xff]  ;;  %v10278_v63 = vmul.f32 %v10214_v18, %v17630_v17  ;;  %v18620_v17 = vunpack.c.l.bf16 %v17642_v40 }
 0x639   : > { %v17634_v34 = vpop.xlane.xlu1 %10150 }
 0x63a   : > { %v10284_v19 = vmul.f32 %v10220_v12, %v17634_v34  ;;  %v10285_v52 = vmul.f32 %v10221_v38, %v17634_v34  ;;  %v10287_v32 = vmul.f32 %v10223_v35, %v17634_v34  ;;  %v10350_v12 = vadd.f32 %v10349_v5, %v10281_v30  ;;  %v17710_v38 = vld [vmem:[#allocation4 + $0x90] sm:$0xff] }
 0x63b   : > { %v10282_v36 = vmul.f32 %v18620_v17, %v17632_v33 }
 0x63c   : > { %v10338_v35 = vadd.f32 %v10337_v50, %v10284_v19  ;;  %v10351_v4 = vadd.f32 %v10350_v12, %v10285_v52  ;;  %v10377_v30 = vadd.f32 %v10376_v24, %v10287_v32  ;;  %v10245_v52 = vunpack.c.h.bf16 %v17710_v38 }
 0x63d   : > { %v17636_v23 = vpop.xlane.xlu1 %10152 }
 0x63e   : > { %v10288_v56 = vmul.f32 %v10224_v22, %v17636_v23  ;;  %v10289_v58 = vmul.f32 %v10225_v9, %v17636_v23  ;;  %v10291_v14 = vmul.f32 %v10227_v41, %v17636_v23 }
 0x640   : > { %v10339_v0 = vadd.f32 %v10338_v35, %v10288_v56  ;;  %v10352_v50 = vadd.f32 %v10351_v4, %v10289_v58  ;;  %v10378_v62 = vadd.f32 %v10377_v30, %v10291_v14  ;;  %v17735_v35 = vld [vmem:[#allocation4 + $0xb0] sm:$0xff]  ;;  %v10247_v58 = vunpack.c.h.bf16 %v17715_v16  ;;  %v17740_v4 = vld [vmem:[#allocation4 + $0xb8] sm:$0xff] }
 0x641   : > { %v17658_v3 = vpop.xlane.xlu1 %10154  ;;  %v10248_v14 = vunpack.c.l.bf16 %v17724_v49  ;;  %v10252_v48 = vunpack.c.l.bf16 %v17735_v35  ;;  %v10255_v45 = vunpack.c.h.bf16 %v17740_v4 }
 0x642   : > { %v10292_v51 = vmul.f32 %v10228_v7, %v17658_v3  ;;  %v10293_v21 = vmul.f32 %v10229_v31, %v17658_v3  ;;  %v10295_v5 = vmul.f32 %v10231_v8, %v17658_v3  ;;  %v10244_v7 = vunpack.c.l.bf16 %v17710_v38 }
 0x643   : > { %v10249_v38 = vunpack.c.h.bf16 %v17724_v49  ;;  %v10253_v49 = vunpack.c.h.bf16 %v17735_v35  ;;  %v17763_v35 = vld [vmem:[#allocation4 + $0xf0] sm:$0xff] }
 0x644   : > { %v10340_v12 = vadd.f32 %v10339_v0, %v10292_v51  ;;  %v10353_v44 = vadd.f32 %v10352_v50, %v10293_v21  ;;  %v10379_v51 = vadd.f32 %v10378_v62, %v10295_v5  ;;  %v17744_v0 = vld [vmem:[#allocation4 + $0xc8] sm:$0xff] }
 0x645   : > { %v17692_v29 = vpop.xlane.xlu1 %10156 }
 0x646   : > { %v10296_v19 = vmul.f32 %v10232_v61, %v17692_v29  ;;  %v10297_v24 = vmul.f32 %v10233_v37, %v17692_v29  ;;  %v10299_v56 = vmul.f32 %v10235_v13, %v17692_v29  ;;  %v17733_v61 = vld [vmem:[#allocation4 + $0xa8] sm:$0xff] }
 0x647   : > { %v10251_v21 = vunpack.c.h.bf16 %v17733_v61 }
 0x648   : > { %v10341_v30 = vadd.f32 %v10340_v12, %v10296_v19  ;;  %v10380_v5 = vadd.f32 %v10379_v51, %v10299_v56  ;;  %v17755_v19 = vld [vmem:[#allocation4 + $0xd8] sm:$0xff]  ;;  %v17757_v12 = vld [vmem:[#allocation4 + $0xe0] sm:$0xff]  ;;  %v10261_v51 = vunpack.c.h.bf16 %v17752_v1 }
 0x649   : > { %v17718_v9 = vpop.xlane.xlu1 %10158  ;;  %v10264_v32 = vunpack.c.l.bf16 %v17757_v12  ;;  %v10265_v2 = vunpack.c.h.bf16 %v17757_v12 }
 0x64a   : > { %18617 = vst [vmem:[#allocation53_spill] sm:$0xff] %v17718_v9  ;;  %v10300_v8 = vmul.f32 %v10236_v46, %v17718_v9  ;;  %v10301_v37 = vmul.f32 %v10237_v54, %v17718_v9  ;;  %v10303_v13 = vmul.f32 %v10239_v15, %v17718_v9  ;;  %v10200_v46 = vld [vmem:[#allocation4 + $0xc0] sm:$0xff]  ;;  %v10354_v54 = vadd.f32 %v10353_v44, %v10297_v24 }
 0x64b   : > { %v10256_v47 = vunpack.c.l.bf16 %v10200_v46  ;;  %v10257_v22 = vunpack.c.h.bf16 %v10200_v46  ;;  %v10259_v44 = vunpack.c.h.bf16 %v17744_v0  ;;  %v10260_v24 = vunpack.c.l.bf16 %v17752_v1 }
 0x64c   : > { %v10342_v62 = vadd.f32 %v10341_v30, %v10300_v8  ;;  %v10355_v41 = vadd.f32 %v10354_v54, %v10301_v37  ;;  %v10381_v8 = vadd.f32 %v10380_v5, %v10303_v13  ;;  %v10263_v46 = vunpack.c.h.bf16 %v17755_v19 }
 0x64d   : > { %v10267_v37 = vunpack.c.h.bf16 %v17761_v11  ;;  %v10274_v54 = vmul.f32 %v10210_v10, %v17666_v59  ;;  %v18618_v13 = vunpack.c.l.bf16 %v17694_v6 }
 0x64e   : > { %v10343_v15 = vrot.slane %v10342_v62, 4  ;;  %v10356_v26 = vrot.slane %v10355_v41, 4  ;;  %v10382_v12 = vrot.slane %v10381_v8, 4 }
 0x650   : > { %v10344_v18 = vadd.f32 %v10343_v15, %v10342_v62  ;;  %v10383_v55 = vadd.f32 %v10382_v12, %v10381_v8 }
 0x66b   : > { %v17708_v20 = vpop.xlane.xlu0 %10160 }
 0x66c   : > { %v10304_v39 = vmul.f32 %v18618_v13, %v17708_v20  ;;  %v10305_v10 = vmul.f32 %v18619_v25, %v17708_v20 }
 0x66f   : > { %v17728_v31 = vpop.xlane.xlu0 %10162 }
 0x670   : > { %v10308_v5 = vmul.f32 %v10244_v7, %v17728_v31  ;;  %v10309_v1 = vmul.f32 %v10245_v52, %v17728_v31  ;;  %v10311_v27 = vmul.f32 %v10247_v58, %v17728_v31  ;;  %v18621_v58 = vunpack.c.h.bf16 %v17701_v43 }
 0x672   : > { %v10307_v30 = vmul.f32 %v18621_v58, %v17708_v20  ;;  %v10388_v28 = vadd.f32 %v10308_v5, %v10304_v39  ;;  %v10401_v6 = vadd.f32 %v10309_v1, %v10305_v10  ;;  %v10362_v58 = vadd.f32 %v10278_v63, %v10274_v54 }
 0x673   : > { %v17748_v50 = vpop.xlane.xlu0 %10164 }
 0x674   : > { %v10312_v59 = vmul.f32 %v10248_v14, %v17748_v50  ;;  %v10313_v7 = vmul.f32 %v10249_v38, %v17748_v50  ;;  %v10315_v13 = vmul.f32 %v10251_v21, %v17748_v50  ;;  %v10357_v38 = vadd.f32 %v10356_v26, %v10355_v41 }
 0x675   : > { %v10427_v9 = vadd.f32 %v10311_v27, %v10307_v30  ;;  %v10345_v21 = vrot.slane %v10344_v18, 2  ;;  %v10363_v1 = vadd.f32 %v10362_v58, %v10282_v36 }
 0x676   : > { %v10389_v40 = vadd.f32 %v10388_v28, %v10312_v59  ;;  %v10402_v33 = vadd.f32 %v10401_v6, %v10313_v7  ;;  %v10358_v8 = vrot.slane %v10357_v38, 2  ;;  %v18622_v59 = vunpack.c.l.bf16 %v17646_v42 }
 0x677   : > { %v17767_v56 = vpop.xlane.xlu0 %10166  ;;  %v10428_v39 = vadd.f32 %v10427_v9, %v10315_v13  ;;  %v10346_v36 = vadd.f32 %v10345_v21, %v10344_v18  ;;  %v18627_v18 = vunpack.c.h.bf16 %v17763_v35 }
 0x678   : > { %v10316_v25 = vmul.f32 %v10252_v48, %v17767_v56  ;;  %v10317_v14 = vmul.f32 %v10253_v49, %v17767_v56  ;;  %v10319_v57 = vmul.f32 %v10255_v45, %v17767_v56  ;;  %v17809_v48 = vld [vmem:[#allocation4 + $0xf8] sm:$0xff]  ;;  %v10384_v45 = vrot.slane %v10383_v55, 2 }
 0x679   : > { %v10271_v63 = vunpack.c.h.bf16 %v17809_v48  ;;  %v10286_v7 = vmul.f32 %v18622_v59, %v17634_v34  ;;  %v10359_v13 = vadd.f32 %v10358_v8, %v10357_v38 }
 0x67a   : > { %v10390_v49 = vadd.f32 %v10389_v40, %v10316_v25  ;;  %v10403_v26 = vadd.f32 %v10402_v33, %v10317_v14  ;;  %v10429_v28 = vadd.f32 %v10428_v39, %v10319_v57  ;;  %v10385_v6 = vadd.f32 %v10384_v45, %v10383_v55 }
 0x67b   : > { %v17794_v52 = vpop.xlane.xlu0 %10168  ;;  %v18624_v14 = vunpack.c.l.bf16 %v17701_v43  ;;  %v10364_v58 = vadd.f32 %v10363_v1, %v10286_v7  ;;  %v18632_v1 = vunpack.c.l.bf16 %v17656_v53 }
 0x67c   : > { %v10320_v62 = vmul.f32 %v10256_v47, %v17794_v52  ;;  %v10321_v15 = vmul.f32 %v10257_v22, %v17794_v52  ;;  %v10323_v5 = vmul.f32 %v10259_v44, %v17794_v52 }
 0x67e   : > { %v10391_v47 = vadd.f32 %v10390_v49, %v10320_v62  ;;  %v10404_v12 = vadd.f32 %v10403_v26, %v10321_v15  ;;  %v10430_v54 = vadd.f32 %v10429_v28, %v10323_v5  ;;  %v18628_v62 = vunpack.c.l.bf16 %v17650_v60 }
 0x67f   : > { %v10171_v17 = vpop.xlane.xlu0 %10170  ;;  %v10266_v15 = vunpack.c.l.bf16 %v17761_v11  ;;  %v10347_v49 = vrot.slane %v10346_v36, 1  ;;  %v10360_v26 = vrot.slane %v10359_v13, 1  ;;  %v10386_v60 = vrot.slane %v10385_v6, 1 }
 0x680   : > { %v10324_v41 = vmul.f32 %v10260_v24, %v10171_v17  ;;  %v10325_v27 = vmul.f32 %v10261_v51, %v10171_v17  ;;  %v10327_v30 = vmul.f32 %v10263_v46, %v10171_v17  ;;  %v18623_v24 = vunpack.c.l.bf16 %v17715_v16 }
 0x681   : > { %v18626_v16 = vunpack.c.l.bf16 %v17763_v35  ;;  %v10290_v43 = vmul.f32 %v18628_v62, %v17636_v23 }
 0x682   : > { %v10310_v51 = vmul.f32 %v18623_v24, %v17728_v31  ;;  %v10392_v57 = vadd.f32 %v10391_v47, %v10324_v41  ;;  %v10405_v46 = vadd.f32 %v10404_v12, %v10325_v27  ;;  %v10431_v25 = vadd.f32 %v10430_v54, %v10327_v30 }
 0x683   : > { %v10173_v22 = vpop.xlane.xlu0 %10172  ;;  %v18630_v41 = vunpack.c.l.bf16 %v17744_v0  ;;  %v10365_v28 = vadd.f32 %v10364_v58, %v10290_v43  ;;  %v10270_v30 = vunpack.c.l.bf16 %v17809_v48  ;;  %v10294_v47 = vmul.f32 %v18632_v1, %v17658_v3  ;;  %v14055_v1 = vld [vmem:[%s17611_s10 + $0xc8] sm:$0xff]  }
 0x684   : > { %v10328_v9 = vmul.f32 %v10264_v32, %v10173_v22  ;;  %v10329_v10 = vmul.f32 %v10265_v2, %v10173_v22  ;;  %v10331_v44 = vmul.f32 %v10267_v37, %v10173_v22  ;;  %v10306_v32 = vmul.f32 %v18624_v14, %v17708_v20  ;;  %v18635_v14 = vld [vmem:[#allocation53_spill] sm:$0xff] }
 0x685   : > { %v18625_v2 = vunpack.c.l.bf16 %v17733_v61  ;;  %v18629_v61 = vunpack.c.l.bf16 %v17740_v4  ;;  %v10322_v27 = vmul.f32 %v18630_v41, %v17794_v52  ;;  %v10348_v0 = vadd.f32 %v10347_v49, %v10346_v36 }
 0x686   : > { %v10393_v42 = vadd.f32 %v10392_v57, %v10328_v9  ;;  %v10406_v34 = vadd.f32 %v10405_v46, %v10329_v10  ;;  %v10432_v33 = vadd.f32 %v10431_v25, %v10331_v44  ;;  %v10414_v20 = vadd.f32 %v10310_v51, %v10306_v32  ;;  %v18636_v32 = vld [vmem:[#allocation44_spill] sm:$0xff] }
 0x687   : > { %v10314_v37 = vmul.f32 %v18625_v2, %v17748_v50  ;;  %v10175_v40 = vpop.xlane.xlu0 %10174  ;;  %v10318_v50 = vmul.f32 %v18629_v61, %v17767_v56  ;;  %v18631_v56 = vunpack.c.l.bf16 %v17755_v19  ;;  %v10361_v52 = vadd.f32 %v10360_v26, %v10359_v13  ;;  %v18633_v19 = vld [vmem:[#allocation51_spill] sm:$0xff] }
 0x688   : > { %v10332_v31 = vmul.f32 %v18626_v16, %v10175_v40  ;;  %v10333_v38 = vmul.f32 %v18627_v18, %v10175_v40  ;;  %v10335_v55 = vmul.f32 %v10271_v63, %v10175_v40  ;;  %v10330_v10 = vmul.f32 %v10266_v15, %v10173_v22 }
 0x689   : > { %v10415_v35 = vadd.f32 %v10414_v20, %v10314_v37  ;;  %v10326_v11 = vmul.f32 %v18631_v56, %v10171_v17  ;;  %v10387_v44 = vadd.f32 %v10386_v60, %v10385_v6  ;;  %v18634_v17 = vunpack.c.l.bf16 %v18633_v19  ;;  %v14061_v19 = vld [vmem:[%s17611_s10 + $0xe0] sm:$0xff]  }
 0x68a   : > { %v10394_v21 = vadd.f32 %v10393_v42, %v10332_v31  ;;  %v10407_v39 = vadd.f32 %v10406_v34, %v10333_v38  ;;  %v10433_v5 = vadd.f32 %v10432_v33, %v10335_v55  ;;  %v10334_v57 = vmul.f32 %v10270_v30, %v10175_v40  ;;  %v14054_v30 = vld [vmem:[%s17611_s10 + $0x80] sm:$0xff]  }
 0x68b   : > { %v10416_v4 = vadd.f32 %v10415_v35, %v10318_v50  ;;  %v10298_v51 = vmul.f32 %v18634_v17, %v17692_v29  ;;  %v10366_v46 = vadd.f32 %v10365_v28, %v10294_v47  ;;  %v18637_v36 = vunpack.c.l.bf16 %v18636_v32  ;;  %v14066_v32 = vld [vmem:[%s17611_s10 + $0xb0] sm:$0xff]  }
 0x68c   : > { %v10395_v23 = vrot.slane %v10394_v21, 4  ;;  %v10408_v8 = vrot.slane %v10407_v39, 4  ;;  %v10434_v45 = vrot.slane %v10433_v5, 4  ;;  %v17850_v2 = vmul.f32 0.015625, %v10348_v0  ;;  %v14057_v0 = vld [vmem:[%s17611_s10 + $0xd0] sm:$0xff]  }
 0x68d   : > { %v10417_v9 = vadd.f32 %v10416_v4, %v10322_v27  ;;  %v10302_v13 = vmul.f32 %v18637_v36, %v18635_v14  ;;  %v17852_v6 = vmul.f32 0.015625, %v10361_v52  ;;  %v17854_v33 = vmul.f32 0.015625, %v10387_v44  ;;  %v14059_v44 = vld [vmem:[%s17611_s10 + $0xd8] sm:$0xff]  }
 0x68e   : > { %v10396_v12 = vadd.f32 %v10395_v23, %v10394_v21  ;;  %v10409_v63 = vadd.f32 %v10408_v8, %v10407_v39  ;;  %v10435_v54 = vadd.f32 %v10434_v45, %v10433_v5  ;;  %v10367_v29 = vadd.f32 %v10366_v46, %v10298_v51 }
 0x68f   : > { %v10418_v48 = vadd.f32 %v10417_v9, %v10326_v11  ;;  %v10448_v55 = vpack.c.bf16 %v17850_v2, %v17850_v2  ;;  %v10449_v62 = vpack.c.bf16 %v17852_v6, %v17852_v6  ;;  %v10451_v50 = vpack.c.bf16 %v17854_v33, %v17854_v33 }
 0x690   : > { %v10397_v59 = vrot.slane %v10396_v12, 2  ;;  %v10410_v7 = vrot.slane %v10409_v63, 2  ;;  %v10436_v24 = vrot.slane %v10435_v54, 2  ;;  %v10368_v38 = vadd.f32 %v10367_v29, %v10302_v13  ;;  %v14067_v13 = vld [vmem:[%s17611_s10 + $0xf8] sm:$0xff]  }
 0x691   : > { %v10419_v22 = vadd.f32 %v10418_v48, %v10330_v10  ;;  %v10535_v49 = vunpack.c.l.b16 %v10448_v55  ;;  %v10536_v26 = vunpack.c.l.b16 %v10449_v62  ;;  %v10538_v27 = vunpack.c.l.b16 %v10451_v50  ;;  %v14058_v10 = vld [vmem:[%s17611_s10 + $0x90] sm:$0xff]   ;;  %v14062_v48 = vld [vmem:[%s17611_s10 + $0xa0] sm:$0xff]   ;;  %v14077_v55 = vld [vmem:[%s14894_s6 + $0xc] ss:$16 sps:$4 sm:$0xff]  }
 0x692   : > { %v10398_v53 = vadd.f32 %v10397_v59, %v10396_v12  ;;  %v10411_v3 = vadd.f32 %v10410_v7, %v10409_v63  ;;  %v10437_v25 = vadd.f32 %v10436_v24, %v10435_v54  ;;  %v10369_v5 = vrot.slane %v10368_v38, 4  ;;  %v14056_v54 = vld [vmem:[%s17611_s10 + $0x88] sm:$0xff]   ;;  %v14060_v24 = vld [vmem:[%s17611_s10 + $0x98] sm:$0xff]  }
 0x693   : > { %v10420_v40 = vadd.f32 %v10419_v22, %v10334_v57  ;;  %v14063_v57 = vld [vmem:[%s17611_s10 + $0xe8] sm:$0xff]  }
 0x694   : > { %v10399_v37 = vrot.slane %v10398_v53, 1  ;;  %v10412_v42 = vrot.slane %v10411_v3, 1  ;;  %v10438_v34 = vrot.slane %v10437_v25, 1  ;;  %v10370_v4 = vadd.f32 %v10369_v5, %v10368_v38  ;;  %v14072_v38 = vld [vmem:[%s14894_s6 + $0x20] ss:$16 sps:$4 sm:$0xff]  }
 0x695   : > { %v10421_v15 = vrot.slane %v10420_v40, 4 }
 0x696   : > { %v10400_v16 = vadd.f32 %v10399_v37, %v10398_v53  ;;  %v10413_v31 = vadd.f32 %v10412_v42, %v10411_v3  ;;  %v10439_v18 = vadd.f32 %v10438_v34, %v10437_v25  ;;  %v10371_v63 = vrot.slane %v10370_v4, 2  ;;  %v14064_v3 = vld [vmem:[%s17611_s10 + $0xa8] sm:$0xff]   ;;  %v14065_v25 = vld [vmem:[%s17611_s10 + $0xf0] sm:$0xff]   ;;  %v14068_v37 = vld [vmem:[%s17611_s10 + $0xb8] sm:$0xff]  }
 0x697   : > { %v10422_v23 = vadd.f32 %v10421_v15, %v10420_v40  ;;  %v18638_v40 = vmov 0  }
 0x698   : > { %v17860_v43 = vmul.f32 0.015625, %v10400_v16  ;;  %v17862_v20 = vmul.f32 0.015625, %v10413_v31  ;;  %v17864_v61 = vmul.f32 0.015625, %v10439_v18  ;;  %v10372_v9 = vadd.f32 %v10371_v63, %v10370_v4  ;;  %v14069_v16 = vld [vmem:[%s14894_s6] ss:$16 sps:$4 sm:$0xff]  }
 0x699   : > { %v10423_v47 = vrot.slane %v10422_v23, 2  ;;  %v14071_v31 = vld [vmem:[%s14894_s6 + $0x4] ss:$16 sps:$4 sm:$0xff]   ;;  %v14078_v4 = vld [vmem:[%s14894_s6 + $0x28] ss:$16 sps:$4 sm:$0xff]  }
 0x69a   : > { %v10452_v58 = vpack.c.bf16 %v17860_v43, %v17860_v43  ;;  %v10453_v21 = vpack.c.bf16 %v17862_v20, %v17862_v20  ;;  %v10455_v39 = vpack.c.bf16 %v17864_v61, %v17864_v61  ;;  %v10373_v7 = vrot.slane %v10372_v9, 1  ;;  %v14074_v18 = vld [vmem:[%s14894_s6 + $0x24] ss:$16 sps:$4 sm:$0xff]  }
 0x69b   : > { %v10424_v52 = vadd.f32 %v10423_v47, %v10422_v23 }
 0x69c   : > { %v10539_v35 = vunpack.c.l.b16 %v10452_v58  ;;  %v10540_v41 = vunpack.c.l.b16 %v10453_v21  ;;  %v10542_v60 = vunpack.c.l.b16 %v10455_v39  ;;  %v10374_v51 = vadd.f32 %v10373_v7, %v10372_v9  ;;  %v12115_v39 = vld [vmem:[%s558_s7] ss:$0 sm:$0xff]  ;;  %s11368_s7 = sshll.u32 %s14866_s25, 3 }
 0x69d   : > { %v10425_v59 = vrot.slane %v10424_v52, 1 }
 0x69e   : > { %v10545_v8 = vsel %vm10543_vm2, %v10540_v41, %v10536_v26  ;;  %v10544_v45 = vsel %vm10543_vm2, %v10539_v35, %v10535_v49  ;;  %v10547_v28 = vsel %vm10543_vm2, %v10542_v60, %v10538_v27  ;;  %v17889_v53 = vmul.f32 0.015625, %v10374_v51 }
 0x69f   : > { %v10549_v56 = vpack.c.b16 %v10545_v8, %v10545_v8  ;;  %v10548_v11 = vpack.c.b16 %v10544_v45, %v10544_v45  ;;  %v10551_v12 = vpack.c.b16 %v10547_v28, %v10547_v28  ;;  %v10426_v17 = vadd.f32 %v10425_v59, %v10424_v52  ;;  %v14075_v8 = vld [vmem:[%s14894_s6 + $0x8] ss:$16 sps:$4 sm:$0xff]   ;;  %v14080_v28 = vld [vmem:[%s14894_s6 + $0x2c] ss:$16 sps:$4 sm:$0xff]   ;;  %v18641_v59 = vld [vmem:[#allocation64_spill] sm:$0xff]  ;;  %s12173_s6 = sshll.u32 %s18613_s22, 7 }
 0x6a0   : > { %v10450_v36 = vpack.c.bf16 %v17889_v53, %v17889_v53  ;;  %v18642_v7 = vsub.s32 2, %v18641_v59  ;;  %s17935_s26 = scalar_lea.hbm %s18644_s20, %s12173_s6  ;;  %s14341_s22 = scalar_lea.vmem %s14340_s0, 256 }
 0x6a1   : > { %10780 = vmatprep.mubr.bf16.mxu1 %v10549_v56  ;;  %v17887_v46 = vmul.f32 0.015625, %v10426_v17  ;;  %v10838_v56 = vld [vmem:[%s14897_s19] sm:$0xf]  ;;  %s646_s19 = scalar_lea.vmem [#allocation18], %s11368_s7 }
 0x6a2   : > { %10781 = vmatmul.mubr.bf16.vlgmr.msra.gmra.mrb[48].mxu1 %v10548_v11  ;;  %v10537_v42 = vunpack.c.l.b16 %v10450_v36  ;;  %v18639_v11 = vld [vmem:[#allocation65_spill] sm:$0xff]  ;;  %s11105_s27 = sshll.u32 %s646_s19, 4  ;;  %s17937_s27 = int_to_ptr.vmem [resolvable:$true] %s11105_s27 }
 0x6a3   : > { %12197 = vmatpush3.bf16.msra.mxu1 %v14054_v30  ;;  %10820 = vmatprep.mubr.bf16.mxu1 %v10551_v12  ;;  %v10454_v14 = vpack.c.bf16 %v17887_v46, %v17887_v46  ;;  %v10843_v30 = vrot.slane %v10838_v56, %v18639_v11  ;;  %s14335_s2 = scalar_lea.vmem %s17937_s27, 128  ;;  %p14342_p1 = scmp.lt.s32.totalorder %s17937_s27, %s14340_s0 }
 0x6a4   : > { %12198 = vmatprep.subr.bf16.mxu1 %v14055_v1  ;;  %v18640_v1 = vld [vmem:[#allocation72_spill] sm:$0xff]  ;;  %p14336_p0 = scmp.ne.s32.totalorder %s17937_s27, %s14335_s2  ;;  %p14343_p4 = scmp.lt.s32.totalorder %s14341_s22, %s14335_s2 }
 0x6a5   : > { %v10541_v22 = vunpack.c.l.b16 %v10454_v14  ;;  %v10847_v47 = vrot.slane %v10838_v56, %v18640_v1 }
 0x6a6   : > { %p14337_p2 = pnand %p14336_p0, %p18645_p13  ;;  %p14344_p6 = por %p14343_p4, %p14342_p1 }
 0x6a7   : > { %12199 = vmatpush3.bf16.msra.mxu1 %v14056_v54  ;;  %v10546_v34 = vsel %vm10543_vm2, %v10541_v22, %v10537_v42 }
 0x6a8   : > { %12200 = vmatprep.subr.bf16.mxu1 %v14057_v0  ;;  %v10550_v29 = vpack.c.b16 %v10546_v34, %v10546_v34  ;;  %p14338_p7 = pneg %p14337_p2 }
 0x6aa   : > { %p14345_p3 = pnand %p14344_p6, %p14338_p7 }
 0x6ab   : > { %12201 = vmatpush3.bf16.msra.mxu1 %v14058_v10 }
 0x6ac   : > { %12202 = vmatprep.subr.bf16.mxu1 %v14059_v44 }
 0x6af   : > { %12203 = vmatpush3.bf16.msra.mxu1 %v14060_v24  ;;  %v10851_v24 = vrot.slane %v10838_v56, %v18642_v7 }
 0x6b0   : > { %12204 = vmatprep.subr.bf16.mxu1 %v14061_v19  ;;  %v18643_v19 = vsub.s32 3, %v18641_v59 }
 0x6b2   : > { %v10855_v17 = vrot.slane %v10838_v56, %v18643_v19 }
 0x6b3   : > { %12205 = vmatpush3.bf16.msra.mxu1 %v14062_v48 }
 0x6b4   : > { %12206 = vmatprep.subr.bf16.mxu1 %v14063_v57 }
 0x6b7   : > { %12207 = vmatpush3.bf16.msra.mxu1 %v14064_v3 }
 0x6b8   : > { %12208 = vmatprep.subr.bf16.mxu1 %v14065_v25 }
 0x6bb   : > { %12209 = vmatpush3.bf16.msra.mxu1 %v14066_v32 }
 0x6bc   : > { %12210 = vmatprep.subr.bf16.mxu1 %v14067_v13 }
 0x6bf   : > { %12211 = vmatpush3.bf16.msra.mxu1 %v14068_v37 }
 0x6c0   : > { %10904 = vmatprep.subr.bf16.mxu1 %v14071_v31 }
 0x6c2   : > { %10821 = vmatmul.mubr.bf16.vlgmr.msra.gmra.mrb[52].mxu1 %v10550_v29 }
 0x6c3   : > { %10936 = vmatprep.mubr.bf16.mxu1 %v18638_v40  ;;  %10905 = vmatpush1.bf16.msra.mxu1 %v14069_v16 }
 0x6c4   : > { %10906 = vmatprep.subr.bf16.mxu1 %v14074_v18 }
 0x6c7   : > { %10907 = vmatpush1.bf16.msra.mxu1 %v14072_v38 }
 0x6c8   : > { %10945 = vmatprep.subr.bf16.mxu1 %v14077_v55 }
 0x775   : > { %v12190_v62 = vpop.f32.mrb[48].mxu1 }
 0x776   : > { %v12191_v50 = vpop.f32.mrb[49].mxu1 }
 0x777   : > { %v12192_v15 = vadd.f32 %v12191_v50, %v12190_v62  ;;  %v12193_v58 = vpop.f32.mrb[50].mxu1 }
 0x778   : > { %v12194_v21 = vpop.f32.mrb[51].mxu1 }
 0x779   : > { %v10783_v26 = vadd.f32 %v12192_v15, %v12115_v39  ;;  %v14457_v15 = vmov 1983009808  }
 0x77a   : > { %v11045_v58 = vunpack.c.l.s4 %v14457_v15 }
 0x795   : > { %v12212_v5 = vpop.f32.mrb[52].mxu1 }
 0x796   : > { %v12213_v49 = vpop.f32.mrb[53].mxu1 }
 0x797   : > { %v12214_v35 = vadd.f32 %v12213_v49, %v12212_v5  ;;  %v12215_v41 = vpop.f32.mrb[54].mxu1  ;;  %v11046_v49 = vunpack.c.0.s8 %v11045_v58 }
 0x798   : > { %v12216_v27 = vpop.f32.mrb[55].mxu1 }
 0x799   : > { %v10823_v60 = vadd.f32 %v12214_v35, %v10783_v26 }
 0x79b   : > { %v10828_v23 = vmax.f32 %v10823_v60, 0.0 }
 0x79d   : > { %v10829_v45 = vpack.c.bf16 %v10828_v23, %v10828_v23 }
 0x79f   : > { %12156 = vmatmul.mubr.msk.bf16.vlgmr.msra.gmra.mrb[56].mxu1 %vm10900_vm3, %v10829_v45 }
 0x7a0   : > { %10946 = vmatpush1.bf16.msra.mxu1 %v14075_v8  ;;  %10977 = vmatprep.mubr.bf16.mxu1 %v18638_v40 }
 0x7a1   : > { %10947 = vmatprep.subr.bf16.mxu1 %v14080_v28 }
 0x7a4   : > { %10948 = vmatpush1.bf16.msra.mxu1 %v14078_v4 }
 0x7a7   : > { %12157 = vmatmul.mubr.msk.bf16.vlgmr.msra.gmra.mrb[60].mxu1 %vm10900_vm3, %v10829_v45 }
 0x872   : > { %v10938_v12 = vpop.f32.mrb[56].mxu1 }
 0x873   : > { %v10939_v63 = vadd.f32 %v10938_v12, %v10843_v30  ;;  %v10940_v54 = vpop.f32.mrb[57].mxu1 }
 0x874   : > { %v10941_v0 = vadd.f32 %v10940_v54, %v10847_v47  ;;  %v10942_v52 = vpop.f32.mrb[58].mxu1 }
 0x875   : > { %v12158_v9 = vmul.f32 -1.442695, %v10939_v63  ;;  %v10943_v10 = vpop.f32.mrb[59].mxu1 }
 0x876   : > { %v12159_v44 = vmul.f32 -1.442695, %v10941_v0 }
 0x877   : > { %14081 = vpow2.f32 %v12158_v9 }
 0x878   : > { %14083 = vpow2.f32 %v12159_v44 }
 0x87a   : > { %v10979_v51 = vpop.f32.mrb[60].mxu1 }
 0x87b   : > { %v10980_v48 = vadd.f32 %v10979_v51, %v10851_v24  ;;  %v10981_v57 = vpop.f32.mrb[61].mxu1 }
 0x87c   : > { %v10982_v3 = vadd.f32 %v10981_v57, %v10855_v17  ;;  %v10983_v25 = vpop.f32.mrb[62].mxu1 }
 0x87d   : > { %v12160_v14 = vmul.f32 -1.442695, %v10980_v48  ;;  %v10984_v32 = vpop.f32.mrb[63].mxu1 }
 0x87e   : > { %v12161_v36 = vmul.f32 -1.442695, %v10982_v3 }
 0x87f   : > { %14085 = vpow2.f32 %v12160_v14 }
 0x880   : > { %14087 = vpow2.f32 %v12161_v36 }
 0x881   : > { %v14082_v13 = vpop.eup %14081 }
 0x882   : > { %v14084_v22 = vpop.eup %14083  ;;  %v10998_v37 = vadd.f32 1.0, %v14082_v13 }
 0x883   : > { %v10999_v42 = vadd.f32 1.0, %v14084_v22 }
 0x884   : > { %14089 = vrcp.f32 %v10998_v37 }
 0x885   : > { %14091 = vrcp.f32 %v10999_v42 }
 0x889   : > { %v14086_v34 = vpop.eup %14085 }
 0x88a   : > { %v14088_v29 = vpop.eup %14087  ;;  %v11000_v40 = vadd.f32 1.0, %v14086_v34 }
 0x88b   : > { %v11001_v16 = vadd.f32 1.0, %v14088_v29 }
 0x88c   : > { %14093 = vrcp.f32 %v11000_v40 }
 0x88d   : > { %14095 = vrcp.f32 %v11001_v16 }
 0x88e   : > { %v14090_v31 = vpop.eup %14089 }
 0x88f   : > { %v14092_v18 = vpop.eup %14091  ;;  %v11014_v38 = vrot.slane %v14090_v31, 1  ;;  %v11026_v55 = vmul.f32 %v14090_v31, %v17850_v2  ;;  %v11049_v2 = vsub.s32 %v11046_v49, %v18641_v59 }
 0x890   : > { %v11015_v62 = vrot.slane %v14092_v18, 1  ;;  %v11027_v50 = vmul.f32 %v14092_v18, %v17852_v6 }
 0x891   : > { %v11030_v21 = vmul.f32 %v11014_v38, %v17860_v43 }
 0x892   : > { %v11031_v39 = vmul.f32 %v11015_v62, %v17862_v20  ;;  %v11042_v5 = vcombine.low %v11026_v55, %v11027_v50 }
 0x894   : > { %v11059_v26 = vcombine.low %v11030_v21, %v11031_v39  ;;  %v11050_v45 = vrot.slane %v11042_v5, %v11049_v2 }
 0x896   : > { %v14094_v35 = vpop.eup %14093  ;;  %v11067_v11 = vrot.slane %v11059_v26, %v11049_v2 }
 0x897   : > { %v14096_v41 = vpop.eup %14095  ;;  %v11016_v27 = vrot.slane %v14094_v35, 1  ;;  %v11028_v60 = vmul.f32 %v14094_v35, %v17889_v53 }
 0x898   : > { %v11017_v23 = vrot.slane %v14096_v41, 1  ;;  %v11029_v6 = vmul.f32 %v14096_v41, %v17854_v33 }
 0x899   : > { %v11032_v8 = vmul.f32 %v11016_v27, %v17887_v46 }
 0x89a   : > { %v11033_v43 = vmul.f32 %v11017_v23, %v17864_v61  ;;  %v11043_v20 = vcombine.low %v11028_v60, %v11029_v6 }
 0x89c   : > { %v11057_v28 = vrot.slane %v11043_v20, %v11049_v2  ;;  %v11060_v4 = vcombine.low %v11032_v8, %v11033_v43 }
 0x89e   : > { %v11058_v56 = vcombine.low %v11050_v45, %v11057_v28  ;;  %v11074_v30 = vrot.slane %v11060_v4, %v11049_v2 }
 0x8a0   : > { %v11075_v53 = vcombine.low %v11067_v11, %v11074_v30 }
 0x8a2   : > { %v11080_v1 = vrot.slane %v11075_v53, 7 }
 0x8a4   : > { %v11081_v33 = vsel %vm10543_vm2, %v11080_v1, %v11058_v56 }
 0x8a5   : > { %v11083_v61 = vsel %vm11082_vm4, %v11080_v1, %v11081_v33 }
 0x8a6   : > { %v11085_v46 = vsel %vm11084_vm5, %v11080_v1, %v11083_v61 }
 0x8a7   : > { %v11087_v47 = vsel %vm11086_vm6, %v11080_v1, %v11085_v46 }
 0x8a8   : > { %11089 = vst [vmem:[%s646_s19] sm:$0xff] %v11087_v47 }
 0x8a9   : > { %14348 = shalt.err (!%p14345_p3)
}
 0x8aa   : > { %s14349_s25 = scalar_lea.hbm %s17935_s26, 128  ;;  %s14353_s23 = scalar_lea.hbm %s18644_s20, 256 }
 0x8ab   : > { %p14350_p12 = scmp.ne.s32.totalorder %s17935_s26, %s14349_s25  ;;  %p14354_p11 = scmp.lt.u32.totalorder %s17935_s26, %s18644_s20 }
 0x8ac   : > { %p14355_p8 = scmp.lt.u32.totalorder %s14353_s23, %s14349_s25  ;;  %p14357_p0 = scmp.lt.u32.totalorder %s14349_s25, %s17935_s26 }
 0x8ad   : > { %p14351_p10 = pnand %p14350_p12, %p18645_p13 }
 0x8ae   : > { %p14356_p5 = por %p14355_p8, %p14354_p11 }
 0x8af   : > { %p14352_p9 = pneg %p14351_p10 }
 0x8b0   : > { %p14358_p2 = por %p14357_p0, %p14356_p5 }
 0x8b2   : > { %p14359_p7 = pnand %p14358_p2, %p14352_p9 }
 0x8b4   : > { %14362 = shalt.err (!%p14359_p7)
}
 0x8b5   : > { %12911 = dma.vmem_to_hbm [thread:$0]  (%p18645_p13), %s17937_s27, 128, %s17935_s26, %s11091_s28  }
 0x8b6 PF: > { %s11117_s10 = sand.u32 1, %s14413_s13   ;;  %p18646_p1 = scmp.ne.s32.totalorder %s18189_s21, 0 }
 0x8b7   : > { %p18647_p4 = scmp.ge.s32.totalorder %s14433_s18, 2  ;;  %s11118_s7 = scalar_lea.sflag [#allocation6], %s11117_s10 }
 0x8b9   : > { %p12940_p6 = pnand %p18647_p4, %p18646_p1 }
 0x8bb   : > { %14408 = dma.done.wait (!%p12940_p6), %s11118_s7, 128  }
 0x8bc   : > { %14410 = vsyncadd (!%p12940_p6), %s11118_s7, 4294967168  ;;  %s36_s18 = sadd.s32 1, %s14433_s18   ;;  %s18648_s6 = sld [smem:[#allocation25_spill]] }
 0x8bd   : > { %p33_p3 = scmp.ge.s32.totalorder %s36_s18, 4   ;;  %s18649_s15 = sld [smem:[#allocation28_spill]] }
 0x8be   : > { %s18650_s29 = sld [smem:[#allocation27_spill]]  ;;  %s18651_s13 = smov %s14417_s14 }
 0x8bf   : > { %s18653_s16 = smov %s14429_s17  ;;  %35 = sbr.rel (!%p33_p3) target bundleno = 21 (0x15), region = 193 }
 0x8c2   : > { %s18652_s14 = smov %s18648_s6 }
 0x8c4   : > { %s18654_s17 = smov %s18650_s29 }
 0x8c6   :  { %11123 = vsyncpa [#allocation5], 1 }
 0x8c7   :  { %11125 = vsyncpa [#allocation5 + $0x1], 1 }
 0x8c8   :  { %11126 = vsyncpa [#allocation8], 1 }
 0x8c9   :  { %11128 = vsyncpa [#allocation8 + $0x1], 1 }
 0x8ca   :  { %11129 = vsyncpa [#allocation11], 1 }
 0x8cb   :  { %11131 = vsyncpa [#allocation11 + $0x1], 1 }
 0x8cc   :  { %11132 = vsyncpa [#allocation14], 1 }
 0x8cd   :  { %11134 = vsyncpa [#allocation14 + $0x1], 1 }
 0x8ce   :  { %11135 = vsyncpa [#allocation17], 1 }
 0x8cf   :  { %11137 = vsyncpa [#allocation17 + $0x1], 1 }
 0x8d0   :  { %11138 = vsyncpa [#allocation6], 1 }
 0x8d1   :  { %11140 = vsyncpa [#allocation6 + $0x1], 1 }

</bundles_post_ra>
